<compile_context>
chip_gen: v6e
topology: v6e:2x2x1
jax: 0.10.0
libtpu: 0.0.40
codegen_flags: <defaults>
</compile_context>

<pallas_src>
import jax
import jax.numpy as jnp
from jax import lax
from jax.experimental import pallas as pl
from jax.experimental.pallas import tpu as pltpu

_LN_EPS = 1e-5            # torch.nn.LayerNorm default eps
_INV_SQRT2 = 0.7071067811865476


def _erf(z):
    # Abramowitz & Stegun 7.1.26 polynomial erf, |abs err| <= 1.5e-7.
    # exp + reciprocal land on the EUP slot (free next to the VALU-heavy conv).
    sign = jnp.where(z < 0.0, -1.0, 1.0)
    az = jnp.abs(z)
    t = pl.reciprocal(1.0 + 0.3275911 * az, approx=False)
    poly = ((((1.061405429 * t - 1.453152027) * t + 1.421413741) * t
             - 0.284496736) * t + 0.254829592) * t
    return sign * (1.0 - poly * jnp.exp(-az * az))


def _gelu_exact(v):
    # Matches torch.nn.functional.gelu default (erf-based) semantics.
    return 0.5 * v * (1.0 + _erf(v * _INV_SQRT2))


def _layer_norm_gelu(vc, g, b):
    # vc: (1, F, T).  LayerNorm over n_feats (axis=1, sublane axis), then GELU.
    mean = jnp.mean(vc, axis=1, keepdims=True)
    cen = vc - mean
    var = jnp.mean(cen * cen, axis=1, keepdims=True)
    vhat = cen * lax.rsqrt(var + _LN_EPS)
    return _gelu_exact(vhat * g + b)


def _shift(v, d, axis):
    """shifted[..., i, ...] = v[..., i + d, ...]; zero where i + d is out of range.

    Register-level shift (static slice + concat with zeros): no padded VMEM
    scratch, no full-buffer zero fill, no unaligned VMEM stores.
    """
    if d == 0:
        return v
    size = v.shape[axis]
    zshape = list(v.shape)
    zshape[axis] = abs(d)
    zeros = jnp.zeros(zshape, v.dtype)
    if d > 0:
        body = lax.slice_in_dim(v, d, size, axis=axis)
        return jnp.concatenate([body, zeros], axis=axis)
    body = lax.slice_in_dim(v, 0, size + d, axis=axis)
    return jnp.concatenate([zeros, body], axis=axis)


def _conv3x3(h_ch, w_ref, b_ref, C, F_, T):
    """3x3 conv, stride 1, padding 1, on a list of per-channel (1, F, T) values.

    Returns a list of per-channel (1, F, T) outputs (no VMEM staging).
    Weight layout in w_ref (SMEM, flat): torch (Cout, Cin, KF, KT) row-major.
    """
    # Hoist all Cout*Cin*9 SMEM scalar reads out of the tap loops.
    w = [[[[w_ref[((co * C + ci) * 3 + kf) * 3 + kt] for kt in range(3)]
           for kf in range(3)]
          for ci in range(C)]
         for co in range(C)]
    accs = [jnp.full((1, F_, T), b_ref[co], dtype=jnp.float32) for co in range(C)]
    # C=4: fully unrolled VPU FMAs (MXU would be >95% idle at this width).
    # TODO(synk): for C >= ~32 switch to an im2col matmul (K=9*Cin, N=Cout) on the MXU.
    for ci in range(C):
        for kf in range(3):
            hf = _shift(h_ch[ci], kf - 1, axis=1)       # n_feats offset (sublanes)
            for kt in range(3):
                tap = _shift(hf, kt - 1, axis=2)        # time offset (lanes)
                for co in range(C):
                    accs[co] = accs[co] + w[co][ci][kf][kt] * tap
    return accs


def _residual_cnn_kernel(x_ref, g1_ref, be1_ref, g2_ref, be2_ref,
                         w1_ref, b1_ref, w2_ref, b2_ref, o_ref):
    # x_ref block: (1, C, F, T) = (batch row, channels, n_feats, time)
    _, C, F_, T = x_ref.shape

    g1 = g1_ref[...].reshape(1, F_, 1)
    b1 = be1_ref[...].reshape(1, F_, 1)
    g2 = g2_ref[...].reshape(1, F_, 1)
    b2 = be2_ref[...].reshape(1, F_, 1)

    x = x_ref[...]
    x_ch = [x[:, c, :, :] for c in range(C)]            # each (1, F, T)

    h = [_layer_norm_gelu(xc, g1, b1) for xc in x_ch]
    # dropout1: identity at inference time
    h = _conv3x3(h, w1_ref, b1_ref, C, F_, T)
    h = [_layer_norm_gelu(hc, g2, b2) for hc in h]
    # dropout2: identity at inference time
    h = _conv3x3(h, w2_ref, b2_ref, C, F_, T)

    for c in range(C):
        o_ref[:, c, :, :] = h[c] + x_ch[c]              # residual add


@jax.jit
def residual_cnn_forward(x_ncft, params):
    """x_ncft: (N, C, n_feats, time) float32 — same layout as the PyTorch module."""
    N, C, F_, T = x_ncft.shape
    x = x_ncft.astype(jnp.float32)

    blk = pl.BlockSpec((1, C, F_, T), lambda n: (n, 0, 0, 0))
    vmem_full = pl.BlockSpec(memory_space=pltpu.MemorySpace.VMEM)
    smem_full = pl.BlockSpec(memory_space=pltpu.MemorySpace.SMEM)

    # TODO(synk): for production lengths (T ~ 1000+), additionally tile T with a
    # 1-column halo per tile and re-derive tile sizes per chip (v7x: 64 MiB VMEM).
    out = pl.pallas_call(
        _residual_cnn_kernel,
        out_shape=jax.ShapeDtypeStruct((N, C, F_, T), jnp.float32),
        grid=(N,),
        in_specs=[blk,                                   # x (tiled over batch)
                  vmem_full, vmem_full, vmem_full, vmem_full,   # ln1/ln2 gamma, beta
                  smem_full, smem_full, smem_full, smem_full],  # conv1/conv2 w, b
        out_specs=blk,
        compiler_params=pltpu.CompilerParams(
            dimension_semantics=("parallel",)),
    )(
        x,
        params["ln1_gamma"].reshape(F_, 1).astype(jnp.float32),
        params["ln1_beta"].reshape(F_, 1).astype(jnp.float32),
        params["ln2_gamma"].reshape(F_, 1).astype(jnp.float32),
        params["ln2_beta"].reshape(F_, 1).astype(jnp.float32),
        params["w1"].reshape(-1).astype(jnp.float32),    # (Cout*Cin*3*3,)
        params["b1"].astype(jnp.float32),
        params["w2"].reshape(-1).astype(jnp.float32),
        params["b2"].astype(jnp.float32),
    )
    return out


@jax.jit
def _reference_forward(x, params):
    """Pure-JAX reference matching the PyTorch module (eval mode)."""
    def cnn_layer_norm(v, g, b):
        mean = jnp.mean(v, axis=2, keepdims=True)
        var = jnp.mean((v - mean) ** 2, axis=2, keepdims=True)
        vhat = (v - mean) / jnp.sqrt(var + _LN_EPS)
        return vhat * g.reshape(1, 1, -1, 1) + b.reshape(1, 1, -1, 1)

    def conv(v, w, b):
        out = lax.conv_general_dilated(
            v, w, window_strides=(1, 1), padding=((1, 1), (1, 1)),
            dimension_numbers=("NCHW", "OIHW", "NCHW"))
        return out + b.reshape(1, -1, 1, 1)

    h = jax.nn.gelu(cnn_layer_norm(x, params["ln1_gamma"], params["ln1_beta"]),
                    approximate=False)
    h = conv(h, params["w1"], params["b1"])
    h = jax.nn.gelu(cnn_layer_norm(h, params["ln2_gamma"], params["ln2_beta"]),
                    approximate=False)
    h = conv(h, params["w2"], params["b2"])
    return h + x


if __name__ == "__main__":
    # ResidualCNN(in_channels=4, out_channels=4, kernel=3, stride=1,
    #             dropout=0.1, n_feats=16), input (batch=2, C=4, n_feats=16, time=16)
    N, C, F_, T = 2, 4, 16, 16
    key = jax.random.PRNGKey(0)
    k_x, k_w1, k_b1, k_w2, k_b2 = jax.random.split(key, 5)

    x = jax.random.normal(k_x, (N, C, F_, T), jnp.float32)

    fan_in = C * 3 * 3
    bound = 1.0 / (fan_in ** 0.5)   # PyTorch Conv2d default init range
    params = {
        "w1": jax.random.uniform(k_w1, (C, C, 3, 3), jnp.float32, -bound, bound),
        "b1": jax.random.uniform(k_b1, (C,), jnp.float32, -bound, bound),
        "w2": jax.random.uniform(k_w2, (C, C, 3, 3), jnp.float32, -bound, bound),
        "b2": jax.random.uniform(k_b2, (C,), jnp.float32, -bound, bound),
        "ln1_gamma": jnp.ones((F_,), jnp.float32),
        "ln1_beta": jnp.zeros((F_,), jnp.float32),
        "ln2_gamma": jnp.ones((F_,), jnp.float32),
        "ln2_beta": jnp.zeros((F_,), jnp.float32),
    }

    y = residual_cnn_forward(x, params)
    jax.block_until_ready(y)
    assert y.shape == (N, C, F_, T) and y.dtype == jnp.float32
    assert bool(jnp.all(jnp.isfinite(y)))

    y_ref = _reference_forward(x, params)
    max_err = float(jnp.max(jnp.abs(y - y_ref)))
    # Only expected deviation is the A&S erf polynomial (~1.5e-7) vs exact erf GELU.
    assert max_err < 5e-4, f"max abs err vs reference: {max_err}"

    print("KERNEL_OK")
</pallas_src>

<mosaic_0001>
module attributes {stable_mosaic.version = 11 : i64} {
  func.func @_residual_cnn_kernel(%arg0: i32, %arg1: memref<1x4x16x16xf32, #tpu.memory_space<vmem>>, %arg2: memref<16x1xf32, #tpu.memory_space<vmem>>, %arg3: memref<16x1xf32, #tpu.memory_space<vmem>>, %arg4: memref<16x1xf32, #tpu.memory_space<vmem>>, %arg5: memref<16x1xf32, #tpu.memory_space<vmem>>, %arg6: memref<144xf32, #tpu.memory_space<smem>>, %arg7: memref<4xf32, #tpu.memory_space<smem>>, %arg8: memref<144xf32, #tpu.memory_space<smem>>, %arg9: memref<4xf32, #tpu.memory_space<smem>>, %arg10: memref<1x4x16x16xf32, #tpu.memory_space<vmem>>) attributes {dimension_semantics = [#tpu.dimension_semantics<parallel>], iteration_bounds = array<i64: 2>, scalar_prefetch = 0 : i64, scratch_operands = 0 : i64, tpu.core_type = #tpu.core_type<tc>, window_params = [{transform_indices = @transform_0, window_bounds = array<i64: 1, 4, 16, 16>}, {pipeline_mode = #tpu.pipeline_mode<synchronous>, transform_indices = @transform_1, window_bounds = array<i64: 16, 1>}, {pipeline_mode = #tpu.pipeline_mode<synchronous>, transform_indices = @transform_2, window_bounds = array<i64: 16, 1>}, {pipeline_mode = #tpu.pipeline_mode<synchronous>, transform_indices = @transform_3, window_bounds = array<i64: 16, 1>}, {pipeline_mode = #tpu.pipeline_mode<synchronous>, transform_indices = @transform_4, window_bounds = array<i64: 16, 1>}, {transform_indices = @transform_5, window_bounds = array<i64: 144>}, {transform_indices = @transform_6, window_bounds = array<i64: 4>}, {transform_indices = @transform_7, window_bounds = array<i64: 144>}, {transform_indices = @transform_8, window_bounds = array<i64: 4>}, {transform_indices = @transform_9, window_bounds = array<i64: 1, 4, 16, 16>}]} {
    %c0 = arith.constant 0 : index
    %c0_0 = arith.constant 0 : index
    %0 = vector.load %arg2[%c0, %c0_0] : memref<16x1xf32, #tpu.memory_space<vmem>>, vector<16x1xf32>
    %1 = vector.shape_cast %0 : vector<16x1xf32> to vector<1x16x1xf32>
    %c0_1 = arith.constant 0 : index
    %c0_2 = arith.constant 0 : index
    %2 = vector.load %arg3[%c0_1, %c0_2] : memref<16x1xf32, #tpu.memory_space<vmem>>, vector<16x1xf32>
    %3 = vector.shape_cast %2 : vector<16x1xf32> to vector<1x16x1xf32>
    %c0_3 = arith.constant 0 : index
    %c0_4 = arith.constant 0 : index
    %4 = vector.load %arg4[%c0_3, %c0_4] : memref<16x1xf32, #tpu.memory_space<vmem>>, vector<16x1xf32>
    %5 = vector.shape_cast %4 : vector<16x1xf32> to vector<1x16x1xf32>
    %c0_5 = arith.constant 0 : index
    %c0_6 = arith.constant 0 : index
    %6 = vector.load %arg5[%c0_5, %c0_6] : memref<16x1xf32, #tpu.memory_space<vmem>>, vector<16x1xf32>
    %7 = vector.shape_cast %6 : vector<16x1xf32> to vector<1x16x1xf32>
    %c0_7 = arith.constant 0 : index
    %c0_8 = arith.constant 0 : index
    %c0_9 = arith.constant 0 : index
    %c0_10 = arith.constant 0 : index
    %8 = vector.load %arg1[%c0_7, %c0_8, %c0_9, %c0_10] : memref<1x4x16x16xf32, #tpu.memory_space<vmem>>, vector<1x4x16x16xf32>
    %9 = vector.extract_strided_slice %8 {offsets = [0, 0, 0, 0], sizes = [1, 1, 16, 16], strides = [1, 1, 1, 1]} : vector<1x4x16x16xf32> to vector<1x1x16x16xf32>
    %10 = vector.shape_cast %9 : vector<1x1x16x16xf32> to vector<1x16x16xf32>
    %11 = vector.extract_strided_slice %8 {offsets = [0, 1, 0, 0], sizes = [1, 1, 16, 16], strides = [1, 1, 1, 1]} : vector<1x4x16x16xf32> to vector<1x1x16x16xf32>
    %12 = vector.shape_cast %11 : vector<1x1x16x16xf32> to vector<1x16x16xf32>
    %13 = vector.extract_strided_slice %8 {offsets = [0, 2, 0, 0], sizes = [1, 1, 16, 16], strides = [1, 1, 1, 1]} : vector<1x4x16x16xf32> to vector<1x1x16x16xf32>
    %14 = vector.shape_cast %13 : vector<1x1x16x16xf32> to vector<1x16x16xf32>
    %15 = vector.extract_strided_slice %8 {offsets = [0, 3, 0, 0], sizes = [1, 1, 16, 16], strides = [1, 1, 1, 1]} : vector<1x4x16x16xf32> to vector<1x1x16x16xf32>
    %16 = vector.shape_cast %15 : vector<1x1x16x16xf32> to vector<1x16x16xf32>
    %cst = arith.constant dense<0.000000e+00> : vector<1x16xf32>
    %17 = vector.multi_reduction <add>, %10, %cst [1] : vector<1x16x16xf32> to vector<1x16xf32>
    %18 = vector.shape_cast %17 : vector<1x16xf32> to vector<1x1x16xf32>
    %cst_11 = arith.constant 1.600000e+01 : f32
    %19 = vector.broadcast %cst_11 : f32 to vector<1x1x16xf32>
    %20 = arith.divf %18, %19 : vector<1x1x16xf32>
    %21 = vector.broadcast %20 : vector<1x1x16xf32> to vector<1x16x16xf32>
    %22 = arith.subf %10, %21 : vector<1x16x16xf32>
    %23 = arith.mulf %22, %22 : vector<1x16x16xf32>
    %cst_12 = arith.constant dense<0.000000e+00> : vector<1x16xf32>
    %24 = vector.multi_reduction <add>, %23, %cst_12 [1] : vector<1x16x16xf32> to vector<1x16xf32>
    %25 = vector.shape_cast %24 : vector<1x16xf32> to vector<1x1x16xf32>
    %cst_13 = arith.constant 1.600000e+01 : f32
    %26 = vector.broadcast %cst_13 : f32 to vector<1x1x16xf32>
    %27 = arith.divf %25, %26 : vector<1x1x16xf32>
    %cst_14 = arith.constant 9.99999974E-6 : f32
    %28 = vector.broadcast %cst_14 : f32 to vector<1x1x16xf32>
    %29 = arith.addf %27, %28 : vector<1x1x16xf32>
    %30 = math.rsqrt %29 : vector<1x1x16xf32>
    %31 = vector.broadcast %30 : vector<1x1x16xf32> to vector<1x16x16xf32>
    %32 = arith.mulf %22, %31 : vector<1x16x16xf32>
    %33 = vector.broadcast %1 : vector<1x16x1xf32> to vector<1x16x16xf32>
    %34 = arith.mulf %32, %33 : vector<1x16x16xf32>
    %35 = vector.broadcast %3 : vector<1x16x1xf32> to vector<1x16x16xf32>
    %36 = arith.addf %34, %35 : vector<1x16x16xf32>
    %cst_15 = arith.constant 5.000000e-01 : f32
    %37 = vector.broadcast %cst_15 : f32 to vector<1x16x16xf32>
    %38 = arith.mulf %37, %36 : vector<1x16x16xf32>
    %cst_16 = arith.constant 0.707106769 : f32
    %39 = vector.broadcast %cst_16 : f32 to vector<1x16x16xf32>
    %40 = arith.mulf %36, %39 : vector<1x16x16xf32>
    %cst_17 = arith.constant 0.000000e+00 : f32
    %41 = vector.broadcast %cst_17 : f32 to vector<1x16x16xf32>
    %42 = arith.cmpf olt, %40, %41 : vector<1x16x16xf32>
    %cst_18 = arith.constant -1.000000e+00 : f32
    %cst_19 = arith.constant 1.000000e+00 : f32
    %43 = vector.broadcast %cst_18 : f32 to vector<1x16x16xf32>
    %44 = vector.broadcast %cst_19 : f32 to vector<1x16x16xf32>
    %45 = arith.select %42, %43, %44 : vector<1x16x16xi1>, vector<1x16x16xf32>
    %46 = math.absf %40 : vector<1x16x16xf32>
    %cst_20 = arith.constant 0.327591091 : f32
    %47 = vector.broadcast %cst_20 : f32 to vector<1x16x16xf32>
    %48 = arith.mulf %47, %46 : vector<1x16x16xf32>
    %cst_21 = arith.constant 1.000000e+00 : f32
    %49 = vector.broadcast %cst_21 : f32 to vector<1x16x16xf32>
    %50 = arith.addf %49, %48 : vector<1x16x16xf32>
    %51 = tpu.reciprocal %50 : vector<1x16x16xf32> -> vector<1x16x16xf32>
    %cst_22 = arith.constant 1.06140542 : f32
    %52 = vector.broadcast %cst_22 : f32 to vector<1x16x16xf32>
    %53 = arith.mulf %52, %51 : vector<1x16x16xf32>
    %cst_23 = arith.constant 1.45315206 : f32
    %54 = vector.broadcast %cst_23 : f32 to vector<1x16x16xf32>
    %55 = arith.subf %53, %54 : vector<1x16x16xf32>
    %56 = arith.mulf %55, %51 : vector<1x16x16xf32>
    %cst_24 = arith.constant 1.42141378 : f32
    %57 = vector.broadcast %cst_24 : f32 to vector<1x16x16xf32>
    %58 = arith.addf %56, %57 : vector<1x16x16xf32>
    %59 = arith.mulf %58, %51 : vector<1x16x16xf32>
    %cst_25 = arith.constant 0.284496725 : f32
    %60 = vector.broadcast %cst_25 : f32 to vector<1x16x16xf32>
    %61 = arith.subf %59, %60 : vector<1x16x16xf32>
    %62 = arith.mulf %61, %51 : vector<1x16x16xf32>
    %cst_26 = arith.constant 0.254829586 : f32
    %63 = vector.broadcast %cst_26 : f32 to vector<1x16x16xf32>
    %64 = arith.addf %62, %63 : vector<1x16x16xf32>
    %65 = arith.mulf %64, %51 : vector<1x16x16xf32>
    %cst_27 = arith.constant 0.000000e+00 : f32
    %66 = vector.broadcast %cst_27 : f32 to vector<1x16x16xf32>
    %67 = arith.subf %66, %46 : vector<1x16x16xf32>
    %68 = arith.mulf %67, %46 : vector<1x16x16xf32>
    %69 = math.exp %68 : vector<1x16x16xf32>
    %70 = arith.mulf %65, %69 : vector<1x16x16xf32>
    %cst_28 = arith.constant 1.000000e+00 : f32
    %71 = vector.broadcast %cst_28 : f32 to vector<1x16x16xf32>
    %72 = arith.subf %71, %70 : vector<1x16x16xf32>
    %73 = arith.mulf %45, %72 : vector<1x16x16xf32>
    %cst_29 = arith.constant 1.000000e+00 : f32
    %74 = vector.broadcast %cst_29 : f32 to vector<1x16x16xf32>
    %75 = arith.addf %74, %73 : vector<1x16x16xf32>
    %76 = arith.mulf %38, %75 : vector<1x16x16xf32>
    %cst_30 = arith.constant dense<0.000000e+00> : vector<1x16xf32>
    %77 = vector.multi_reduction <add>, %12, %cst_30 [1] : vector<1x16x16xf32> to vector<1x16xf32>
    %78 = vector.shape_cast %77 : vector<1x16xf32> to vector<1x1x16xf32>
    %cst_31 = arith.constant 1.600000e+01 : f32
    %79 = vector.broadcast %cst_31 : f32 to vector<1x1x16xf32>
    %80 = arith.divf %78, %79 : vector<1x1x16xf32>
    %81 = vector.broadcast %80 : vector<1x1x16xf32> to vector<1x16x16xf32>
    %82 = arith.subf %12, %81 : vector<1x16x16xf32>
    %83 = arith.mulf %82, %82 : vector<1x16x16xf32>
    %cst_32 = arith.constant dense<0.000000e+00> : vector<1x16xf32>
    %84 = vector.multi_reduction <add>, %83, %cst_32 [1] : vector<1x16x16xf32> to vector<1x16xf32>
    %85 = vector.shape_cast %84 : vector<1x16xf32> to vector<1x1x16xf32>
    %cst_33 = arith.constant 1.600000e+01 : f32
    %86 = vector.broadcast %cst_33 : f32 to vector<1x1x16xf32>
    %87 = arith.divf %85, %86 : vector<1x1x16xf32>
    %cst_34 = arith.constant 9.99999974E-6 : f32
    %88 = vector.broadcast %cst_34 : f32 to vector<1x1x16xf32>
    %89 = arith.addf %87, %88 : vector<1x1x16xf32>
    %90 = math.rsqrt %89 : vector<1x1x16xf32>
    %91 = vector.broadcast %90 : vector<1x1x16xf32> to vector<1x16x16xf32>
    %92 = arith.mulf %82, %91 : vector<1x16x16xf32>
    %93 = vector.broadcast %1 : vector<1x16x1xf32> to vector<1x16x16xf32>
    %94 = arith.mulf %92, %93 : vector<1x16x16xf32>
    %95 = vector.broadcast %3 : vector<1x16x1xf32> to vector<1x16x16xf32>
    %96 = arith.addf %94, %95 : vector<1x16x16xf32>
    %cst_35 = arith.constant 5.000000e-01 : f32
    %97 = vector.broadcast %cst_35 : f32 to vector<1x16x16xf32>
    %98 = arith.mulf %97, %96 : vector<1x16x16xf32>
    %cst_36 = arith.constant 0.707106769 : f32
    %99 = vector.broadcast %cst_36 : f32 to vector<1x16x16xf32>
    %100 = arith.mulf %96, %99 : vector<1x16x16xf32>
    %cst_37 = arith.constant 0.000000e+00 : f32
    %101 = vector.broadcast %cst_37 : f32 to vector<1x16x16xf32>
    %102 = arith.cmpf olt, %100, %101 : vector<1x16x16xf32>
    %cst_38 = arith.constant -1.000000e+00 : f32
    %cst_39 = arith.constant 1.000000e+00 : f32
    %103 = vector.broadcast %cst_38 : f32 to vector<1x16x16xf32>
    %104 = vector.broadcast %cst_39 : f32 to vector<1x16x16xf32>
    %105 = arith.select %102, %103, %104 : vector<1x16x16xi1>, vector<1x16x16xf32>
    %106 = math.absf %100 : vector<1x16x16xf32>
    %cst_40 = arith.constant 0.327591091 : f32
    %107 = vector.broadcast %cst_40 : f32 to vector<1x16x16xf32>
    %108 = arith.mulf %107, %106 : vector<1x16x16xf32>
    %cst_41 = arith.constant 1.000000e+00 : f32
    %109 = vector.broadcast %cst_41 : f32 to vector<1x16x16xf32>
    %110 = arith.addf %109, %108 : vector<1x16x16xf32>
    %111 = tpu.reciprocal %110 : vector<1x16x16xf32> -> vector<1x16x16xf32>
    %cst_42 = arith.constant 1.06140542 : f32
    %112 = vector.broadcast %cst_42 : f32 to vector<1x16x16xf32>
    %113 = arith.mulf %112, %111 : vector<1x16x16xf32>
    %cst_43 = arith.constant 1.45315206 : f32
    %114 = vector.broadcast %cst_43 : f32 to vector<1x16x16xf32>
    %115 = arith.subf %113, %114 : vector<1x16x16xf32>
    %116 = arith.mulf %115, %111 : vector<1x16x16xf32>
    %cst_44 = arith.constant 1.42141378 : f32
    %117 = vector.broadcast %cst_44 : f32 to vector<1x16x16xf32>
    %118 = arith.addf %116, %117 : vector<1x16x16xf32>
    %119 = arith.mulf %118, %111 : vector<1x16x16xf32>
    %cst_45 = arith.constant 0.284496725 : f32
    %120 = vector.broadcast %cst_45 : f32 to vector<1x16x16xf32>
    %121 = arith.subf %119, %120 : vector<1x16x16xf32>
    %122 = arith.mulf %121, %111 : vector<1x16x16xf32>
    %cst_46 = arith.constant 0.254829586 : f32
    %123 = vector.broadcast %cst_46 : f32 to vector<1x16x16xf32>
    %124 = arith.addf %122, %123 : vector<1x16x16xf32>
    %125 = arith.mulf %124, %111 : vector<1x16x16xf32>
    %cst_47 = arith.constant 0.000000e+00 : f32
    %126 = vector.broadcast %cst_47 : f32 to vector<1x16x16xf32>
    %127 = arith.subf %126, %106 : vector<1x16x16xf32>
    %128 = arith.mulf %127, %106 : vector<1x16x16xf32>
    %129 = math.exp %128 : vector<1x16x16xf32>
    %130 = arith.mulf %125, %129 : vector<1x16x16xf32>
    %cst_48 = arith.constant 1.000000e+00 : f32
    %131 = vector.broadcast %cst_48 : f32 to vector<1x16x16xf32>
    %132 = arith.subf %131, %130 : vector<1x16x16xf32>
    %133 = arith.mulf %105, %132 : vector<1x16x16xf32>
    %cst_49 = arith.constant 1.000000e+00 : f32
    %134 = vector.broadcast %cst_49 : f32 to vector<1x16x16xf32>
    %135 = arith.addf %134, %133 : vector<1x16x16xf32>
    %136 = arith.mulf %98, %135 : vector<1x16x16xf32>
    %cst_50 = arith.constant dense<0.000000e+00> : vector<1x16xf32>
    %137 = vector.multi_reduction <add>, %14, %cst_50 [1] : vector<1x16x16xf32> to vector<1x16xf32>
    %138 = vector.shape_cast %137 : vector<1x16xf32> to vector<1x1x16xf32>
    %cst_51 = arith.constant 1.600000e+01 : f32
    %139 = vector.broadcast %cst_51 : f32 to vector<1x1x16xf32>
    %140 = arith.divf %138, %139 : vector<1x1x16xf32>
    %141 = vector.broadcast %140 : vector<1x1x16xf32> to vector<1x16x16xf32>
    %142 = arith.subf %14, %141 : vector<1x16x16xf32>
    %143 = arith.mulf %142, %142 : vector<1x16x16xf32>
    %cst_52 = arith.constant dense<0.000000e+00> : vector<1x16xf32>
    %144 = vector.multi_reduction <add>, %143, %cst_52 [1] : vector<1x16x16xf32> to vector<1x16xf32>
    %145 = vector.shape_cast %144 : vector<1x16xf32> to vector<1x1x16xf32>
    %cst_53 = arith.constant 1.600000e+01 : f32
    %146 = vector.broadcast %cst_53 : f32 to vector<1x1x16xf32>
    %147 = arith.divf %145, %146 : vector<1x1x16xf32>
    %cst_54 = arith.constant 9.99999974E-6 : f32
    %148 = vector.broadcast %cst_54 : f32 to vector<1x1x16xf32>
    %149 = arith.addf %147, %148 : vector<1x1x16xf32>
    %150 = math.rsqrt %149 : vector<1x1x16xf32>
    %151 = vector.broadcast %150 : vector<1x1x16xf32> to vector<1x16x16xf32>
    %152 = arith.mulf %142, %151 : vector<1x16x16xf32>
    %153 = vector.broadcast %1 : vector<1x16x1xf32> to vector<1x16x16xf32>
    %154 = arith.mulf %152, %153 : vector<1x16x16xf32>
    %155 = vector.broadcast %3 : vector<1x16x1xf32> to vector<1x16x16xf32>
    %156 = arith.addf %154, %155 : vector<1x16x16xf32>
    %cst_55 = arith.constant 5.000000e-01 : f32
    %157 = vector.broadcast %cst_55 : f32 to vector<1x16x16xf32>
    %158 = arith.mulf %157, %156 : vector<1x16x16xf32>
    %cst_56 = arith.constant 0.707106769 : f32
    %159 = vector.broadcast %cst_56 : f32 to vector<1x16x16xf32>
    %160 = arith.mulf %156, %159 : vector<1x16x16xf32>
    %cst_57 = arith.constant 0.000000e+00 : f32
    %161 = vector.broadcast %cst_57 : f32 to vector<1x16x16xf32>
    %162 = arith.cmpf olt, %160, %161 : vector<1x16x16xf32>
    %cst_58 = arith.constant -1.000000e+00 : f32
    %cst_59 = arith.constant 1.000000e+00 : f32
    %163 = vector.broadcast %cst_58 : f32 to vector<1x16x16xf32>
    %164 = vector.broadcast %cst_59 : f32 to vector<1x16x16xf32>
    %165 = arith.select %162, %163, %164 : vector<1x16x16xi1>, vector<1x16x16xf32>
    %166 = math.absf %160 : vector<1x16x16xf32>
    %cst_60 = arith.constant 0.327591091 : f32
    %167 = vector.broadcast %cst_60 : f32 to vector<1x16x16xf32>
    %168 = arith.mulf %167, %166 : vector<1x16x16xf32>
    %cst_61 = arith.constant 1.000000e+00 : f32
    %169 = vector.broadcast %cst_61 : f32 to vector<1x16x16xf32>
    %170 = arith.addf %169, %168 : vector<1x16x16xf32>
    %171 = tpu.reciprocal %170 : vector<1x16x16xf32> -> vector<1x16x16xf32>
    %cst_62 = arith.constant 1.06140542 : f32
    %172 = vector.broadcast %cst_62 : f32 to vector<1x16x16xf32>
    %173 = arith.mulf %172, %171 : vector<1x16x16xf32>
    %cst_63 = arith.constant 1.45315206 : f32
    %174 = vector.broadcast %cst_63 : f32 to vector<1x16x16xf32>
    %175 = arith.subf %173, %174 : vector<1x16x16xf32>
    %176 = arith.mulf %175, %171 : vector<1x16x16xf32>
    %cst_64 = arith.constant 1.42141378 : f32
    %177 = vector.broadcast %cst_64 : f32 to vector<1x16x16xf32>
    %178 = arith.addf %176, %177 : vector<1x16x16xf32>
    %179 = arith.mulf %178, %171 : vector<1x16x16xf32>
    %cst_65 = arith.constant 0.284496725 : f32
    %180 = vector.broadcast %cst_65 : f32 to vector<1x16x16xf32>
    %181 = arith.subf %179, %180 : vector<1x16x16xf32>
    %182 = arith.mulf %181, %171 : vector<1x16x16xf32>
    %cst_66 = arith.constant 0.254829586 : f32
    %183 = vector.broadcast %cst_66 : f32 to vector<1x16x16xf32>
    %184 = arith.addf %182, %183 : vector<1x16x16xf32>
    %185 = arith.mulf %184, %171 : vector<1x16x16xf32>
    %cst_67 = arith.constant 0.000000e+00 : f32
    %186 = vector.broadcast %cst_67 : f32 to vector<1x16x16xf32>
    %187 = arith.subf %186, %166 : vector<1x16x16xf32>
    %188 = arith.mulf %187, %166 : vector<1x16x16xf32>
    %189 = math.exp %188 : vector<1x16x16xf32>
    %190 = arith.mulf %185, %189 : vector<1x16x16xf32>
    %cst_68 = arith.constant 1.000000e+00 : f32
    %191 = vector.broadcast %cst_68 : f32 to vector<1x16x16xf32>
    %192 = arith.subf %191, %190 : vector<1x16x16xf32>
    %193 = arith.mulf %165, %192 : vector<1x16x16xf32>
    %cst_69 = arith.constant 1.000000e+00 : f32
    %194 = vector.broadcast %cst_69 : f32 to vector<1x16x16xf32>
    %195 = arith.addf %194, %193 : vector<1x16x16xf32>
    %196 = arith.mulf %158, %195 : vector<1x16x16xf32>
    %cst_70 = arith.constant dense<0.000000e+00> : vector<1x16xf32>
    %197 = vector.multi_reduction <add>, %16, %cst_70 [1] : vector<1x16x16xf32> to vector<1x16xf32>
    %198 = vector.shape_cast %197 : vector<1x16xf32> to vector<1x1x16xf32>
    %cst_71 = arith.constant 1.600000e+01 : f32
    %199 = vector.broadcast %cst_71 : f32 to vector<1x1x16xf32>
    %200 = arith.divf %198, %199 : vector<1x1x16xf32>
    %201 = vector.broadcast %200 : vector<1x1x16xf32> to vector<1x16x16xf32>
    %202 = arith.subf %16, %201 : vector<1x16x16xf32>
    %203 = arith.mulf %202, %202 : vector<1x16x16xf32>
    %cst_72 = arith.constant dense<0.000000e+00> : vector<1x16xf32>
    %204 = vector.multi_reduction <add>, %203, %cst_72 [1] : vector<1x16x16xf32> to vector<1x16xf32>
    %205 = vector.shape_cast %204 : vector<1x16xf32> to vector<1x1x16xf32>
    %cst_73 = arith.constant 1.600000e+01 : f32
    %206 = vector.broadcast %cst_73 : f32 to vector<1x1x16xf32>
    %207 = arith.divf %205, %206 : vector<1x1x16xf32>
    %cst_74 = arith.constant 9.99999974E-6 : f32
    %208 = vector.broadcast %cst_74 : f32 to vector<1x1x16xf32>
    %209 = arith.addf %207, %208 : vector<1x1x16xf32>
    %210 = math.rsqrt %209 : vector<1x1x16xf32>
    %211 = vector.broadcast %210 : vector<1x1x16xf32> to vector<1x16x16xf32>
    %212 = arith.mulf %202, %211 : vector<1x16x16xf32>
    %213 = vector.broadcast %1 : vector<1x16x1xf32> to vector<1x16x16xf32>
    %214 = arith.mulf %212, %213 : vector<1x16x16xf32>
    %215 = vector.broadcast %3 : vector<1x16x1xf32> to vector<1x16x16xf32>
    %216 = arith.addf %214, %215 : vector<1x16x16xf32>
    %cst_75 = arith.constant 5.000000e-01 : f32
    %217 = vector.broadcast %cst_75 : f32 to vector<1x16x16xf32>
    %218 = arith.mulf %217, %216 : vector<1x16x16xf32>
    %cst_76 = arith.constant 0.707106769 : f32
    %219 = vector.broadcast %cst_76 : f32 to vector<1x16x16xf32>
    %220 = arith.mulf %216, %219 : vector<1x16x16xf32>
    %cst_77 = arith.constant 0.000000e+00 : f32
    %221 = vector.broadcast %cst_77 : f32 to vector<1x16x16xf32>
    %222 = arith.cmpf olt, %220, %221 : vector<1x16x16xf32>
    %cst_78 = arith.constant -1.000000e+00 : f32
    %cst_79 = arith.constant 1.000000e+00 : f32
    %223 = vector.broadcast %cst_78 : f32 to vector<1x16x16xf32>
    %224 = vector.broadcast %cst_79 : f32 to vector<1x16x16xf32>
    %225 = arith.select %222, %223, %224 : vector<1x16x16xi1>, vector<1x16x16xf32>
    %226 = math.absf %220 : vector<1x16x16xf32>
    %cst_80 = arith.constant 0.327591091 : f32
    %227 = vector.broadcast %cst_80 : f32 to vector<1x16x16xf32>
    %228 = arith.mulf %227, %226 : vector<1x16x16xf32>
    %cst_81 = arith.constant 1.000000e+00 : f32
    %229 = vector.broadcast %cst_81 : f32 to vector<1x16x16xf32>
    %230 = arith.addf %229, %228 : vector<1x16x16xf32>
    %231 = tpu.reciprocal %230 : vector<1x16x16xf32> -> vector<1x16x16xf32>
    %cst_82 = arith.constant 1.06140542 : f32
    %232 = vector.broadcast %cst_82 : f32 to vector<1x16x16xf32>
    %233 = arith.mulf %232, %231 : vector<1x16x16xf32>
    %cst_83 = arith.constant 1.45315206 : f32
    %234 = vector.broadcast %cst_83 : f32 to vector<1x16x16xf32>
    %235 = arith.subf %233, %234 : vector<1x16x16xf32>
    %236 = arith.mulf %235, %231 : vector<1x16x16xf32>
    %cst_84 = arith.constant 1.42141378 : f32
    %237 = vector.broadcast %cst_84 : f32 to vector<1x16x16xf32>
    %238 = arith.addf %236, %237 : vector<1x16x16xf32>
    %239 = arith.mulf %238, %231 : vector<1x16x16xf32>
    %cst_85 = arith.constant 0.284496725 : f32
    %240 = vector.broadcast %cst_85 : f32 to vector<1x16x16xf32>
    %241 = arith.subf %239, %240 : vector<1x16x16xf32>
    %242 = arith.mulf %241, %231 : vector<1x16x16xf32>
    %cst_86 = arith.constant 0.254829586 : f32
    %243 = vector.broadcast %cst_86 : f32 to vector<1x16x16xf32>
    %244 = arith.addf %242, %243 : vector<1x16x16xf32>
    %245 = arith.mulf %244, %231 : vector<1x16x16xf32>
    %cst_87 = arith.constant 0.000000e+00 : f32
    %246 = vector.broadcast %cst_87 : f32 to vector<1x16x16xf32>
    %247 = arith.subf %246, %226 : vector<1x16x16xf32>
    %248 = arith.mulf %247, %226 : vector<1x16x16xf32>
    %249 = math.exp %248 : vector<1x16x16xf32>
    %250 = arith.mulf %245, %249 : vector<1x16x16xf32>
    %cst_88 = arith.constant 1.000000e+00 : f32
    %251 = vector.broadcast %cst_88 : f32 to vector<1x16x16xf32>
    %252 = arith.subf %251, %250 : vector<1x16x16xf32>
    %253 = arith.mulf %225, %252 : vector<1x16x16xf32>
    %cst_89 = arith.constant 1.000000e+00 : f32
    %254 = vector.broadcast %cst_89 : f32 to vector<1x16x16xf32>
    %255 = arith.addf %254, %253 : vector<1x16x16xf32>
    %256 = arith.mulf %218, %255 : vector<1x16x16xf32>
    %c0_90 = arith.constant 0 : index
    %257 = memref.load %arg6[%c0_90] : memref<144xf32, #tpu.memory_space<smem>>
    %c1 = arith.constant 1 : index
    %258 = memref.load %arg6[%c1] : memref<144xf32, #tpu.memory_space<smem>>
    %c2 = arith.constant 2 : index
    %259 = memref.load %arg6[%c2] : memref<144xf32, #tpu.memory_space<smem>>
    %c3 = arith.constant 3 : index
    %260 = memref.load %arg6[%c3] : memref<144xf32, #tpu.memory_space<smem>>
    %c4 = arith.constant 4 : index
    %261 = memref.load %arg6[%c4] : memref<144xf32, #tpu.memory_space<smem>>
    %c5 = arith.constant 5 : index
    %262 = memref.load %arg6[%c5] : memref<144xf32, #tpu.memory_space<smem>>
    %c6 = arith.constant 6 : index
    %263 = memref.load %arg6[%c6] : memref<144xf32, #tpu.memory_space<smem>>
    %c7 = arith.constant 7 : index
    %264 = memref.load %arg6[%c7] : memref<144xf32, #tpu.memory_space<smem>>
    %c8 = arith.constant 8 : index
    %265 = memref.load %arg6[%c8] : memref<144xf32, #tpu.memory_space<smem>>
    %c9 = arith.constant 9 : index
    %266 = memref.load %arg6[%c9] : memref<144xf32, #tpu.memory_space<smem>>
    %c10 = arith.constant 10 : index
    %267 = memref.load %arg6[%c10] : memref<144xf32, #tpu.memory_space<smem>>
    %c11 = arith.constant 11 : index
    %268 = memref.load %arg6[%c11] : memref<144xf32, #tpu.memory_space<smem>>
    %c12 = arith.constant 12 : index
    %269 = memref.load %arg6[%c12] : memref<144xf32, #tpu.memory_space<smem>>
    %c13 = arith.constant 13 : index
    %270 = memref.load %arg6[%c13] : memref<144xf32, #tpu.memory_space<smem>>
    %c14 = arith.constant 14 : index
    %271 = memref.load %arg6[%c14] : memref<144xf32, #tpu.memory_space<smem>>
    %c15 = arith.constant 15 : index
    %272 = memref.load %arg6[%c15] : memref<144xf32, #tpu.memory_space<smem>>
    %c16 = arith.constant 16 : index
    %273 = memref.load %arg6[%c16] : memref<144xf32, #tpu.memory_space<smem>>
    %c17 = arith.constant 17 : index
    %274 = memref.load %arg6[%c17] : memref<144xf32, #tpu.memory_space<smem>>
    %c18 = arith.constant 18 : index
    %275 = memref.load %arg6[%c18] : memref<144xf32, #tpu.memory_space<smem>>
    %c19 = arith.constant 19 : index
    %276 = memref.load %arg6[%c19] : memref<144xf32, #tpu.memory_space<smem>>
    %c20 = arith.constant 20 : index
    %277 = memref.load %arg6[%c20] : memref<144xf32, #tpu.memory_space<smem>>
    %c21 = arith.constant 21 : index
    %278 = memref.load %arg6[%c21] : memref<144xf32, #tpu.memory_space<smem>>
    %c22 = arith.constant 22 : index
    %279 = memref.load %arg6[%c22] : memref<144xf32, #tpu.memory_space<smem>>
    %c23 = arith.constant 23 : index
    %280 = memref.load %arg6[%c23] : memref<144xf32, #tpu.memory_space<smem>>
    %c24 = arith.constant 24 : index
    %281 = memref.load %arg6[%c24] : memref<144xf32, #tpu.memory_space<smem>>
    %c25 = arith.constant 25 : index
    %282 = memref.load %arg6[%c25] : memref<144xf32, #tpu.memory_space<smem>>
    %c26 = arith.constant 26 : index
    %283 = memref.load %arg6[%c26] : memref<144xf32, #tpu.memory_space<smem>>
    %c27 = arith.constant 27 : index
    %284 = memref.load %arg6[%c27] : memref<144xf32, #tpu.memory_space<smem>>
    %c28 = arith.constant 28 : index
    %285 = memref.load %arg6[%c28] : memref<144xf32, #tpu.memory_space<smem>>
    %c29 = arith.constant 29 : index
    %286 = memref.load %arg6[%c29] : memref<144xf32, #tpu.memory_space<smem>>
    %c30 = arith.constant 30 : index
    %287 = memref.load %arg6[%c30] : memref<144xf32, #tpu.memory_space<smem>>
    %c31 = arith.constant 31 : index
    %288 = memref.load %arg6[%c31] : memref<144xf32, #tpu.memory_space<smem>>
    %c32 = arith.constant 32 : index
    %289 = memref.load %arg6[%c32] : memref<144xf32, #tpu.memory_space<smem>>
    %c33 = arith.constant 33 : index
    %290 = memref.load %arg6[%c33] : memref<144xf32, #tpu.memory_space<smem>>
    %c34 = arith.constant 34 : index
    %291 = memref.load %arg6[%c34] : memref<144xf32, #tpu.memory_space<smem>>
    %c35 = arith.constant 35 : index
    %292 = memref.load %arg6[%c35] : memref<144xf32, #tpu.memory_space<smem>>
    %c36 = arith.constant 36 : index
    %293 = memref.load %arg6[%c36] : memref<144xf32, #tpu.memory_space<smem>>
    %c37 = arith.constant 37 : index
    %294 = memref.load %arg6[%c37] : memref<144xf32, #tpu.memory_space<smem>>
    %c38 = arith.constant 38 : index
    %295 = memref.load %arg6[%c38] : memref<144xf32, #tpu.memory_space<smem>>
    %c39 = arith.constant 39 : index
    %296 = memref.load %arg6[%c39] : memref<144xf32, #tpu.memory_space<smem>>
    %c40 = arith.constant 40 : index
    %297 = memref.load %arg6[%c40] : memref<144xf32, #tpu.memory_space<smem>>
    %c41 = arith.constant 41 : index
    %298 = memref.load %arg6[%c41] : memref<144xf32, #tpu.memory_space<smem>>
    %c42 = arith.constant 42 : index
    %299 = memref.load %arg6[%c42] : memref<144xf32, #tpu.memory_space<smem>>
    %c43 = arith.constant 43 : index
    %300 = memref.load %arg6[%c43] : memref<144xf32, #tpu.memory_space<smem>>
    %c44 = arith.constant 44 : index
    %301 = memref.load %arg6[%c44] : memref<144xf32, #tpu.memory_space<smem>>
    %c45 = arith.constant 45 : index
    %302 = memref.load %arg6[%c45] : memref<144xf32, #tpu.memory_space<smem>>
    %c46 = arith.constant 46 : index
    %303 = memref.load %arg6[%c46] : memref<144xf32, #tpu.memory_space<smem>>
    %c47 = arith.constant 47 : index
    %304 = memref.load %arg6[%c47] : memref<144xf32, #tpu.memory_space<smem>>
    %c48 = arith.constant 48 : index
    %305 = memref.load %arg6[%c48] : memref<144xf32, #tpu.memory_space<smem>>
    %c49 = arith.constant 49 : index
    %306 = memref.load %arg6[%c49] : memref<144xf32, #tpu.memory_space<smem>>
    %c50 = arith.constant 50 : index
    %307 = memref.load %arg6[%c50] : memref<144xf32, #tpu.memory_space<smem>>
    %c51 = arith.constant 51 : index
    %308 = memref.load %arg6[%c51] : memref<144xf32, #tpu.memory_space<smem>>
    %c52 = arith.constant 52 : index
    %309 = memref.load %arg6[%c52] : memref<144xf32, #tpu.memory_space<smem>>
    %c53 = arith.constant 53 : index
    %310 = memref.load %arg6[%c53] : memref<144xf32, #tpu.memory_space<smem>>
    %c54 = arith.constant 54 : index
    %311 = memref.load %arg6[%c54] : memref<144xf32, #tpu.memory_space<smem>>
    %c55 = arith.constant 55 : index
    %312 = memref.load %arg6[%c55] : memref<144xf32, #tpu.memory_space<smem>>
    %c56 = arith.constant 56 : index
    %313 = memref.load %arg6[%c56] : memref<144xf32, #tpu.memory_space<smem>>
    %c57 = arith.constant 57 : index
    %314 = memref.load %arg6[%c57] : memref<144xf32, #tpu.memory_space<smem>>
    %c58 = arith.constant 58 : index
    %315 = memref.load %arg6[%c58] : memref<144xf32, #tpu.memory_space<smem>>
    %c59 = arith.constant 59 : index
    %316 = memref.load %arg6[%c59] : memref<144xf32, #tpu.memory_space<smem>>
    %c60 = arith.constant 60 : index
    %317 = memref.load %arg6[%c60] : memref<144xf32, #tpu.memory_space<smem>>
    %c61 = arith.constant 61 : index
    %318 = memref.load %arg6[%c61] : memref<144xf32, #tpu.memory_space<smem>>
    %c62 = arith.constant 62 : index
    %319 = memref.load %arg6[%c62] : memref<144xf32, #tpu.memory_space<smem>>
    %c63 = arith.constant 63 : index
    %320 = memref.load %arg6[%c63] : memref<144xf32, #tpu.memory_space<smem>>
    %c64 = arith.constant 64 : index
    %321 = memref.load %arg6[%c64] : memref<144xf32, #tpu.memory_space<smem>>
    %c65 = arith.constant 65 : index
    %322 = memref.load %arg6[%c65] : memref<144xf32, #tpu.memory_space<smem>>
    %c66 = arith.constant 66 : index
    %323 = memref.load %arg6[%c66] : memref<144xf32, #tpu.memory_space<smem>>
    %c67 = arith.constant 67 : index
    %324 = memref.load %arg6[%c67] : memref<144xf32, #tpu.memory_space<smem>>
    %c68 = arith.constant 68 : index
    %325 = memref.load %arg6[%c68] : memref<144xf32, #tpu.memory_space<smem>>
    %c69 = arith.constant 69 : index
    %326 = memref.load %arg6[%c69] : memref<144xf32, #tpu.memory_space<smem>>
    %c70 = arith.constant 70 : index
    %327 = memref.load %arg6[%c70] : memref<144xf32, #tpu.memory_space<smem>>
    %c71 = arith.constant 71 : index
    %328 = memref.load %arg6[%c71] : memref<144xf32, #tpu.memory_space<smem>>
    %c72 = arith.constant 72 : index
    %329 = memref.load %arg6[%c72] : memref<144xf32, #tpu.memory_space<smem>>
    %c73 = arith.constant 73 : index
    %330 = memref.load %arg6[%c73] : memref<144xf32, #tpu.memory_space<smem>>
    %c74 = arith.constant 74 : index
    %331 = memref.load %arg6[%c74] : memref<144xf32, #tpu.memory_space<smem>>
    %c75 = arith.constant 75 : index
    %332 = memref.load %arg6[%c75] : memref<144xf32, #tpu.memory_space<smem>>
    %c76 = arith.constant 76 : index
    %333 = memref.load %arg6[%c76] : memref<144xf32, #tpu.memory_space<smem>>
    %c77 = arith.constant 77 : index
    %334 = memref.load %arg6[%c77] : memref<144xf32, #tpu.memory_space<smem>>
    %c78 = arith.constant 78 : index
    %335 = memref.load %arg6[%c78] : memref<144xf32, #tpu.memory_space<smem>>
    %c79 = arith.constant 79 : index
    %336 = memref.load %arg6[%c79] : memref<144xf32, #tpu.memory_space<smem>>
    %c80 = arith.constant 80 : index
    %337 = memref.load %arg6[%c80] : memref<144xf32, #tpu.memory_space<smem>>
    %c81 = arith.constant 81 : index
    %338 = memref.load %arg6[%c81] : memref<144xf32, #tpu.memory_space<smem>>
    %c82 = arith.constant 82 : index
    %339 = memref.load %arg6[%c82] : memref<144xf32, #tpu.memory_space<smem>>
    %c83 = arith.constant 83 : index
    %340 = memref.load %arg6[%c83] : memref<144xf32, #tpu.memory_space<smem>>
    %c84 = arith.constant 84 : index
    %341 = memref.load %arg6[%c84] : memref<144xf32, #tpu.memory_space<smem>>
    %c85 = arith.constant 85 : index
    %342 = memref.load %arg6[%c85] : memref<144xf32, #tpu.memory_space<smem>>
    %c86 = arith.constant 86 : index
    %343 = memref.load %arg6[%c86] : memref<144xf32, #tpu.memory_space<smem>>
    %c87 = arith.constant 87 : index
    %344 = memref.load %arg6[%c87] : memref<144xf32, #tpu.memory_space<smem>>
    %c88 = arith.constant 88 : index
    %345 = memref.load %arg6[%c88] : memref<144xf32, #tpu.memory_space<smem>>
    %c89 = arith.constant 89 : index
    %346 = memref.load %arg6[%c89] : memref<144xf32, #tpu.memory_space<smem>>
    %c90 = arith.constant 90 : index
    %347 = memref.load %arg6[%c90] : memref<144xf32, #tpu.memory_space<smem>>
    %c91 = arith.constant 91 : index
    %348 = memref.load %arg6[%c91] : memref<144xf32, #tpu.memory_space<smem>>
    %c92 = arith.constant 92 : index
    %349 = memref.load %arg6[%c92] : memref<144xf32, #tpu.memory_space<smem>>
    %c93 = arith.constant 93 : index
    %350 = memref.load %arg6[%c93] : memref<144xf32, #tpu.memory_space<smem>>
    %c94 = arith.constant 94 : index
    %351 = memref.load %arg6[%c94] : memref<144xf32, #tpu.memory_space<smem>>
    %c95 = arith.constant 95 : index
    %352 = memref.load %arg6[%c95] : memref<144xf32, #tpu.memory_space<smem>>
    %c96 = arith.constant 96 : index
    %353 = memref.load %arg6[%c96] : memref<144xf32, #tpu.memory_space<smem>>
    %c97 = arith.constant 97 : index
    %354 = memref.load %arg6[%c97] : memref<144xf32, #tpu.memory_space<smem>>
    %c98 = arith.constant 98 : index
    %355 = memref.load %arg6[%c98] : memref<144xf32, #tpu.memory_space<smem>>
    %c99 = arith.constant 99 : index
    %356 = memref.load %arg6[%c99] : memref<144xf32, #tpu.memory_space<smem>>
    %c100 = arith.constant 100 : index
    %357 = memref.load %arg6[%c100] : memref<144xf32, #tpu.memory_space<smem>>
    %c101 = arith.constant 101 : index
    %358 = memref.load %arg6[%c101] : memref<144xf32, #tpu.memory_space<smem>>
    %c102 = arith.constant 102 : index
    %359 = memref.load %arg6[%c102] : memref<144xf32, #tpu.memory_space<smem>>
    %c103 = arith.constant 103 : index
    %360 = memref.load %arg6[%c103] : memref<144xf32, #tpu.memory_space<smem>>
    %c104 = arith.constant 104 : index
    %361 = memref.load %arg6[%c104] : memref<144xf32, #tpu.memory_space<smem>>
    %c105 = arith.constant 105 : index
    %362 = memref.load %arg6[%c105] : memref<144xf32, #tpu.memory_space<smem>>
    %c106 = arith.constant 106 : index
    %363 = memref.load %arg6[%c106] : memref<144xf32, #tpu.memory_space<smem>>
    %c107 = arith.constant 107 : index
    %364 = memref.load %arg6[%c107] : memref<144xf32, #tpu.memory_space<smem>>
    %c108 = arith.constant 108 : index
    %365 = memref.load %arg6[%c108] : memref<144xf32, #tpu.memory_space<smem>>
    %c109 = arith.constant 109 : index
    %366 = memref.load %arg6[%c109] : memref<144xf32, #tpu.memory_space<smem>>
    %c110 = arith.constant 110 : index
    %367 = memref.load %arg6[%c110] : memref<144xf32, #tpu.memory_space<smem>>
    %c111 = arith.constant 111 : index
    %368 = memref.load %arg6[%c111] : memref<144xf32, #tpu.memory_space<smem>>
    %c112 = arith.constant 112 : index
    %369 = memref.load %arg6[%c112] : memref<144xf32, #tpu.memory_space<smem>>
    %c113 = arith.constant 113 : index
    %370 = memref.load %arg6[%c113] : memref<144xf32, #tpu.memory_space<smem>>
    %c114 = arith.constant 114 : index
    %371 = memref.load %arg6[%c114] : memref<144xf32, #tpu.memory_space<smem>>
    %c115 = arith.constant 115 : index
    %372 = memref.load %arg6[%c115] : memref<144xf32, #tpu.memory_space<smem>>
    %c116 = arith.constant 116 : index
    %373 = memref.load %arg6[%c116] : memref<144xf32, #tpu.memory_space<smem>>
    %c117 = arith.constant 117 : index
    %374 = memref.load %arg6[%c117] : memref<144xf32, #tpu.memory_space<smem>>
    %c118 = arith.constant 118 : index
    %375 = memref.load %arg6[%c118] : memref<144xf32, #tpu.memory_space<smem>>
    %c119 = arith.constant 119 : index
    %376 = memref.load %arg6[%c119] : memref<144xf32, #tpu.memory_space<smem>>
    %c120 = arith.constant 120 : index
    %377 = memref.load %arg6[%c120] : memref<144xf32, #tpu.memory_space<smem>>
    %c121 = arith.constant 121 : index
    %378 = memref.load %arg6[%c121] : memref<144xf32, #tpu.memory_space<smem>>
    %c122 = arith.constant 122 : index
    %379 = memref.load %arg6[%c122] : memref<144xf32, #tpu.memory_space<smem>>
    %c123 = arith.constant 123 : index
    %380 = memref.load %arg6[%c123] : memref<144xf32, #tpu.memory_space<smem>>
    %c124 = arith.constant 124 : index
    %381 = memref.load %arg6[%c124] : memref<144xf32, #tpu.memory_space<smem>>
    %c125 = arith.constant 125 : index
    %382 = memref.load %arg6[%c125] : memref<144xf32, #tpu.memory_space<smem>>
    %c126 = arith.constant 126 : index
    %383 = memref.load %arg6[%c126] : memref<144xf32, #tpu.memory_space<smem>>
    %c127 = arith.constant 127 : index
    %384 = memref.load %arg6[%c127] : memref<144xf32, #tpu.memory_space<smem>>
    %c128 = arith.constant 128 : index
    %385 = memref.load %arg6[%c128] : memref<144xf32, #tpu.memory_space<smem>>
    %c129 = arith.constant 129 : index
    %386 = memref.load %arg6[%c129] : memref<144xf32, #tpu.memory_space<smem>>
    %c130 = arith.constant 130 : index
    %387 = memref.load %arg6[%c130] : memref<144xf32, #tpu.memory_space<smem>>
    %c131 = arith.constant 131 : index
    %388 = memref.load %arg6[%c131] : memref<144xf32, #tpu.memory_space<smem>>
    %c132 = arith.constant 132 : index
    %389 = memref.load %arg6[%c132] : memref<144xf32, #tpu.memory_space<smem>>
    %c133 = arith.constant 133 : index
    %390 = memref.load %arg6[%c133] : memref<144xf32, #tpu.memory_space<smem>>
    %c134 = arith.constant 134 : index
    %391 = memref.load %arg6[%c134] : memref<144xf32, #tpu.memory_space<smem>>
    %c135 = arith.constant 135 : index
    %392 = memref.load %arg6[%c135] : memref<144xf32, #tpu.memory_space<smem>>
    %c136 = arith.constant 136 : index
    %393 = memref.load %arg6[%c136] : memref<144xf32, #tpu.memory_space<smem>>
    %c137 = arith.constant 137 : index
    %394 = memref.load %arg6[%c137] : memref<144xf32, #tpu.memory_space<smem>>
    %c138 = arith.constant 138 : index
    %395 = memref.load %arg6[%c138] : memref<144xf32, #tpu.memory_space<smem>>
    %c139 = arith.constant 139 : index
    %396 = memref.load %arg6[%c139] : memref<144xf32, #tpu.memory_space<smem>>
    %c140 = arith.constant 140 : index
    %397 = memref.load %arg6[%c140] : memref<144xf32, #tpu.memory_space<smem>>
    %c141 = arith.constant 141 : index
    %398 = memref.load %arg6[%c141] : memref<144xf32, #tpu.memory_space<smem>>
    %c142 = arith.constant 142 : index
    %399 = memref.load %arg6[%c142] : memref<144xf32, #tpu.memory_space<smem>>
    %c143 = arith.constant 143 : index
    %400 = memref.load %arg6[%c143] : memref<144xf32, #tpu.memory_space<smem>>
    %c0_91 = arith.constant 0 : index
    %401 = memref.load %arg7[%c0_91] : memref<4xf32, #tpu.memory_space<smem>>
    %402 = vector.broadcast %401 : f32 to vector<1x16x16xf32>
    %c1_92 = arith.constant 1 : index
    %403 = memref.load %arg7[%c1_92] : memref<4xf32, #tpu.memory_space<smem>>
    %404 = vector.broadcast %403 : f32 to vector<1x16x16xf32>
    %c2_93 = arith.constant 2 : index
    %405 = memref.load %arg7[%c2_93] : memref<4xf32, #tpu.memory_space<smem>>
    %406 = vector.broadcast %405 : f32 to vector<1x16x16xf32>
    %c3_94 = arith.constant 3 : index
    %407 = memref.load %arg7[%c3_94] : memref<4xf32, #tpu.memory_space<smem>>
    %408 = vector.broadcast %407 : f32 to vector<1x16x16xf32>
    %cst_95 = arith.constant 0.000000e+00 : f32
    %409 = vector.broadcast %cst_95 : f32 to vector<1x1x16xf32>
    %410 = vector.extract_strided_slice %76 {offsets = [0, 0, 0], sizes = [1, 15, 16], strides = [1, 1, 1]} : vector<1x16x16xf32> to vector<1x15x16xf32>
    %411 = tpu.concatenate %409, %410 in 1 : vector<1x1x16xf32>, vector<1x15x16xf32> -> vector<1x16x16xf32>
    %cst_96 = arith.constant 0.000000e+00 : f32
    %412 = vector.broadcast %cst_96 : f32 to vector<1x16x1xf32>
    %413 = vector.extract_strided_slice %411 {offsets = [0, 0, 0], sizes = [1, 16, 15], strides = [1, 1, 1]} : vector<1x16x16xf32> to vector<1x16x15xf32>
    %414 = tpu.concatenate %412, %413 in 2 : vector<1x16x1xf32>, vector<1x16x15xf32> -> vector<1x16x16xf32>
    %415 = vector.broadcast %257 : f32 to vector<1x16x16xf32>
    %416 = arith.mulf %415, %414 : vector<1x16x16xf32>
    %417 = arith.addf %402, %416 : vector<1x16x16xf32>
    %418 = vector.broadcast %293 : f32 to vector<1x16x16xf32>
    %419 = arith.mulf %418, %414 : vector<1x16x16xf32>
    %420 = arith.addf %404, %419 : vector<1x16x16xf32>
    %421 = vector.broadcast %329 : f32 to vector<1x16x16xf32>
    %422 = arith.mulf %421, %414 : vector<1x16x16xf32>
    %423 = arith.addf %406, %422 : vector<1x16x16xf32>
    %424 = vector.broadcast %365 : f32 to vector<1x16x16xf32>
    %425 = arith.mulf %424, %414 : vector<1x16x16xf32>
    %426 = arith.addf %408, %425 : vector<1x16x16xf32>
    %427 = vector.broadcast %258 : f32 to vector<1x16x16xf32>
    %428 = arith.mulf %427, %411 : vector<1x16x16xf32>
    %429 = arith.addf %417, %428 : vector<1x16x16xf32>
    %430 = vector.broadcast %294 : f32 to vector<1x16x16xf32>
    %431 = arith.mulf %430, %411 : vector<1x16x16xf32>
    %432 = arith.addf %420, %431 : vector<1x16x16xf32>
    %433 = vector.broadcast %330 : f32 to vector<1x16x16xf32>
    %434 = arith.mulf %433, %411 : vector<1x16x16xf32>
    %435 = arith.addf %423, %434 : vector<1x16x16xf32>
    %436 = vector.broadcast %366 : f32 to vector<1x16x16xf32>
    %437 = arith.mulf %436, %411 : vector<1x16x16xf32>
    %438 = arith.addf %426, %437 : vector<1x16x16xf32>
    %cst_97 = arith.constant 0.000000e+00 : f32
    %439 = vector.broadcast %cst_97 : f32 to vector<1x16x1xf32>
    %440 = vector.extract_strided_slice %411 {offsets = [0, 0, 1], sizes = [1, 16, 15], strides = [1, 1, 1]} : vector<1x16x16xf32> to vector<1x16x15xf32>
    %441 = tpu.concatenate %440, %439 in 2 : vector<1x16x15xf32>, vector<1x16x1xf32> -> vector<1x16x16xf32>
    %442 = vector.broadcast %259 : f32 to vector<1x16x16xf32>
    %443 = arith.mulf %442, %441 : vector<1x16x16xf32>
    %444 = arith.addf %429, %443 : vector<1x16x16xf32>
    %445 = vector.broadcast %295 : f32 to vector<1x16x16xf32>
    %446 = arith.mulf %445, %441 : vector<1x16x16xf32>
    %447 = arith.addf %432, %446 : vector<1x16x16xf32>
    %448 = vector.broadcast %331 : f32 to vector<1x16x16xf32>
    %449 = arith.mulf %448, %441 : vector<1x16x16xf32>
    %450 = arith.addf %435, %449 : vector<1x16x16xf32>
    %451 = vector.broadcast %367 : f32 to vector<1x16x16xf32>
    %452 = arith.mulf %451, %441 : vector<1x16x16xf32>
    %453 = arith.addf %438, %452 : vector<1x16x16xf32>
    %cst_98 = arith.constant 0.000000e+00 : f32
    %454 = vector.broadcast %cst_98 : f32 to vector<1x16x1xf32>
    %455 = vector.extract_strided_slice %76 {offsets = [0, 0, 0], sizes = [1, 16, 15], strides = [1, 1, 1]} : vector<1x16x16xf32> to vector<1x16x15xf32>
    %456 = tpu.concatenate %454, %455 in 2 : vector<1x16x1xf32>, vector<1x16x15xf32> -> vector<1x16x16xf32>
    %457 = vector.broadcast %260 : f32 to vector<1x16x16xf32>
    %458 = arith.mulf %457, %456 : vector<1x16x16xf32>
    %459 = arith.addf %444, %458 : vector<1x16x16xf32>
    %460 = vector.broadcast %296 : f32 to vector<1x16x16xf32>
    %461 = arith.mulf %460, %456 : vector<1x16x16xf32>
    %462 = arith.addf %447, %461 : vector<1x16x16xf32>
    %463 = vector.broadcast %332 : f32 to vector<1x16x16xf32>
    %464 = arith.mulf %463, %456 : vector<1x16x16xf32>
    %465 = arith.addf %450, %464 : vector<1x16x16xf32>
    %466 = vector.broadcast %368 : f32 to vector<1x16x16xf32>
    %467 = arith.mulf %466, %456 : vector<1x16x16xf32>
    %468 = arith.addf %453, %467 : vector<1x16x16xf32>
    %469 = vector.broadcast %261 : f32 to vector<1x16x16xf32>
    %470 = arith.mulf %469, %76 : vector<1x16x16xf32>
    %471 = arith.addf %459, %470 : vector<1x16x16xf32>
    %472 = vector.broadcast %297 : f32 to vector<1x16x16xf32>
    %473 = arith.mulf %472, %76 : vector<1x16x16xf32>
    %474 = arith.addf %462, %473 : vector<1x16x16xf32>
    %475 = vector.broadcast %333 : f32 to vector<1x16x16xf32>
    %476 = arith.mulf %475, %76 : vector<1x16x16xf32>
    %477 = arith.addf %465, %476 : vector<1x16x16xf32>
    %478 = vector.broadcast %369 : f32 to vector<1x16x16xf32>
    %479 = arith.mulf %478, %76 : vector<1x16x16xf32>
    %480 = arith.addf %468, %479 : vector<1x16x16xf32>
    %cst_99 = arith.constant 0.000000e+00 : f32
    %481 = vector.broadcast %cst_99 : f32 to vector<1x16x1xf32>
    %482 = vector.extract_strided_slice %76 {offsets = [0, 0, 1], sizes = [1, 16, 15], strides = [1, 1, 1]} : vector<1x16x16xf32> to vector<1x16x15xf32>
    %483 = tpu.concatenate %482, %481 in 2 : vector<1x16x15xf32>, vector<1x16x1xf32> -> vector<1x16x16xf32>
    %484 = vector.broadcast %262 : f32 to vector<1x16x16xf32>
    %485 = arith.mulf %484, %483 : vector<1x16x16xf32>
    %486 = arith.addf %471, %485 : vector<1x16x16xf32>
    %487 = vector.broadcast %298 : f32 to vector<1x16x16xf32>
    %488 = arith.mulf %487, %483 : vector<1x16x16xf32>
    %489 = arith.addf %474, %488 : vector<1x16x16xf32>
    %490 = vector.broadcast %334 : f32 to vector<1x16x16xf32>
    %491 = arith.mulf %490, %483 : vector<1x16x16xf32>
    %492 = arith.addf %477, %491 : vector<1x16x16xf32>
    %493 = vector.broadcast %370 : f32 to vector<1x16x16xf32>
    %494 = arith.mulf %493, %483 : vector<1x16x16xf32>
    %495 = arith.addf %480, %494 : vector<1x16x16xf32>
    %cst_100 = arith.constant 0.000000e+00 : f32
    %496 = vector.broadcast %cst_100 : f32 to vector<1x1x16xf32>
    %497 = vector.extract_strided_slice %76 {offsets = [0, 1, 0], sizes = [1, 15, 16], strides = [1, 1, 1]} : vector<1x16x16xf32> to vector<1x15x16xf32>
    %498 = tpu.concatenate %497, %496 in 1 : vector<1x15x16xf32>, vector<1x1x16xf32> -> vector<1x16x16xf32>
    %cst_101 = arith.constant 0.000000e+00 : f32
    %499 = vector.broadcast %cst_101 : f32 to vector<1x16x1xf32>
    %500 = vector.extract_strided_slice %498 {offsets = [0, 0, 0], sizes = [1, 16, 15], strides = [1, 1, 1]} : vector<1x16x16xf32> to vector<1x16x15xf32>
    %501 = tpu.concatenate %499, %500 in 2 : vector<1x16x1xf32>, vector<1x16x15xf32> -> vector<1x16x16xf32>
    %502 = vector.broadcast %263 : f32 to vector<1x16x16xf32>
    %503 = arith.mulf %502, %501 : vector<1x16x16xf32>
    %504 = arith.addf %486, %503 : vector<1x16x16xf32>
    %505 = vector.broadcast %299 : f32 to vector<1x16x16xf32>
    %506 = arith.mulf %505, %501 : vector<1x16x16xf32>
    %507 = arith.addf %489, %506 : vector<1x16x16xf32>
    %508 = vector.broadcast %335 : f32 to vector<1x16x16xf32>
    %509 = arith.mulf %508, %501 : vector<1x16x16xf32>
    %510 = arith.addf %492, %509 : vector<1x16x16xf32>
    %511 = vector.broadcast %371 : f32 to vector<1x16x16xf32>
    %512 = arith.mulf %511, %501 : vector<1x16x16xf32>
    %513 = arith.addf %495, %512 : vector<1x16x16xf32>
    %514 = vector.broadcast %264 : f32 to vector<1x16x16xf32>
    %515 = arith.mulf %514, %498 : vector<1x16x16xf32>
    %516 = arith.addf %504, %515 : vector<1x16x16xf32>
    %517 = vector.broadcast %300 : f32 to vector<1x16x16xf32>
    %518 = arith.mulf %517, %498 : vector<1x16x16xf32>
    %519 = arith.addf %507, %518 : vector<1x16x16xf32>
    %520 = vector.broadcast %336 : f32 to vector<1x16x16xf32>
    %521 = arith.mulf %520, %498 : vector<1x16x16xf32>
    %522 = arith.addf %510, %521 : vector<1x16x16xf32>
    %523 = vector.broadcast %372 : f32 to vector<1x16x16xf32>
    %524 = arith.mulf %523, %498 : vector<1x16x16xf32>
    %525 = arith.addf %513, %524 : vector<1x16x16xf32>
    %cst_102 = arith.constant 0.000000e+00 : f32
    %526 = vector.broadcast %cst_102 : f32 to vector<1x16x1xf32>
    %527 = vector.extract_strided_slice %498 {offsets = [0, 0, 1], sizes = [1, 16, 15], strides = [1, 1, 1]} : vector<1x16x16xf32> to vector<1x16x15xf32>
    %528 = tpu.concatenate %527, %526 in 2 : vector<1x16x15xf32>, vector<1x16x1xf32> -> vector<1x16x16xf32>
    %529 = vector.broadcast %265 : f32 to vector<1x16x16xf32>
    %530 = arith.mulf %529, %528 : vector<1x16x16xf32>
    %531 = arith.addf %516, %530 : vector<1x16x16xf32>
    %532 = vector.broadcast %301 : f32 to vector<1x16x16xf32>
    %533 = arith.mulf %532, %528 : vector<1x16x16xf32>
    %534 = arith.addf %519, %533 : vector<1x16x16xf32>
    %535 = vector.broadcast %337 : f32 to vector<1x16x16xf32>
    %536 = arith.mulf %535, %528 : vector<1x16x16xf32>
    %537 = arith.addf %522, %536 : vector<1x16x16xf32>
    %538 = vector.broadcast %373 : f32 to vector<1x16x16xf32>
    %539 = arith.mulf %538, %528 : vector<1x16x16xf32>
    %540 = arith.addf %525, %539 : vector<1x16x16xf32>
    %cst_103 = arith.constant 0.000000e+00 : f32
    %541 = vector.broadcast %cst_103 : f32 to vector<1x1x16xf32>
    %542 = vector.extract_strided_slice %136 {offsets = [0, 0, 0], sizes = [1, 15, 16], strides = [1, 1, 1]} : vector<1x16x16xf32> to vector<1x15x16xf32>
    %543 = tpu.concatenate %541, %542 in 1 : vector<1x1x16xf32>, vector<1x15x16xf32> -> vector<1x16x16xf32>
    %cst_104 = arith.constant 0.000000e+00 : f32
    %544 = vector.broadcast %cst_104 : f32 to vector<1x16x1xf32>
    %545 = vector.extract_strided_slice %543 {offsets = [0, 0, 0], sizes = [1, 16, 15], strides = [1, 1, 1]} : vector<1x16x16xf32> to vector<1x16x15xf32>
    %546 = tpu.concatenate %544, %545 in 2 : vector<1x16x1xf32>, vector<1x16x15xf32> -> vector<1x16x16xf32>
    %547 = vector.broadcast %266 : f32 to vector<1x16x16xf32>
    %548 = arith.mulf %547, %546 : vector<1x16x16xf32>
    %549 = arith.addf %531, %548 : vector<1x16x16xf32>
    %550 = vector.broadcast %302 : f32 to vector<1x16x16xf32>
    %551 = arith.mulf %550, %546 : vector<1x16x16xf32>
    %552 = arith.addf %534, %551 : vector<1x16x16xf32>
    %553 = vector.broadcast %338 : f32 to vector<1x16x16xf32>
    %554 = arith.mulf %553, %546 : vector<1x16x16xf32>
    %555 = arith.addf %537, %554 : vector<1x16x16xf32>
    %556 = vector.broadcast %374 : f32 to vector<1x16x16xf32>
    %557 = arith.mulf %556, %546 : vector<1x16x16xf32>
    %558 = arith.addf %540, %557 : vector<1x16x16xf32>
    %559 = vector.broadcast %267 : f32 to vector<1x16x16xf32>
    %560 = arith.mulf %559, %543 : vector<1x16x16xf32>
    %561 = arith.addf %549, %560 : vector<1x16x16xf32>
    %562 = vector.broadcast %303 : f32 to vector<1x16x16xf32>
    %563 = arith.mulf %562, %543 : vector<1x16x16xf32>
    %564 = arith.addf %552, %563 : vector<1x16x16xf32>
    %565 = vector.broadcast %339 : f32 to vector<1x16x16xf32>
    %566 = arith.mulf %565, %543 : vector<1x16x16xf32>
    %567 = arith.addf %555, %566 : vector<1x16x16xf32>
    %568 = vector.broadcast %375 : f32 to vector<1x16x16xf32>
    %569 = arith.mulf %568, %543 : vector<1x16x16xf32>
    %570 = arith.addf %558, %569 : vector<1x16x16xf32>
    %cst_105 = arith.constant 0.000000e+00 : f32
    %571 = vector.broadcast %cst_105 : f32 to vector<1x16x1xf32>
    %572 = vector.extract_strided_slice %543 {offsets = [0, 0, 1], sizes = [1, 16, 15], strides = [1, 1, 1]} : vector<1x16x16xf32> to vector<1x16x15xf32>
    %573 = tpu.concatenate %572, %571 in 2 : vector<1x16x15xf32>, vector<1x16x1xf32> -> vector<1x16x16xf32>
    %574 = vector.broadcast %268 : f32 to vector<1x16x16xf32>
    %575 = arith.mulf %574, %573 : vector<1x16x16xf32>
    %576 = arith.addf %561, %575 : vector<1x16x16xf32>
    %577 = vector.broadcast %304 : f32 to vector<1x16x16xf32>
    %578 = arith.mulf %577, %573 : vector<1x16x16xf32>
    %579 = arith.addf %564, %578 : vector<1x16x16xf32>
    %580 = vector.broadcast %340 : f32 to vector<1x16x16xf32>
    %581 = arith.mulf %580, %573 : vector<1x16x16xf32>
    %582 = arith.addf %567, %581 : vector<1x16x16xf32>
    %583 = vector.broadcast %376 : f32 to vector<1x16x16xf32>
    %584 = arith.mulf %583, %573 : vector<1x16x16xf32>
    %585 = arith.addf %570, %584 : vector<1x16x16xf32>
    %cst_106 = arith.constant 0.000000e+00 : f32
    %586 = vector.broadcast %cst_106 : f32 to vector<1x16x1xf32>
    %587 = vector.extract_strided_slice %136 {offsets = [0, 0, 0], sizes = [1, 16, 15], strides = [1, 1, 1]} : vector<1x16x16xf32> to vector<1x16x15xf32>
    %588 = tpu.concatenate %586, %587 in 2 : vector<1x16x1xf32>, vector<1x16x15xf32> -> vector<1x16x16xf32>
    %589 = vector.broadcast %269 : f32 to vector<1x16x16xf32>
    %590 = arith.mulf %589, %588 : vector<1x16x16xf32>
    %591 = arith.addf %576, %590 : vector<1x16x16xf32>
    %592 = vector.broadcast %305 : f32 to vector<1x16x16xf32>
    %593 = arith.mulf %592, %588 : vector<1x16x16xf32>
    %594 = arith.addf %579, %593 : vector<1x16x16xf32>
    %595 = vector.broadcast %341 : f32 to vector<1x16x16xf32>
    %596 = arith.mulf %595, %588 : vector<1x16x16xf32>
    %597 = arith.addf %582, %596 : vector<1x16x16xf32>
    %598 = vector.broadcast %377 : f32 to vector<1x16x16xf32>
    %599 = arith.mulf %598, %588 : vector<1x16x16xf32>
    %600 = arith.addf %585, %599 : vector<1x16x16xf32>
    %601 = vector.broadcast %270 : f32 to vector<1x16x16xf32>
    %602 = arith.mulf %601, %136 : vector<1x16x16xf32>
    %603 = arith.addf %591, %602 : vector<1x16x16xf32>
    %604 = vector.broadcast %306 : f32 to vector<1x16x16xf32>
    %605 = arith.mulf %604, %136 : vector<1x16x16xf32>
    %606 = arith.addf %594, %605 : vector<1x16x16xf32>
    %607 = vector.broadcast %342 : f32 to vector<1x16x16xf32>
    %608 = arith.mulf %607, %136 : vector<1x16x16xf32>
    %609 = arith.addf %597, %608 : vector<1x16x16xf32>
    %610 = vector.broadcast %378 : f32 to vector<1x16x16xf32>
    %611 = arith.mulf %610, %136 : vector<1x16x16xf32>
    %612 = arith.addf %600, %611 : vector<1x16x16xf32>
    %cst_107 = arith.constant 0.000000e+00 : f32
    %613 = vector.broadcast %cst_107 : f32 to vector<1x16x1xf32>
    %614 = vector.extract_strided_slice %136 {offsets = [0, 0, 1], sizes = [1, 16, 15], strides = [1, 1, 1]} : vector<1x16x16xf32> to vector<1x16x15xf32>
    %615 = tpu.concatenate %614, %613 in 2 : vector<1x16x15xf32>, vector<1x16x1xf32> -> vector<1x16x16xf32>
    %616 = vector.broadcast %271 : f32 to vector<1x16x16xf32>
    %617 = arith.mulf %616, %615 : vector<1x16x16xf32>
    %618 = arith.addf %603, %617 : vector<1x16x16xf32>
    %619 = vector.broadcast %307 : f32 to vector<1x16x16xf32>
    %620 = arith.mulf %619, %615 : vector<1x16x16xf32>
    %621 = arith.addf %606, %620 : vector<1x16x16xf32>
    %622 = vector.broadcast %343 : f32 to vector<1x16x16xf32>
    %623 = arith.mulf %622, %615 : vector<1x16x16xf32>
    %624 = arith.addf %609, %623 : vector<1x16x16xf32>
    %625 = vector.broadcast %379 : f32 to vector<1x16x16xf32>
    %626 = arith.mulf %625, %615 : vector<1x16x16xf32>
    %627 = arith.addf %612, %626 : vector<1x16x16xf32>
    %cst_108 = arith.constant 0.000000e+00 : f32
    %628 = vector.broadcast %cst_108 : f32 to vector<1x1x16xf32>
    %629 = vector.extract_strided_slice %136 {offsets = [0, 1, 0], sizes = [1, 15, 16], strides = [1, 1, 1]} : vector<1x16x16xf32> to vector<1x15x16xf32>
    %630 = tpu.concatenate %629, %628 in 1 : vector<1x15x16xf32>, vector<1x1x16xf32> -> vector<1x16x16xf32>
    %cst_109 = arith.constant 0.000000e+00 : f32
    %631 = vector.broadcast %cst_109 : f32 to vector<1x16x1xf32>
    %632 = vector.extract_strided_slice %630 {offsets = [0, 0, 0], sizes = [1, 16, 15], strides = [1, 1, 1]} : vector<1x16x16xf32> to vector<1x16x15xf32>
    %633 = tpu.concatenate %631, %632 in 2 : vector<1x16x1xf32>, vector<1x16x15xf32> -> vector<1x16x16xf32>
    %634 = vector.broadcast %272 : f32 to vector<1x16x16xf32>
    %635 = arith.mulf %634, %633 : vector<1x16x16xf32>
    %636 = arith.addf %618, %635 : vector<1x16x16xf32>
    %637 = vector.broadcast %308 : f32 to vector<1x16x16xf32>
    %638 = arith.mulf %637, %633 : vector<1x16x16xf32>
    %639 = arith.addf %621, %638 : vector<1x16x16xf32>
    %640 = vector.broadcast %344 : f32 to vector<1x16x16xf32>
    %641 = arith.mulf %640, %633 : vector<1x16x16xf32>
    %642 = arith.addf %624, %641 : vector<1x16x16xf32>
    %643 = vector.broadcast %380 : f32 to vector<1x16x16xf32>
    %644 = arith.mulf %643, %633 : vector<1x16x16xf32>
    %645 = arith.addf %627, %644 : vector<1x16x16xf32>
    %646 = vector.broadcast %273 : f32 to vector<1x16x16xf32>
    %647 = arith.mulf %646, %630 : vector<1x16x16xf32>
    %648 = arith.addf %636, %647 : vector<1x16x16xf32>
    %649 = vector.broadcast %309 : f32 to vector<1x16x16xf32>
    %650 = arith.mulf %649, %630 : vector<1x16x16xf32>
    %651 = arith.addf %639, %650 : vector<1x16x16xf32>
    %652 = vector.broadcast %345 : f32 to vector<1x16x16xf32>
    %653 = arith.mulf %652, %630 : vector<1x16x16xf32>
    %654 = arith.addf %642, %653 : vector<1x16x16xf32>
    %655 = vector.broadcast %381 : f32 to vector<1x16x16xf32>
    %656 = arith.mulf %655, %630 : vector<1x16x16xf32>
    %657 = arith.addf %645, %656 : vector<1x16x16xf32>
    %cst_110 = arith.constant 0.000000e+00 : f32
    %658 = vector.broadcast %cst_110 : f32 to vector<1x16x1xf32>
    %659 = vector.extract_strided_slice %630 {offsets = [0, 0, 1], sizes = [1, 16, 15], strides = [1, 1, 1]} : vector<1x16x16xf32> to vector<1x16x15xf32>
    %660 = tpu.concatenate %659, %658 in 2 : vector<1x16x15xf32>, vector<1x16x1xf32> -> vector<1x16x16xf32>
    %661 = vector.broadcast %274 : f32 to vector<1x16x16xf32>
    %662 = arith.mulf %661, %660 : vector<1x16x16xf32>
    %663 = arith.addf %648, %662 : vector<1x16x16xf32>
    %664 = vector.broadcast %310 : f32 to vector<1x16x16xf32>
    %665 = arith.mulf %664, %660 : vector<1x16x16xf32>
    %666 = arith.addf %651, %665 : vector<1x16x16xf32>
    %667 = vector.broadcast %346 : f32 to vector<1x16x16xf32>
    %668 = arith.mulf %667, %660 : vector<1x16x16xf32>
    %669 = arith.addf %654, %668 : vector<1x16x16xf32>
    %670 = vector.broadcast %382 : f32 to vector<1x16x16xf32>
    %671 = arith.mulf %670, %660 : vector<1x16x16xf32>
    %672 = arith.addf %657, %671 : vector<1x16x16xf32>
    %cst_111 = arith.constant 0.000000e+00 : f32
    %673 = vector.broadcast %cst_111 : f32 to vector<1x1x16xf32>
    %674 = vector.extract_strided_slice %196 {offsets = [0, 0, 0], sizes = [1, 15, 16], strides = [1, 1, 1]} : vector<1x16x16xf32> to vector<1x15x16xf32>
    %675 = tpu.concatenate %673, %674 in 1 : vector<1x1x16xf32>, vector<1x15x16xf32> -> vector<1x16x16xf32>
    %cst_112 = arith.constant 0.000000e+00 : f32
    %676 = vector.broadcast %cst_112 : f32 to vector<1x16x1xf32>
    %677 = vector.extract_strided_slice %675 {offsets = [0, 0, 0], sizes = [1, 16, 15], strides = [1, 1, 1]} : vector<1x16x16xf32> to vector<1x16x15xf32>
    %678 = tpu.concatenate %676, %677 in 2 : vector<1x16x1xf32>, vector<1x16x15xf32> -> vector<1x16x16xf32>
    %679 = vector.broadcast %275 : f32 to vector<1x16x16xf32>
    %680 = arith.mulf %679, %678 : vector<1x16x16xf32>
    %681 = arith.addf %663, %680 : vector<1x16x16xf32>
    %682 = vector.broadcast %311 : f32 to vector<1x16x16xf32>
    %683 = arith.mulf %682, %678 : vector<1x16x16xf32>
    %684 = arith.addf %666, %683 : vector<1x16x16xf32>
    %685 = vector.broadcast %347 : f32 to vector<1x16x16xf32>
    %686 = arith.mulf %685, %678 : vector<1x16x16xf32>
    %687 = arith.addf %669, %686 : vector<1x16x16xf32>
    %688 = vector.broadcast %383 : f32 to vector<1x16x16xf32>
    %689 = arith.mulf %688, %678 : vector<1x16x16xf32>
    %690 = arith.addf %672, %689 : vector<1x16x16xf32>
    %691 = vector.broadcast %276 : f32 to vector<1x16x16xf32>
    %692 = arith.mulf %691, %675 : vector<1x16x16xf32>
    %693 = arith.addf %681, %692 : vector<1x16x16xf32>
    %694 = vector.broadcast %312 : f32 to vector<1x16x16xf32>
    %695 = arith.mulf %694, %675 : vector<1x16x16xf32>
    %696 = arith.addf %684, %695 : vector<1x16x16xf32>
    %697 = vector.broadcast %348 : f32 to vector<1x16x16xf32>
    %698 = arith.mulf %697, %675 : vector<1x16x16xf32>
    %699 = arith.addf %687, %698 : vector<1x16x16xf32>
    %700 = vector.broadcast %384 : f32 to vector<1x16x16xf32>
    %701 = arith.mulf %700, %675 : vector<1x16x16xf32>
    %702 = arith.addf %690, %701 : vector<1x16x16xf32>
    %cst_113 = arith.constant 0.000000e+00 : f32
    %703 = vector.broadcast %cst_113 : f32 to vector<1x16x1xf32>
    %704 = vector.extract_strided_slice %675 {offsets = [0, 0, 1], sizes = [1, 16, 15], strides = [1, 1, 1]} : vector<1x16x16xf32> to vector<1x16x15xf32>
    %705 = tpu.concatenate %704, %703 in 2 : vector<1x16x15xf32>, vector<1x16x1xf32> -> vector<1x16x16xf32>
    %706 = vector.broadcast %277 : f32 to vector<1x16x16xf32>
    %707 = arith.mulf %706, %705 : vector<1x16x16xf32>
    %708 = arith.addf %693, %707 : vector<1x16x16xf32>
    %709 = vector.broadcast %313 : f32 to vector<1x16x16xf32>
    %710 = arith.mulf %709, %705 : vector<1x16x16xf32>
    %711 = arith.addf %696, %710 : vector<1x16x16xf32>
    %712 = vector.broadcast %349 : f32 to vector<1x16x16xf32>
    %713 = arith.mulf %712, %705 : vector<1x16x16xf32>
    %714 = arith.addf %699, %713 : vector<1x16x16xf32>
    %715 = vector.broadcast %385 : f32 to vector<1x16x16xf32>
    %716 = arith.mulf %715, %705 : vector<1x16x16xf32>
    %717 = arith.addf %702, %716 : vector<1x16x16xf32>
    %cst_114 = arith.constant 0.000000e+00 : f32
    %718 = vector.broadcast %cst_114 : f32 to vector<1x16x1xf32>
    %719 = vector.extract_strided_slice %196 {offsets = [0, 0, 0], sizes = [1, 16, 15], strides = [1, 1, 1]} : vector<1x16x16xf32> to vector<1x16x15xf32>
    %720 = tpu.concatenate %718, %719 in 2 : vector<1x16x1xf32>, vector<1x16x15xf32> -> vector<1x16x16xf32>
    %721 = vector.broadcast %278 : f32 to vector<1x16x16xf32>
    %722 = arith.mulf %721, %720 : vector<1x16x16xf32>
    %723 = arith.addf %708, %722 : vector<1x16x16xf32>
    %724 = vector.broadcast %314 : f32 to vector<1x16x16xf32>
    %725 = arith.mulf %724, %720 : vector<1x16x16xf32>
    %726 = arith.addf %711, %725 : vector<1x16x16xf32>
    %727 = vector.broadcast %350 : f32 to vector<1x16x16xf32>
    %728 = arith.mulf %727, %720 : vector<1x16x16xf32>
    %729 = arith.addf %714, %728 : vector<1x16x16xf32>
    %730 = vector.broadcast %386 : f32 to vector<1x16x16xf32>
    %731 = arith.mulf %730, %720 : vector<1x16x16xf32>
    %732 = arith.addf %717, %731 : vector<1x16x16xf32>
    %733 = vector.broadcast %279 : f32 to vector<1x16x16xf32>
    %734 = arith.mulf %733, %196 : vector<1x16x16xf32>
    %735 = arith.addf %723, %734 : vector<1x16x16xf32>
    %736 = vector.broadcast %315 : f32 to vector<1x16x16xf32>
    %737 = arith.mulf %736, %196 : vector<1x16x16xf32>
    %738 = arith.addf %726, %737 : vector<1x16x16xf32>
    %739 = vector.broadcast %351 : f32 to vector<1x16x16xf32>
    %740 = arith.mulf %739, %196 : vector<1x16x16xf32>
    %741 = arith.addf %729, %740 : vector<1x16x16xf32>
    %742 = vector.broadcast %387 : f32 to vector<1x16x16xf32>
    %743 = arith.mulf %742, %196 : vector<1x16x16xf32>
    %744 = arith.addf %732, %743 : vector<1x16x16xf32>
    %cst_115 = arith.constant 0.000000e+00 : f32
    %745 = vector.broadcast %cst_115 : f32 to vector<1x16x1xf32>
    %746 = vector.extract_strided_slice %196 {offsets = [0, 0, 1], sizes = [1, 16, 15], strides = [1, 1, 1]} : vector<1x16x16xf32> to vector<1x16x15xf32>
    %747 = tpu.concatenate %746, %745 in 2 : vector<1x16x15xf32>, vector<1x16x1xf32> -> vector<1x16x16xf32>
    %748 = vector.broadcast %280 : f32 to vector<1x16x16xf32>
    %749 = arith.mulf %748, %747 : vector<1x16x16xf32>
    %750 = arith.addf %735, %749 : vector<1x16x16xf32>
    %751 = vector.broadcast %316 : f32 to vector<1x16x16xf32>
    %752 = arith.mulf %751, %747 : vector<1x16x16xf32>
    %753 = arith.addf %738, %752 : vector<1x16x16xf32>
    %754 = vector.broadcast %352 : f32 to vector<1x16x16xf32>
    %755 = arith.mulf %754, %747 : vector<1x16x16xf32>
    %756 = arith.addf %741, %755 : vector<1x16x16xf32>
    %757 = vector.broadcast %388 : f32 to vector<1x16x16xf32>
    %758 = arith.mulf %757, %747 : vector<1x16x16xf32>
    %759 = arith.addf %744, %758 : vector<1x16x16xf32>
    %cst_116 = arith.constant 0.000000e+00 : f32
    %760 = vector.broadcast %cst_116 : f32 to vector<1x1x16xf32>
    %761 = vector.extract_strided_slice %196 {offsets = [0, 1, 0], sizes = [1, 15, 16], strides = [1, 1, 1]} : vector<1x16x16xf32> to vector<1x15x16xf32>
    %762 = tpu.concatenate %761, %760 in 1 : vector<1x15x16xf32>, vector<1x1x16xf32> -> vector<1x16x16xf32>
    %cst_117 = arith.constant 0.000000e+00 : f32
    %763 = vector.broadcast %cst_117 : f32 to vector<1x16x1xf32>
    %764 = vector.extract_strided_slice %762 {offsets = [0, 0, 0], sizes = [1, 16, 15], strides = [1, 1, 1]} : vector<1x16x16xf32> to vector<1x16x15xf32>
    %765 = tpu.concatenate %763, %764 in 2 : vector<1x16x1xf32>, vector<1x16x15xf32> -> vector<1x16x16xf32>
    %766 = vector.broadcast %281 : f32 to vector<1x16x16xf32>
    %767 = arith.mulf %766, %765 : vector<1x16x16xf32>
    %768 = arith.addf %750, %767 : vector<1x16x16xf32>
    %769 = vector.broadcast %317 : f32 to vector<1x16x16xf32>
    %770 = arith.mulf %769, %765 : vector<1x16x16xf32>
    %771 = arith.addf %753, %770 : vector<1x16x16xf32>
    %772 = vector.broadcast %353 : f32 to vector<1x16x16xf32>
    %773 = arith.mulf %772, %765 : vector<1x16x16xf32>
    %774 = arith.addf %756, %773 : vector<1x16x16xf32>
    %775 = vector.broadcast %389 : f32 to vector<1x16x16xf32>
    %776 = arith.mulf %775, %765 : vector<1x16x16xf32>
    %777 = arith.addf %759, %776 : vector<1x16x16xf32>
    %778 = vector.broadcast %282 : f32 to vector<1x16x16xf32>
    %779 = arith.mulf %778, %762 : vector<1x16x16xf32>
    %780 = arith.addf %768, %779 : vector<1x16x16xf32>
    %781 = vector.broadcast %318 : f32 to vector<1x16x16xf32>
    %782 = arith.mulf %781, %762 : vector<1x16x16xf32>
    %783 = arith.addf %771, %782 : vector<1x16x16xf32>
    %784 = vector.broadcast %354 : f32 to vector<1x16x16xf32>
    %785 = arith.mulf %784, %762 : vector<1x16x16xf32>
    %786 = arith.addf %774, %785 : vector<1x16x16xf32>
    %787 = vector.broadcast %390 : f32 to vector<1x16x16xf32>
    %788 = arith.mulf %787, %762 : vector<1x16x16xf32>
    %789 = arith.addf %777, %788 : vector<1x16x16xf32>
    %cst_118 = arith.constant 0.000000e+00 : f32
    %790 = vector.broadcast %cst_118 : f32 to vector<1x16x1xf32>
    %791 = vector.extract_strided_slice %762 {offsets = [0, 0, 1], sizes = [1, 16, 15], strides = [1, 1, 1]} : vector<1x16x16xf32> to vector<1x16x15xf32>
    %792 = tpu.concatenate %791, %790 in 2 : vector<1x16x15xf32>, vector<1x16x1xf32> -> vector<1x16x16xf32>
    %793 = vector.broadcast %283 : f32 to vector<1x16x16xf32>
    %794 = arith.mulf %793, %792 : vector<1x16x16xf32>
    %795 = arith.addf %780, %794 : vector<1x16x16xf32>
    %796 = vector.broadcast %319 : f32 to vector<1x16x16xf32>
    %797 = arith.mulf %796, %792 : vector<1x16x16xf32>
    %798 = arith.addf %783, %797 : vector<1x16x16xf32>
    %799 = vector.broadcast %355 : f32 to vector<1x16x16xf32>
    %800 = arith.mulf %799, %792 : vector<1x16x16xf32>
    %801 = arith.addf %786, %800 : vector<1x16x16xf32>
    %802 = vector.broadcast %391 : f32 to vector<1x16x16xf32>
    %803 = arith.mulf %802, %792 : vector<1x16x16xf32>
    %804 = arith.addf %789, %803 : vector<1x16x16xf32>
    %cst_119 = arith.constant 0.000000e+00 : f32
    %805 = vector.broadcast %cst_119 : f32 to vector<1x1x16xf32>
    %806 = vector.extract_strided_slice %256 {offsets = [0, 0, 0], sizes = [1, 15, 16], strides = [1, 1, 1]} : vector<1x16x16xf32> to vector<1x15x16xf32>
    %807 = tpu.concatenate %805, %806 in 1 : vector<1x1x16xf32>, vector<1x15x16xf32> -> vector<1x16x16xf32>
    %cst_120 = arith.constant 0.000000e+00 : f32
    %808 = vector.broadcast %cst_120 : f32 to vector<1x16x1xf32>
    %809 = vector.extract_strided_slice %807 {offsets = [0, 0, 0], sizes = [1, 16, 15], strides = [1, 1, 1]} : vector<1x16x16xf32> to vector<1x16x15xf32>
    %810 = tpu.concatenate %808, %809 in 2 : vector<1x16x1xf32>, vector<1x16x15xf32> -> vector<1x16x16xf32>
    %811 = vector.broadcast %284 : f32 to vector<1x16x16xf32>
    %812 = arith.mulf %811, %810 : vector<1x16x16xf32>
    %813 = arith.addf %795, %812 : vector<1x16x16xf32>
    %814 = vector.broadcast %320 : f32 to vector<1x16x16xf32>
    %815 = arith.mulf %814, %810 : vector<1x16x16xf32>
    %816 = arith.addf %798, %815 : vector<1x16x16xf32>
    %817 = vector.broadcast %356 : f32 to vector<1x16x16xf32>
    %818 = arith.mulf %817, %810 : vector<1x16x16xf32>
    %819 = arith.addf %801, %818 : vector<1x16x16xf32>
    %820 = vector.broadcast %392 : f32 to vector<1x16x16xf32>
    %821 = arith.mulf %820, %810 : vector<1x16x16xf32>
    %822 = arith.addf %804, %821 : vector<1x16x16xf32>
    %823 = vector.broadcast %285 : f32 to vector<1x16x16xf32>
    %824 = arith.mulf %823, %807 : vector<1x16x16xf32>
    %825 = arith.addf %813, %824 : vector<1x16x16xf32>
    %826 = vector.broadcast %321 : f32 to vector<1x16x16xf32>
    %827 = arith.mulf %826, %807 : vector<1x16x16xf32>
    %828 = arith.addf %816, %827 : vector<1x16x16xf32>
    %829 = vector.broadcast %357 : f32 to vector<1x16x16xf32>
    %830 = arith.mulf %829, %807 : vector<1x16x16xf32>
    %831 = arith.addf %819, %830 : vector<1x16x16xf32>
    %832 = vector.broadcast %393 : f32 to vector<1x16x16xf32>
    %833 = arith.mulf %832, %807 : vector<1x16x16xf32>
    %834 = arith.addf %822, %833 : vector<1x16x16xf32>
    %cst_121 = arith.constant 0.000000e+00 : f32
    %835 = vector.broadcast %cst_121 : f32 to vector<1x16x1xf32>
    %836 = vector.extract_strided_slice %807 {offsets = [0, 0, 1], sizes = [1, 16, 15], strides = [1, 1, 1]} : vector<1x16x16xf32> to vector<1x16x15xf32>
    %837 = tpu.concatenate %836, %835 in 2 : vector<1x16x15xf32>, vector<1x16x1xf32> -> vector<1x16x16xf32>
    %838 = vector.broadcast %286 : f32 to vector<1x16x16xf32>
    %839 = arith.mulf %838, %837 : vector<1x16x16xf32>
    %840 = arith.addf %825, %839 : vector<1x16x16xf32>
    %841 = vector.broadcast %322 : f32 to vector<1x16x16xf32>
    %842 = arith.mulf %841, %837 : vector<1x16x16xf32>
    %843 = arith.addf %828, %842 : vector<1x16x16xf32>
    %844 = vector.broadcast %358 : f32 to vector<1x16x16xf32>
    %845 = arith.mulf %844, %837 : vector<1x16x16xf32>
    %846 = arith.addf %831, %845 : vector<1x16x16xf32>
    %847 = vector.broadcast %394 : f32 to vector<1x16x16xf32>
    %848 = arith.mulf %847, %837 : vector<1x16x16xf32>
    %849 = arith.addf %834, %848 : vector<1x16x16xf32>
    %cst_122 = arith.constant 0.000000e+00 : f32
    %850 = vector.broadcast %cst_122 : f32 to vector<1x16x1xf32>
    %851 = vector.extract_strided_slice %256 {offsets = [0, 0, 0], sizes = [1, 16, 15], strides = [1, 1, 1]} : vector<1x16x16xf32> to vector<1x16x15xf32>
    %852 = tpu.concatenate %850, %851 in 2 : vector<1x16x1xf32>, vector<1x16x15xf32> -> vector<1x16x16xf32>
    %853 = vector.broadcast %287 : f32 to vector<1x16x16xf32>
    %854 = arith.mulf %853, %852 : vector<1x16x16xf32>
    %855 = arith.addf %840, %854 : vector<1x16x16xf32>
    %856 = vector.broadcast %323 : f32 to vector<1x16x16xf32>
    %857 = arith.mulf %856, %852 : vector<1x16x16xf32>
    %858 = arith.addf %843, %857 : vector<1x16x16xf32>
    %859 = vector.broadcast %359 : f32 to vector<1x16x16xf32>
    %860 = arith.mulf %859, %852 : vector<1x16x16xf32>
    %861 = arith.addf %846, %860 : vector<1x16x16xf32>
    %862 = vector.broadcast %395 : f32 to vector<1x16x16xf32>
    %863 = arith.mulf %862, %852 : vector<1x16x16xf32>
    %864 = arith.addf %849, %863 : vector<1x16x16xf32>
    %865 = vector.broadcast %288 : f32 to vector<1x16x16xf32>
    %866 = arith.mulf %865, %256 : vector<1x16x16xf32>
    %867 = arith.addf %855, %866 : vector<1x16x16xf32>
    %868 = vector.broadcast %324 : f32 to vector<1x16x16xf32>
    %869 = arith.mulf %868, %256 : vector<1x16x16xf32>
    %870 = arith.addf %858, %869 : vector<1x16x16xf32>
    %871 = vector.broadcast %360 : f32 to vector<1x16x16xf32>
    %872 = arith.mulf %871, %256 : vector<1x16x16xf32>
    %873 = arith.addf %861, %872 : vector<1x16x16xf32>
    %874 = vector.broadcast %396 : f32 to vector<1x16x16xf32>
    %875 = arith.mulf %874, %256 : vector<1x16x16xf32>
    %876 = arith.addf %864, %875 : vector<1x16x16xf32>
    %cst_123 = arith.constant 0.000000e+00 : f32
    %877 = vector.broadcast %cst_123 : f32 to vector<1x16x1xf32>
    %878 = vector.extract_strided_slice %256 {offsets = [0, 0, 1], sizes = [1, 16, 15], strides = [1, 1, 1]} : vector<1x16x16xf32> to vector<1x16x15xf32>
    %879 = tpu.concatenate %878, %877 in 2 : vector<1x16x15xf32>, vector<1x16x1xf32> -> vector<1x16x16xf32>
    %880 = vector.broadcast %289 : f32 to vector<1x16x16xf32>
    %881 = arith.mulf %880, %879 : vector<1x16x16xf32>
    %882 = arith.addf %867, %881 : vector<1x16x16xf32>
    %883 = vector.broadcast %325 : f32 to vector<1x16x16xf32>
    %884 = arith.mulf %883, %879 : vector<1x16x16xf32>
    %885 = arith.addf %870, %884 : vector<1x16x16xf32>
    %886 = vector.broadcast %361 : f32 to vector<1x16x16xf32>
    %887 = arith.mulf %886, %879 : vector<1x16x16xf32>
    %888 = arith.addf %873, %887 : vector<1x16x16xf32>
    %889 = vector.broadcast %397 : f32 to vector<1x16x16xf32>
    %890 = arith.mulf %889, %879 : vector<1x16x16xf32>
    %891 = arith.addf %876, %890 : vector<1x16x16xf32>
    %cst_124 = arith.constant 0.000000e+00 : f32
    %892 = vector.broadcast %cst_124 : f32 to vector<1x1x16xf32>
    %893 = vector.extract_strided_slice %256 {offsets = [0, 1, 0], sizes = [1, 15, 16], strides = [1, 1, 1]} : vector<1x16x16xf32> to vector<1x15x16xf32>
    %894 = tpu.concatenate %893, %892 in 1 : vector<1x15x16xf32>, vector<1x1x16xf32> -> vector<1x16x16xf32>
    %cst_125 = arith.constant 0.000000e+00 : f32
    %895 = vector.broadcast %cst_125 : f32 to vector<1x16x1xf32>
    %896 = vector.extract_strided_slice %894 {offsets = [0, 0, 0], sizes = [1, 16, 15], strides = [1, 1, 1]} : vector<1x16x16xf32> to vector<1x16x15xf32>
    %897 = tpu.concatenate %895, %896 in 2 : vector<1x16x1xf32>, vector<1x16x15xf32> -> vector<1x16x16xf32>
    %898 = vector.broadcast %290 : f32 to vector<1x16x16xf32>
    %899 = arith.mulf %898, %897 : vector<1x16x16xf32>
    %900 = arith.addf %882, %899 : vector<1x16x16xf32>
    %901 = vector.broadcast %326 : f32 to vector<1x16x16xf32>
    %902 = arith.mulf %901, %897 : vector<1x16x16xf32>
    %903 = arith.addf %885, %902 : vector<1x16x16xf32>
    %904 = vector.broadcast %362 : f32 to vector<1x16x16xf32>
    %905 = arith.mulf %904, %897 : vector<1x16x16xf32>
    %906 = arith.addf %888, %905 : vector<1x16x16xf32>
    %907 = vector.broadcast %398 : f32 to vector<1x16x16xf32>
    %908 = arith.mulf %907, %897 : vector<1x16x16xf32>
    %909 = arith.addf %891, %908 : vector<1x16x16xf32>
    %910 = vector.broadcast %291 : f32 to vector<1x16x16xf32>
    %911 = arith.mulf %910, %894 : vector<1x16x16xf32>
    %912 = arith.addf %900, %911 : vector<1x16x16xf32>
    %913 = vector.broadcast %327 : f32 to vector<1x16x16xf32>
    %914 = arith.mulf %913, %894 : vector<1x16x16xf32>
    %915 = arith.addf %903, %914 : vector<1x16x16xf32>
    %916 = vector.broadcast %363 : f32 to vector<1x16x16xf32>
    %917 = arith.mulf %916, %894 : vector<1x16x16xf32>
    %918 = arith.addf %906, %917 : vector<1x16x16xf32>
    %919 = vector.broadcast %399 : f32 to vector<1x16x16xf32>
    %920 = arith.mulf %919, %894 : vector<1x16x16xf32>
    %921 = arith.addf %909, %920 : vector<1x16x16xf32>
    %cst_126 = arith.constant 0.000000e+00 : f32
    %922 = vector.broadcast %cst_126 : f32 to vector<1x16x1xf32>
    %923 = vector.extract_strided_slice %894 {offsets = [0, 0, 1], sizes = [1, 16, 15], strides = [1, 1, 1]} : vector<1x16x16xf32> to vector<1x16x15xf32>
    %924 = tpu.concatenate %923, %922 in 2 : vector<1x16x15xf32>, vector<1x16x1xf32> -> vector<1x16x16xf32>
    %925 = vector.broadcast %292 : f32 to vector<1x16x16xf32>
    %926 = arith.mulf %925, %924 : vector<1x16x16xf32>
    %927 = arith.addf %912, %926 : vector<1x16x16xf32>
    %928 = vector.broadcast %328 : f32 to vector<1x16x16xf32>
    %929 = arith.mulf %928, %924 : vector<1x16x16xf32>
    %930 = arith.addf %915, %929 : vector<1x16x16xf32>
    %931 = vector.broadcast %364 : f32 to vector<1x16x16xf32>
    %932 = arith.mulf %931, %924 : vector<1x16x16xf32>
    %933 = arith.addf %918, %932 : vector<1x16x16xf32>
    %934 = vector.broadcast %400 : f32 to vector<1x16x16xf32>
    %935 = arith.mulf %934, %924 : vector<1x16x16xf32>
    %936 = arith.addf %921, %935 : vector<1x16x16xf32>
    %cst_127 = arith.constant dense<0.000000e+00> : vector<1x16xf32>
    %937 = vector.multi_reduction <add>, %927, %cst_127 [1] : vector<1x16x16xf32> to vector<1x16xf32>
    %938 = vector.shape_cast %937 : vector<1x16xf32> to vector<1x1x16xf32>
    %cst_128 = arith.constant 1.600000e+01 : f32
    %939 = vector.broadcast %cst_128 : f32 to vector<1x1x16xf32>
    %940 = arith.divf %938, %939 : vector<1x1x16xf32>
    %941 = vector.broadcast %940 : vector<1x1x16xf32> to vector<1x16x16xf32>
    %942 = arith.subf %927, %941 : vector<1x16x16xf32>
    %943 = arith.mulf %942, %942 : vector<1x16x16xf32>
    %cst_129 = arith.constant dense<0.000000e+00> : vector<1x16xf32>
    %944 = vector.multi_reduction <add>, %943, %cst_129 [1] : vector<1x16x16xf32> to vector<1x16xf32>
    %945 = vector.shape_cast %944 : vector<1x16xf32> to vector<1x1x16xf32>
    %cst_130 = arith.constant 1.600000e+01 : f32
    %946 = vector.broadcast %cst_130 : f32 to vector<1x1x16xf32>
    %947 = arith.divf %945, %946 : vector<1x1x16xf32>
    %cst_131 = arith.constant 9.99999974E-6 : f32
    %948 = vector.broadcast %cst_131 : f32 to vector<1x1x16xf32>
    %949 = arith.addf %947, %948 : vector<1x1x16xf32>
    %950 = math.rsqrt %949 : vector<1x1x16xf32>
    %951 = vector.broadcast %950 : vector<1x1x16xf32> to vector<1x16x16xf32>
    %952 = arith.mulf %942, %951 : vector<1x16x16xf32>
    %953 = vector.broadcast %5 : vector<1x16x1xf32> to vector<1x16x16xf32>
    %954 = arith.mulf %952, %953 : vector<1x16x16xf32>
    %955 = vector.broadcast %7 : vector<1x16x1xf32> to vector<1x16x16xf32>
    %956 = arith.addf %954, %955 : vector<1x16x16xf32>
    %cst_132 = arith.constant 5.000000e-01 : f32
    %957 = vector.broadcast %cst_132 : f32 to vector<1x16x16xf32>
    %958 = arith.mulf %957, %956 : vector<1x16x16xf32>
    %cst_133 = arith.constant 0.707106769 : f32
    %959 = vector.broadcast %cst_133 : f32 to vector<1x16x16xf32>
    %960 = arith.mulf %956, %959 : vector<1x16x16xf32>
    %cst_134 = arith.constant 0.000000e+00 : f32
    %961 = vector.broadcast %cst_134 : f32 to vector<1x16x16xf32>
    %962 = arith.cmpf olt, %960, %961 : vector<1x16x16xf32>
    %cst_135 = arith.constant -1.000000e+00 : f32
    %cst_136 = arith.constant 1.000000e+00 : f32
    %963 = vector.broadcast %cst_135 : f32 to vector<1x16x16xf32>
    %964 = vector.broadcast %cst_136 : f32 to vector<1x16x16xf32>
    %965 = arith.select %962, %963, %964 : vector<1x16x16xi1>, vector<1x16x16xf32>
    %966 = math.absf %960 : vector<1x16x16xf32>
    %cst_137 = arith.constant 0.327591091 : f32
    %967 = vector.broadcast %cst_137 : f32 to vector<1x16x16xf32>
    %968 = arith.mulf %967, %966 : vector<1x16x16xf32>
    %cst_138 = arith.constant 1.000000e+00 : f32
    %969 = vector.broadcast %cst_138 : f32 to vector<1x16x16xf32>
    %970 = arith.addf %969, %968 : vector<1x16x16xf32>
    %971 = tpu.reciprocal %970 : vector<1x16x16xf32> -> vector<1x16x16xf32>
    %cst_139 = arith.constant 1.06140542 : f32
    %972 = vector.broadcast %cst_139 : f32 to vector<1x16x16xf32>
    %973 = arith.mulf %972, %971 : vector<1x16x16xf32>
    %cst_140 = arith.constant 1.45315206 : f32
    %974 = vector.broadcast %cst_140 : f32 to vector<1x16x16xf32>
    %975 = arith.subf %973, %974 : vector<1x16x16xf32>
    %976 = arith.mulf %975, %971 : vector<1x16x16xf32>
    %cst_141 = arith.constant 1.42141378 : f32
    %977 = vector.broadcast %cst_141 : f32 to vector<1x16x16xf32>
    %978 = arith.addf %976, %977 : vector<1x16x16xf32>
    %979 = arith.mulf %978, %971 : vector<1x16x16xf32>
    %cst_142 = arith.constant 0.284496725 : f32
    %980 = vector.broadcast %cst_142 : f32 to vector<1x16x16xf32>
    %981 = arith.subf %979, %980 : vector<1x16x16xf32>
    %982 = arith.mulf %981, %971 : vector<1x16x16xf32>
    %cst_143 = arith.constant 0.254829586 : f32
    %983 = vector.broadcast %cst_143 : f32 to vector<1x16x16xf32>
    %984 = arith.addf %982, %983 : vector<1x16x16xf32>
    %985 = arith.mulf %984, %971 : vector<1x16x16xf32>
    %cst_144 = arith.constant 0.000000e+00 : f32
    %986 = vector.broadcast %cst_144 : f32 to vector<1x16x16xf32>
    %987 = arith.subf %986, %966 : vector<1x16x16xf32>
    %988 = arith.mulf %987, %966 : vector<1x16x16xf32>
    %989 = math.exp %988 : vector<1x16x16xf32>
    %990 = arith.mulf %985, %989 : vector<1x16x16xf32>
    %cst_145 = arith.constant 1.000000e+00 : f32
    %991 = vector.broadcast %cst_145 : f32 to vector<1x16x16xf32>
    %992 = arith.subf %991, %990 : vector<1x16x16xf32>
    %993 = arith.mulf %965, %992 : vector<1x16x16xf32>
    %cst_146 = arith.constant 1.000000e+00 : f32
    %994 = vector.broadcast %cst_146 : f32 to vector<1x16x16xf32>
    %995 = arith.addf %994, %993 : vector<1x16x16xf32>
    %996 = arith.mulf %958, %995 : vector<1x16x16xf32>
    %cst_147 = arith.constant dense<0.000000e+00> : vector<1x16xf32>
    %997 = vector.multi_reduction <add>, %930, %cst_147 [1] : vector<1x16x16xf32> to vector<1x16xf32>
    %998 = vector.shape_cast %997 : vector<1x16xf32> to vector<1x1x16xf32>
    %cst_148 = arith.constant 1.600000e+01 : f32
    %999 = vector.broadcast %cst_148 : f32 to vector<1x1x16xf32>
    %1000 = arith.divf %998, %999 : vector<1x1x16xf32>
    %1001 = vector.broadcast %1000 : vector<1x1x16xf32> to vector<1x16x16xf32>
    %1002 = arith.subf %930, %1001 : vector<1x16x16xf32>
    %1003 = arith.mulf %1002, %1002 : vector<1x16x16xf32>
    %cst_149 = arith.constant dense<0.000000e+00> : vector<1x16xf32>
    %1004 = vector.multi_reduction <add>, %1003, %cst_149 [1] : vector<1x16x16xf32> to vector<1x16xf32>
    %1005 = vector.shape_cast %1004 : vector<1x16xf32> to vector<1x1x16xf32>
    %cst_150 = arith.constant 1.600000e+01 : f32
    %1006 = vector.broadcast %cst_150 : f32 to vector<1x1x16xf32>
    %1007 = arith.divf %1005, %1006 : vector<1x1x16xf32>
    %cst_151 = arith.constant 9.99999974E-6 : f32
    %1008 = vector.broadcast %cst_151 : f32 to vector<1x1x16xf32>
    %1009 = arith.addf %1007, %1008 : vector<1x1x16xf32>
    %1010 = math.rsqrt %1009 : vector<1x1x16xf32>
    %1011 = vector.broadcast %1010 : vector<1x1x16xf32> to vector<1x16x16xf32>
    %1012 = arith.mulf %1002, %1011 : vector<1x16x16xf32>
    %1013 = vector.broadcast %5 : vector<1x16x1xf32> to vector<1x16x16xf32>
    %1014 = arith.mulf %1012, %1013 : vector<1x16x16xf32>
    %1015 = vector.broadcast %7 : vector<1x16x1xf32> to vector<1x16x16xf32>
    %1016 = arith.addf %1014, %1015 : vector<1x16x16xf32>
    %cst_152 = arith.constant 5.000000e-01 : f32
    %1017 = vector.broadcast %cst_152 : f32 to vector<1x16x16xf32>
    %1018 = arith.mulf %1017, %1016 : vector<1x16x16xf32>
    %cst_153 = arith.constant 0.707106769 : f32
    %1019 = vector.broadcast %cst_153 : f32 to vector<1x16x16xf32>
    %1020 = arith.mulf %1016, %1019 : vector<1x16x16xf32>
    %cst_154 = arith.constant 0.000000e+00 : f32
    %1021 = vector.broadcast %cst_154 : f32 to vector<1x16x16xf32>
    %1022 = arith.cmpf olt, %1020, %1021 : vector<1x16x16xf32>
    %cst_155 = arith.constant -1.000000e+00 : f32
    %cst_156 = arith.constant 1.000000e+00 : f32
    %1023 = vector.broadcast %cst_155 : f32 to vector<1x16x16xf32>
    %1024 = vector.broadcast %cst_156 : f32 to vector<1x16x16xf32>
    %1025 = arith.select %1022, %1023, %1024 : vector<1x16x16xi1>, vector<1x16x16xf32>
    %1026 = math.absf %1020 : vector<1x16x16xf32>
    %cst_157 = arith.constant 0.327591091 : f32
    %1027 = vector.broadcast %cst_157 : f32 to vector<1x16x16xf32>
    %1028 = arith.mulf %1027, %1026 : vector<1x16x16xf32>
    %cst_158 = arith.constant 1.000000e+00 : f32
    %1029 = vector.broadcast %cst_158 : f32 to vector<1x16x16xf32>
    %1030 = arith.addf %1029, %1028 : vector<1x16x16xf32>
    %1031 = tpu.reciprocal %1030 : vector<1x16x16xf32> -> vector<1x16x16xf32>
    %cst_159 = arith.constant 1.06140542 : f32
    %1032 = vector.broadcast %cst_159 : f32 to vector<1x16x16xf32>
    %1033 = arith.mulf %1032, %1031 : vector<1x16x16xf32>
    %cst_160 = arith.constant 1.45315206 : f32
    %1034 = vector.broadcast %cst_160 : f32 to vector<1x16x16xf32>
    %1035 = arith.subf %1033, %1034 : vector<1x16x16xf32>
    %1036 = arith.mulf %1035, %1031 : vector<1x16x16xf32>
    %cst_161 = arith.constant 1.42141378 : f32
    %1037 = vector.broadcast %cst_161 : f32 to vector<1x16x16xf32>
    %1038 = arith.addf %1036, %1037 : vector<1x16x16xf32>
    %1039 = arith.mulf %1038, %1031 : vector<1x16x16xf32>
    %cst_162 = arith.constant 0.284496725 : f32
    %1040 = vector.broadcast %cst_162 : f32 to vector<1x16x16xf32>
    %1041 = arith.subf %1039, %1040 : vector<1x16x16xf32>
    %1042 = arith.mulf %1041, %1031 : vector<1x16x16xf32>
    %cst_163 = arith.constant 0.254829586 : f32
    %1043 = vector.broadcast %cst_163 : f32 to vector<1x16x16xf32>
    %1044 = arith.addf %1042, %1043 : vector<1x16x16xf32>
    %1045 = arith.mulf %1044, %1031 : vector<1x16x16xf32>
    %cst_164 = arith.constant 0.000000e+00 : f32
    %1046 = vector.broadcast %cst_164 : f32 to vector<1x16x16xf32>
    %1047 = arith.subf %1046, %1026 : vector<1x16x16xf32>
    %1048 = arith.mulf %1047, %1026 : vector<1x16x16xf32>
    %1049 = math.exp %1048 : vector<1x16x16xf32>
    %1050 = arith.mulf %1045, %1049 : vector<1x16x16xf32>
    %cst_165 = arith.constant 1.000000e+00 : f32
    %1051 = vector.broadcast %cst_165 : f32 to vector<1x16x16xf32>
    %1052 = arith.subf %1051, %1050 : vector<1x16x16xf32>
    %1053 = arith.mulf %1025, %1052 : vector<1x16x16xf32>
    %cst_166 = arith.constant 1.000000e+00 : f32
    %1054 = vector.broadcast %cst_166 : f32 to vector<1x16x16xf32>
    %1055 = arith.addf %1054, %1053 : vector<1x16x16xf32>
    %1056 = arith.mulf %1018, %1055 : vector<1x16x16xf32>
    %cst_167 = arith.constant dense<0.000000e+00> : vector<1x16xf32>
    %1057 = vector.multi_reduction <add>, %933, %cst_167 [1] : vector<1x16x16xf32> to vector<1x16xf32>
    %1058 = vector.shape_cast %1057 : vector<1x16xf32> to vector<1x1x16xf32>
    %cst_168 = arith.constant 1.600000e+01 : f32
    %1059 = vector.broadcast %cst_168 : f32 to vector<1x1x16xf32>
    %1060 = arith.divf %1058, %1059 : vector<1x1x16xf32>
    %1061 = vector.broadcast %1060 : vector<1x1x16xf32> to vector<1x16x16xf32>
    %1062 = arith.subf %933, %1061 : vector<1x16x16xf32>
    %1063 = arith.mulf %1062, %1062 : vector<1x16x16xf32>
    %cst_169 = arith.constant dense<0.000000e+00> : vector<1x16xf32>
    %1064 = vector.multi_reduction <add>, %1063, %cst_169 [1] : vector<1x16x16xf32> to vector<1x16xf32>
    %1065 = vector.shape_cast %1064 : vector<1x16xf32> to vector<1x1x16xf32>
    %cst_170 = arith.constant 1.600000e+01 : f32
    %1066 = vector.broadcast %cst_170 : f32 to vector<1x1x16xf32>
    %1067 = arith.divf %1065, %1066 : vector<1x1x16xf32>
    %cst_171 = arith.constant 9.99999974E-6 : f32
    %1068 = vector.broadcast %cst_171 : f32 to vector<1x1x16xf32>
    %1069 = arith.addf %1067, %1068 : vector<1x1x16xf32>
    %1070 = math.rsqrt %1069 : vector<1x1x16xf32>
    %1071 = vector.broadcast %1070 : vector<1x1x16xf32> to vector<1x16x16xf32>
    %1072 = arith.mulf %1062, %1071 : vector<1x16x16xf32>
    %1073 = vector.broadcast %5 : vector<1x16x1xf32> to vector<1x16x16xf32>
    %1074 = arith.mulf %1072, %1073 : vector<1x16x16xf32>
    %1075 = vector.broadcast %7 : vector<1x16x1xf32> to vector<1x16x16xf32>
    %1076 = arith.addf %1074, %1075 : vector<1x16x16xf32>
    %cst_172 = arith.constant 5.000000e-01 : f32
    %1077 = vector.broadcast %cst_172 : f32 to vector<1x16x16xf32>
    %1078 = arith.mulf %1077, %1076 : vector<1x16x16xf32>
    %cst_173 = arith.constant 0.707106769 : f32
    %1079 = vector.broadcast %cst_173 : f32 to vector<1x16x16xf32>
    %1080 = arith.mulf %1076, %1079 : vector<1x16x16xf32>
    %cst_174 = arith.constant 0.000000e+00 : f32
    %1081 = vector.broadcast %cst_174 : f32 to vector<1x16x16xf32>
    %1082 = arith.cmpf olt, %1080, %1081 : vector<1x16x16xf32>
    %cst_175 = arith.constant -1.000000e+00 : f32
    %cst_176 = arith.constant 1.000000e+00 : f32
    %1083 = vector.broadcast %cst_175 : f32 to vector<1x16x16xf32>
    %1084 = vector.broadcast %cst_176 : f32 to vector<1x16x16xf32>
    %1085 = arith.select %1082, %1083, %1084 : vector<1x16x16xi1>, vector<1x16x16xf32>
    %1086 = math.absf %1080 : vector<1x16x16xf32>
    %cst_177 = arith.constant 0.327591091 : f32
    %1087 = vector.broadcast %cst_177 : f32 to vector<1x16x16xf32>
    %1088 = arith.mulf %1087, %1086 : vector<1x16x16xf32>
    %cst_178 = arith.constant 1.000000e+00 : f32
    %1089 = vector.broadcast %cst_178 : f32 to vector<1x16x16xf32>
    %1090 = arith.addf %1089, %1088 : vector<1x16x16xf32>
    %1091 = tpu.reciprocal %1090 : vector<1x16x16xf32> -> vector<1x16x16xf32>
    %cst_179 = arith.constant 1.06140542 : f32
    %1092 = vector.broadcast %cst_179 : f32 to vector<1x16x16xf32>
    %1093 = arith.mulf %1092, %1091 : vector<1x16x16xf32>
    %cst_180 = arith.constant 1.45315206 : f32
    %1094 = vector.broadcast %cst_180 : f32 to vector<1x16x16xf32>
    %1095 = arith.subf %1093, %1094 : vector<1x16x16xf32>
    %1096 = arith.mulf %1095, %1091 : vector<1x16x16xf32>
    %cst_181 = arith.constant 1.42141378 : f32
    %1097 = vector.broadcast %cst_181 : f32 to vector<1x16x16xf32>
    %1098 = arith.addf %1096, %1097 : vector<1x16x16xf32>
    %1099 = arith.mulf %1098, %1091 : vector<1x16x16xf32>
    %cst_182 = arith.constant 0.284496725 : f32
    %1100 = vector.broadcast %cst_182 : f32 to vector<1x16x16xf32>
    %1101 = arith.subf %1099, %1100 : vector<1x16x16xf32>
    %1102 = arith.mulf %1101, %1091 : vector<1x16x16xf32>
    %cst_183 = arith.constant 0.254829586 : f32
    %1103 = vector.broadcast %cst_183 : f32 to vector<1x16x16xf32>
    %1104 = arith.addf %1102, %1103 : vector<1x16x16xf32>
    %1105 = arith.mulf %1104, %1091 : vector<1x16x16xf32>
    %cst_184 = arith.constant 0.000000e+00 : f32
    %1106 = vector.broadcast %cst_184 : f32 to vector<1x16x16xf32>
    %1107 = arith.subf %1106, %1086 : vector<1x16x16xf32>
    %1108 = arith.mulf %1107, %1086 : vector<1x16x16xf32>
    %1109 = math.exp %1108 : vector<1x16x16xf32>
    %1110 = arith.mulf %1105, %1109 : vector<1x16x16xf32>
    %cst_185 = arith.constant 1.000000e+00 : f32
    %1111 = vector.broadcast %cst_185 : f32 to vector<1x16x16xf32>
    %1112 = arith.subf %1111, %1110 : vector<1x16x16xf32>
    %1113 = arith.mulf %1085, %1112 : vector<1x16x16xf32>
    %cst_186 = arith.constant 1.000000e+00 : f32
    %1114 = vector.broadcast %cst_186 : f32 to vector<1x16x16xf32>
    %1115 = arith.addf %1114, %1113 : vector<1x16x16xf32>
    %1116 = arith.mulf %1078, %1115 : vector<1x16x16xf32>
    %cst_187 = arith.constant dense<0.000000e+00> : vector<1x16xf32>
    %1117 = vector.multi_reduction <add>, %936, %cst_187 [1] : vector<1x16x16xf32> to vector<1x16xf32>
    %1118 = vector.shape_cast %1117 : vector<1x16xf32> to vector<1x1x16xf32>
    %cst_188 = arith.constant 1.600000e+01 : f32
    %1119 = vector.broadcast %cst_188 : f32 to vector<1x1x16xf32>
    %1120 = arith.divf %1118, %1119 : vector<1x1x16xf32>
    %1121 = vector.broadcast %1120 : vector<1x1x16xf32> to vector<1x16x16xf32>
    %1122 = arith.subf %936, %1121 : vector<1x16x16xf32>
    %1123 = arith.mulf %1122, %1122 : vector<1x16x16xf32>
    %cst_189 = arith.constant dense<0.000000e+00> : vector<1x16xf32>
    %1124 = vector.multi_reduction <add>, %1123, %cst_189 [1] : vector<1x16x16xf32> to vector<1x16xf32>
    %1125 = vector.shape_cast %1124 : vector<1x16xf32> to vector<1x1x16xf32>
    %cst_190 = arith.constant 1.600000e+01 : f32
    %1126 = vector.broadcast %cst_190 : f32 to vector<1x1x16xf32>
    %1127 = arith.divf %1125, %1126 : vector<1x1x16xf32>
    %cst_191 = arith.constant 9.99999974E-6 : f32
    %1128 = vector.broadcast %cst_191 : f32 to vector<1x1x16xf32>
    %1129 = arith.addf %1127, %1128 : vector<1x1x16xf32>
    %1130 = math.rsqrt %1129 : vector<1x1x16xf32>
    %1131 = vector.broadcast %1130 : vector<1x1x16xf32> to vector<1x16x16xf32>
    %1132 = arith.mulf %1122, %1131 : vector<1x16x16xf32>
    %1133 = vector.broadcast %5 : vector<1x16x1xf32> to vector<1x16x16xf32>
    %1134 = arith.mulf %1132, %1133 : vector<1x16x16xf32>
    %1135 = vector.broadcast %7 : vector<1x16x1xf32> to vector<1x16x16xf32>
    %1136 = arith.addf %1134, %1135 : vector<1x16x16xf32>
    %cst_192 = arith.constant 5.000000e-01 : f32
    %1137 = vector.broadcast %cst_192 : f32 to vector<1x16x16xf32>
    %1138 = arith.mulf %1137, %1136 : vector<1x16x16xf32>
    %cst_193 = arith.constant 0.707106769 : f32
    %1139 = vector.broadcast %cst_193 : f32 to vector<1x16x16xf32>
    %1140 = arith.mulf %1136, %1139 : vector<1x16x16xf32>
    %cst_194 = arith.constant 0.000000e+00 : f32
    %1141 = vector.broadcast %cst_194 : f32 to vector<1x16x16xf32>
    %1142 = arith.cmpf olt, %1140, %1141 : vector<1x16x16xf32>
    %cst_195 = arith.constant -1.000000e+00 : f32
    %cst_196 = arith.constant 1.000000e+00 : f32
    %1143 = vector.broadcast %cst_195 : f32 to vector<1x16x16xf32>
    %1144 = vector.broadcast %cst_196 : f32 to vector<1x16x16xf32>
    %1145 = arith.select %1142, %1143, %1144 : vector<1x16x16xi1>, vector<1x16x16xf32>
    %1146 = math.absf %1140 : vector<1x16x16xf32>
    %cst_197 = arith.constant 0.327591091 : f32
    %1147 = vector.broadcast %cst_197 : f32 to vector<1x16x16xf32>
    %1148 = arith.mulf %1147, %1146 : vector<1x16x16xf32>
    %cst_198 = arith.constant 1.000000e+00 : f32
    %1149 = vector.broadcast %cst_198 : f32 to vector<1x16x16xf32>
    %1150 = arith.addf %1149, %1148 : vector<1x16x16xf32>
    %1151 = tpu.reciprocal %1150 : vector<1x16x16xf32> -> vector<1x16x16xf32>
    %cst_199 = arith.constant 1.06140542 : f32
    %1152 = vector.broadcast %cst_199 : f32 to vector<1x16x16xf32>
    %1153 = arith.mulf %1152, %1151 : vector<1x16x16xf32>
    %cst_200 = arith.constant 1.45315206 : f32
    %1154 = vector.broadcast %cst_200 : f32 to vector<1x16x16xf32>
    %1155 = arith.subf %1153, %1154 : vector<1x16x16xf32>
    %1156 = arith.mulf %1155, %1151 : vector<1x16x16xf32>
    %cst_201 = arith.constant 1.42141378 : f32
    %1157 = vector.broadcast %cst_201 : f32 to vector<1x16x16xf32>
    %1158 = arith.addf %1156, %1157 : vector<1x16x16xf32>
    %1159 = arith.mulf %1158, %1151 : vector<1x16x16xf32>
    %cst_202 = arith.constant 0.284496725 : f32
    %1160 = vector.broadcast %cst_202 : f32 to vector<1x16x16xf32>
    %1161 = arith.subf %1159, %1160 : vector<1x16x16xf32>
    %1162 = arith.mulf %1161, %1151 : vector<1x16x16xf32>
    %cst_203 = arith.constant 0.254829586 : f32
    %1163 = vector.broadcast %cst_203 : f32 to vector<1x16x16xf32>
    %1164 = arith.addf %1162, %1163 : vector<1x16x16xf32>
    %1165 = arith.mulf %1164, %1151 : vector<1x16x16xf32>
    %cst_204 = arith.constant 0.000000e+00 : f32
    %1166 = vector.broadcast %cst_204 : f32 to vector<1x16x16xf32>
    %1167 = arith.subf %1166, %1146 : vector<1x16x16xf32>
    %1168 = arith.mulf %1167, %1146 : vector<1x16x16xf32>
    %1169 = math.exp %1168 : vector<1x16x16xf32>
    %1170 = arith.mulf %1165, %1169 : vector<1x16x16xf32>
    %cst_205 = arith.constant 1.000000e+00 : f32
    %1171 = vector.broadcast %cst_205 : f32 to vector<1x16x16xf32>
    %1172 = arith.subf %1171, %1170 : vector<1x16x16xf32>
    %1173 = arith.mulf %1145, %1172 : vector<1x16x16xf32>
    %cst_206 = arith.constant 1.000000e+00 : f32
    %1174 = vector.broadcast %cst_206 : f32 to vector<1x16x16xf32>
    %1175 = arith.addf %1174, %1173 : vector<1x16x16xf32>
    %1176 = arith.mulf %1138, %1175 : vector<1x16x16xf32>
    %c0_207 = arith.constant 0 : index
    %1177 = memref.load %arg8[%c0_207] : memref<144xf32, #tpu.memory_space<smem>>
    %c1_208 = arith.constant 1 : index
    %1178 = memref.load %arg8[%c1_208] : memref<144xf32, #tpu.memory_space<smem>>
    %c2_209 = arith.constant 2 : index
    %1179 = memref.load %arg8[%c2_209] : memref<144xf32, #tpu.memory_space<smem>>
    %c3_210 = arith.constant 3 : index
    %1180 = memref.load %arg8[%c3_210] : memref<144xf32, #tpu.memory_space<smem>>
    %c4_211 = arith.constant 4 : index
    %1181 = memref.load %arg8[%c4_211] : memref<144xf32, #tpu.memory_space<smem>>
    %c5_212 = arith.constant 5 : index
    %1182 = memref.load %arg8[%c5_212] : memref<144xf32, #tpu.memory_space<smem>>
    %c6_213 = arith.constant 6 : index
    %1183 = memref.load %arg8[%c6_213] : memref<144xf32, #tpu.memory_space<smem>>
    %c7_214 = arith.constant 7 : index
    %1184 = memref.load %arg8[%c7_214] : memref<144xf32, #tpu.memory_space<smem>>
    %c8_215 = arith.constant 8 : index
    %1185 = memref.load %arg8[%c8_215] : memref<144xf32, #tpu.memory_space<smem>>
    %c9_216 = arith.constant 9 : index
    %1186 = memref.load %arg8[%c9_216] : memref<144xf32, #tpu.memory_space<smem>>
    %c10_217 = arith.constant 10 : index
    %1187 = memref.load %arg8[%c10_217] : memref<144xf32, #tpu.memory_space<smem>>
    %c11_218 = arith.constant 11 : index
    %1188 = memref.load %arg8[%c11_218] : memref<144xf32, #tpu.memory_space<smem>>
    %c12_219 = arith.constant 12 : index
    %1189 = memref.load %arg8[%c12_219] : memref<144xf32, #tpu.memory_space<smem>>
    %c13_220 = arith.constant 13 : index
    %1190 = memref.load %arg8[%c13_220] : memref<144xf32, #tpu.memory_space<smem>>
    %c14_221 = arith.constant 14 : index
    %1191 = memref.load %arg8[%c14_221] : memref<144xf32, #tpu.memory_space<smem>>
    %c15_222 = arith.constant 15 : index
    %1192 = memref.load %arg8[%c15_222] : memref<144xf32, #tpu.memory_space<smem>>
    %c16_223 = arith.constant 16 : index
    %1193 = memref.load %arg8[%c16_223] : memref<144xf32, #tpu.memory_space<smem>>
    %c17_224 = arith.constant 17 : index
    %1194 = memref.load %arg8[%c17_224] : memref<144xf32, #tpu.memory_space<smem>>
    %c18_225 = arith.constant 18 : index
    %1195 = memref.load %arg8[%c18_225] : memref<144xf32, #tpu.memory_space<smem>>
    %c19_226 = arith.constant 19 : index
    %1196 = memref.load %arg8[%c19_226] : memref<144xf32, #tpu.memory_space<smem>>
    %c20_227 = arith.constant 20 : index
    %1197 = memref.load %arg8[%c20_227] : memref<144xf32, #tpu.memory_space<smem>>
    %c21_228 = arith.constant 21 : index
    %1198 = memref.load %arg8[%c21_228] : memref<144xf32, #tpu.memory_space<smem>>
    %c22_229 = arith.constant 22 : index
    %1199 = memref.load %arg8[%c22_229] : memref<144xf32, #tpu.memory_space<smem>>
    %c23_230 = arith.constant 23 : index
    %1200 = memref.load %arg8[%c23_230] : memref<144xf32, #tpu.memory_space<smem>>
    %c24_231 = arith.constant 24 : index
    %1201 = memref.load %arg8[%c24_231] : memref<144xf32, #tpu.memory_space<smem>>
    %c25_232 = arith.constant 25 : index
    %1202 = memref.load %arg8[%c25_232] : memref<144xf32, #tpu.memory_space<smem>>
    %c26_233 = arith.constant 26 : index
    %1203 = memref.load %arg8[%c26_233] : memref<144xf32, #tpu.memory_space<smem>>
    %c27_234 = arith.constant 27 : index
    %1204 = memref.load %arg8[%c27_234] : memref<144xf32, #tpu.memory_space<smem>>
    %c28_235 = arith.constant 28 : index
    %1205 = memref.load %arg8[%c28_235] : memref<144xf32, #tpu.memory_space<smem>>
    %c29_236 = arith.constant 29 : index
    %1206 = memref.load %arg8[%c29_236] : memref<144xf32, #tpu.memory_space<smem>>
    %c30_237 = arith.constant 30 : index
    %1207 = memref.load %arg8[%c30_237] : memref<144xf32, #tpu.memory_space<smem>>
    %c31_238 = arith.constant 31 : index
    %1208 = memref.load %arg8[%c31_238] : memref<144xf32, #tpu.memory_space<smem>>
    %c32_239 = arith.constant 32 : index
    %1209 = memref.load %arg8[%c32_239] : memref<144xf32, #tpu.memory_space<smem>>
    %c33_240 = arith.constant 33 : index
    %1210 = memref.load %arg8[%c33_240] : memref<144xf32, #tpu.memory_space<smem>>
    %c34_241 = arith.constant 34 : index
    %1211 = memref.load %arg8[%c34_241] : memref<144xf32, #tpu.memory_space<smem>>
    %c35_242 = arith.constant 35 : index
    %1212 = memref.load %arg8[%c35_242] : memref<144xf32, #tpu.memory_space<smem>>
    %c36_243 = arith.constant 36 : index
    %1213 = memref.load %arg8[%c36_243] : memref<144xf32, #tpu.memory_space<smem>>
    %c37_244 = arith.constant 37 : index
    %1214 = memref.load %arg8[%c37_244] : memref<144xf32, #tpu.memory_space<smem>>
    %c38_245 = arith.constant 38 : index
    %1215 = memref.load %arg8[%c38_245] : memref<144xf32, #tpu.memory_space<smem>>
    %c39_246 = arith.constant 39 : index
    %1216 = memref.load %arg8[%c39_246] : memref<144xf32, #tpu.memory_space<smem>>
    %c40_247 = arith.constant 40 : index
    %1217 = memref.load %arg8[%c40_247] : memref<144xf32, #tpu.memory_space<smem>>
    %c41_248 = arith.constant 41 : index
    %1218 = memref.load %arg8[%c41_248] : memref<144xf32, #tpu.memory_space<smem>>
    %c42_249 = arith.constant 42 : index
    %1219 = memref.load %arg8[%c42_249] : memref<144xf32, #tpu.memory_space<smem>>
    %c43_250 = arith.constant 43 : index
    %1220 = memref.load %arg8[%c43_250] : memref<144xf32, #tpu.memory_space<smem>>
    %c44_251 = arith.constant 44 : index
    %1221 = memref.load %arg8[%c44_251] : memref<144xf32, #tpu.memory_space<smem>>
    %c45_252 = arith.constant 45 : index
    %1222 = memref.load %arg8[%c45_252] : memref<144xf32, #tpu.memory_space<smem>>
    %c46_253 = arith.constant 46 : index
    %1223 = memref.load %arg8[%c46_253] : memref<144xf32, #tpu.memory_space<smem>>
    %c47_254 = arith.constant 47 : index
    %1224 = memref.load %arg8[%c47_254] : memref<144xf32, #tpu.memory_space<smem>>
    %c48_255 = arith.constant 48 : index
    %1225 = memref.load %arg8[%c48_255] : memref<144xf32, #tpu.memory_space<smem>>
    %c49_256 = arith.constant 49 : index
    %1226 = memref.load %arg8[%c49_256] : memref<144xf32, #tpu.memory_space<smem>>
    %c50_257 = arith.constant 50 : index
    %1227 = memref.load %arg8[%c50_257] : memref<144xf32, #tpu.memory_space<smem>>
    %c51_258 = arith.constant 51 : index
    %1228 = memref.load %arg8[%c51_258] : memref<144xf32, #tpu.memory_space<smem>>
    %c52_259 = arith.constant 52 : index
    %1229 = memref.load %arg8[%c52_259] : memref<144xf32, #tpu.memory_space<smem>>
    %c53_260 = arith.constant 53 : index
    %1230 = memref.load %arg8[%c53_260] : memref<144xf32, #tpu.memory_space<smem>>
    %c54_261 = arith.constant 54 : index
    %1231 = memref.load %arg8[%c54_261] : memref<144xf32, #tpu.memory_space<smem>>
    %c55_262 = arith.constant 55 : index
    %1232 = memref.load %arg8[%c55_262] : memref<144xf32, #tpu.memory_space<smem>>
    %c56_263 = arith.constant 56 : index
    %1233 = memref.load %arg8[%c56_263] : memref<144xf32, #tpu.memory_space<smem>>
    %c57_264 = arith.constant 57 : index
    %1234 = memref.load %arg8[%c57_264] : memref<144xf32, #tpu.memory_space<smem>>
    %c58_265 = arith.constant 58 : index
    %1235 = memref.load %arg8[%c58_265] : memref<144xf32, #tpu.memory_space<smem>>
    %c59_266 = arith.constant 59 : index
    %1236 = memref.load %arg8[%c59_266] : memref<144xf32, #tpu.memory_space<smem>>
    %c60_267 = arith.constant 60 : index
    %1237 = memref.load %arg8[%c60_267] : memref<144xf32, #tpu.memory_space<smem>>
    %c61_268 = arith.constant 61 : index
    %1238 = memref.load %arg8[%c61_268] : memref<144xf32, #tpu.memory_space<smem>>
    %c62_269 = arith.constant 62 : index
    %1239 = memref.load %arg8[%c62_269] : memref<144xf32, #tpu.memory_space<smem>>
    %c63_270 = arith.constant 63 : index
    %1240 = memref.load %arg8[%c63_270] : memref<144xf32, #tpu.memory_space<smem>>
    %c64_271 = arith.constant 64 : index
    %1241 = memref.load %arg8[%c64_271] : memref<144xf32, #tpu.memory_space<smem>>
    %c65_272 = arith.constant 65 : index
    %1242 = memref.load %arg8[%c65_272] : memref<144xf32, #tpu.memory_space<smem>>
    %c66_273 = arith.constant 66 : index
    %1243 = memref.load %arg8[%c66_273] : memref<144xf32, #tpu.memory_space<smem>>
    %c67_274 = arith.constant 67 : index
    %1244 = memref.load %arg8[%c67_274] : memref<144xf32, #tpu.memory_space<smem>>
    %c68_275 = arith.constant 68 : index
    %1245 = memref.load %arg8[%c68_275] : memref<144xf32, #tpu.memory_space<smem>>
    %c69_276 = arith.constant 69 : index
    %1246 = memref.load %arg8[%c69_276] : memref<144xf32, #tpu.memory_space<smem>>
    %c70_277 = arith.constant 70 : index
    %1247 = memref.load %arg8[%c70_277] : memref<144xf32, #tpu.memory_space<smem>>
    %c71_278 = arith.constant 71 : index
    %1248 = memref.load %arg8[%c71_278] : memref<144xf32, #tpu.memory_space<smem>>
    %c72_279 = arith.constant 72 : index
    %1249 = memref.load %arg8[%c72_279] : memref<144xf32, #tpu.memory_space<smem>>
    %c73_280 = arith.constant 73 : index
    %1250 = memref.load %arg8[%c73_280] : memref<144xf32, #tpu.memory_space<smem>>
    %c74_281 = arith.constant 74 : index
    %1251 = memref.load %arg8[%c74_281] : memref<144xf32, #tpu.memory_space<smem>>
    %c75_282 = arith.constant 75 : index
    %1252 = memref.load %arg8[%c75_282] : memref<144xf32, #tpu.memory_space<smem>>
    %c76_283 = arith.constant 76 : index
    %1253 = memref.load %arg8[%c76_283] : memref<144xf32, #tpu.memory_space<smem>>
    %c77_284 = arith.constant 77 : index
    %1254 = memref.load %arg8[%c77_284] : memref<144xf32, #tpu.memory_space<smem>>
    %c78_285 = arith.constant 78 : index
    %1255 = memref.load %arg8[%c78_285] : memref<144xf32, #tpu.memory_space<smem>>
    %c79_286 = arith.constant 79 : index
    %1256 = memref.load %arg8[%c79_286] : memref<144xf32, #tpu.memory_space<smem>>
    %c80_287 = arith.constant 80 : index
    %1257 = memref.load %arg8[%c80_287] : memref<144xf32, #tpu.memory_space<smem>>
    %c81_288 = arith.constant 81 : index
    %1258 = memref.load %arg8[%c81_288] : memref<144xf32, #tpu.memory_space<smem>>
    %c82_289 = arith.constant 82 : index
    %1259 = memref.load %arg8[%c82_289] : memref<144xf32, #tpu.memory_space<smem>>
    %c83_290 = arith.constant 83 : index
    %1260 = memref.load %arg8[%c83_290] : memref<144xf32, #tpu.memory_space<smem>>
    %c84_291 = arith.constant 84 : index
    %1261 = memref.load %arg8[%c84_291] : memref<144xf32, #tpu.memory_space<smem>>
    %c85_292 = arith.constant 85 : index
    %1262 = memref.load %arg8[%c85_292] : memref<144xf32, #tpu.memory_space<smem>>
    %c86_293 = arith.constant 86 : index
    %1263 = memref.load %arg8[%c86_293] : memref<144xf32, #tpu.memory_space<smem>>
    %c87_294 = arith.constant 87 : index
    %1264 = memref.load %arg8[%c87_294] : memref<144xf32, #tpu.memory_space<smem>>
    %c88_295 = arith.constant 88 : index
    %1265 = memref.load %arg8[%c88_295] : memref<144xf32, #tpu.memory_space<smem>>
    %c89_296 = arith.constant 89 : index
    %1266 = memref.load %arg8[%c89_296] : memref<144xf32, #tpu.memory_space<smem>>
    %c90_297 = arith.constant 90 : index
    %1267 = memref.load %arg8[%c90_297] : memref<144xf32, #tpu.memory_space<smem>>
    %c91_298 = arith.constant 91 : index
    %1268 = memref.load %arg8[%c91_298] : memref<144xf32, #tpu.memory_space<smem>>
    %c92_299 = arith.constant 92 : index
    %1269 = memref.load %arg8[%c92_299] : memref<144xf32, #tpu.memory_space<smem>>
    %c93_300 = arith.constant 93 : index
    %1270 = memref.load %arg8[%c93_300] : memref<144xf32, #tpu.memory_space<smem>>
    %c94_301 = arith.constant 94 : index
    %1271 = memref.load %arg8[%c94_301] : memref<144xf32, #tpu.memory_space<smem>>
    %c95_302 = arith.constant 95 : index
    %1272 = memref.load %arg8[%c95_302] : memref<144xf32, #tpu.memory_space<smem>>
    %c96_303 = arith.constant 96 : index
    %1273 = memref.load %arg8[%c96_303] : memref<144xf32, #tpu.memory_space<smem>>
    %c97_304 = arith.constant 97 : index
    %1274 = memref.load %arg8[%c97_304] : memref<144xf32, #tpu.memory_space<smem>>
    %c98_305 = arith.constant 98 : index
    %1275 = memref.load %arg8[%c98_305] : memref<144xf32, #tpu.memory_space<smem>>
    %c99_306 = arith.constant 99 : index
    %1276 = memref.load %arg8[%c99_306] : memref<144xf32, #tpu.memory_space<smem>>
    %c100_307 = arith.constant 100 : index
    %1277 = memref.load %arg8[%c100_307] : memref<144xf32, #tpu.memory_space<smem>>
    %c101_308 = arith.constant 101 : index
    %1278 = memref.load %arg8[%c101_308] : memref<144xf32, #tpu.memory_space<smem>>
    %c102_309 = arith.constant 102 : index
    %1279 = memref.load %arg8[%c102_309] : memref<144xf32, #tpu.memory_space<smem>>
    %c103_310 = arith.constant 103 : index
    %1280 = memref.load %arg8[%c103_310] : memref<144xf32, #tpu.memory_space<smem>>
    %c104_311 = arith.constant 104 : index
    %1281 = memref.load %arg8[%c104_311] : memref<144xf32, #tpu.memory_space<smem>>
    %c105_312 = arith.constant 105 : index
    %1282 = memref.load %arg8[%c105_312] : memref<144xf32, #tpu.memory_space<smem>>
    %c106_313 = arith.constant 106 : index
    %1283 = memref.load %arg8[%c106_313] : memref<144xf32, #tpu.memory_space<smem>>
    %c107_314 = arith.constant 107 : index
    %1284 = memref.load %arg8[%c107_314] : memref<144xf32, #tpu.memory_space<smem>>
    %c108_315 = arith.constant 108 : index
    %1285 = memref.load %arg8[%c108_315] : memref<144xf32, #tpu.memory_space<smem>>
    %c109_316 = arith.constant 109 : index
    %1286 = memref.load %arg8[%c109_316] : memref<144xf32, #tpu.memory_space<smem>>
    %c110_317 = arith.constant 110 : index
    %1287 = memref.load %arg8[%c110_317] : memref<144xf32, #tpu.memory_space<smem>>
    %c111_318 = arith.constant 111 : index
    %1288 = memref.load %arg8[%c111_318] : memref<144xf32, #tpu.memory_space<smem>>
    %c112_319 = arith.constant 112 : index
    %1289 = memref.load %arg8[%c112_319] : memref<144xf32, #tpu.memory_space<smem>>
    %c113_320 = arith.constant 113 : index
    %1290 = memref.load %arg8[%c113_320] : memref<144xf32, #tpu.memory_space<smem>>
    %c114_321 = arith.constant 114 : index
    %1291 = memref.load %arg8[%c114_321] : memref<144xf32, #tpu.memory_space<smem>>
    %c115_322 = arith.constant 115 : index
    %1292 = memref.load %arg8[%c115_322] : memref<144xf32, #tpu.memory_space<smem>>
    %c116_323 = arith.constant 116 : index
    %1293 = memref.load %arg8[%c116_323] : memref<144xf32, #tpu.memory_space<smem>>
    %c117_324 = arith.constant 117 : index
    %1294 = memref.load %arg8[%c117_324] : memref<144xf32, #tpu.memory_space<smem>>
    %c118_325 = arith.constant 118 : index
    %1295 = memref.load %arg8[%c118_325] : memref<144xf32, #tpu.memory_space<smem>>
    %c119_326 = arith.constant 119 : index
    %1296 = memref.load %arg8[%c119_326] : memref<144xf32, #tpu.memory_space<smem>>
    %c120_327 = arith.constant 120 : index
    %1297 = memref.load %arg8[%c120_327] : memref<144xf32, #tpu.memory_space<smem>>
    %c121_328 = arith.constant 121 : index
    %1298 = memref.load %arg8[%c121_328] : memref<144xf32, #tpu.memory_space<smem>>
    %c122_329 = arith.constant 122 : index
    %1299 = memref.load %arg8[%c122_329] : memref<144xf32, #tpu.memory_space<smem>>
    %c123_330 = arith.constant 123 : index
    %1300 = memref.load %arg8[%c123_330] : memref<144xf32, #tpu.memory_space<smem>>
    %c124_331 = arith.constant 124 : index
    %1301 = memref.load %arg8[%c124_331] : memref<144xf32, #tpu.memory_space<smem>>
    %c125_332 = arith.constant 125 : index
    %1302 = memref.load %arg8[%c125_332] : memref<144xf32, #tpu.memory_space<smem>>
    %c126_333 = arith.constant 126 : index
    %1303 = memref.load %arg8[%c126_333] : memref<144xf32, #tpu.memory_space<smem>>
    %c127_334 = arith.constant 127 : index
    %1304 = memref.load %arg8[%c127_334] : memref<144xf32, #tpu.memory_space<smem>>
    %c128_335 = arith.constant 128 : index
    %1305 = memref.load %arg8[%c128_335] : memref<144xf32, #tpu.memory_space<smem>>
    %c129_336 = arith.constant 129 : index
    %1306 = memref.load %arg8[%c129_336] : memref<144xf32, #tpu.memory_space<smem>>
    %c130_337 = arith.constant 130 : index
    %1307 = memref.load %arg8[%c130_337] : memref<144xf32, #tpu.memory_space<smem>>
    %c131_338 = arith.constant 131 : index
    %1308 = memref.load %arg8[%c131_338] : memref<144xf32, #tpu.memory_space<smem>>
    %c132_339 = arith.constant 132 : index
    %1309 = memref.load %arg8[%c132_339] : memref<144xf32, #tpu.memory_space<smem>>
    %c133_340 = arith.constant 133 : index
    %1310 = memref.load %arg8[%c133_340] : memref<144xf32, #tpu.memory_space<smem>>
    %c134_341 = arith.constant 134 : index
    %1311 = memref.load %arg8[%c134_341] : memref<144xf32, #tpu.memory_space<smem>>
    %c135_342 = arith.constant 135 : index
    %1312 = memref.load %arg8[%c135_342] : memref<144xf32, #tpu.memory_space<smem>>
    %c136_343 = arith.constant 136 : index
    %1313 = memref.load %arg8[%c136_343] : memref<144xf32, #tpu.memory_space<smem>>
    %c137_344 = arith.constant 137 : index
    %1314 = memref.load %arg8[%c137_344] : memref<144xf32, #tpu.memory_space<smem>>
    %c138_345 = arith.constant 138 : index
    %1315 = memref.load %arg8[%c138_345] : memref<144xf32, #tpu.memory_space<smem>>
    %c139_346 = arith.constant 139 : index
    %1316 = memref.load %arg8[%c139_346] : memref<144xf32, #tpu.memory_space<smem>>
    %c140_347 = arith.constant 140 : index
    %1317 = memref.load %arg8[%c140_347] : memref<144xf32, #tpu.memory_space<smem>>
    %c141_348 = arith.constant 141 : index
    %1318 = memref.load %arg8[%c141_348] : memref<144xf32, #tpu.memory_space<smem>>
    %c142_349 = arith.constant 142 : index
    %1319 = memref.load %arg8[%c142_349] : memref<144xf32, #tpu.memory_space<smem>>
    %c143_350 = arith.constant 143 : index
    %1320 = memref.load %arg8[%c143_350] : memref<144xf32, #tpu.memory_space<smem>>
    %c0_351 = arith.constant 0 : index
    %1321 = memref.load %arg9[%c0_351] : memref<4xf32, #tpu.memory_space<smem>>
    %1322 = vector.broadcast %1321 : f32 to vector<1x16x16xf32>
    %c1_352 = arith.constant 1 : index
    %1323 = memref.load %arg9[%c1_352] : memref<4xf32, #tpu.memory_space<smem>>
    %1324 = vector.broadcast %1323 : f32 to vector<1x16x16xf32>
    %c2_353 = arith.constant 2 : index
    %1325 = memref.load %arg9[%c2_353] : memref<4xf32, #tpu.memory_space<smem>>
    %1326 = vector.broadcast %1325 : f32 to vector<1x16x16xf32>
    %c3_354 = arith.constant 3 : index
    %1327 = memref.load %arg9[%c3_354] : memref<4xf32, #tpu.memory_space<smem>>
    %1328 = vector.broadcast %1327 : f32 to vector<1x16x16xf32>
    %cst_355 = arith.constant 0.000000e+00 : f32
    %1329 = vector.broadcast %cst_355 : f32 to vector<1x1x16xf32>
    %1330 = vector.extract_strided_slice %996 {offsets = [0, 0, 0], sizes = [1, 15, 16], strides = [1, 1, 1]} : vector<1x16x16xf32> to vector<1x15x16xf32>
    %1331 = tpu.concatenate %1329, %1330 in 1 : vector<1x1x16xf32>, vector<1x15x16xf32> -> vector<1x16x16xf32>
    %cst_356 = arith.constant 0.000000e+00 : f32
    %1332 = vector.broadcast %cst_356 : f32 to vector<1x16x1xf32>
    %1333 = vector.extract_strided_slice %1331 {offsets = [0, 0, 0], sizes = [1, 16, 15], strides = [1, 1, 1]} : vector<1x16x16xf32> to vector<1x16x15xf32>
    %1334 = tpu.concatenate %1332, %1333 in 2 : vector<1x16x1xf32>, vector<1x16x15xf32> -> vector<1x16x16xf32>
    %1335 = vector.broadcast %1177 : f32 to vector<1x16x16xf32>
    %1336 = arith.mulf %1335, %1334 : vector<1x16x16xf32>
    %1337 = arith.addf %1322, %1336 : vector<1x16x16xf32>
    %1338 = vector.broadcast %1213 : f32 to vector<1x16x16xf32>
    %1339 = arith.mulf %1338, %1334 : vector<1x16x16xf32>
    %1340 = arith.addf %1324, %1339 : vector<1x16x16xf32>
    %1341 = vector.broadcast %1249 : f32 to vector<1x16x16xf32>
    %1342 = arith.mulf %1341, %1334 : vector<1x16x16xf32>
    %1343 = arith.addf %1326, %1342 : vector<1x16x16xf32>
    %1344 = vector.broadcast %1285 : f32 to vector<1x16x16xf32>
    %1345 = arith.mulf %1344, %1334 : vector<1x16x16xf32>
    %1346 = arith.addf %1328, %1345 : vector<1x16x16xf32>
    %1347 = vector.broadcast %1178 : f32 to vector<1x16x16xf32>
    %1348 = arith.mulf %1347, %1331 : vector<1x16x16xf32>
    %1349 = arith.addf %1337, %1348 : vector<1x16x16xf32>
    %1350 = vector.broadcast %1214 : f32 to vector<1x16x16xf32>
    %1351 = arith.mulf %1350, %1331 : vector<1x16x16xf32>
    %1352 = arith.addf %1340, %1351 : vector<1x16x16xf32>
    %1353 = vector.broadcast %1250 : f32 to vector<1x16x16xf32>
    %1354 = arith.mulf %1353, %1331 : vector<1x16x16xf32>
    %1355 = arith.addf %1343, %1354 : vector<1x16x16xf32>
    %1356 = vector.broadcast %1286 : f32 to vector<1x16x16xf32>
    %1357 = arith.mulf %1356, %1331 : vector<1x16x16xf32>
    %1358 = arith.addf %1346, %1357 : vector<1x16x16xf32>
    %cst_357 = arith.constant 0.000000e+00 : f32
    %1359 = vector.broadcast %cst_357 : f32 to vector<1x16x1xf32>
    %1360 = vector.extract_strided_slice %1331 {offsets = [0, 0, 1], sizes = [1, 16, 15], strides = [1, 1, 1]} : vector<1x16x16xf32> to vector<1x16x15xf32>
    %1361 = tpu.concatenate %1360, %1359 in 2 : vector<1x16x15xf32>, vector<1x16x1xf32> -> vector<1x16x16xf32>
    %1362 = vector.broadcast %1179 : f32 to vector<1x16x16xf32>
    %1363 = arith.mulf %1362, %1361 : vector<1x16x16xf32>
    %1364 = arith.addf %1349, %1363 : vector<1x16x16xf32>
    %1365 = vector.broadcast %1215 : f32 to vector<1x16x16xf32>
    %1366 = arith.mulf %1365, %1361 : vector<1x16x16xf32>
    %1367 = arith.addf %1352, %1366 : vector<1x16x16xf32>
    %1368 = vector.broadcast %1251 : f32 to vector<1x16x16xf32>
    %1369 = arith.mulf %1368, %1361 : vector<1x16x16xf32>
    %1370 = arith.addf %1355, %1369 : vector<1x16x16xf32>
    %1371 = vector.broadcast %1287 : f32 to vector<1x16x16xf32>
    %1372 = arith.mulf %1371, %1361 : vector<1x16x16xf32>
    %1373 = arith.addf %1358, %1372 : vector<1x16x16xf32>
    %cst_358 = arith.constant 0.000000e+00 : f32
    %1374 = vector.broadcast %cst_358 : f32 to vector<1x16x1xf32>
    %1375 = vector.extract_strided_slice %996 {offsets = [0, 0, 0], sizes = [1, 16, 15], strides = [1, 1, 1]} : vector<1x16x16xf32> to vector<1x16x15xf32>
    %1376 = tpu.concatenate %1374, %1375 in 2 : vector<1x16x1xf32>, vector<1x16x15xf32> -> vector<1x16x16xf32>
    %1377 = vector.broadcast %1180 : f32 to vector<1x16x16xf32>
    %1378 = arith.mulf %1377, %1376 : vector<1x16x16xf32>
    %1379 = arith.addf %1364, %1378 : vector<1x16x16xf32>
    %1380 = vector.broadcast %1216 : f32 to vector<1x16x16xf32>
    %1381 = arith.mulf %1380, %1376 : vector<1x16x16xf32>
    %1382 = arith.addf %1367, %1381 : vector<1x16x16xf32>
    %1383 = vector.broadcast %1252 : f32 to vector<1x16x16xf32>
    %1384 = arith.mulf %1383, %1376 : vector<1x16x16xf32>
    %1385 = arith.addf %1370, %1384 : vector<1x16x16xf32>
    %1386 = vector.broadcast %1288 : f32 to vector<1x16x16xf32>
    %1387 = arith.mulf %1386, %1376 : vector<1x16x16xf32>
    %1388 = arith.addf %1373, %1387 : vector<1x16x16xf32>
    %1389 = vector.broadcast %1181 : f32 to vector<1x16x16xf32>
    %1390 = arith.mulf %1389, %996 : vector<1x16x16xf32>
    %1391 = arith.addf %1379, %1390 : vector<1x16x16xf32>
    %1392 = vector.broadcast %1217 : f32 to vector<1x16x16xf32>
    %1393 = arith.mulf %1392, %996 : vector<1x16x16xf32>
    %1394 = arith.addf %1382, %1393 : vector<1x16x16xf32>
    %1395 = vector.broadcast %1253 : f32 to vector<1x16x16xf32>
    %1396 = arith.mulf %1395, %996 : vector<1x16x16xf32>
    %1397 = arith.addf %1385, %1396 : vector<1x16x16xf32>
    %1398 = vector.broadcast %1289 : f32 to vector<1x16x16xf32>
    %1399 = arith.mulf %1398, %996 : vector<1x16x16xf32>
    %1400 = arith.addf %1388, %1399 : vector<1x16x16xf32>
    %cst_359 = arith.constant 0.000000e+00 : f32
    %1401 = vector.broadcast %cst_359 : f32 to vector<1x16x1xf32>
    %1402 = vector.extract_strided_slice %996 {offsets = [0, 0, 1], sizes = [1, 16, 15], strides = [1, 1, 1]} : vector<1x16x16xf32> to vector<1x16x15xf32>
    %1403 = tpu.concatenate %1402, %1401 in 2 : vector<1x16x15xf32>, vector<1x16x1xf32> -> vector<1x16x16xf32>
    %1404 = vector.broadcast %1182 : f32 to vector<1x16x16xf32>
    %1405 = arith.mulf %1404, %1403 : vector<1x16x16xf32>
    %1406 = arith.addf %1391, %1405 : vector<1x16x16xf32>
    %1407 = vector.broadcast %1218 : f32 to vector<1x16x16xf32>
    %1408 = arith.mulf %1407, %1403 : vector<1x16x16xf32>
    %1409 = arith.addf %1394, %1408 : vector<1x16x16xf32>
    %1410 = vector.broadcast %1254 : f32 to vector<1x16x16xf32>
    %1411 = arith.mulf %1410, %1403 : vector<1x16x16xf32>
    %1412 = arith.addf %1397, %1411 : vector<1x16x16xf32>
    %1413 = vector.broadcast %1290 : f32 to vector<1x16x16xf32>
    %1414 = arith.mulf %1413, %1403 : vector<1x16x16xf32>
    %1415 = arith.addf %1400, %1414 : vector<1x16x16xf32>
    %cst_360 = arith.constant 0.000000e+00 : f32
    %1416 = vector.broadcast %cst_360 : f32 to vector<1x1x16xf32>
    %1417 = vector.extract_strided_slice %996 {offsets = [0, 1, 0], sizes = [1, 15, 16], strides = [1, 1, 1]} : vector<1x16x16xf32> to vector<1x15x16xf32>
    %1418 = tpu.concatenate %1417, %1416 in 1 : vector<1x15x16xf32>, vector<1x1x16xf32> -> vector<1x16x16xf32>
    %cst_361 = arith.constant 0.000000e+00 : f32
    %1419 = vector.broadcast %cst_361 : f32 to vector<1x16x1xf32>
    %1420 = vector.extract_strided_slice %1418 {offsets = [0, 0, 0], sizes = [1, 16, 15], strides = [1, 1, 1]} : vector<1x16x16xf32> to vector<1x16x15xf32>
    %1421 = tpu.concatenate %1419, %1420 in 2 : vector<1x16x1xf32>, vector<1x16x15xf32> -> vector<1x16x16xf32>
    %1422 = vector.broadcast %1183 : f32 to vector<1x16x16xf32>
    %1423 = arith.mulf %1422, %1421 : vector<1x16x16xf32>
    %1424 = arith.addf %1406, %1423 : vector<1x16x16xf32>
    %1425 = vector.broadcast %1219 : f32 to vector<1x16x16xf32>
    %1426 = arith.mulf %1425, %1421 : vector<1x16x16xf32>
    %1427 = arith.addf %1409, %1426 : vector<1x16x16xf32>
    %1428 = vector.broadcast %1255 : f32 to vector<1x16x16xf32>
    %1429 = arith.mulf %1428, %1421 : vector<1x16x16xf32>
    %1430 = arith.addf %1412, %1429 : vector<1x16x16xf32>
    %1431 = vector.broadcast %1291 : f32 to vector<1x16x16xf32>
    %1432 = arith.mulf %1431, %1421 : vector<1x16x16xf32>
    %1433 = arith.addf %1415, %1432 : vector<1x16x16xf32>
    %1434 = vector.broadcast %1184 : f32 to vector<1x16x16xf32>
    %1435 = arith.mulf %1434, %1418 : vector<1x16x16xf32>
    %1436 = arith.addf %1424, %1435 : vector<1x16x16xf32>
    %1437 = vector.broadcast %1220 : f32 to vector<1x16x16xf32>
    %1438 = arith.mulf %1437, %1418 : vector<1x16x16xf32>
    %1439 = arith.addf %1427, %1438 : vector<1x16x16xf32>
    %1440 = vector.broadcast %1256 : f32 to vector<1x16x16xf32>
    %1441 = arith.mulf %1440, %1418 : vector<1x16x16xf32>
    %1442 = arith.addf %1430, %1441 : vector<1x16x16xf32>
    %1443 = vector.broadcast %1292 : f32 to vector<1x16x16xf32>
    %1444 = arith.mulf %1443, %1418 : vector<1x16x16xf32>
    %1445 = arith.addf %1433, %1444 : vector<1x16x16xf32>
    %cst_362 = arith.constant 0.000000e+00 : f32
    %1446 = vector.broadcast %cst_362 : f32 to vector<1x16x1xf32>
    %1447 = vector.extract_strided_slice %1418 {offsets = [0, 0, 1], sizes = [1, 16, 15], strides = [1, 1, 1]} : vector<1x16x16xf32> to vector<1x16x15xf32>
    %1448 = tpu.concatenate %1447, %1446 in 2 : vector<1x16x15xf32>, vector<1x16x1xf32> -> vector<1x16x16xf32>
    %1449 = vector.broadcast %1185 : f32 to vector<1x16x16xf32>
    %1450 = arith.mulf %1449, %1448 : vector<1x16x16xf32>
    %1451 = arith.addf %1436, %1450 : vector<1x16x16xf32>
    %1452 = vector.broadcast %1221 : f32 to vector<1x16x16xf32>
    %1453 = arith.mulf %1452, %1448 : vector<1x16x16xf32>
    %1454 = arith.addf %1439, %1453 : vector<1x16x16xf32>
    %1455 = vector.broadcast %1257 : f32 to vector<1x16x16xf32>
    %1456 = arith.mulf %1455, %1448 : vector<1x16x16xf32>
    %1457 = arith.addf %1442, %1456 : vector<1x16x16xf32>
    %1458 = vector.broadcast %1293 : f32 to vector<1x16x16xf32>
    %1459 = arith.mulf %1458, %1448 : vector<1x16x16xf32>
    %1460 = arith.addf %1445, %1459 : vector<1x16x16xf32>
    %cst_363 = arith.constant 0.000000e+00 : f32
    %1461 = vector.broadcast %cst_363 : f32 to vector<1x1x16xf32>
    %1462 = vector.extract_strided_slice %1056 {offsets = [0, 0, 0], sizes = [1, 15, 16], strides = [1, 1, 1]} : vector<1x16x16xf32> to vector<1x15x16xf32>
    %1463 = tpu.concatenate %1461, %1462 in 1 : vector<1x1x16xf32>, vector<1x15x16xf32> -> vector<1x16x16xf32>
    %cst_364 = arith.constant 0.000000e+00 : f32
    %1464 = vector.broadcast %cst_364 : f32 to vector<1x16x1xf32>
    %1465 = vector.extract_strided_slice %1463 {offsets = [0, 0, 0], sizes = [1, 16, 15], strides = [1, 1, 1]} : vector<1x16x16xf32> to vector<1x16x15xf32>
    %1466 = tpu.concatenate %1464, %1465 in 2 : vector<1x16x1xf32>, vector<1x16x15xf32> -> vector<1x16x16xf32>
    %1467 = vector.broadcast %1186 : f32 to vector<1x16x16xf32>
    %1468 = arith.mulf %1467, %1466 : vector<1x16x16xf32>
    %1469 = arith.addf %1451, %1468 : vector<1x16x16xf32>
    %1470 = vector.broadcast %1222 : f32 to vector<1x16x16xf32>
    %1471 = arith.mulf %1470, %1466 : vector<1x16x16xf32>
    %1472 = arith.addf %1454, %1471 : vector<1x16x16xf32>
    %1473 = vector.broadcast %1258 : f32 to vector<1x16x16xf32>
    %1474 = arith.mulf %1473, %1466 : vector<1x16x16xf32>
    %1475 = arith.addf %1457, %1474 : vector<1x16x16xf32>
    %1476 = vector.broadcast %1294 : f32 to vector<1x16x16xf32>
    %1477 = arith.mulf %1476, %1466 : vector<1x16x16xf32>
    %1478 = arith.addf %1460, %1477 : vector<1x16x16xf32>
    %1479 = vector.broadcast %1187 : f32 to vector<1x16x16xf32>
    %1480 = arith.mulf %1479, %1463 : vector<1x16x16xf32>
    %1481 = arith.addf %1469, %1480 : vector<1x16x16xf32>
    %1482 = vector.broadcast %1223 : f32 to vector<1x16x16xf32>
    %1483 = arith.mulf %1482, %1463 : vector<1x16x16xf32>
    %1484 = arith.addf %1472, %1483 : vector<1x16x16xf32>
    %1485 = vector.broadcast %1259 : f32 to vector<1x16x16xf32>
    %1486 = arith.mulf %1485, %1463 : vector<1x16x16xf32>
    %1487 = arith.addf %1475, %1486 : vector<1x16x16xf32>
    %1488 = vector.broadcast %1295 : f32 to vector<1x16x16xf32>
    %1489 = arith.mulf %1488, %1463 : vector<1x16x16xf32>
    %1490 = arith.addf %1478, %1489 : vector<1x16x16xf32>
    %cst_365 = arith.constant 0.000000e+00 : f32
    %1491 = vector.broadcast %cst_365 : f32 to vector<1x16x1xf32>
    %1492 = vector.extract_strided_slice %1463 {offsets = [0, 0, 1], sizes = [1, 16, 15], strides = [1, 1, 1]} : vector<1x16x16xf32> to vector<1x16x15xf32>
    %1493 = tpu.concatenate %1492, %1491 in 2 : vector<1x16x15xf32>, vector<1x16x1xf32> -> vector<1x16x16xf32>
    %1494 = vector.broadcast %1188 : f32 to vector<1x16x16xf32>
    %1495 = arith.mulf %1494, %1493 : vector<1x16x16xf32>
    %1496 = arith.addf %1481, %1495 : vector<1x16x16xf32>
    %1497 = vector.broadcast %1224 : f32 to vector<1x16x16xf32>
    %1498 = arith.mulf %1497, %1493 : vector<1x16x16xf32>
    %1499 = arith.addf %1484, %1498 : vector<1x16x16xf32>
    %1500 = vector.broadcast %1260 : f32 to vector<1x16x16xf32>
    %1501 = arith.mulf %1500, %1493 : vector<1x16x16xf32>
    %1502 = arith.addf %1487, %1501 : vector<1x16x16xf32>
    %1503 = vector.broadcast %1296 : f32 to vector<1x16x16xf32>
    %1504 = arith.mulf %1503, %1493 : vector<1x16x16xf32>
    %1505 = arith.addf %1490, %1504 : vector<1x16x16xf32>
    %cst_366 = arith.constant 0.000000e+00 : f32
    %1506 = vector.broadcast %cst_366 : f32 to vector<1x16x1xf32>
    %1507 = vector.extract_strided_slice %1056 {offsets = [0, 0, 0], sizes = [1, 16, 15], strides = [1, 1, 1]} : vector<1x16x16xf32> to vector<1x16x15xf32>
    %1508 = tpu.concatenate %1506, %1507 in 2 : vector<1x16x1xf32>, vector<1x16x15xf32> -> vector<1x16x16xf32>
    %1509 = vector.broadcast %1189 : f32 to vector<1x16x16xf32>
    %1510 = arith.mulf %1509, %1508 : vector<1x16x16xf32>
    %1511 = arith.addf %1496, %1510 : vector<1x16x16xf32>
    %1512 = vector.broadcast %1225 : f32 to vector<1x16x16xf32>
    %1513 = arith.mulf %1512, %1508 : vector<1x16x16xf32>
    %1514 = arith.addf %1499, %1513 : vector<1x16x16xf32>
    %1515 = vector.broadcast %1261 : f32 to vector<1x16x16xf32>
    %1516 = arith.mulf %1515, %1508 : vector<1x16x16xf32>
    %1517 = arith.addf %1502, %1516 : vector<1x16x16xf32>
    %1518 = vector.broadcast %1297 : f32 to vector<1x16x16xf32>
    %1519 = arith.mulf %1518, %1508 : vector<1x16x16xf32>
    %1520 = arith.addf %1505, %1519 : vector<1x16x16xf32>
    %1521 = vector.broadcast %1190 : f32 to vector<1x16x16xf32>
    %1522 = arith.mulf %1521, %1056 : vector<1x16x16xf32>
    %1523 = arith.addf %1511, %1522 : vector<1x16x16xf32>
    %1524 = vector.broadcast %1226 : f32 to vector<1x16x16xf32>
    %1525 = arith.mulf %1524, %1056 : vector<1x16x16xf32>
    %1526 = arith.addf %1514, %1525 : vector<1x16x16xf32>
    %1527 = vector.broadcast %1262 : f32 to vector<1x16x16xf32>
    %1528 = arith.mulf %1527, %1056 : vector<1x16x16xf32>
    %1529 = arith.addf %1517, %1528 : vector<1x16x16xf32>
    %1530 = vector.broadcast %1298 : f32 to vector<1x16x16xf32>
    %1531 = arith.mulf %1530, %1056 : vector<1x16x16xf32>
    %1532 = arith.addf %1520, %1531 : vector<1x16x16xf32>
    %cst_367 = arith.constant 0.000000e+00 : f32
    %1533 = vector.broadcast %cst_367 : f32 to vector<1x16x1xf32>
    %1534 = vector.extract_strided_slice %1056 {offsets = [0, 0, 1], sizes = [1, 16, 15], strides = [1, 1, 1]} : vector<1x16x16xf32> to vector<1x16x15xf32>
    %1535 = tpu.concatenate %1534, %1533 in 2 : vector<1x16x15xf32>, vector<1x16x1xf32> -> vector<1x16x16xf32>
    %1536 = vector.broadcast %1191 : f32 to vector<1x16x16xf32>
    %1537 = arith.mulf %1536, %1535 : vector<1x16x16xf32>
    %1538 = arith.addf %1523, %1537 : vector<1x16x16xf32>
    %1539 = vector.broadcast %1227 : f32 to vector<1x16x16xf32>
    %1540 = arith.mulf %1539, %1535 : vector<1x16x16xf32>
    %1541 = arith.addf %1526, %1540 : vector<1x16x16xf32>
    %1542 = vector.broadcast %1263 : f32 to vector<1x16x16xf32>
    %1543 = arith.mulf %1542, %1535 : vector<1x16x16xf32>
    %1544 = arith.addf %1529, %1543 : vector<1x16x16xf32>
    %1545 = vector.broadcast %1299 : f32 to vector<1x16x16xf32>
    %1546 = arith.mulf %1545, %1535 : vector<1x16x16xf32>
    %1547 = arith.addf %1532, %1546 : vector<1x16x16xf32>
    %cst_368 = arith.constant 0.000000e+00 : f32
    %1548 = vector.broadcast %cst_368 : f32 to vector<1x1x16xf32>
    %1549 = vector.extract_strided_slice %1056 {offsets = [0, 1, 0], sizes = [1, 15, 16], strides = [1, 1, 1]} : vector<1x16x16xf32> to vector<1x15x16xf32>
    %1550 = tpu.concatenate %1549, %1548 in 1 : vector<1x15x16xf32>, vector<1x1x16xf32> -> vector<1x16x16xf32>
    %cst_369 = arith.constant 0.000000e+00 : f32
    %1551 = vector.broadcast %cst_369 : f32 to vector<1x16x1xf32>
    %1552 = vector.extract_strided_slice %1550 {offsets = [0, 0, 0], sizes = [1, 16, 15], strides = [1, 1, 1]} : vector<1x16x16xf32> to vector<1x16x15xf32>
    %1553 = tpu.concatenate %1551, %1552 in 2 : vector<1x16x1xf32>, vector<1x16x15xf32> -> vector<1x16x16xf32>
    %1554 = vector.broadcast %1192 : f32 to vector<1x16x16xf32>
    %1555 = arith.mulf %1554, %1553 : vector<1x16x16xf32>
    %1556 = arith.addf %1538, %1555 : vector<1x16x16xf32>
    %1557 = vector.broadcast %1228 : f32 to vector<1x16x16xf32>
    %1558 = arith.mulf %1557, %1553 : vector<1x16x16xf32>
    %1559 = arith.addf %1541, %1558 : vector<1x16x16xf32>
    %1560 = vector.broadcast %1264 : f32 to vector<1x16x16xf32>
    %1561 = arith.mulf %1560, %1553 : vector<1x16x16xf32>
    %1562 = arith.addf %1544, %1561 : vector<1x16x16xf32>
    %1563 = vector.broadcast %1300 : f32 to vector<1x16x16xf32>
    %1564 = arith.mulf %1563, %1553 : vector<1x16x16xf32>
    %1565 = arith.addf %1547, %1564 : vector<1x16x16xf32>
    %1566 = vector.broadcast %1193 : f32 to vector<1x16x16xf32>
    %1567 = arith.mulf %1566, %1550 : vector<1x16x16xf32>
    %1568 = arith.addf %1556, %1567 : vector<1x16x16xf32>
    %1569 = vector.broadcast %1229 : f32 to vector<1x16x16xf32>
    %1570 = arith.mulf %1569, %1550 : vector<1x16x16xf32>
    %1571 = arith.addf %1559, %1570 : vector<1x16x16xf32>
    %1572 = vector.broadcast %1265 : f32 to vector<1x16x16xf32>
    %1573 = arith.mulf %1572, %1550 : vector<1x16x16xf32>
    %1574 = arith.addf %1562, %1573 : vector<1x16x16xf32>
    %1575 = vector.broadcast %1301 : f32 to vector<1x16x16xf32>
    %1576 = arith.mulf %1575, %1550 : vector<1x16x16xf32>
    %1577 = arith.addf %1565, %1576 : vector<1x16x16xf32>
    %cst_370 = arith.constant 0.000000e+00 : f32
    %1578 = vector.broadcast %cst_370 : f32 to vector<1x16x1xf32>
    %1579 = vector.extract_strided_slice %1550 {offsets = [0, 0, 1], sizes = [1, 16, 15], strides = [1, 1, 1]} : vector<1x16x16xf32> to vector<1x16x15xf32>
    %1580 = tpu.concatenate %1579, %1578 in 2 : vector<1x16x15xf32>, vector<1x16x1xf32> -> vector<1x16x16xf32>
    %1581 = vector.broadcast %1194 : f32 to vector<1x16x16xf32>
    %1582 = arith.mulf %1581, %1580 : vector<1x16x16xf32>
    %1583 = arith.addf %1568, %1582 : vector<1x16x16xf32>
    %1584 = vector.broadcast %1230 : f32 to vector<1x16x16xf32>
    %1585 = arith.mulf %1584, %1580 : vector<1x16x16xf32>
    %1586 = arith.addf %1571, %1585 : vector<1x16x16xf32>
    %1587 = vector.broadcast %1266 : f32 to vector<1x16x16xf32>
    %1588 = arith.mulf %1587, %1580 : vector<1x16x16xf32>
    %1589 = arith.addf %1574, %1588 : vector<1x16x16xf32>
    %1590 = vector.broadcast %1302 : f32 to vector<1x16x16xf32>
    %1591 = arith.mulf %1590, %1580 : vector<1x16x16xf32>
    %1592 = arith.addf %1577, %1591 : vector<1x16x16xf32>
    %cst_371 = arith.constant 0.000000e+00 : f32
    %1593 = vector.broadcast %cst_371 : f32 to vector<1x1x16xf32>
    %1594 = vector.extract_strided_slice %1116 {offsets = [0, 0, 0], sizes = [1, 15, 16], strides = [1, 1, 1]} : vector<1x16x16xf32> to vector<1x15x16xf32>
    %1595 = tpu.concatenate %1593, %1594 in 1 : vector<1x1x16xf32>, vector<1x15x16xf32> -> vector<1x16x16xf32>
    %cst_372 = arith.constant 0.000000e+00 : f32
    %1596 = vector.broadcast %cst_372 : f32 to vector<1x16x1xf32>
    %1597 = vector.extract_strided_slice %1595 {offsets = [0, 0, 0], sizes = [1, 16, 15], strides = [1, 1, 1]} : vector<1x16x16xf32> to vector<1x16x15xf32>
    %1598 = tpu.concatenate %1596, %1597 in 2 : vector<1x16x1xf32>, vector<1x16x15xf32> -> vector<1x16x16xf32>
    %1599 = vector.broadcast %1195 : f32 to vector<1x16x16xf32>
    %1600 = arith.mulf %1599, %1598 : vector<1x16x16xf32>
    %1601 = arith.addf %1583, %1600 : vector<1x16x16xf32>
    %1602 = vector.broadcast %1231 : f32 to vector<1x16x16xf32>
    %1603 = arith.mulf %1602, %1598 : vector<1x16x16xf32>
    %1604 = arith.addf %1586, %1603 : vector<1x16x16xf32>
    %1605 = vector.broadcast %1267 : f32 to vector<1x16x16xf32>
    %1606 = arith.mulf %1605, %1598 : vector<1x16x16xf32>
    %1607 = arith.addf %1589, %1606 : vector<1x16x16xf32>
    %1608 = vector.broadcast %1303 : f32 to vector<1x16x16xf32>
    %1609 = arith.mulf %1608, %1598 : vector<1x16x16xf32>
    %1610 = arith.addf %1592, %1609 : vector<1x16x16xf32>
    %1611 = vector.broadcast %1196 : f32 to vector<1x16x16xf32>
    %1612 = arith.mulf %1611, %1595 : vector<1x16x16xf32>
    %1613 = arith.addf %1601, %1612 : vector<1x16x16xf32>
    %1614 = vector.broadcast %1232 : f32 to vector<1x16x16xf32>
    %1615 = arith.mulf %1614, %1595 : vector<1x16x16xf32>
    %1616 = arith.addf %1604, %1615 : vector<1x16x16xf32>
    %1617 = vector.broadcast %1268 : f32 to vector<1x16x16xf32>
    %1618 = arith.mulf %1617, %1595 : vector<1x16x16xf32>
    %1619 = arith.addf %1607, %1618 : vector<1x16x16xf32>
    %1620 = vector.broadcast %1304 : f32 to vector<1x16x16xf32>
    %1621 = arith.mulf %1620, %1595 : vector<1x16x16xf32>
    %1622 = arith.addf %1610, %1621 : vector<1x16x16xf32>
    %cst_373 = arith.constant 0.000000e+00 : f32
    %1623 = vector.broadcast %cst_373 : f32 to vector<1x16x1xf32>
    %1624 = vector.extract_strided_slice %1595 {offsets = [0, 0, 1], sizes = [1, 16, 15], strides = [1, 1, 1]} : vector<1x16x16xf32> to vector<1x16x15xf32>
    %1625 = tpu.concatenate %1624, %1623 in 2 : vector<1x16x15xf32>, vector<1x16x1xf32> -> vector<1x16x16xf32>
    %1626 = vector.broadcast %1197 : f32 to vector<1x16x16xf32>
    %1627 = arith.mulf %1626, %1625 : vector<1x16x16xf32>
    %1628 = arith.addf %1613, %1627 : vector<1x16x16xf32>
    %1629 = vector.broadcast %1233 : f32 to vector<1x16x16xf32>
    %1630 = arith.mulf %1629, %1625 : vector<1x16x16xf32>
    %1631 = arith.addf %1616, %1630 : vector<1x16x16xf32>
    %1632 = vector.broadcast %1269 : f32 to vector<1x16x16xf32>
    %1633 = arith.mulf %1632, %1625 : vector<1x16x16xf32>
    %1634 = arith.addf %1619, %1633 : vector<1x16x16xf32>
    %1635 = vector.broadcast %1305 : f32 to vector<1x16x16xf32>
    %1636 = arith.mulf %1635, %1625 : vector<1x16x16xf32>
    %1637 = arith.addf %1622, %1636 : vector<1x16x16xf32>
    %cst_374 = arith.constant 0.000000e+00 : f32
    %1638 = vector.broadcast %cst_374 : f32 to vector<1x16x1xf32>
    %1639 = vector.extract_strided_slice %1116 {offsets = [0, 0, 0], sizes = [1, 16, 15], strides = [1, 1, 1]} : vector<1x16x16xf32> to vector<1x16x15xf32>
    %1640 = tpu.concatenate %1638, %1639 in 2 : vector<1x16x1xf32>, vector<1x16x15xf32> -> vector<1x16x16xf32>
    %1641 = vector.broadcast %1198 : f32 to vector<1x16x16xf32>
    %1642 = arith.mulf %1641, %1640 : vector<1x16x16xf32>
    %1643 = arith.addf %1628, %1642 : vector<1x16x16xf32>
    %1644 = vector.broadcast %1234 : f32 to vector<1x16x16xf32>
    %1645 = arith.mulf %1644, %1640 : vector<1x16x16xf32>
    %1646 = arith.addf %1631, %1645 : vector<1x16x16xf32>
    %1647 = vector.broadcast %1270 : f32 to vector<1x16x16xf32>
    %1648 = arith.mulf %1647, %1640 : vector<1x16x16xf32>
    %1649 = arith.addf %1634, %1648 : vector<1x16x16xf32>
    %1650 = vector.broadcast %1306 : f32 to vector<1x16x16xf32>
    %1651 = arith.mulf %1650, %1640 : vector<1x16x16xf32>
    %1652 = arith.addf %1637, %1651 : vector<1x16x16xf32>
    %1653 = vector.broadcast %1199 : f32 to vector<1x16x16xf32>
    %1654 = arith.mulf %1653, %1116 : vector<1x16x16xf32>
    %1655 = arith.addf %1643, %1654 : vector<1x16x16xf32>
    %1656 = vector.broadcast %1235 : f32 to vector<1x16x16xf32>
    %1657 = arith.mulf %1656, %1116 : vector<1x16x16xf32>
    %1658 = arith.addf %1646, %1657 : vector<1x16x16xf32>
    %1659 = vector.broadcast %1271 : f32 to vector<1x16x16xf32>
    %1660 = arith.mulf %1659, %1116 : vector<1x16x16xf32>
    %1661 = arith.addf %1649, %1660 : vector<1x16x16xf32>
    %1662 = vector.broadcast %1307 : f32 to vector<1x16x16xf32>
    %1663 = arith.mulf %1662, %1116 : vector<1x16x16xf32>
    %1664 = arith.addf %1652, %1663 : vector<1x16x16xf32>
    %cst_375 = arith.constant 0.000000e+00 : f32
    %1665 = vector.broadcast %cst_375 : f32 to vector<1x16x1xf32>
    %1666 = vector.extract_strided_slice %1116 {offsets = [0, 0, 1], sizes = [1, 16, 15], strides = [1, 1, 1]} : vector<1x16x16xf32> to vector<1x16x15xf32>
    %1667 = tpu.concatenate %1666, %1665 in 2 : vector<1x16x15xf32>, vector<1x16x1xf32> -> vector<1x16x16xf32>
    %1668 = vector.broadcast %1200 : f32 to vector<1x16x16xf32>
    %1669 = arith.mulf %1668, %1667 : vector<1x16x16xf32>
    %1670 = arith.addf %1655, %1669 : vector<1x16x16xf32>
    %1671 = vector.broadcast %1236 : f32 to vector<1x16x16xf32>
    %1672 = arith.mulf %1671, %1667 : vector<1x16x16xf32>
    %1673 = arith.addf %1658, %1672 : vector<1x16x16xf32>
    %1674 = vector.broadcast %1272 : f32 to vector<1x16x16xf32>
    %1675 = arith.mulf %1674, %1667 : vector<1x16x16xf32>
    %1676 = arith.addf %1661, %1675 : vector<1x16x16xf32>
    %1677 = vector.broadcast %1308 : f32 to vector<1x16x16xf32>
    %1678 = arith.mulf %1677, %1667 : vector<1x16x16xf32>
    %1679 = arith.addf %1664, %1678 : vector<1x16x16xf32>
    %cst_376 = arith.constant 0.000000e+00 : f32
    %1680 = vector.broadcast %cst_376 : f32 to vector<1x1x16xf32>
    %1681 = vector.extract_strided_slice %1116 {offsets = [0, 1, 0], sizes = [1, 15, 16], strides = [1, 1, 1]} : vector<1x16x16xf32> to vector<1x15x16xf32>
    %1682 = tpu.concatenate %1681, %1680 in 1 : vector<1x15x16xf32>, vector<1x1x16xf32> -> vector<1x16x16xf32>
    %cst_377 = arith.constant 0.000000e+00 : f32
    %1683 = vector.broadcast %cst_377 : f32 to vector<1x16x1xf32>
    %1684 = vector.extract_strided_slice %1682 {offsets = [0, 0, 0], sizes = [1, 16, 15], strides = [1, 1, 1]} : vector<1x16x16xf32> to vector<1x16x15xf32>
    %1685 = tpu.concatenate %1683, %1684 in 2 : vector<1x16x1xf32>, vector<1x16x15xf32> -> vector<1x16x16xf32>
    %1686 = vector.broadcast %1201 : f32 to vector<1x16x16xf32>
    %1687 = arith.mulf %1686, %1685 : vector<1x16x16xf32>
    %1688 = arith.addf %1670, %1687 : vector<1x16x16xf32>
    %1689 = vector.broadcast %1237 : f32 to vector<1x16x16xf32>
    %1690 = arith.mulf %1689, %1685 : vector<1x16x16xf32>
    %1691 = arith.addf %1673, %1690 : vector<1x16x16xf32>
    %1692 = vector.broadcast %1273 : f32 to vector<1x16x16xf32>
    %1693 = arith.mulf %1692, %1685 : vector<1x16x16xf32>
    %1694 = arith.addf %1676, %1693 : vector<1x16x16xf32>
    %1695 = vector.broadcast %1309 : f32 to vector<1x16x16xf32>
    %1696 = arith.mulf %1695, %1685 : vector<1x16x16xf32>
    %1697 = arith.addf %1679, %1696 : vector<1x16x16xf32>
    %1698 = vector.broadcast %1202 : f32 to vector<1x16x16xf32>
    %1699 = arith.mulf %1698, %1682 : vector<1x16x16xf32>
    %1700 = arith.addf %1688, %1699 : vector<1x16x16xf32>
    %1701 = vector.broadcast %1238 : f32 to vector<1x16x16xf32>
    %1702 = arith.mulf %1701, %1682 : vector<1x16x16xf32>
    %1703 = arith.addf %1691, %1702 : vector<1x16x16xf32>
    %1704 = vector.broadcast %1274 : f32 to vector<1x16x16xf32>
    %1705 = arith.mulf %1704, %1682 : vector<1x16x16xf32>
    %1706 = arith.addf %1694, %1705 : vector<1x16x16xf32>
    %1707 = vector.broadcast %1310 : f32 to vector<1x16x16xf32>
    %1708 = arith.mulf %1707, %1682 : vector<1x16x16xf32>
    %1709 = arith.addf %1697, %1708 : vector<1x16x16xf32>
    %cst_378 = arith.constant 0.000000e+00 : f32
    %1710 = vector.broadcast %cst_378 : f32 to vector<1x16x1xf32>
    %1711 = vector.extract_strided_slice %1682 {offsets = [0, 0, 1], sizes = [1, 16, 15], strides = [1, 1, 1]} : vector<1x16x16xf32> to vector<1x16x15xf32>
    %1712 = tpu.concatenate %1711, %1710 in 2 : vector<1x16x15xf32>, vector<1x16x1xf32> -> vector<1x16x16xf32>
    %1713 = vector.broadcast %1203 : f32 to vector<1x16x16xf32>
    %1714 = arith.mulf %1713, %1712 : vector<1x16x16xf32>
    %1715 = arith.addf %1700, %1714 : vector<1x16x16xf32>
    %1716 = vector.broadcast %1239 : f32 to vector<1x16x16xf32>
    %1717 = arith.mulf %1716, %1712 : vector<1x16x16xf32>
    %1718 = arith.addf %1703, %1717 : vector<1x16x16xf32>
    %1719 = vector.broadcast %1275 : f32 to vector<1x16x16xf32>
    %1720 = arith.mulf %1719, %1712 : vector<1x16x16xf32>
    %1721 = arith.addf %1706, %1720 : vector<1x16x16xf32>
    %1722 = vector.broadcast %1311 : f32 to vector<1x16x16xf32>
    %1723 = arith.mulf %1722, %1712 : vector<1x16x16xf32>
    %1724 = arith.addf %1709, %1723 : vector<1x16x16xf32>
    %cst_379 = arith.constant 0.000000e+00 : f32
    %1725 = vector.broadcast %cst_379 : f32 to vector<1x1x16xf32>
    %1726 = vector.extract_strided_slice %1176 {offsets = [0, 0, 0], sizes = [1, 15, 16], strides = [1, 1, 1]} : vector<1x16x16xf32> to vector<1x15x16xf32>
    %1727 = tpu.concatenate %1725, %1726 in 1 : vector<1x1x16xf32>, vector<1x15x16xf32> -> vector<1x16x16xf32>
    %cst_380 = arith.constant 0.000000e+00 : f32
    %1728 = vector.broadcast %cst_380 : f32 to vector<1x16x1xf32>
    %1729 = vector.extract_strided_slice %1727 {offsets = [0, 0, 0], sizes = [1, 16, 15], strides = [1, 1, 1]} : vector<1x16x16xf32> to vector<1x16x15xf32>
    %1730 = tpu.concatenate %1728, %1729 in 2 : vector<1x16x1xf32>, vector<1x16x15xf32> -> vector<1x16x16xf32>
    %1731 = vector.broadcast %1204 : f32 to vector<1x16x16xf32>
    %1732 = arith.mulf %1731, %1730 : vector<1x16x16xf32>
    %1733 = arith.addf %1715, %1732 : vector<1x16x16xf32>
    %1734 = vector.broadcast %1240 : f32 to vector<1x16x16xf32>
    %1735 = arith.mulf %1734, %1730 : vector<1x16x16xf32>
    %1736 = arith.addf %1718, %1735 : vector<1x16x16xf32>
    %1737 = vector.broadcast %1276 : f32 to vector<1x16x16xf32>
    %1738 = arith.mulf %1737, %1730 : vector<1x16x16xf32>
    %1739 = arith.addf %1721, %1738 : vector<1x16x16xf32>
    %1740 = vector.broadcast %1312 : f32 to vector<1x16x16xf32>
    %1741 = arith.mulf %1740, %1730 : vector<1x16x16xf32>
    %1742 = arith.addf %1724, %1741 : vector<1x16x16xf32>
    %1743 = vector.broadcast %1205 : f32 to vector<1x16x16xf32>
    %1744 = arith.mulf %1743, %1727 : vector<1x16x16xf32>
    %1745 = arith.addf %1733, %1744 : vector<1x16x16xf32>
    %1746 = vector.broadcast %1241 : f32 to vector<1x16x16xf32>
    %1747 = arith.mulf %1746, %1727 : vector<1x16x16xf32>
    %1748 = arith.addf %1736, %1747 : vector<1x16x16xf32>
    %1749 = vector.broadcast %1277 : f32 to vector<1x16x16xf32>
    %1750 = arith.mulf %1749, %1727 : vector<1x16x16xf32>
    %1751 = arith.addf %1739, %1750 : vector<1x16x16xf32>
    %1752 = vector.broadcast %1313 : f32 to vector<1x16x16xf32>
    %1753 = arith.mulf %1752, %1727 : vector<1x16x16xf32>
    %1754 = arith.addf %1742, %1753 : vector<1x16x16xf32>
    %cst_381 = arith.constant 0.000000e+00 : f32
    %1755 = vector.broadcast %cst_381 : f32 to vector<1x16x1xf32>
    %1756 = vector.extract_strided_slice %1727 {offsets = [0, 0, 1], sizes = [1, 16, 15], strides = [1, 1, 1]} : vector<1x16x16xf32> to vector<1x16x15xf32>
    %1757 = tpu.concatenate %1756, %1755 in 2 : vector<1x16x15xf32>, vector<1x16x1xf32> -> vector<1x16x16xf32>
    %1758 = vector.broadcast %1206 : f32 to vector<1x16x16xf32>
    %1759 = arith.mulf %1758, %1757 : vector<1x16x16xf32>
    %1760 = arith.addf %1745, %1759 : vector<1x16x16xf32>
    %1761 = vector.broadcast %1242 : f32 to vector<1x16x16xf32>
    %1762 = arith.mulf %1761, %1757 : vector<1x16x16xf32>
    %1763 = arith.addf %1748, %1762 : vector<1x16x16xf32>
    %1764 = vector.broadcast %1278 : f32 to vector<1x16x16xf32>
    %1765 = arith.mulf %1764, %1757 : vector<1x16x16xf32>
    %1766 = arith.addf %1751, %1765 : vector<1x16x16xf32>
    %1767 = vector.broadcast %1314 : f32 to vector<1x16x16xf32>
    %1768 = arith.mulf %1767, %1757 : vector<1x16x16xf32>
    %1769 = arith.addf %1754, %1768 : vector<1x16x16xf32>
    %cst_382 = arith.constant 0.000000e+00 : f32
    %1770 = vector.broadcast %cst_382 : f32 to vector<1x16x1xf32>
    %1771 = vector.extract_strided_slice %1176 {offsets = [0, 0, 0], sizes = [1, 16, 15], strides = [1, 1, 1]} : vector<1x16x16xf32> to vector<1x16x15xf32>
    %1772 = tpu.concatenate %1770, %1771 in 2 : vector<1x16x1xf32>, vector<1x16x15xf32> -> vector<1x16x16xf32>
    %1773 = vector.broadcast %1207 : f32 to vector<1x16x16xf32>
    %1774 = arith.mulf %1773, %1772 : vector<1x16x16xf32>
    %1775 = arith.addf %1760, %1774 : vector<1x16x16xf32>
    %1776 = vector.broadcast %1243 : f32 to vector<1x16x16xf32>
    %1777 = arith.mulf %1776, %1772 : vector<1x16x16xf32>
    %1778 = arith.addf %1763, %1777 : vector<1x16x16xf32>
    %1779 = vector.broadcast %1279 : f32 to vector<1x16x16xf32>
    %1780 = arith.mulf %1779, %1772 : vector<1x16x16xf32>
    %1781 = arith.addf %1766, %1780 : vector<1x16x16xf32>
    %1782 = vector.broadcast %1315 : f32 to vector<1x16x16xf32>
    %1783 = arith.mulf %1782, %1772 : vector<1x16x16xf32>
    %1784 = arith.addf %1769, %1783 : vector<1x16x16xf32>
    %1785 = vector.broadcast %1208 : f32 to vector<1x16x16xf32>
    %1786 = arith.mulf %1785, %1176 : vector<1x16x16xf32>
    %1787 = arith.addf %1775, %1786 : vector<1x16x16xf32>
    %1788 = vector.broadcast %1244 : f32 to vector<1x16x16xf32>
    %1789 = arith.mulf %1788, %1176 : vector<1x16x16xf32>
    %1790 = arith.addf %1778, %1789 : vector<1x16x16xf32>
    %1791 = vector.broadcast %1280 : f32 to vector<1x16x16xf32>
    %1792 = arith.mulf %1791, %1176 : vector<1x16x16xf32>
    %1793 = arith.addf %1781, %1792 : vector<1x16x16xf32>
    %1794 = vector.broadcast %1316 : f32 to vector<1x16x16xf32>
    %1795 = arith.mulf %1794, %1176 : vector<1x16x16xf32>
    %1796 = arith.addf %1784, %1795 : vector<1x16x16xf32>
    %cst_383 = arith.constant 0.000000e+00 : f32
    %1797 = vector.broadcast %cst_383 : f32 to vector<1x16x1xf32>
    %1798 = vector.extract_strided_slice %1176 {offsets = [0, 0, 1], sizes = [1, 16, 15], strides = [1, 1, 1]} : vector<1x16x16xf32> to vector<1x16x15xf32>
    %1799 = tpu.concatenate %1798, %1797 in 2 : vector<1x16x15xf32>, vector<1x16x1xf32> -> vector<1x16x16xf32>
    %1800 = vector.broadcast %1209 : f32 to vector<1x16x16xf32>
    %1801 = arith.mulf %1800, %1799 : vector<1x16x16xf32>
    %1802 = arith.addf %1787, %1801 : vector<1x16x16xf32>
    %1803 = vector.broadcast %1245 : f32 to vector<1x16x16xf32>
    %1804 = arith.mulf %1803, %1799 : vector<1x16x16xf32>
    %1805 = arith.addf %1790, %1804 : vector<1x16x16xf32>
    %1806 = vector.broadcast %1281 : f32 to vector<1x16x16xf32>
    %1807 = arith.mulf %1806, %1799 : vector<1x16x16xf32>
    %1808 = arith.addf %1793, %1807 : vector<1x16x16xf32>
    %1809 = vector.broadcast %1317 : f32 to vector<1x16x16xf32>
    %1810 = arith.mulf %1809, %1799 : vector<1x16x16xf32>
    %1811 = arith.addf %1796, %1810 : vector<1x16x16xf32>
    %cst_384 = arith.constant 0.000000e+00 : f32
    %1812 = vector.broadcast %cst_384 : f32 to vector<1x1x16xf32>
    %1813 = vector.extract_strided_slice %1176 {offsets = [0, 1, 0], sizes = [1, 15, 16], strides = [1, 1, 1]} : vector<1x16x16xf32> to vector<1x15x16xf32>
    %1814 = tpu.concatenate %1813, %1812 in 1 : vector<1x15x16xf32>, vector<1x1x16xf32> -> vector<1x16x16xf32>
    %cst_385 = arith.constant 0.000000e+00 : f32
    %1815 = vector.broadcast %cst_385 : f32 to vector<1x16x1xf32>
    %1816 = vector.extract_strided_slice %1814 {offsets = [0, 0, 0], sizes = [1, 16, 15], strides = [1, 1, 1]} : vector<1x16x16xf32> to vector<1x16x15xf32>
    %1817 = tpu.concatenate %1815, %1816 in 2 : vector<1x16x1xf32>, vector<1x16x15xf32> -> vector<1x16x16xf32>
    %1818 = vector.broadcast %1210 : f32 to vector<1x16x16xf32>
    %1819 = arith.mulf %1818, %1817 : vector<1x16x16xf32>
    %1820 = arith.addf %1802, %1819 : vector<1x16x16xf32>
    %1821 = vector.broadcast %1246 : f32 to vector<1x16x16xf32>
    %1822 = arith.mulf %1821, %1817 : vector<1x16x16xf32>
    %1823 = arith.addf %1805, %1822 : vector<1x16x16xf32>
    %1824 = vector.broadcast %1282 : f32 to vector<1x16x16xf32>
    %1825 = arith.mulf %1824, %1817 : vector<1x16x16xf32>
    %1826 = arith.addf %1808, %1825 : vector<1x16x16xf32>
    %1827 = vector.broadcast %1318 : f32 to vector<1x16x16xf32>
    %1828 = arith.mulf %1827, %1817 : vector<1x16x16xf32>
    %1829 = arith.addf %1811, %1828 : vector<1x16x16xf32>
    %1830 = vector.broadcast %1211 : f32 to vector<1x16x16xf32>
    %1831 = arith.mulf %1830, %1814 : vector<1x16x16xf32>
    %1832 = arith.addf %1820, %1831 : vector<1x16x16xf32>
    %1833 = vector.broadcast %1247 : f32 to vector<1x16x16xf32>
    %1834 = arith.mulf %1833, %1814 : vector<1x16x16xf32>
    %1835 = arith.addf %1823, %1834 : vector<1x16x16xf32>
    %1836 = vector.broadcast %1283 : f32 to vector<1x16x16xf32>
    %1837 = arith.mulf %1836, %1814 : vector<1x16x16xf32>
    %1838 = arith.addf %1826, %1837 : vector<1x16x16xf32>
    %1839 = vector.broadcast %1319 : f32 to vector<1x16x16xf32>
    %1840 = arith.mulf %1839, %1814 : vector<1x16x16xf32>
    %1841 = arith.addf %1829, %1840 : vector<1x16x16xf32>
    %cst_386 = arith.constant 0.000000e+00 : f32
    %1842 = vector.broadcast %cst_386 : f32 to vector<1x16x1xf32>
    %1843 = vector.extract_strided_slice %1814 {offsets = [0, 0, 1], sizes = [1, 16, 15], strides = [1, 1, 1]} : vector<1x16x16xf32> to vector<1x16x15xf32>
    %1844 = tpu.concatenate %1843, %1842 in 2 : vector<1x16x15xf32>, vector<1x16x1xf32> -> vector<1x16x16xf32>
    %1845 = vector.broadcast %1212 : f32 to vector<1x16x16xf32>
    %1846 = arith.mulf %1845, %1844 : vector<1x16x16xf32>
    %1847 = arith.addf %1832, %1846 : vector<1x16x16xf32>
    %1848 = vector.broadcast %1248 : f32 to vector<1x16x16xf32>
    %1849 = arith.mulf %1848, %1844 : vector<1x16x16xf32>
    %1850 = arith.addf %1835, %1849 : vector<1x16x16xf32>
    %1851 = vector.broadcast %1284 : f32 to vector<1x16x16xf32>
    %1852 = arith.mulf %1851, %1844 : vector<1x16x16xf32>
    %1853 = arith.addf %1838, %1852 : vector<1x16x16xf32>
    %1854 = vector.broadcast %1320 : f32 to vector<1x16x16xf32>
    %1855 = arith.mulf %1854, %1844 : vector<1x16x16xf32>
    %1856 = arith.addf %1841, %1855 : vector<1x16x16xf32>
    %1857 = arith.addf %1847, %10 : vector<1x16x16xf32>
    %c0_387 = arith.constant 0 : index
    %c0_388 = arith.constant 0 : index
    %c0_389 = arith.constant 0 : index
    %c0_390 = arith.constant 0 : index
    %1858 = vector.load %arg10[%c0_387, %c0_388, %c0_389, %c0_390] : memref<1x4x16x16xf32, #tpu.memory_space<vmem>>, vector<1x1x16x16xf32>
    %1859 = vector.shape_cast %1858 : vector<1x1x16x16xf32> to vector<1x16x16xf32>
    %1860 = vector.shape_cast %1857 : vector<1x16x16xf32> to vector<1x1x16x16xf32>
    tpu.vector_store %arg10[%c0_387, %c0_388, %c0_389, %c0_390], %1860 {strides = array<i32>} : memref<1x4x16x16xf32, #tpu.memory_space<vmem>>, vector<1x1x16x16xf32>,
    %1861 = arith.addf %1850, %12 : vector<1x16x16xf32>
    %c0_391 = arith.constant 0 : index
    %c1_392 = arith.constant 1 : index
    %c0_393 = arith.constant 0 : index
    %c0_394 = arith.constant 0 : index
    %1862 = vector.load %arg10[%c0_391, %c1_392, %c0_393, %c0_394] : memref<1x4x16x16xf32, #tpu.memory_space<vmem>>, vector<1x1x16x16xf32>
    %1863 = vector.shape_cast %1862 : vector<1x1x16x16xf32> to vector<1x16x16xf32>
    %1864 = vector.shape_cast %1861 : vector<1x16x16xf32> to vector<1x1x16x16xf32>
    tpu.vector_store %arg10[%c0_391, %c1_392, %c0_393, %c0_394], %1864 {strides = array<i32>} : memref<1x4x16x16xf32, #tpu.memory_space<vmem>>, vector<1x1x16x16xf32>,
    %1865 = arith.addf %1853, %14 : vector<1x16x16xf32>
    %c0_395 = arith.constant 0 : index
    %c2_396 = arith.constant 2 : index
    %c0_397 = arith.constant 0 : index
    %c0_398 = arith.constant 0 : index
    %1866 = vector.load %arg10[%c0_395, %c2_396, %c0_397, %c0_398] : memref<1x4x16x16xf32, #tpu.memory_space<vmem>>, vector<1x1x16x16xf32>
    %1867 = vector.shape_cast %1866 : vector<1x1x16x16xf32> to vector<1x16x16xf32>
    %1868 = vector.shape_cast %1865 : vector<1x16x16xf32> to vector<1x1x16x16xf32>
    tpu.vector_store %arg10[%c0_395, %c2_396, %c0_397, %c0_398], %1868 {strides = array<i32>} : memref<1x4x16x16xf32, #tpu.memory_space<vmem>>, vector<1x1x16x16xf32>,
    %1869 = arith.addf %1856, %16 : vector<1x16x16xf32>
    %c0_399 = arith.constant 0 : index
    %c3_400 = arith.constant 3 : index
    %c0_401 = arith.constant 0 : index
    %c0_402 = arith.constant 0 : index
    %1870 = vector.load %arg10[%c0_399, %c3_400, %c0_401, %c0_402] : memref<1x4x16x16xf32, #tpu.memory_space<vmem>>, vector<1x1x16x16xf32>
    %1871 = vector.shape_cast %1870 : vector<1x1x16x16xf32> to vector<1x16x16xf32>
    %1872 = vector.shape_cast %1869 : vector<1x16x16xf32> to vector<1x1x16x16xf32>
    tpu.vector_store %arg10[%c0_399, %c3_400, %c0_401, %c0_402], %1872 {strides = array<i32>} : memref<1x4x16x16xf32, #tpu.memory_space<vmem>>, vector<1x1x16x16xf32>,
    return
  }
  func.func @transform_0(%arg0: i32) -> (i32, i32, i32, i32) {
    %c0_i32 = arith.constant 0 : i32
    %c0_i32_0 = arith.constant 0 : i32
    %c0_i32_1 = arith.constant 0 : i32
    %c0_i32_2 = arith.constant 0 : i32
    return %arg0, %c0_i32, %c0_i32_0, %c0_i32_1 : i32, i32, i32, i32
  }
  func.func @transform_1(%arg0: i32) -> (i32, i32) {
    %c0_i32 = arith.constant 0 : i32
    %c0_i32_0 = arith.constant 0 : i32
    %c0_i32_1 = arith.constant 0 : i32
    return %c0_i32, %c0_i32_0 : i32, i32
  }
  func.func @transform_2(%arg0: i32) -> (i32, i32) {
    %c0_i32 = arith.constant 0 : i32
    %c0_i32_0 = arith.constant 0 : i32
    %c0_i32_1 = arith.constant 0 : i32
    return %c0_i32, %c0_i32_0 : i32, i32
  }
  func.func @transform_3(%arg0: i32) -> (i32, i32) {
    %c0_i32 = arith.constant 0 : i32
    %c0_i32_0 = arith.constant 0 : i32
    %c0_i32_1 = arith.constant 0 : i32
    return %c0_i32, %c0_i32_0 : i32, i32
  }
  func.func @transform_4(%arg0: i32) -> (i32, i32) {
    %c0_i32 = arith.constant 0 : i32
    %c0_i32_0 = arith.constant 0 : i32
    %c0_i32_1 = arith.constant 0 : i32
    return %c0_i32, %c0_i32_0 : i32, i32
  }
  func.func @transform_5(%arg0: i32) -> i32 {
    %c0_i32 = arith.constant 0 : i32
    %c0_i32_0 = arith.constant 0 : i32
    return %c0_i32 : i32
  }
  func.func @transform_6(%arg0: i32) -> i32 {
    %c0_i32 = arith.constant 0 : i32
    %c0_i32_0 = arith.constant 0 : i32
    return %c0_i32 : i32
  }
  func.func @transform_7(%arg0: i32) -> i32 {
    %c0_i32 = arith.constant 0 : i32
    %c0_i32_0 = arith.constant 0 : i32
    return %c0_i32 : i32
  }
  func.func @transform_8(%arg0: i32) -> i32 {
    %c0_i32 = arith.constant 0 : i32
    %c0_i32_0 = arith.constant 0 : i32
    return %c0_i32 : i32
  }
  func.func @transform_9(%arg0: i32) -> (i32, i32, i32, i32) {
    %c0_i32 = arith.constant 0 : i32
    %c0_i32_0 = arith.constant 0 : i32
    %c0_i32_1 = arith.constant 0 : i32
    %c0_i32_2 = arith.constant 0 : i32
    return %arg0, %c0_i32, %c0_i32_0, %c0_i32_1 : i32, i32, i32, i32
  }
}

</mosaic_0001>

<bundles_post_ra>
// kernel: residual_cnn_forward.1
= control target key start
LH: loop header
LB: loop body
LE: loop exit
PB: predicated region body
PF: predicated region fallthrough
CT: control target
= control target key end

     0   :  { %s8546_s0 = inlined_call_operand.vmem [shape: f32[2,4,16,16], index: 0, kind: input, shape index: {}]   ;;  %s8547_s1 = inlined_call_operand.vmem [shape: f32[16,1], index: 1, kind: input, shape index: {}]   ;;  %s8548_s2 = inlined_call_operand.vmem [shape: f32[16,1], index: 2, kind: input, shape index: {}]   ;;  %s8549_s3 = inlined_call_operand.vmem [shape: f32[16,1], index: 3, kind: input, shape index: {}]   ;;  %s8550_s4 = inlined_call_operand.vmem [shape: f32[16,1], index: 4, kind: input, shape index: {}]   ;;  %s8551_s5 = inlined_call_operand.vmem [shape: f32[144], index: 5, kind: input, shape index: {}]   ;;  %s8552_s6 = inlined_call_operand.vmem [shape: f32[4], index: 6, kind: input, shape index: {}]   ;;  %s8553_s7 = inlined_call_operand.vmem [shape: f32[144], index: 7, kind: input, shape index: {}]   ;;  %s8554_s8 = inlined_call_operand.vmem [shape: f32[4], index: 8, kind: input, shape index: {}]   ;;  %s8555_s9 = inlined_call_operand.hbm [shape: f32[2,4,16,16], index: 9, kind: output, shape index: {}]  }
   0x1   :  { %8946 = sst [smem:[#allocation216_spill]] %s8546_s0 }
   0x2   :  { %8947 = sst [smem:[#allocation217_spill]] %s8547_s1 }
   0x3   :  { %8948 = sst [smem:[#allocation218_spill]] %s8548_s2 }
   0x4   :  { %8949 = sst [smem:[#allocation219_spill]] %s8549_s3 }
   0x5   :  { %8950 = sst [smem:[#allocation220_spill]] %s8550_s4 }
   0x6   :  { %8951 = sst [smem:[#allocation221_spill]] %s8551_s5 }
   0x7   :  { %8952 = sst [smem:[#allocation222_spill]] %s8552_s6 }
   0x8   :  { %8953 = sst [smem:[#allocation223_spill]] %s8553_s7 }
   0x9   :  { %8954 = sst [smem:[#allocation224_spill]] %s8554_s8 }
   0xa   :  { %8955 = sst [smem:[#allocation225_spill]] %s8555_s9 }
   0xb   :  { %14 = vsyncpa [#allocation4], 0 }
   0xc   :  { %15 = vsyncpa [#allocation6], 0 }
   0xd   :  { %16 = vsyncpa [#allocation9], 0 }
   0xe   :  { %17 = vsyncpa [#allocation3], 0 }
   0xf   :  { %19 = vsyncpa [#allocation3 + $0x1], 0  ;;  %s4232_s30 = smov 0   ;;  %s4234_s10 = smov 0  }
  0x10   :  { %s4236_s11 = smov 0   ;;  %s4238_s12 = smov 0  }
  0x11 LB: > { %8956 = sst [smem:[#allocation15_spill]] %s4157_s30  ;;  %s4253_s13 = sadd.s32 4294967295, %s4169_s12   ;;  %s4169_s12 = sphi %s4238_s12, %s10571_s12   ;;  %s4165_s11 = sphi %s4236_s11, %s10574_s11   ;;  %s4161_s10 = sphi %s4234_s10, %s10573_s10   ;;  %s4157_s30 = sphi %s4232_s30, %s10572_s30  }
  0x12   : > { %8957 = sst [smem:[#allocation16_spill]] %s4161_s10  ;;  %s3509_s14 = sadd.s32 4294967294, %s4169_s12  }
  0x13   : > { %8958 = sst [smem:[#allocation17_spill]] %s4165_s11  ;;  %s4257_s15 = sadd.s32 1, %s4169_s12  }
  0x14   : > { %8959 = sst [smem:[#allocation18_spill]] %s4169_s12  ;;  %s226_s16 = sadd.s32 1, %s4165_s11 }
  0x15   : > { %8960 = sst [smem:[#allocation19_spill]] %s4253_s13  ;;  %s223_s17 = ssub.s32 %s4169_s12, %s4257_s15 }
  0x16   : > { %8961 = sst [smem:[#allocation20_spill]] %s4257_s15  ;;  %p236_p0 = scmp.ne.s32.totalorder %s4165_s11, %s4161_s10 }
  0x17   : > { %p224_p1 = scmp.eq.s32.totalorder %s223_s17, 0  ;;  %p237_p2 = scmp.eq.s32.totalorder %s4253_s13, 1 }
  0x18   : > { %p242_p3 = scmp.ne.s32.totalorder %s4161_s10, %s4157_s30  ;;  %p243_p4 = scmp.eq.s32.totalorder %s3509_s14, 1 }
  0x19   : > { %s4268_s18 = scalar_select %p224_p1, %s4165_s11, %s226_s16  }
  0x1a   : > { %p4270_p5 = por %p237_p2, %p236_p0  ;;  %p4274_p6 = por %p243_p4, %p242_p3 }
  0x1b   : > { %8962 = sst [smem:[#allocation21_spill]] %s4268_s18  ;;  %p3510_p7 = scmp.ge.s32.totalorder %s4169_s12, 1 }
  0x1c   : > { %s8963_s19 = scalar_select %p4270_p5, 1, 0 }
  0x1d   : > { %s8965_s20 = scalar_select %p4274_p6, 1, 0 }
  0x1e   : > { %8964 = sst [smem:[#allocation22_spill]] %s8963_s19  ;;  %p250_p8 = scmp.lt.s32.totalorder %s4169_s12, 3 }
  0x1f   : > { %8966 = sst [smem:[#allocation23_spill]] %s8965_s20  ;;  %p8556_p9 = scmp.eq.s32.totalorder %s4253_s13, 0 }
  0x20   : > { %p4281_p10 = pnand %p3510_p7, %p250_p8  ;;  %s8968_s6 = sld [smem:[#allocation222_spill]] }
  0x21   : > { %s8969_s5 = sld [smem:[#allocation221_spill]] }
  0x22   : > { %s8967_s21 = scalar_select %p4281_p10, 1, 0 }
  0x23   : > { %p3879_p11 = pneg %p4281_p10  ;;  %s8971_s7 = sld [smem:[#allocation223_spill]] }
  0x24   : > { %s8972_s8 = sld [smem:[#allocation224_spill]] }
  0x25   : > { %p4295_p12 = pnand %p8556_p9, %p3879_p11 }
  0x26   : > { %s286_s24 = sshll.u32 %s8968_s6, 4  ;;  %s287_s24 = int_to_ptr.vmem [resolvable:$true] %s286_s24 }
  0x27   : > { %s275_s27 = sshll.u32 %s8969_s5, 4  ;;  %s4037_s25 = scalar_lea.vmem %s287_s24, 16  ;;  %s276_s27 = int_to_ptr.vmem [resolvable:$true] %s275_s27 }
  0x28   : > { %p4038_p13 = scmp.ne.s32.totalorder %s287_s24, %s4037_s25  ;;  %p4039_p0 = pneg %p4295_p12 }
  0x29   : > { %s297_s16 = sshll.u32 %s8971_s7, 4  ;;  %p4045_p3 = scmp.lt.s32.totalorder %s287_s24, %s287_s24  ;;  %s4302_s16 = int_to_ptr.vmem [resolvable:$true] %s297_s16 }
  0x2a   : > { %s308_s23 = sshll.u32 %s8972_s8, 4  ;;  %p4040_p1 = pnand %p4039_p0, %p4038_p13  ;;  %s309_s23 = int_to_ptr.vmem [resolvable:$true] %s308_s23 }
  0x2b   : > { %p4046_p4 = scmp.lt.s32.totalorder %s4037_s25, %s4037_s25 }
  0x2c   : > { %p4041_p2 = pneg %p4040_p1 }
  0x2d   : > { %p4047_p7 = por %p4046_p4, %p4045_p3 }
  0x2f   : > { %p4048_p8 = pnand %p4047_p7, %p4041_p2 }
  0x31   : > { %4051 = shalt.err (!%p4048_p8)
}
  0x32   : > { %s4171_s26 = smov [#allocation5]   ;;  %s4052_s29 = scalar_lea.vmem %s276_s27, 32 }
  0x33   : > { %3885 = dma.vmem_to_smem (!%p4295_p12), %s287_s24, 16, %s4171_s26, [#allocation6]  }
  0x34   : > { %p4053_p11 = scmp.ne.s32.totalorder %s276_s27, %s4052_s29  ;;  %p4060_p5 = scmp.lt.s32.totalorder %s276_s27, %s276_s27 }
  0x35   : > { %p4061_p10 = scmp.lt.s32.totalorder %s4052_s29, %s4052_s29 }
  0x36   : > { %p4055_p9 = pnand %p4053_p11, %p4039_p0 }
  0x37   : > { %p4062_p13 = por %p4061_p10, %p4060_p5 }
  0x38   : > { %p4056_p6 = pneg %p4055_p9 }
  0x3a   : > { %p4063_p1 = pnand %p4062_p13, %p4056_p6 }
  0x3c   : > { %4066 = shalt.err (!%p4063_p1)
}
  0x3d   : > { %s4172_s14 = smov [#allocation2]   ;;  %s4067_s24 = scalar_lea.vmem %s4302_s16, 32 }
  0x3e   : > { %3882 = dma.vmem_to_smem (!%p4295_p12), %s276_s27, 32, %s4172_s14, [#allocation4]  }
  0x3f   : > { %p4068_p2 = scmp.ne.s32.totalorder %s4302_s16, %s4067_s24  ;;  %p4075_p9 = scmp.lt.s32.totalorder %s4302_s16, %s4302_s16 }
  0x40   : > { %p4076_p7 = scmp.lt.s32.totalorder %s4067_s24, %s4067_s24 }
  0x41   : > { %p4070_p3 = pnand %p4068_p2, %p4039_p0 }
  0x42   : > { %p4077_p5 = por %p4076_p7, %p4075_p9 }
  0x43   : > { %p4071_p4 = pneg %p4070_p3 }
  0x45   : > { %p4078_p6 = pnand %p4077_p5, %p4071_p4 }
  0x47   : > { %4081 = shalt.err (!%p4078_p6)
}
  0x48   : > { %s4173_s17 = smov [#allocation7]   ;;  %s4082_s25 = scalar_lea.vmem %s309_s23, 16 }
  0x49   : > { %3888 = dma.vmem_to_smem (!%p4295_p12), %s4302_s16, 32, %s4173_s17, [#allocation6]  }
  0x4a   : > { %p4083_p10 = scmp.ne.s32.totalorder %s309_s23, %s4082_s25  ;;  %p4090_p13 = scmp.lt.s32.totalorder %s309_s23, %s309_s23 }
  0x4b   : > { %p4091_p1 = scmp.lt.s32.totalorder %s4082_s25, %s4082_s25 }
  0x4c   : > { %p4085_p8 = pnand %p4083_p10, %p4039_p0 }
  0x4d   : > { %p4092_p2 = por %p4091_p1, %p4090_p13 }
  0x4e   : > { %p4086_p11 = pneg %p4085_p8 }
  0x50   : > { %p4093_p3 = pnand %p4092_p2, %p4086_p11 }
  0x52   : > { %4096 = shalt.err (!%p4093_p3)
}
  0x53   : > { %s4174_s26 = smov [#allocation8]   ;;  %p8973_p4 = scmp.ne.s32.totalorder %s8967_s21, 0 }
  0x54   : > { %3891 = dma.vmem_to_smem (!%p4295_p12), %s309_s23, 16, %s4174_s26, [#allocation9]  }
  0x55   : > { %329 = sbr.rel (%p8973_p4) target bundleno = 1158 (0x486), region = 56 }
  0x5a   : > { %p8974_p9 = scmp.eq.s32.totalorder %s4253_s13, 0 }
  0x5c   : > { %4140 = dma.done.wait (%p8974_p9), [#allocation4], 32   ;;  %p8975_p7 = pmov %p8974_p9 }
  0x5e   : > { %4142 = vsyncadd (%p8975_p7), [#allocation4], 4294967264  ;;  %p8976_p0 = pmov %p8975_p7 }
  0x60   : > { %4144 = dma.done.wait (%p8976_p0), [#allocation6], 48   ;;  %p8977_p5 = pmov %p8976_p0 }
  0x61   : > { %p8978_p6 = pmov %p8976_p0 }
  0x62   : > { %4146 = vsyncadd (%p8977_p5), [#allocation6], 4294967248 }
  0x63   : > { %4148 = dma.done.wait (%p8978_p6), [#allocation9], 16   ;;  %p8979_p12 = pmov %p8976_p0 }
  0x65   : > { %4150 = vsyncadd (%p8979_p12), [#allocation9], 4294967280 }
  0x66   : > { %347 = sfence }
  0x67   : > { %s8980_s2 = sld [smem:[#allocation218_spill]]  ;;  %v4175_v2 = vmov 0   ;;  %p378_p10 = scmp.lt.s32.totalorder %s4253_s13, 1  ;;  %vm399_vm0 = vcmask 130048   ;;  %vm911_vm7 = vcmask 1040384   ;;  %vm1073_vm8 = vcmask 1046528  }
  0x68   : > { %s8981_s1 = sld [smem:[#allocation217_spill]]  ;;  %3948 = vset.pattern.permute.xlu1 %v4175_v2  ;;  %3947 = vset.pattern.permute.xlu0 %v4175_v2  ;;  %s8568_s30 = smov 1   ;;  %vm925_vm11 = vcmask 7168   ;;  %vm974_vm12 = vcmask 121856  }
  0x69   : > { %s379_s22 = scalar_select %p378_p10, %s4253_s13, 1 }
  0x6a   : > { %s8982_s0 = sld [smem:[#allocation216_spill]]  ;;  %s9005_s4 = smov 1  }
  0x6b   : > { %s3859_s27 = sshll.u32 %s379_s22, 6  ;;  %s4482_s28 = sld [smem:[#allocation2 + $0x4]] }
  0x6c   : > { %s4484_s16 = sld [smem:[#allocation2 + $0x28]] }
  0x6d   : > { %v385_v0 = vld [vmem:[%s8980_s2] sm:$0xff]  ;;  %v386_v3 = vld [vmem:[%s8980_s2 + $0x8] sm:$0xff]  ;;  %s4494_s23 = sld [smem:[#allocation2 + $0x4c]] }
  0x6e   : > { %v383_v1 = vld [vmem:[%s8981_s1] sm:$0xff]  ;;  %443 = vperm.xlu1 %3948, %v385_v0   ;;  %v384_v4 = vld [vmem:[%s8981_s1 + $0x8] sm:$0xff]  ;;  %s4497_s29 = sld [smem:[#allocation2 + $0x1]] }
  0x6f   : > { %431 = vperm.xlu0 %3947, %v383_v1   ;;  %s4501_s14 = sld [smem:[#allocation2 + $0x25]] }
  0x70   : > { %s4369_s21 = scalar_lea.vmem %s8982_s0, %s3859_s27  ;;  %s4505_s24 = sld [smem:[#allocation2 + $0x49]] }
  0x71   : > { %8983 = sst [smem:[#allocation24_spill]] %s4369_s21  ;;  %v391_v5 = vld [vmem:[%s4369_s21] sm:$0xff]  ;;  %v392_v6 = vld [vmem:[%s4369_s21 + $0x8] sm:$0xff]  ;;  %v393_v7 = vld [vmem:[%s4369_s21 + $0x10] sm:$0xff] }
  0x72   : > { %448 = vperm.xlu1 %3948, %v386_v3   ;;  %v394_v8 = vld [vmem:[%s4369_s21 + $0x18] sm:$0xff]  ;;  %v395_v9 = vld [vmem:[%s4369_s21 + $0x20] sm:$0xff]  ;;  %v396_v10 = vld [vmem:[%s4369_s21 + $0x28] sm:$0xff]  ;;  %v400_v11 = vsel %vm399_vm0, %v391_v5, 0.0  ;;  %v401_v12 = vsel %vm399_vm0, %v392_v6, 0.0  ;;  %v505_v13 = vsel %vm399_vm0, %v393_v7, 0.0 }
  0x73   : > { %436 = vperm.xlu0 %3947, %v384_v4   ;;  %v506_v14 = vsel %vm399_vm0, %v394_v8, 0.0  ;;  %v589_v15 = vsel %vm399_vm0, %v395_v9, 0.0  ;;  %v590_v16 = vsel %vm399_vm0, %v396_v10, 0.0  ;;  %v402_v17 = vadd.f32 %v401_v12, %v400_v11  ;;  %v397_v31 = vld [vmem:[%s4369_s21 + $0x30] sm:$0xff]  ;;  %v398_v32 = vld [vmem:[%s4369_s21 + $0x38] sm:$0xff]  ;;  %s4512_s17 = sld [smem:[#allocation2 + $0x6d]] }
  0x74   : > { %v507_v18 = vadd.f32 %v506_v14, %v505_v13  ;;  %v591_v19 = vadd.f32 %v590_v16, %v589_v15  ;;  %v673_v36 = vsel %vm399_vm0, %v397_v31, 0.0  ;;  %v674_v37 = vsel %vm399_vm0, %v398_v32, 0.0  ;;  %s4514_s22 = sld [smem:[#allocation2 + $0x70]] }
  0x75   : > { %v403_v20 = vrot.slane %v402_v17, 4  ;;  %v675_v40 = vadd.f32 %v674_v37, %v673_v36  ;;  %s4518_s27 = sld [smem:[#allocation2 + $0xa]] }
  0x76   : > { %v508_v21 = vrot.slane %v507_v18, 4  ;;  %v592_v22 = vrot.slane %v591_v19, 4  ;;  %s4525_s25 = sld [smem:[#allocation2 + $0x2e]] }
  0x77   : > { %v404_v23 = vadd.f32 %v403_v20, %v402_v17  ;;  %v676_v44 = vrot.slane %v675_v40, 4  ;;  %s4527_s26 = sld [smem:[#allocation2 + $0x52]] }
  0x78   : > { %v509_v24 = vadd.f32 %v508_v21, %v507_v18  ;;  %v593_v25 = vadd.f32 %v592_v22, %v591_v19  ;;  %s4531_s0 = sld [smem:[#allocation2 + $0x76]] }
  0x79   : > { %v405_v26 = vrot.slane %v404_v23, 2  ;;  %v677_v49 = vadd.f32 %v676_v44, %v675_v40  ;;  %s4537_s1 = sld [smem:[#allocation2 + $0x7]] }
  0x7a   : > { %v510_v27 = vrot.slane %v509_v24, 2  ;;  %v594_v28 = vrot.slane %v593_v25, 2  ;;  %s4545_s2 = sld [smem:[#allocation2 + $0x2b]] }
  0x7b   : > { %v406_v29 = vadd.f32 %v405_v26, %v404_v23  ;;  %v678_v56 = vrot.slane %v677_v49, 2  ;;  %8984 = sst [smem:[#allocation25_spill]] %s4518_s27 }
  0x7c   : > { %v511_v30 = vadd.f32 %v510_v27, %v509_v24  ;;  %v595_v33 = vadd.f32 %v594_v28, %v593_v25  ;;  %8985 = sst [smem:[#allocation26_spill]] %s4525_s25 }
  0x7d   : > { %v407_v34 = vrot.slane %v406_v29, 1  ;;  %v679_v63 = vadd.f32 %v678_v56, %v677_v49  ;;  %8986 = sst [smem:[#allocation27_spill]] %s4527_s26 }
  0x7e   : > { %v512_v35 = vrot.slane %v511_v30, 1  ;;  %v596_v38 = vrot.slane %v595_v33, 1  ;;  %8987 = sst [smem:[#allocation28_spill]] %s4531_s0 }
  0x7f   : > { %v408_v39 = vadd.f32 %v407_v34, %v406_v29  ;;  %8988 = sst [smem:[#allocation29_spill]] %s4537_s1 }
  0x80   : > { %v513_v41 = vadd.f32 %v512_v35, %v511_v30  ;;  %v597_v42 = vadd.f32 %v596_v38, %v595_v33  ;;  %8989 = sst [smem:[#allocation30_spill]] %s4545_s2 }
  0x81   : > { %v410_v43 = vmul.f32 0.0625, %v408_v39  ;;  %s4554_s5 = sld [smem:[#allocation2 + $0x4f]] }
  0x82   : > { %v514_v45 = vmul.f32 0.0625, %v513_v41  ;;  %v598_v46 = vmul.f32 0.0625, %v597_v42  ;;  %s4565_s6 = sld [smem:[#allocation2 + $0x73]] }
  0x83   : > { %v4387_v47 = vsub.f32 %v391_v5, %v410_v43  ;;  %v4389_v48 = vsub.f32 %v392_v6, %v410_v43  ;;  %v680_v6 = vrot.slane %v679_v63, 1  ;;  %s4571_s7 = sld [smem:[#allocation2 + $0xd]] }
  0x84   : > { %v4391_v50 = vsub.f32 %v393_v7, %v514_v45  ;;  %v4393_v51 = vsub.f32 %v394_v8, %v514_v45  ;;  %v4395_v52 = vsub.f32 %v395_v9, %v598_v46  ;;  %v4397_v53 = vsub.f32 %v396_v10, %v598_v46  ;;  %s4577_s8 = sld [smem:[#allocation2 + $0x31]] }
  0x85   : > { %v413_v54 = vmul.f32 %v4387_v47, %v4387_v47  ;;  %v414_v55 = vmul.f32 %v4389_v48, %v4389_v48  ;;  %v681_v10 = vadd.f32 %v680_v6, %v679_v63  ;;  %s4582_s18 = sld [smem:[#allocation2 + $0x55]] }
  0x86   : > { %v517_v57 = vmul.f32 %v4391_v50, %v4391_v50  ;;  %v518_v58 = vmul.f32 %v4393_v51, %v4393_v51  ;;  %v601_v59 = vmul.f32 %v4395_v52, %v4395_v52  ;;  %v602_v60 = vmul.f32 %v4397_v53, %v4397_v53  ;;  %s4588_s11 = sld [smem:[#allocation2 + $0x79]] }
  0x87   : > { %v415_v61 = vsel %vm399_vm0, %v413_v54, 0.0  ;;  %v416_v62 = vsel %vm399_vm0, %v414_v55, 0.0  ;;  %v682_v14 = vmul.f32 0.0625, %v681_v10  ;;  %8990 = sst [smem:[#allocation31_spill]] %s4554_s5 }
  0x88   : > { %v519_v0 = vsel %vm399_vm0, %v517_v57, 0.0  ;;  %v520_v1 = vsel %vm399_vm0, %v518_v58, 0.0  ;;  %v603_v2 = vsel %vm399_vm0, %v601_v59, 0.0  ;;  %v604_v3 = vsel %vm399_vm0, %v602_v60, 0.0  ;;  %8991 = sst [smem:[#allocation32_spill]] %s4565_s6 }
  0x89   : > { %v417_v4 = vadd.f32 %v416_v62, %v415_v61  ;;  %v521_v5 = vadd.f32 %v520_v1, %v519_v0  ;;  %v605_v7 = vadd.f32 %v604_v3, %v603_v2  ;;  %v4417_v18 = vsub.f32 %v397_v31, %v682_v14  ;;  %8992 = sst [smem:[#allocation33_spill]] %s4571_s7 }
  0x8a   : > { %v4419_v19 = vsub.f32 %v398_v32, %v682_v14  ;;  %8993 = sst [smem:[#allocation34_spill]] %s4577_s8 }
  0x8b   : > { %v418_v8 = vrot.slane %v417_v4, 4  ;;  %v522_v9 = vrot.slane %v521_v5, 4  ;;  %v606_v11 = vrot.slane %v605_v7, 4  ;;  %v685_v23 = vmul.f32 %v4417_v18, %v4417_v18  ;;  %8994 = sst [smem:[#allocation35_spill]] %s4582_s18 }
  0x8c   : > { %v686_v24 = vmul.f32 %v4419_v19, %v4419_v19  ;;  %8995 = sst [smem:[#allocation36_spill]] %s4588_s11 }
  0x8d   : > { %v419_v12 = vadd.f32 %v418_v8, %v417_v4  ;;  %v523_v13 = vadd.f32 %v522_v9, %v521_v5  ;;  %v607_v15 = vadd.f32 %v606_v11, %v605_v7  ;;  %v687_v28 = vsel %vm399_vm0, %v685_v23, 0.0  ;;  %s4593_s15 = sld [smem:[#allocation2 + $0x10]] }
  0x8e   : > { %v688_v29 = vsel %vm399_vm0, %v686_v24, 0.0  ;;  %s4597_s20 = sld [smem:[#allocation2 + $0x34]] }
  0x8f   : > { %v420_v16 = vrot.slane %v419_v12, 2  ;;  %v524_v17 = vrot.slane %v523_v13, 2  ;;  %v608_v20 = vrot.slane %v607_v15, 2  ;;  %v689_v32 = vadd.f32 %v688_v29, %v687_v28  ;;  %s4602_s12 = sld [smem:[#allocation2 + $0x58]] }
  0x90   : > { %s4606_s19 = sld [smem:[#allocation2 + $0x7c]] }
  0x91   : > { %v421_v21 = vadd.f32 %v420_v16, %v419_v12  ;;  %v525_v22 = vadd.f32 %v524_v17, %v523_v13  ;;  %v609_v25 = vadd.f32 %v608_v20, %v607_v15  ;;  %v690_v36 = vrot.slane %v689_v32, 4  ;;  %s4610_s9 = sld [smem:[#allocation2 + $0x13]] }
  0x92   : > { %s4616_s21 = sld [smem:[#allocation2 + $0x37]] }
  0x93   : > { %v422_v26 = vrot.slane %v421_v21, 1  ;;  %v526_v27 = vrot.slane %v525_v22, 1  ;;  %v610_v30 = vrot.slane %v609_v25, 1  ;;  %v691_v40 = vadd.f32 %v690_v36, %v689_v32  ;;  %8996 = sst [smem:[#allocation37_spill]] %s4593_s15 }
  0x94   : > { %8997 = sst [smem:[#allocation38_spill]] %s4597_s20 }
  0x95   : > { %v423_v31 = vadd.f32 %v422_v26, %v421_v21  ;;  %v527_v33 = vadd.f32 %v526_v27, %v525_v22  ;;  %v611_v34 = vadd.f32 %v610_v30, %v609_v25  ;;  %v692_v43 = vrot.slane %v691_v40, 2  ;;  %8998 = sst [smem:[#allocation39_spill]] %s4602_s12 }
  0x96   : > { %8999 = sst [smem:[#allocation40_spill]] %s4606_s19 }
  0x97   : > { %v424_v35 = vmul.f32 0.0625, %v423_v31  ;;  %v528_v37 = vmul.f32 0.0625, %v527_v33  ;;  %v612_v38 = vmul.f32 0.0625, %v611_v34  ;;  %v693_v44 = vadd.f32 %v692_v43, %v691_v40  ;;  %9000 = sst [smem:[#allocation41_spill]] %s4610_s9 }
  0x98   : > { %9001 = sst [smem:[#allocation42_spill]] %s4616_s21 }
  0x99   : > { %v425_v39 = vadd.f32 1e-05, %v424_v35  ;;  %v529_v41 = vadd.f32 1e-05, %v528_v37  ;;  %v613_v42 = vadd.f32 1e-05, %v612_v38 }
  0x9a   : > { %v694_v45 = vrot.slane %v693_v44, 1  ;;  %s4622_s13 = sld [smem:[#allocation2 + $0x5b]] }
  0x9b   : > { %3949 = vrsqrt.f32 %v425_v39  ;;  %s4631_s10 = sld [smem:[#allocation2 + $0x16]] }
  0x9c   : > { %3951 = vrsqrt.f32 %v529_v41  ;;  %v695_v46 = vadd.f32 %v694_v45, %v693_v44  ;;  %s4636_s3 = sld [smem:[#allocation2 + $0x3a]] }
  0x9d   : > { %3953 = vrsqrt.f32 %v613_v42  ;;  %s4655_s21 = sld [smem:[#allocation2 + $0x3d]] }
  0x9e   : > { %v696_v56 = vmul.f32 0.0625, %v695_v46 }
  0xa0   : > { %v697_v60 = vadd.f32 1e-05, %v696_v56  ;;  %9002 = sst [smem:[#allocation43_spill]] %s4622_s13 }
  0xa1   : > { %9004 = sst [smem:[#allocation45_spill]] %s4631_s10 }
  0xa2   : > { %3955 = vrsqrt.f32 %v697_v60  ;;  %9006 = sst [smem:[#allocation46_spill]] %s4636_s3  ;;  %s9010_s3 = smov 127  }
  0xa3   : > { %s4646_s10 = sld [smem:[#allocation2 + $0x82]] }
  0xa4   : > { %s4648_s13 = sld [smem:[#allocation2 + $0x19]] }
  0xa5   : > { %9011 = sst [smem:[#allocation50_spill]] %s4655_s21 }
  0xa6   : > { %s4675_s21 = sld [smem:[#allocation2 + $0x64]] }
  0xa8   : > { %v3950_v49 = vpop.eup %3949 }
  0xa9   : > { %v3952_v54 = vpop.eup %3951  ;;  %v427_v57 = vmul.f32 %v3950_v49, %v4387_v47  ;;  %v428_v10 = vmul.f32 %v3950_v49, %v4389_v48  ;;  %9008 = sst [smem:[#allocation48_spill]] %s4646_s10 }
  0xaa   : > { %v3954_v55 = vpop.eup %3953  ;;  %v531_v58 = vmul.f32 %v3952_v54, %v4391_v50  ;;  %v532_v15 = vmul.f32 %v3952_v54, %v4393_v51  ;;  %9009 = sst [smem:[#allocation49_spill]] %s4648_s13 }
  0xab   : > { %v615_v59 = vmul.f32 %v3954_v55, %v4395_v52  ;;  %v616_v16 = vmul.f32 %v3954_v55, %v4397_v53  ;;  %s4662_s13 = sld [smem:[#allocation2 + $0x85]] }
  0xac   : > { %s4665_s10 = sld [smem:[#allocation2 + $0x1c]] }
  0xad   : > { %9016 = sst [smem:[#allocation55_spill]] %s4675_s21 }
  0xae   : > { %s4694_s21 = sld [smem:[#allocation2 + $0x43]] }
  0xaf   : > { %v3956_v24 = vpop.eup %3955 }
  0xb0   : > { %v699_v27 = vmul.f32 %v3956_v24, %v4417_v18 }
  0xb1   : > { %9013 = sst [smem:[#allocation52_spill]] %s4662_s13 }
  0xb2   : > { %9014 = sst [smem:[#allocation53_spill]] %s4665_s10 }
  0xb3   : > { %s4680_s10 = sld [smem:[#allocation2 + $0x88]] }
  0xb4   : > { %s4687_s13 = sld [smem:[#allocation2 + $0x1f]] }
  0xb5   : > { %9019 = sst [smem:[#allocation58_spill]] %s4694_s21 }
  0xb6   : > { %s4709_s21 = sld [smem:[#allocation2 + $0x46]] }
  0xb9   : > { %9017 = sst [smem:[#allocation56_spill]] %s4680_s10 }
  0xba   : > { %9018 = sst [smem:[#allocation57_spill]] %s4687_s13 }
  0xbb   : > { %s4699_s10 = sld [smem:[#allocation2 + $0x8b]] }
  0xbc   : > { %s4707_s13 = sld [smem:[#allocation2 + $0x22]] }
  0xbd   : > { %9023 = sst [smem:[#allocation62_spill]] %s4709_s21 }
  0xbe   : > { %s4724_s21 = sld [smem:[#allocation2 + $0x3]] }
  0xbf   : > { %s9086_s9 = sld [smem:[#allocation56_spill]] }
  0xc1   : > { %9021 = sst [smem:[#allocation60_spill]] %s4699_s10 }
  0xc2   : > { %9022 = sst [smem:[#allocation61_spill]] %s4707_s13 }
  0xc3   : > { %s4714_s10 = sld [smem:[#allocation2 + $0x6a]] }
  0xc4   : > { %9026 = sst [smem:[#allocation65_spill]] %s4724_s21 }
  0xc5   : > { %s4727_s13 = sld [smem:[#allocation2 + $0x27]] }
  0xc6   : > { %s4750_s21 = sld [smem:[#allocation2 + $0x4d]] }
  0xc9   : > { %9024 = sst [smem:[#allocation63_spill]] %s4714_s10 }
  0xca   : > { %s4730_s10 = sld [smem:[#allocation2 + $0x4b]] }
  0xcb   : > { %9027 = sst [smem:[#allocation66_spill]] %s4727_s13 }
  0xcc   : > { %s4745_s13 = sld [smem:[#allocation2 + $0x5]] }
  0xcd   : > { %9032 = sst [smem:[#allocation71_spill]] %s4750_s21 }
  0xce   : > { %s4765_s21 = sld [smem:[#allocation2 + $0x54]] }
  0xd0   : > { %9028 = sst [smem:[#allocation67_spill]] %s4730_s10 }
  0xd1   : > { %s4747_s10 = sld [smem:[#allocation2 + $0x29]] }
  0xd2   : > { %9030 = sst [smem:[#allocation69_spill]] %s4745_s13 }
  0xd3   : > { %s4760_s13 = sld [smem:[#allocation2 + $0xc]] }
  0xd4   : > { %9036 = sst [smem:[#allocation75_spill]] %s4765_s21 }
  0xd5   : > { %s4781_s21 = sld [smem:[#allocation2 + $0x56]] }
  0xd7   : > { %9031 = sst [smem:[#allocation70_spill]] %s4747_s10 }
  0xd8   : > { %s4762_s10 = sld [smem:[#allocation2 + $0x30]] }
  0xd9   : > { %9034 = sst [smem:[#allocation73_spill]] %s4760_s13 }
  0xda   : > { %s4776_s13 = sld [smem:[#allocation2 + $0xe]] }
  0xdb   : > { %9040 = sst [smem:[#allocation79_spill]] %s4781_s21 }
  0xdc   : > { %s4796_s21 = sld [smem:[#allocation2 + $0x39]] }
  0xde   : > { %9035 = sst [smem:[#allocation74_spill]] %s4762_s10 }
  0xdf   : > { %s4778_s10 = sld [smem:[#allocation2 + $0x32]] }
  0xe0   : > { %9038 = sst [smem:[#allocation77_spill]] %s4776_s13 }
  0xe1   : > { %s4799_s13 = sld [smem:[#allocation2 + $0x5d]] }
  0xe2   : > { %9043 = sst [smem:[#allocation82_spill]] %s4796_s21 }
  0xe3   : > { %s4813_s21 = sld [smem:[#allocation2 + $0x24]] }
  0xe5   : > { %9039 = sst [smem:[#allocation78_spill]] %s4778_s10 }
  0xe6   : > { %s4793_s10 = sld [smem:[#allocation2 + $0x15]] }
  0xe7   : > { %9044 = sst [smem:[#allocation83_spill]] %s4799_s13 }
  0xe8   : > { %s4816_s13 = sld [smem:[#allocation2 + $0x48]] }
  0xe9   : > { %v444_v1 = vpop.permute.xlu1 %443  ;;  %9047 = sst [smem:[#allocation86_spill]] %s4813_s21 }
  0xea   : > { %v432_v61 = vpop.permute.xlu0 %431  ;;  %s4828_s21 = sld [smem:[#allocation5]] }
  0xeb   : > { %v439_v62 = vmul.f32 %v432_v61, %v427_v57  ;;  %v533_v63 = vmul.f32 %v531_v58, %v432_v61  ;;  %v617_v0 = vmul.f32 %v615_v59, %v432_v61  ;;  %v701_v35 = vmul.f32 %v699_v27, %v432_v61 }
  0xec   : > { %9042 = sst [smem:[#allocation81_spill]] %s4793_s10 }
  0xed   : > { %v4430_v2 = vadd.f32 %v444_v1, %v439_v62  ;;  %v4432_v3 = vadd.f32 %v533_v63, %v444_v1  ;;  %v4434_v4 = vadd.f32 %v617_v0, %v444_v1  ;;  %v4454_v21 = vpop.permute.xlu1 %448  ;;  %v4492_v46 = vadd.f32 %v701_v35, %v444_v1  ;;  %s4811_s10 = sld [smem:[#allocation2]] }
  0xee   : > { %v4449_v12 = vpop.permute.xlu0 %436  ;;  %v700_v1 = vmul.f32 %v3956_v24, %v4419_v19  ;;  %9048 = sst [smem:[#allocation87_spill]] %s4816_s13 }
  0xef   : > { %v4437_v5 = vmul.f32 0.70710677, %v4430_v2  ;;  %v4440_v47 = vmul.f32 0.70710677, %v4432_v3  ;;  %v4443_v50 = vmul.f32 0.70710677, %v4434_v4  ;;  %v440_v20 = vmul.f32 %v4449_v12, %v428_v10 }
  0xf0   : > { %v534_v48 = vmul.f32 %v532_v15, %v4449_v12  ;;  %v618_v23 = vmul.f32 %v616_v16, %v4449_v12  ;;  %v4509_v0 = vmul.f32 0.70710677, %v4492_v46  ;;  %v702_v15 = vmul.f32 %v700_v1, %v4449_v12  ;;  %9050 = sst [smem:[#allocation89_spill]] %s4828_s21 }
  0xf1   : > { %v461_v52 = vand.u32 2147483647, %v4437_v5  ;;  %v545_v6 = vand.u32 2147483647, %v4440_v47  ;;  %v629_v7 = vand.u32 2147483647, %v4443_v50  ;;  %v4457_v22 = vadd.f32 %v4454_v21, %v440_v20 }
  0xf2   : > { %v4465_v53 = vadd.f32 %v534_v48, %v4454_v21  ;;  %v4468_v26 = vadd.f32 %v618_v23, %v4454_v21  ;;  %v4522_v19 = vand.u32 2147483647, %v4509_v0  ;;  %vm457_vm1 = vcmp.lt.f32.partialorder %v4437_v5, 0.0  ;;  %s4834_s13 = sld [smem:[#allocation5 + $0x2]] }
  0xf3   : > { %v463_v8 = vmul.f32 0.3275911, %v461_v52  ;;  %v547_v9 = vmul.f32 0.3275911, %v545_v6  ;;  %v631_v11 = vmul.f32 0.3275911, %v629_v7 }
  0xf4   : > { %v4462_v51 = vmul.f32 0.70710677, %v4457_v22  ;;  %v487_v25 = vsub.f32 0.0, %v461_v52  ;;  %v571_v29 = vsub.f32 0.0, %v545_v6  ;;  %v4473_v30 = vmul.f32 0.70710677, %v4465_v53 }
  0xf5   : > { %v465_v13 = vadd.f32 1.0, %v463_v8  ;;  %v549_v14 = vadd.f32 1.0, %v547_v9  ;;  %v633_v17 = vadd.f32 1.0, %v631_v11  ;;  %v4476_v32 = vmul.f32 0.70710677, %v4468_v26  ;;  %9046 = sst [smem:[#allocation85_spill]] %s4811_s10 }
  0xf6   : > { %v462_v28 = vand.u32 2147483647, %v4462_v51  ;;  %v489_v33 = vmul.f32 %v487_v25, %v461_v52  ;;  %v546_v34 = vand.u32 2147483647, %v4473_v30  ;;  %v573_v37 = vmul.f32 %v571_v29, %v545_v6  ;;  %s4831_s10 = sld [smem:[#allocation5 + $0x1]] }
  0xf7   : > { %3957 = vrcp.f32 %v465_v13  ;;  %v4480_v39 = vand.u32 2147483647, %v4476_v32  ;;  %v655_v41 = vsub.f32 0.0, %v629_v7  ;;  %vm541_vm2 = vcmp.lt.f32.partialorder %v4440_v47, 0.0  ;;  %s4845_s21 = sld [smem:[#allocation2 + $0x2]] }
  0xf8   : > { %3959 = vrcp.f32 %v549_v14  ;;  %v464_v31 = vmul.f32 0.3275911, %v462_v28  ;;  %v548_v38 = vmul.f32 0.3275911, %v546_v34  ;;  %v491_v40 = vmul.f32 1.442695, %v489_v33 }
  0xf9   : > { %3961 = vrcp.f32 %v633_v17  ;;  %v632_v43 = vmul.f32 0.3275911, %v4480_v39  ;;  %v575_v54 = vmul.f32 1.442695, %v573_v37  ;;  %v657_v59 = vmul.f32 %v655_v41, %v629_v7  ;;  %9052 = sst [smem:[#allocation91_spill]] %s4834_s13 }
  0xfa   : > { %v466_v36 = vadd.f32 1.0, %v464_v31  ;;  %v550_v42 = vadd.f32 1.0, %v548_v38  ;;  %v488_v60 = vsub.f32 0.0, %v462_v28  ;;  %v572_v10 = vsub.f32 0.0, %v546_v34  ;;  %s4849_s13 = sld [smem:[#allocation2 + $0x4a]] }
  0xfb   : > { %v634_v55 = vadd.f32 1.0, %v632_v43  ;;  %v659_v8 = vmul.f32 1.442695, %v657_v59  ;;  %v715_v31 = vmul.f32 0.3275911, %v4522_v19  ;;  %v4543_v33 = vadd.f32 %v702_v15, %v4454_v21 }
  0xfc   : > { %3963 = vrcp.f32 %v466_v36  ;;  %v490_v9 = vmul.f32 %v488_v60, %v462_v28  ;;  %v574_v24 = vmul.f32 %v572_v10, %v546_v34  ;;  %v656_v28 = vsub.f32 0.0, %v4480_v39  ;;  %9051 = sst [smem:[#allocation90_spill]] %s4831_s10 }
  0xfd   : > { %3965 = vrcp.f32 %v550_v42  ;;  %v4560_v59 = vmul.f32 0.70710677, %v4543_v33  ;;  %v453_v5 = vmul.f32 0.5, %v4430_v2  ;;  %vm625_vm3 = vcmp.lt.f32.partialorder %v4443_v50, 0.0  ;;  %9054 = sst [smem:[#allocation93_spill]] %s4845_s21 }
  0xfe   : > { %3967 = vpow2.f32 %v491_v40  ;;  %v493_v23 = vmul.f32 1.442695, %v490_v9  ;;  %v577_v41 = vmul.f32 1.442695, %v574_v24  ;;  %vm458_vm4 = vcmp.lt.f32.partialorder %v4462_v51, 0.0  ;;  %s4847_s10 = sld [smem:[#allocation2 + $0x26]] }
  0xff   : > { %3969 = vrcp.f32 %v634_v55  ;;  %vm542_vm5 = vcmp.lt.f32.partialorder %v4473_v30, 0.0  ;;  %v454_v51 = vmul.f32 0.5, %v4457_v22  ;;  %vm626_vm6 = vcmp.lt.f32.partialorder %v4476_v32, 0.0  ;;  %s5058_s21 = sld [smem:[#allocation2 + $0x35]] }
 0x100   : > { %3971 = vpow2.f32 %v575_v54  ;;  %vm709_vm9 = vcmp.lt.f32.partialorder %v4509_v0, 0.0  ;;  %9056 = sst [smem:[#allocation95_spill]] %s4849_s13  ;;  %vm710_vm10 = vcmp.lt.f32.partialorder %v4560_v59, 0.0 }
 0x101   : > { %3973 = vpow2.f32 %v659_v8  ;;  %s4864_s13 = sld [smem:[#allocation2 + $0x3b]] }
 0x102   : > { %3975 = vpow2.f32 %v493_v23 }
 0x103   : > { %3977 = vpow2.f32 %v577_v41 }
 0x104   : > { %v4486_v18 = vpop.eup %3957  ;;  %9055 = sst [smem:[#allocation94_spill]] %s4847_s10 }
 0x105   : > { %v4489_v44 = vpop.eup %3959  ;;  %v469_v45 = vmul.f32 1.0614054, %v4486_v18  ;;  %s4861_s10 = sld [smem:[#allocation2 + $0x17]] }
 0x106   : > { %v553_v49 = vmul.f32 1.0614054, %v4489_v44  ;;  %v4499_v57 = vpop.eup %3961  ;;  %9129 = sst [smem:[#allocation118_spill]] %s5058_s21 }
 0x107   : > { %v3524_v56 = vadd.f32 -1.4531521, %v469_v45  ;;  %v637_v62 = vmul.f32 1.0614054, %v4499_v57  ;;  %9059 = sst [smem:[#allocation98_spill]] %s4864_s13 }
 0x108   : > { %v3528_v58 = vadd.f32 -1.4531521, %v553_v49  ;;  %v658_v49 = vmul.f32 %v656_v28, %v4480_v39  ;;  %s4877_s13 = sld [smem:[#allocation2 + $0x83]] }
 0x109   : > { %v473_v61 = vmul.f32 %v4486_v18, %v3524_v56  ;;  %v3532_v6 = vadd.f32 -1.4531521, %v637_v62  ;;  %v4529_v20 = vpop.eup %3963  ;;  %v717_v56 = vadd.f32 1.0, %v715_v31  ;;  %s9177_s21 = sld [smem:[#allocation220_spill]] }
 0x10a   : > { %v557_v63 = vmul.f32 %v4489_v44, %v3528_v58  ;;  %v470_v12 = vmul.f32 1.0614054, %v4529_v20  ;;  %v4547_v34 = vpop.eup %3965  ;;  %v661_v8 = vmul.f32 1.442695, %v658_v49 }
 0x10b   : > { %v475_v52 = vadd.f32 1.4214138, %v473_v61  ;;  %v641_v13 = vmul.f32 %v4499_v57, %v3532_v6  ;;  %v554_v40 = vmul.f32 1.0614054, %v4547_v34  ;;  %v3968_v42 = vpop.eup %3967  ;;  %3979 = vrcp.f32 %v717_v56  ;;  %9058 = sst [smem:[#allocation97_spill]] %s4861_s10 }
 0x10c   : > { %v559_v7 = vadd.f32 1.4214138, %v557_v63  ;;  %v3525_v37 = vadd.f32 -1.4531521, %v470_v12  ;;  %v4556_v54 = vpop.eup %3969  ;;  %3981 = vpow2.f32 %v661_v8  ;;  %v537_v56 = vmul.f32 0.5, %v4432_v3  ;;  %s4883_s10 = sld [smem:[#allocation2 + $0x6]] }
 0x10d   : > { %v477_v11 = vmul.f32 %v4486_v18, %v475_v52  ;;  %v643_v17 = vadd.f32 1.4214138, %v641_v13  ;;  %v3529_v58 = vadd.f32 -1.4531521, %v554_v40  ;;  %v3972_v60 = vpop.eup %3971  ;;  %v638_v1 = vmul.f32 1.0614054, %v4556_v54 }
 0x10e   : > { %v561_v14 = vmul.f32 %v4489_v44, %v559_v7  ;;  %v474_v21 = vmul.f32 %v4529_v20, %v3525_v37  ;;  %v3974_v23 = vpop.eup %3973  ;;  %9061 = sst [smem:[#allocation100_spill]] %s4877_s13 }
 0x10f   : > { %v3526_v16 = vadd.f32 -0.28449672, %v477_v11  ;;  %v645_v27 = vmul.f32 %v4499_v57, %v643_v17  ;;  %v558_v39 = vmul.f32 %v4547_v34, %v3529_v58  ;;  %v3533_v10 = vadd.f32 -1.4531521, %v638_v1  ;;  %v3976_v37 = vpop.eup %3975  ;;  %s4893_s13 = sld [smem:[#allocation2 + $0x4e]] }
 0x110   : > { %v3530_v48 = vadd.f32 -0.28449672, %v561_v14  ;;  %v476_v62 = vadd.f32 1.4214138, %v474_v21  ;;  %v4574_v11 = vand.u32 2147483647, %v4560_v59  ;;  %v1030_v59 = vstv %s4484_s16 }
 0x111   : > { %v481_v25 = vmul.f32 %v4486_v18, %v3526_v16  ;;  %v3534_v36 = vadd.f32 -0.28449672, %v645_v27  ;;  %v560_v9 = vadd.f32 1.4214138, %v558_v39  ;;  %s9191_s16 = sld [smem:[#allocation41_spill]] }
 0x112   : > { %v565_v29 = vmul.f32 %v4489_v44, %v3530_v48  ;;  %v478_v7 = vmul.f32 %v4529_v20, %v476_v62  ;;  %v642_v48 = vmul.f32 %v4556_v54, %v3533_v10  ;;  %v716_v2 = vmul.f32 0.3275911, %v4574_v11  ;;  %9062 = sst [smem:[#allocation101_spill]] %s4883_s10 }
 0x113   : > { %v483_v35 = vadd.f32 0.2548296, %v481_v25  ;;  %v649_v45 = vmul.f32 %v4499_v57, %v3534_v36  ;;  %v562_v17 = vmul.f32 %v4547_v34, %v560_v9  ;;  %s9085_s10 = sld [smem:[#allocation55_spill]] }
 0x114   : > { %v567_v38 = vadd.f32 0.2548296, %v565_v29  ;;  %v3527_v16 = vadd.f32 -0.28449672, %v478_v7  ;;  %v644_v12 = vadd.f32 1.4214138, %v642_v48 }
 0x115   : > { %v485_v43 = vmul.f32 %v4486_v18, %v483_v35  ;;  %v651_v18 = vadd.f32 0.2548296, %v649_v45  ;;  %v718_v21 = vadd.f32 1.0, %v716_v2  ;;  %9064 = sst [smem:[#allocation103_spill]] %s4893_s13 }
 0x116   : > { %v569_v55 = vmul.f32 %v4489_v44, %v567_v38  ;;  %v8680_v44 = vmov 1.0   ;;  %v482_v27 = vmul.f32 %v4529_v20, %v3527_v16  ;;  %v646_v47 = vmul.f32 %v4556_v54, %v644_v12  ;;  %s4914_s13 = sld [smem:[#allocation2 + $0x8]] }
 0x117   : > { %v495_v61 = vmul.f32 %v3968_v42, %v485_v43  ;;  %v459_v52 = vsel %vm457_vm1, -1.0, %v8680_v44  ;;  %v653_v15 = vmul.f32 %v4499_v57, %v651_v18  ;;  %v543_v25 = vsel %vm541_vm2, -1.0, %v8680_v44 }
 0x118   : > { %v579_v63 = vmul.f32 %v3972_v60, %v569_v55  ;;  %v3531_v57 = vadd.f32 -0.28449672, %v562_v17  ;;  %v484_v35 = vadd.f32 0.2548296, %v482_v27  ;;  %v3535_v41 = vadd.f32 -0.28449672, %v646_v47  ;;  %v3978_v55 = vpop.eup %3977 }
 0x119   : > { %v497_v6 = vsub.f32 1.0, %v495_v61  ;;  %v663_v31 = vmul.f32 %v3974_v23, %v653_v15  ;;  %v627_v50 = vsel %vm625_vm3, -1.0, %v8680_v44  ;;  %v4624_v3 = vpop.eup %3979  ;;  %3983 = vrcp.f32 %v718_v21 }
 0x11a   : > { %v581_v14 = vsub.f32 1.0, %v579_v63  ;;  %v566_v36 = vmul.f32 %v4547_v34, %v3531_v57  ;;  %v486_v38 = vmul.f32 %v4529_v20, %v484_v35  ;;  %v650_v49 = vmul.f32 %v4556_v54, %v3535_v41 }
 0x11b   : > { %v499_v13 = vmul.f32 %v497_v6, %v459_v52  ;;  %v665_v43 = vsub.f32 1.0, %v663_v31  ;;  %v3982_v6 = vpop.eup %3981  ;;  %v721_v7 = vmul.f32 1.0614054, %v4624_v3  ;;  %v544_v8 = vsel %vm542_vm5, -1.0, %v8680_v44 }
 0x11c   : > { %v583_v29 = vmul.f32 %v581_v14, %v543_v25  ;;  %v568_v40 = vadd.f32 0.2548296, %v566_v36  ;;  %v496_v45 = vmul.f32 %v3976_v37, %v486_v38  ;;  %v652_v61 = vadd.f32 0.2548296, %v650_v49  ;;  %9066 = sst [smem:[#allocation105_spill]] %s4914_s13 }
 0x11d   : > { %v501_v24 = vadd.f32 1.0, %v499_v13  ;;  %v667_v62 = vmul.f32 %v665_v43, %v627_v50  ;;  %v621_v13 = vmul.f32 0.5, %v4434_v4  ;;  %v3536_v14 = vadd.f32 -1.4531521, %v721_v7  ;;  %s4962_s13 = sld [smem:[#allocation2 + $0x75]] }
 0x11e   : > { %v585_v42 = vadd.f32 1.0, %v583_v29  ;;  %v570_v20 = vmul.f32 %v4547_v34, %v568_v40  ;;  %v498_v58 = vsub.f32 1.0, %v496_v45  ;;  %v460_v34 = vsel %vm458_vm4, -1.0, %v8680_v44 }
 0x11f   : > { %v4591_v28 = vmul.f32 %v501_v24, %v453_v5  ;;  %v654_v1 = vmul.f32 %v4556_v54, %v652_v61  ;;  %v669_v54 = vadd.f32 1.0, %v667_v62  ;;  %v538_v5 = vmul.f32 0.5, %v4465_v53 }
 0x120   : > { %v580_v60 = vmul.f32 %v3978_v55, %v570_v20  ;;  %v4626_v18 = vmul.f32 %v585_v42, %v537_v56  ;;  %v500_v63 = vmul.f32 %v498_v58, %v460_v34  ;;  %v628_v32 = vsel %vm626_vm6, -1.0, %v8680_v44 }
 0x121   : > { %997 = vrot.lane.b32.xlu0 %v4591_v28, %s8568_s30  ;;  %s8573_s30 = smov 127   ;;  %v664_v22 = vmul.f32 %v3982_v6, %v654_v1  ;;  %v4660_v30 = vmul.f32 %v669_v54, %v621_v13  ;;  %v912_v4 = vrot.slane %v4591_v28, 7  ;;  %v725_v17 = vmul.f32 %v4624_v3, %v3536_v14 }
 0x122   : > { %v582_v39 = vsub.f32 1.0, %v580_v60  ;;  %v502_v52 = vadd.f32 1.0, %v500_v63  ;;  %v739_v25 = vsub.f32 0.0, %v4522_v19  ;;  %v622_v29 = vmul.f32 0.5, %v4468_v26 }
 0x123   : > { %v666_v16 = vsub.f32 1.0, %v664_v22  ;;  %v4685_v24 = vsel %vm911_vm7, 0.0, %v912_v4  ;;  %v727_v27 = vadd.f32 1.4214138, %v725_v17  ;;  %v1074_v37 = vrot.slane %v4591_v28, 1  ;;  %9093 = sst [smem:[#allocation56_spill]] %s4962_s13 }
 0x124   : > { %v4644_v9 = vmul.f32 %v502_v52, %v454_v51  ;;  %v584_v10 = vmul.f32 %v582_v39, %v544_v8  ;;  %v741_v2 = vmul.f32 %v739_v25, %v4522_v19  ;;  %v740_v43 = vsub.f32 0.0, %v4574_v11  ;;  %s4975_s13 = sld [smem:[#allocation2 + $0x2f]] }
 0x125   : > { %1045 = vrot.lane.b32.xlu0 %v4591_v28, %s8573_s30  ;;  %s4628_s30 = sld [smem:[#allocation2 + $0x7f]]  ;;  %v668_v23 = vmul.f32 %v666_v16, %v628_v32  ;;  %v729_v31 = vmul.f32 %v4624_v3, %v727_v27  ;;  %v1159_v20 = vrot.slane %v4626_v18, 7  ;;  %v1318_v62 = vrot.slane %v4626_v18, 1 }
 0x126   : > { %999 = vrot.lane.b32.xlu1 %v4644_v9, %s9005_s4  ;;  %v586_v15 = vadd.f32 1.0, %v584_v10  ;;  %v4682_v53 = vpop.eup %3983  ;;  %v913_v19 = vrot.slane %v4644_v9, 7  ;;  %v1075_v26 = vrot.slane %v4644_v9, 1  ;;  %v743_v47 = vmul.f32 1.442695, %v741_v2 }
 0x127   : > { %v670_v57 = vadd.f32 1.0, %v668_v23  ;;  %v722_v12 = vmul.f32 1.0614054, %v4682_v53  ;;  %v3538_v38 = vadd.f32 -0.28449672, %v729_v31  ;;  %v742_v49 = vmul.f32 %v740_v43, %v4574_v11 }
 0x128   : > { %v4678_v48 = vmul.f32 %v586_v15, %v538_v5  ;;  %v4733_v41 = vsel %vm911_vm7, %v912_v4, %v913_v19  ;;  %v4736_v42 = vsel %vm1073_vm8, %v1074_v37, %v1075_v26  ;;  %3985 = vpow2.f32 %v743_v47 }
 0x129   : > { %1242 = vrot.lane.b32.xlu0 %v4626_v18, %s9005_s4  ;;  %v4712_v35 = vmul.f32 %v670_v57, %v622_v29  ;;  %v3537_v36 = vadd.f32 -1.4531521, %v722_v12  ;;  %v733_v45 = vmul.f32 %v4624_v3, %v3538_v38  ;;  %v4768_v50 = vsel %vm911_vm7, 0.0, %v1159_v20 }
 0x12a   : > { %1047 = vrot.lane.b32.xlu1 %v4644_v9, %s9010_s3  ;;  %v745_v11 = vmul.f32 1.442695, %v742_v49  ;;  %v4784_v60 = vsel %vm1073_vm8, %v1075_v26, 0.0  ;;  %v1319_v61 = vrot.slane %v4678_v48, 1  ;;  %v1160_v1 = vrot.slane %v4678_v48, 7 }
 0x12b   : > { %9003 = sst [smem:[#allocation44_spill]] %s4628_s30  ;;  %v726_v40 = vmul.f32 %v4682_v53, %v3537_v36  ;;  %v735_v55 = vadd.f32 0.2548296, %v733_v45  ;;  %v1403_v8 = vrot.slane %v4660_v30, 7  ;;  %v711_v0 = vsel %vm709_vm9, -1.0, %v8680_v44 }
 0x12c   : > { %s4642_s30 = sld [smem:[#allocation2 + $0x5e]]  ;;  %3987 = vpow2.f32 %v745_v11  ;;  %v4803_v51 = vsel %vm1073_vm8, %v1318_v62, %v1319_v61  ;;  %v4819_v7 = vsel %vm911_vm7, %v1159_v20, %v1160_v1  ;;  %v4852_v16 = vsel %vm1073_vm8, %v1319_v61, 0.0 }
 0x12d   : > { %1290 = vrot.lane.b32.xlu0 %v4626_v18, %s9010_s3  ;;  %v728_v21 = vadd.f32 1.4214138, %v726_v40  ;;  %v737_v58 = vmul.f32 %v4624_v3, %v735_v55  ;;  %v4837_v22 = vsel %vm911_vm7, 0.0, %v1403_v8  ;;  %v705_v4 = vmul.f32 0.5, %v4492_v46 }
 0x12e   : > { %1244 = vrot.lane.b32.xlu1 %v4678_v48, %s9005_s4  ;;  %v948_v5 = vstv %s4497_s29  ;;  %v1025_v32 = vstv %s4482_s28  ;;  %v953_v46 = vstv %s4501_s14  ;;  %v1563_v25 = vrot.slane %v4712_v35, 1  ;;  %s5072_s29 = sld [smem:[#allocation2 + $0x59]] }
 0x12f   : > { %v730_v56 = vmul.f32 %v4682_v53, %v728_v21  ;;  %v958_v27 = vstv %s4505_s24  ;;  %v963_v57 = vstv %s4512_s17  ;;  %v1035_v12 = vstv %s4494_s23  ;;  %s5104_s17 = sld [smem:[#allocation2 + $0x12]] }
 0x130   : > { %v712_v2 = vsel %vm710_vm10, -1.0, %v8680_v44  ;;  %v1562_v29 = vrot.slane %v4660_v30, 1  ;;  %v1040_v31 = vstv %s4514_s22  ;;  %v1194_v36 = vstv %s4518_s27  ;;  %s9158_s22 = sld [smem:[#allocation36_spill]] }
 0x131   : > { %1486 = vrot.lane.b32.xlu0 %v4660_v30, %s9005_s4  ;;  %v3539_v34 = vadd.f32 -0.28449672, %v730_v56  ;;  %v1199_v26 = vstv %s4525_s25  ;;  %v1204_v47 = vstv %s4527_s26  ;;  %v1209_v37 = vstv %s4531_s0  ;;  %s4918_s0 = sld [smem:[#allocation2 + $0x2c]] }
 0x132   : > { %9007 = sst [smem:[#allocation47_spill]] %s4642_s30  ;;  %1292 = vrot.lane.b32.xlu1 %v4678_v48, %s9010_s3  ;;  %v4904_v40 = vsel %vm1073_vm8, %v1562_v29, %v1563_v25  ;;  %v1109_v43 = vstv %s4537_s1  ;;  %v1114_v45 = vstv %s4545_s2  ;;  %v1119_v21 = vstv %s4554_s5 }
 0x133   : > { %s4658_s30 = sld [smem:[#allocation2 + $0x61]]  ;;  %v734_v39 = vmul.f32 %v4682_v53, %v3539_v34  ;;  %v1124_v20 = vstv %s4565_s6  ;;  %v1270_v49 = vstv %s4571_s7  ;;  %v1275_v55 = vstv %s4577_s8 }
 0x134   : > { %v8701_v56 = vstv %s4582_s18  ;;  %v8703_v11 = vstv %s4588_s11  ;;  %s4924_s25 = sld [smem:[#allocation2 + $0x50]]  ;;  %v1353_v34 = vstv %s4593_s15  ;;  %v8704_v61 = vstv %s4597_s20 }
 0x135   : > { %919 = vrot.lane.b32.xlu0 %v4685_v24, %s9005_s4  ;;  %v3986_v3 = vpop.eup %3985  ;;  %v736_v6 = vadd.f32 0.2548296, %v734_v39  ;;  %s4930_s6 = sld [smem:[#allocation2 + $0x74]]  ;;  %v5120_v44 = vmul.f32 %v1040_v31, %v4591_v28  ;;  %v5250_v1 = vmul.f32 %v8703_v11, %v4626_v18  ;;  %v5255_v39 = vmul.f32 %v1194_v36, %v4819_v7 }
 0x136   : > { %1488 = vrot.lane.b32.xlu1 %v4712_v35, %s9005_s4  ;;  %v747_v63 = vmul.f32 %v3986_v3, %v737_v58  ;;  %v8706_v3 = vstv %s4602_s12  ;;  %s4940_s12 = sld [smem:[#allocation2 + $0x9]]  ;;  %v5307_v11 = vmul.f32 %v1270_v49, %v4678_v48 }
 0x137   : > { %v738_v10 = vmul.f32 %v4682_v53, %v736_v6  ;;  %v1404_v53 = vrot.slane %v4712_v35, 7  ;;  %9068 = sst [smem:[#allocation106_spill]] %s4918_s0  ;;  %v5235_v6 = vmul.f32 %v1275_v55, %v4626_v18  ;;  %9174 = vst [vmem:[#allocation126_spill] sm:$0xff] %v5250_v1  ;;  %9175 = vst [vmem:[#allocation127_spill] sm:$0xff] %v5255_v39 }
 0x138   : > { %v749_v52 = vsub.f32 1.0, %v747_v63  ;;  %v8705_v63 = vstv %s4606_s19  ;;  %s4944_s19 = sld [smem:[#allocation2 + $0x2d]]  ;;  %9190 = vst [vmem:[#allocation135_spill] sm:$0xff] %v5307_v11 }
 0x139   : > { %9012 = sst [smem:[#allocation51_spill]] %s4658_s30  ;;  %968 = vrot.lane.b32.xlu0 %v4685_v24, %s9010_s3  ;;  %v3988_v13 = vpop.eup %3987  ;;  %v4899_v38 = vsel %vm911_vm7, %v1403_v8, %v1404_v53  ;;  %v5207_v8 = vmul.f32 %v1194_v36, %v4768_v50  ;;  %9166 = vst [vmem:[#allocation124_spill] sm:$0xff] %v5235_v6  ;;  %v5276_v36 = vmul.f32 %v1209_v37, %v4819_v7 }
 0x13a   : > { %s4672_s30 = sld [smem:[#allocation2 + $0x40]]  ;;  %921 = vrot.lane.b32.xlu1 %v4733_v41, %s9005_s4  ;;  %v751_v54 = vmul.f32 %v749_v52, %v711_v0  ;;  %v748_v15 = vmul.f32 %v3988_v13, %v738_v10  ;;  %v706_v52 = vmul.f32 0.5, %v4543_v33  ;;  %v5110_v33 = vmul.f32 %v1030_v59, %v4591_v28 }
 0x13b   : > { %9071 = sst [smem:[#allocation107_spill]] %s4924_s25  ;;  %v5138_v10 = vmul.f32 %v1119_v21, %v4736_v42  ;;  %v5156_v0 = vmul.f32 %v1030_v59, %v4644_v9  ;;  %v5173_v59 = vmul.f32 %v1040_v31, %v4644_v9  ;;  %v5199_v31 = vmul.f32 %v1124_v20, %v4784_v60  ;;  %9181 = vst [vmem:[#allocation130_spill] sm:$0xff] %v5276_v36 }
 0x13c   : > { %v753_v14 = vadd.f32 1.0, %v751_v54  ;;  %v750_v23 = vsub.f32 1.0, %v748_v15  ;;  %9076 = sst [smem:[#allocation108_spill]] %s4930_s6  ;;  %v5033_v15 = vmul.f32 %v948_v5, %v4685_v24  ;;  %v5151_v54 = vmul.f32 %v1025_v32, %v4644_v9 }
 0x13d   : > { %1534 = vrot.lane.b32.xlu0 %v4660_v30, %s9010_s3  ;;  %9081 = sst [smem:[#allocation109_spill]] %s4940_s12 }
 0x13e   : > { %970 = vrot.lane.b32.xlu1 %v4733_v41, %s9010_s3  ;;  %v4867_v17 = vmul.f32 %v753_v14, %v705_v4  ;;  %v752_v19 = vmul.f32 %v750_v23, %v712_v2  ;;  %9084 = sst [smem:[#allocation110_spill]] %s4944_s19  ;;  %v5038_v4 = vmul.f32 %v953_v46, %v4685_v24 }
 0x13f   : > { %s9087_s15 = sld [smem:[#allocation57_spill]] }
 0x140   : > { %9015 = sst [smem:[#allocation54_spill]] %s4672_s30  ;;  %v754_v58 = vadd.f32 1.0, %v752_v19  ;;  %v1647_v62 = vrot.slane %v4867_v17, 7  ;;  %v1806_v14 = vrot.slane %v4867_v17, 1  ;;  %v5051_v19 = vmul.f32 %v963_v57, %v4685_v24 }
 0x141   : > { %s4696_s30 = sld [smem:[#allocation2 + $0x67]]  ;;  %1081 = vrot.lane.b32.xlu0 %v4736_v42, %s9005_s4 }
 0x142   : > { %1536 = vrot.lane.b32.xlu1 %v4712_v35, %s9010_s3  ;;  %v4950_v13 = vmul.f32 %v754_v58, %v706_v52  ;;  %s4952_s8 = sld [smem:[#allocation2 + $0x51]]  ;;  %v4960_v23 = vsel %vm911_vm7, 0.0, %v1647_v62  ;;  %v4990_v58 = vsel %vm1073_vm8, %v1563_v25, 0.0  ;;  %v5046_v52 = vmul.f32 %v958_v27, %v4685_v24 }
 0x143   : > { %s9089_s7 = sld [smem:[#allocation58_spill]]  ;;  %v5056_v25 = vmul.f32 %v948_v5, %v4733_v41  ;;  %v5070_v24 = vmul.f32 %v953_v46, %v4733_v41 }
 0x144   : > { %s4971_s18 = sld [smem:[#allocation2 + $0xb]]  ;;  %v1648_v53 = vrot.slane %v4950_v13, 7  ;;  %v1807_v29 = vrot.slane %v4950_v13, 1 }
 0x145   : > { %1129 = vrot.lane.b32.xlu0 %v4736_v42, %s9010_s3  ;;  %9101 = sst [smem:[#allocation58_spill]] %s4975_s13 }
 0x146   : > { %1083 = vrot.lane.b32.xlu1 %v4784_v60, %s9005_s4  ;;  %s4981_s25 = sld [smem:[#allocation2 + $0x53]]  ;;  %v5063_v2 = vsel %vm911_vm7, %v1647_v62, %v1648_v53  ;;  %v5075_v5 = vsel %vm1073_vm8, %v1806_v14, %v1807_v29  ;;  %v5081_v62 = vmul.f32 %v958_v27, %v4733_v41  ;;  %v5086_v53 = vmul.f32 %v963_v57, %v4733_v41 }
 0x147   : > { %9020 = sst [smem:[#allocation59_spill]] %s4696_s30  ;;  %v5095_v46 = vsel %vm1073_vm8, %v1807_v29, 0.0  ;;  %v5102_v41 = vmul.f32 %v1025_v32, %v4591_v28  ;;  %v5115_v29 = vmul.f32 %v1035_v12, %v4591_v28  ;;  %v5128_v57 = vmul.f32 %v1109_v43, %v4736_v42 }
 0x148   : > { %s4718_s30 = sld [smem:[#allocation2 + $0x8e]]  ;;  %9138 = vst [vmem:[#allocation120_spill] sm:$0xff] %v5095_v46  ;;  %v5133_v27 = vmul.f32 %v1114_v45, %v4736_v42  ;;  %v5146_v14 = vmul.f32 %v1124_v20, %v4736_v42  ;;  %v5168_v32 = vmul.f32 %v1035_v12, %v4644_v9  ;;  %v5178_v28 = vmul.f32 %v1109_v43, %v4784_v60 }
 0x149   : > { %1166 = vrot.lane.b32.xlu0 %v4768_v50, %s9005_s4  ;;  %9088 = sst [smem:[#allocation55_spill]] %s4952_s8  ;;  %v5189_v12 = vmul.f32 %v1114_v45, %v4784_v60  ;;  %v5194_v9 = vmul.f32 %v1119_v21, %v4784_v60  ;;  %v5212_v45 = vmul.f32 %v1199_v26, %v4768_v50  ;;  %v5217_v21 = vmul.f32 %v1204_v47, %v4768_v50 }
 0x14a   : > { %1131 = vrot.lane.b32.xlu1 %v4784_v60, %s9010_s3  ;;  %9099 = sst [smem:[#allocation57_spill]] %s4971_s18  ;;  %v5225_v20 = vmul.f32 %v1209_v37, %v4768_v50  ;;  %v5230_v43 = vmul.f32 %v1270_v49, %v4626_v18  ;;  %v5245_v60 = vmul.f32 %v8701_v56, %v4626_v18  ;;  %v5266_v56 = vmul.f32 %v1199_v26, %v4819_v7 }
 0x14b   : > { %s5004_s8 = sld [smem:[#allocation2 + $0xf]]  ;;  %9161 = vst [vmem:[#allocation121_spill] sm:$0xff] %v5217_v21  ;;  %v5271_v18 = vmul.f32 %v1204_v47, %v4819_v7  ;;  %v5289_v26 = vmul.f32 %v8704_v61, %v4803_v51  ;;  %v5294_v47 = vmul.f32 %v8706_v3, %v4803_v51  ;;  %v5302_v37 = vmul.f32 %v8705_v63, %v4803_v51 }
 0x14c   : > { %9104 = sst [smem:[#allocation111_spill]] %s4981_s25  ;;  %9163 = vst [vmem:[#allocation122_spill] sm:$0xff] %v5225_v20  ;;  %9164 = vst [vmem:[#allocation123_spill] sm:$0xff] %v5230_v43  ;;  %v5312_v61 = vmul.f32 %v1275_v55, %v4678_v48  ;;  %v9200_v63 = vstv %s9158_s22  ;;  %v5332_v3 = vmul.f32 %v1353_v34, %v4852_v16 }
 0x14d   : > { %1214 = vrot.lane.b32.xlu0 %v4768_v50, %s9010_s3  ;;  %s4995_s25 = sld [smem:[#allocation2 + $0x77]]  ;;  %9172 = vst [vmem:[#allocation125_spill] sm:$0xff] %v5245_v60  ;;  %9178 = vst [vmem:[#allocation128_spill] sm:$0xff] %v5266_v56  ;;  %v5284_v50 = vmul.f32 %v1353_v34, %v4803_v51  ;;  %v5327_v55 = vmul.f32 %v9200_v63, %v4678_v48 }
 0x14e   : > { %9025 = sst [smem:[#allocation64_spill]] %s4718_s30  ;;  %1168 = vrot.lane.b32.xlu1 %v4819_v7, %s9005_s4  ;;  %9180 = vst [vmem:[#allocation129_spill] sm:$0xff] %v5271_v18  ;;  %9185 = vst [vmem:[#allocation132_spill] sm:$0xff] %v5289_v26 }
 0x14f   : > { %s4738_s30 = sld [smem:[#allocation2 + $0x6f]]  ;;  %9183 = vst [vmem:[#allocation131_spill] sm:$0xff] %v5284_v50  ;;  %9186 = vst [vmem:[#allocation133_spill] sm:$0xff] %v5294_v47 }
 0x150   : > { %s5016_s6 = sld [smem:[#allocation2 + $0x57]]  ;;  %9188 = vst [vmem:[#allocation134_spill] sm:$0xff] %v5302_v37  ;;  %9192 = vst [vmem:[#allocation136_spill] sm:$0xff] %v5312_v61 }
 0x151   : > { %1325 = vrot.lane.b32.xlu0 %v4803_v51, %s9005_s4  ;;  %9116 = sst [smem:[#allocation113_spill]] %s5004_s8  ;;  %9201 = vst [vmem:[#allocation138_spill] sm:$0xff] %v5327_v55  ;;  %9202 = vst [vmem:[#allocation139_spill] sm:$0xff] %v5332_v3 }
 0x152   : > { %1216 = vrot.lane.b32.xlu1 %v4819_v7, %s9010_s3  ;;  %s5022_s2 = sld [smem:[#allocation2 + $0x7b]] }
 0x153   : > { %9112 = sst [smem:[#allocation112_spill]] %s4995_s25 }
 0x154   : > { %s5010_s25 = sld [smem:[#allocation2 + $0x33]] }
 0x155   : > { %9029 = sst [smem:[#allocation68_spill]] %s4738_s30  ;;  %1373 = vrot.lane.b32.xlu0 %v4803_v51, %s9010_s3 }
 0x156   : > { %s4753_s30 = sld [smem:[#allocation2 + $0x71]]  ;;  %1327 = vrot.lane.b32.xlu1 %v4852_v16, %s9005_s4 }
 0x157   : > { %9121 = sst [smem:[#allocation115_spill]] %s5016_s6 }
 0x158   : > { %9124 = sst [smem:[#allocation116_spill]] %s5022_s2 }
 0x159   : > { %1410 = vrot.lane.b32.xlu0 %v4837_v22, %s9005_s4  ;;  %s5040_s5 = sld [smem:[#allocation2 + $0x11]] }
 0x15a   : > { %1375 = vrot.lane.b32.xlu1 %v4852_v16, %s9010_s3  ;;  %9119 = sst [smem:[#allocation114_spill]] %s5010_s25 }
 0x15b   : > { %9131 = sst [smem:[#allocation119_spill]] %s5072_s29 }
 0x15c   : > { %9033 = sst [smem:[#allocation72_spill]] %s4753_s30 }
 0x15d   : > { %s4770_s30 = sld [smem:[#allocation2 + $0x78]]  ;;  %1458 = vrot.lane.b32.xlu0 %v4837_v22, %s9010_s3 }
 0x15e   : > { %1412 = vrot.lane.b32.xlu1 %v4899_v38, %s9005_s4  ;;  %s5088_s18 = sld [smem:[#allocation2 + $0x7d]] }
 0x15f   : > { %9126 = sst [smem:[#allocation117_spill]] %s5040_s5 }
 0x160   : > { %9140 = sst [smem:[#allocation30_spill]] %s5104_s17 }
 0x161   : > { %1730 = vrot.lane.b32.xlu0 %v4867_v17, %s9005_s4  ;;  %s5122_s0 = sld [smem:[#allocation2 + $0x36]] }
 0x162   : > { %1460 = vrot.lane.b32.xlu1 %v4899_v38, %s9010_s3  ;;  %s5140_s11 = sld [smem:[#allocation2 + $0x5a]] }
 0x163   : > { %9037 = sst [smem:[#allocation76_spill]] %s4770_s30 }
 0x164   : > { %s4787_s30 = sld [smem:[#allocation2 + $0x7a]] }
 0x165   : > { %1569 = vrot.lane.b32.xlu0 %v4904_v40, %s9005_s4  ;;  %9135 = sst [smem:[#allocation29_spill]] %s5088_s18 }
 0x166   : > { %1732 = vrot.lane.b32.xlu1 %v4950_v13, %s9005_s4  ;;  %s5158_s20 = sld [smem:[#allocation2 + $0x7e]] }
 0x167   : > { %9142 = sst [smem:[#allocation31_spill]] %s5122_s0 }
 0x168   : > { %9144 = sst [smem:[#allocation32_spill]] %s5140_s11 }
 0x169   : > { %1617 = vrot.lane.b32.xlu0 %v4904_v40, %s9010_s3  ;;  %s5180_s17 = sld [smem:[#allocation2 + $0x14]] }
 0x16a   : > { %9041 = sst [smem:[#allocation80_spill]] %s4787_s30  ;;  %1571 = vrot.lane.b32.xlu1 %v4990_v58, %s9005_s4 }
 0x16b   : > { %s4805_s30 = sld [smem:[#allocation2 + $0x81]] }
 0x16c   : > { %9147 = sst [smem:[#allocation25_spill]] %s5158_s20 }
 0x16d   : > { %1654 = vrot.lane.b32.xlu0 %v4960_v23, %s9005_s4  ;;  %s9155_s29 = sld [smem:[#allocation219_spill]] }
 0x16e   : > { %1619 = vrot.lane.b32.xlu1 %v4990_v58, %s9010_s3  ;;  %s9157_s1 = sld [smem:[#allocation35_spill]] }
 0x16f   : > { %9154 = sst [smem:[#allocation26_spill]] %s5180_s17 }
 0x170   : > { %s5201_s17 = sld [smem:[#allocation2 + $0x38]] }
 0x171   : > { %9045 = sst [smem:[#allocation84_spill]] %s4805_s30  ;;  %1702 = vrot.lane.b32.xlu0 %v4960_v23, %s9010_s3 }
 0x172   : > { %s4822_s30 = sld [smem:[#allocation2 + $0x6c]]  ;;  %1656 = vrot.lane.b32.xlu1 %v5063_v2, %s9005_s4 }
 0x173   : > { %v387_v42 = vld [vmem:[%s9155_s29] sm:$0xff]  ;;  %s5237_s14 = sld [smem:[#allocation2 + $0x80]] }
 0x174   : > { %s9169_s28 = sld [smem:[#allocation38_spill]]  ;;  %v9197_v7 = vstv %s9157_s1 }
 0x175   : > { %1778 = vrot.lane.b32.xlu0 %v4867_v17, %s9010_s3  ;;  %s9170_s27 = sld [smem:[#allocation39_spill]]  ;;  %v5322_v49 = vmul.f32 %v9197_v7, %v4678_v48 }
 0x176   : > { %1704 = vrot.lane.b32.xlu1 %v5063_v2, %s9010_s3  ;;  %9159 = sst [smem:[#allocation27_spill]] %s5201_s17 }
 0x177   : > { %s5278_s26 = sld [smem:[#allocation2 + $0x42]]  ;;  %9199 = vst [vmem:[#allocation137_spill] sm:$0xff] %v5322_v49 }
 0x178   : > { %9049 = sst [smem:[#allocation88_spill]] %s4822_s30 }
 0x179   : > { %s4839_s30 = sld [smem:[#allocation5 + $0x3]]  ;;  %1813 = vrot.lane.b32.xlu0 %v5075_v5, %s9005_s4 }
 0x17a   : > { %9168 = sst [smem:[#allocation33_spill]] %s5237_s14  ;;  %1780 = vrot.lane.b32.xlu1 %v4950_v13, %s9010_s3  ;;  %v9204_v51 = vstv %s9169_s28 }
 0x17b   : > { %s5257_s14 = sld [smem:[#allocation2 + $0x1e]]  ;;  %v5340_v61 = vmul.f32 %v9204_v51, %v4852_v16  ;;  %v9207_v7 = vstv %s9170_s27 }
 0x17c   : > { %s5296_s24 = sld [smem:[#allocation2 + $0x66]]  ;;  %v5345_v49 = vmul.f32 %v9207_v7, %v4852_v16 }
 0x17d   : > { %1861 = vrot.lane.b32.xlu0 %v5075_v5, %s9010_s3  ;;  %9182 = sst [smem:[#allocation35_spill]] %s5278_s26  ;;  %9206 = vst [vmem:[#allocation140_spill] sm:$0xff] %v5340_v61 }
 0x17e   : > { %s9193_s23 = sld [smem:[#allocation42_spill]]  ;;  %1815 = vrot.lane.b32.xlu1 %v5095_v46, %s9005_s4  ;;  %9208 = vst [vmem:[#allocation141_spill] sm:$0xff] %v5345_v49 }
 0x17f   : > { %9053 = sst [smem:[#allocation92_spill]] %s4839_s30 }
 0x180   : > { %s4854_s30 = sld [smem:[#allocation2 + $0x6e]] }
 0x181   : > { %1919 = vperm.xlu0 %3947, %v387_v42   ;;  %9176 = sst [smem:[#allocation34_spill]] %s5257_s14  ;;  %v389_v42 = vld [vmem:[%s9177_s21] sm:$0xff] }
 0x182   : > { %9187 = sst [smem:[#allocation36_spill]] %s5296_s24  ;;  %1863 = vrot.lane.b32.xlu1 %v5095_v46, %s9010_s3 }
 0x183   : > { %s5314_s13 = sld [smem:[#allocation2 + $0x8a]] }
 0x184   : > { %s9195_s19 = sld [smem:[#allocation43_spill]]  ;;  %v9215_v51 = vstv %s9193_s23 }
 0x185   : > { %1931 = vperm.xlu0 %3947, %v389_v42   ;;  %s9198_s20 = sld [smem:[#allocation44_spill]]  ;;  %v9213_v42 = vstv %s9191_s16  ;;  %v5363_v61 = vmul.f32 %v9215_v51, %v4837_v22 }
 0x186   : > { %9057 = sst [smem:[#allocation96_spill]] %s4854_s30  ;;  %v5358_v3 = vmul.f32 %v9213_v42, %v4837_v22 }
 0x187   : > { %s4871_s30 = sld [smem:[#allocation2 + $0x5f]]  ;;  %9217 = vst [vmem:[#allocation144_spill] sm:$0xff] %v5363_v61  ;;  %v5386_v61 = vmul.f32 %v9215_v51, %v4899_v38 }
 0x188   : > { %s5334_s0 = sld [smem:[#allocation2 + $0x18]]  ;;  %9214 = vst [vmem:[#allocation143_spill] sm:$0xff] %v5358_v3  ;;  %v5381_v3 = vmul.f32 %v9213_v42, %v4899_v38 }
 0x189   : > { %9194 = sst [smem:[#allocation37_spill]] %s5314_s13  ;;  %9228 = vst [vmem:[#allocation148_spill] sm:$0xff] %v5386_v61 }
 0x18a   : > { %s9211_s1 = sld [smem:[#allocation45_spill]]  ;;  %v9218_v7 = vstv %s9195_s19  ;;  %9227 = vst [vmem:[#allocation147_spill] sm:$0xff] %v5381_v3 }
 0x18b   : > { %s5352_s22 = sld [smem:[#allocation2 + $0x3c]]  ;;  %v5368_v49 = vmul.f32 %v9218_v7, %v4837_v22  ;;  %v9236_v42 = vstv %s9198_s20 }
 0x18c   : > { %s9219_s27 = sld [smem:[#allocation46_spill]] }
 0x18d   : > { %9060 = sst [smem:[#allocation99_spill]] %s4871_s30  ;;  %9220 = vst [vmem:[#allocation145_spill] sm:$0xff] %v5368_v49 }
 0x18e   : > { %s4889_s30 = sld [smem:[#allocation2 + $0x2a]] }
 0x18f   : > { %9203 = sst [smem:[#allocation38_spill]] %s5334_s0 }
 0x190   : > { %s5370_s18 = sld [smem:[#allocation2 + $0x60]]  ;;  %v9238_v51 = vstv %s9211_s1 }
 0x191   : > { %9212 = sst [smem:[#allocation39_spill]] %s5352_s22  ;;  %v5406_v61 = vmul.f32 %v9238_v51, %v4660_v30 }
 0x192   : > { %s9223_s11 = sld [smem:[#allocation48_spill]] }
 0x193   : > { %s9229_s5 = sld [smem:[#allocation49_spill]]  ;;  %9240 = vst [vmem:[#allocation151_spill] sm:$0xff] %v5406_v61 }
 0x194   : > { %9063 = sst [smem:[#allocation102_spill]] %s4889_s30 }
 0x195   : > { %s4906_s30 = sld [smem:[#allocation2 + $0x72]] }
 0x196   : > { %s5388_s22 = sld [smem:[#allocation2 + $0x84]] }
 0x197   : > { %s9232_s12 = sld [smem:[#allocation51_spill]] }
 0x198   : > { %s9239_s16 = sld [smem:[#allocation52_spill]]  ;;  %v9247_v51 = vstv %s9223_s11 }
 0x199   : > { %s5408_s23 = sld [smem:[#allocation2 + $0x1a]]  ;;  %v5427_v61 = vmul.f32 %v9247_v51, %v4660_v30  ;;  %v9251_v3 = vstv %s9229_s5 }
 0x19a   : > { %s5432_s3 = sld [smem:[#allocation2 + $0x62]] }
 0x19b   : > { %9065 = sst [smem:[#allocation104_spill]] %s4906_s30  ;;  %9248 = vst [vmem:[#allocation154_spill] sm:$0xff] %v5427_v61 }
 0x19c   : > { %s5219_s30 = sld [smem:[#allocation2 + $0x5c]] }
 0x19d   : > { %9230 = sst [smem:[#allocation41_spill]] %s5388_s22 }
 0x19e   : > { %s9262_s17 = sld [smem:[#allocation53_spill]] }
 0x19f   : > { %9241 = sst [smem:[#allocation42_spill]] %s5408_s23 }
 0x1a0   : > { %9250 = sst [smem:[#allocation44_spill]] %s5432_s3 }
 0x1a1   : > { %s9265_s28 = sld [smem:[#allocation54_spill]] }
 0x1a2   : > { %9162 = sst [smem:[#allocation28_spill]] %s5219_s30 }
 0x1a3   : > { %s9173_s30 = sld [smem:[#allocation40_spill]] }
 0x1a4   : > { %9222 = sst [smem:[#allocation40_spill]] %s5370_s18 }
 0x1a5   : > { %s9231_s18 = sld [smem:[#allocation50_spill]] }
 0x1a6   : > { %s9275_s19 = sld [smem:[#allocation59_spill]] }
 0x1a7   : > { %s5506_s4 = sld [smem:[#allocation2 + $0x63]] }
 0x1a8   : > { %s9312_s0 = sld [smem:[#allocation63_spill]] }
 0x1a9   : > { %v9209_v48 = vstv %s9173_s30  ;;  %s9221_s30 = sld [smem:[#allocation47_spill]] }
 0x1aa   : > { %v5350_v63 = vmul.f32 %v9209_v48, %v4852_v16  ;;  %v9224_v48 = vstv %s9198_s20  ;;  %v5401_v16 = vmul.f32 %v9236_v42, %v4899_v38  ;;  %s5429_s20 = sld [smem:[#allocation2 + $0x3e]] }
 0x1ab   : > { %v5376_v34 = vmul.f32 %v9224_v48, %v4837_v22  ;;  %v9233_v22 = vmov %v9218_v7  ;;  %v388_v7 = vld [vmem:[%s9155_s29 + $0x8] sm:$0xff]  ;;  %s5450_s29 = sld [smem:[#allocation2 + $0x86]] }
 0x1ac   : > { %9210 = vst [vmem:[#allocation142_spill] sm:$0xff] %v5350_v63  ;;  %v5396_v48 = vmul.f32 %v9233_v22, %v4899_v38  ;;  %9237 = vst [vmem:[#allocation150_spill] sm:$0xff] %v5401_v16  ;;  %v9242_v22 = vstv %s9219_s27  ;;  %v9259_v16 = vstv %s9239_s16  ;;  %1924 = vperm.xlu1 %3948, %v388_v7   ;;  %v390_v7 = vld [vmem:[%s9177_s21 + $0x8] sm:$0xff]  ;;  %s9311_s21 = sld [smem:[#allocation62_spill]] }
 0x1ad   : > { %9225 = vst [vmem:[#allocation146_spill] sm:$0xff] %v5376_v34  ;;  %v5455_v61 = vmul.f32 %v9259_v16, %v4904_v40  ;;  %9285 = sst [smem:[#allocation48_spill]] %s5506_s4 }
 0x1ae   : > { %9235 = vst [vmem:[#allocation149_spill] sm:$0xff] %v5396_v48  ;;  %v5417_v48 = vmul.f32 %v9242_v22, %v4660_v30  ;;  %v5437_v22 = vmul.f32 %v9251_v3, %v4904_v40  ;;  %v9261_v3 = vstv %s9211_s1  ;;  %s5478_s1 = sld [smem:[#allocation2 + $0x1b]] }
 0x1af   : > { %v9245_v38 = vstv %s9221_s30  ;;  %9260 = vst [vmem:[#allocation158_spill] sm:$0xff] %v5455_v61  ;;  %v9267_v51 = vstv %s9221_s30  ;;  %s9313_s30 = sld [smem:[#allocation64_spill]] }
 0x1b0   : > { %9244 = vst [vmem:[#allocation152_spill] sm:$0xff] %v5417_v48  ;;  %v5422_v42 = vmul.f32 %v9245_v38, %v4660_v30  ;;  %9249 = sst [smem:[#allocation43_spill]] %s5429_s20  ;;  %9253 = vst [vmem:[#allocation155_spill] sm:$0xff] %v5437_v22  ;;  %v9254_v48 = vstv %s9231_s18  ;;  %v5460_v22 = vmul.f32 %v9261_v3, %v4712_v35  ;;  %v9273_v3 = vstv %s9229_s5  ;;  %1936 = vperm.xlu1 %3948, %v390_v7  }
 0x1b1   : > { %v5442_v38 = vmul.f32 %v9254_v48, %v4904_v40  ;;  %9258 = sst [smem:[#allocation45_spill]] %s5450_s29  ;;  %v9264_v48 = vstv %s9219_s27 }
 0x1b2   : > { %9246 = vst [vmem:[#allocation153_spill] sm:$0xff] %v5422_v42  ;;  %v9256_v42 = vstv %s9232_s12  ;;  %9263 = vst [vmem:[#allocation159_spill] sm:$0xff] %v5460_v22  ;;  %s5489_s29 = sld [smem:[#allocation2 + $0x3f]] }
 0x1b3   : > { %9255 = vst [vmem:[#allocation156_spill] sm:$0xff] %v5442_v38  ;;  %v5447_v30 = vmul.f32 %v9256_v42, %v4904_v40  ;;  %v5465_v38 = vmul.f32 %v9264_v48, %v4712_v35  ;;  %v9270_v40 = vstv %s9223_s11  ;;  %v5483_v48 = vmul.f32 %v9273_v3, %v4990_v58  ;;  %s9281_s11 = sld [smem:[#allocation60_spill]] }
 0x1b4   : > { %v5476_v16 = vmul.f32 %v9270_v40, %v4712_v35  ;;  %9272 = sst [smem:[#allocation46_spill]] %s5478_s1  ;;  %v9280_v40 = vmov %v9256_v42  ;;  %v9283_v3 = vstv %s9239_s16  ;;  %v9286_v42 = vstv %s9262_s17 }
 0x1b5   : > { %9257 = vst [vmem:[#allocation157_spill] sm:$0xff] %v5447_v30  ;;  %9266 = vst [vmem:[#allocation160_spill] sm:$0xff] %v5465_v38  ;;  %v5471_v30 = vmul.f32 %v9267_v51, %v4712_v35  ;;  %v9278_v35 = vstv %s9231_s18  ;;  %v5511_v61 = vmul.f32 %v9286_v42, %v4960_v23  ;;  %s5529_s12 = sld [smem:[#allocation2 + $0x87]]  ;;  %v9296_v42 = vstv %s9087_s15 }
 0x1b6   : > { %9271 = vst [vmem:[#allocation162_spill] sm:$0xff] %v5476_v16  ;;  %9274 = vst [vmem:[#allocation163_spill] sm:$0xff] %v5483_v48  ;;  %v5494_v51 = vmul.f32 %v9278_v35, %v4990_v58  ;;  %v5499_v16 = vmul.f32 %v9280_v40, %v4990_v58  ;;  %v5504_v48 = vmul.f32 %v9283_v3, %v4990_v58  ;;  %v9288_v35 = vstv %s9265_s28  ;;  %s5547_s16 = sld [smem:[#allocation2 + $0x1d]] }
 0x1b7   : > { %9269 = vst [vmem:[#allocation161_spill] sm:$0xff] %v5471_v30  ;;  %9287 = vst [vmem:[#allocation167_spill] sm:$0xff] %v5511_v61  ;;  %v9291_v40 = vstv %s9085_s10  ;;  %v9293_v30 = vstv %s9086_s9  ;;  %v5534_v61 = vmul.f32 %v9296_v42, %v4867_v17  ;;  %v9306_v3 = vstv %s9262_s17  ;;  %s9309_s27 = sld [smem:[#allocation61_spill]] }
 0x1b8   : > { %9277 = sst [smem:[#allocation47_spill]] %s5489_s29  ;;  %9279 = vst [vmem:[#allocation164_spill] sm:$0xff] %v5494_v51  ;;  %9282 = vst [vmem:[#allocation165_spill] sm:$0xff] %v5499_v16  ;;  %v5516_v51 = vmul.f32 %v9288_v35, %v4960_v23  ;;  %v5521_v16 = vmul.f32 %v9291_v40, %v4960_v23  ;;  %v5526_v58 = vmul.f32 %v9293_v30, %v4960_v23  ;;  %v9298_v35 = vstv %s9089_s7 }
 0x1b9   : > { %9284 = vst [vmem:[#allocation166_spill] sm:$0xff] %v5504_v48  ;;  %9297 = vst [vmem:[#allocation171_spill] sm:$0xff] %v5534_v61  ;;  %v9301_v40 = vstv %s9275_s19  ;;  %v9304_v30 = vstv %s9281_s11  ;;  %v5557_v61 = vmul.f32 %v9306_v3, %v5063_v2  ;;  %s5565_s22 = sld [smem:[#allocation2 + $0x41]]  ;;  %v9315_v23 = vstv %s9085_s10 }
 0x1ba   : > { %9290 = vst [vmem:[#allocation168_spill] sm:$0xff] %v5516_v51  ;;  %9292 = vst [vmem:[#allocation169_spill] sm:$0xff] %v5521_v16  ;;  %v5539_v51 = vmul.f32 %v9298_v35, %v4867_v17  ;;  %v5544_v16 = vmul.f32 %v9301_v40, %v4867_v17  ;;  %v5552_v42 = vmul.f32 %v9304_v30, %v4867_v17  ;;  %v9308_v35 = vstv %s9265_s28  ;;  %s9319_s17 = sld [smem:[#allocation58_spill]] }
 0x1bb   : > { %9294 = vst [vmem:[#allocation170_spill] sm:$0xff] %v5526_v58  ;;  %9295 = sst [smem:[#allocation49_spill]] %s5529_s12  ;;  %9307 = vst [vmem:[#allocation175_spill] sm:$0xff] %v5557_v61  ;;  %v5562_v40 = vmul.f32 %v9308_v35, %v5063_v2  ;;  %v5570_v17 = vmul.f32 %v9315_v23, %v5063_v2  ;;  %v9318_v3 = vstv %s9086_s9  ;;  %v9321_v35 = vstv %s9087_s15  ;;  %v998_v61 = vpop.permute.xlu0 %997 }
 0x1bc   : > { %9300 = vst [vmem:[#allocation172_spill] sm:$0xff] %v5539_v51  ;;  %9302 = vst [vmem:[#allocation173_spill] sm:$0xff] %v5544_v16  ;;  %9303 = sst [smem:[#allocation50_spill]] %s5547_s16  ;;  %v5575_v30 = vmul.f32 %v9318_v3, %v5063_v2  ;;  %v9330_v3 = vstv %s9281_s11 }
 0x1bd   : > { %9305 = vst [vmem:[#allocation174_spill] sm:$0xff] %v5552_v42  ;;  %9310 = vst [vmem:[#allocation176_spill] sm:$0xff] %v5562_v40  ;;  %v5580_v40 = vmul.f32 %v9321_v35, %v4950_v13  ;;  %v9326_v42 = vstv %s9089_s7  ;;  %v5598_v35 = vmul.f32 %v9330_v3, %v4950_v13  ;;  %s5600_s9 = sld [smem:[#allocation2 + $0x89]]  ;;  %v9333_v7 = vstv %s9309_s27 }
 0x1be   : > { %9317 = vst [vmem:[#allocation177_spill] sm:$0xff] %v5570_v17  ;;  %9320 = vst [vmem:[#allocation178_spill] sm:$0xff] %v5575_v30  ;;  %v5588_v23 = vmul.f32 %v9326_v42, %v4950_v13  ;;  %v9328_v17 = vstv %s9275_s19  ;;  %v9335_v42 = vstv %s9311_s21  ;;  %s9336_s7 = sld [smem:[#allocation117_spill]] }
 0x1bf   : > { %9314 = sst [smem:[#allocation51_spill]] %s5565_s22  ;;  %9323 = vst [vmem:[#allocation179_spill] sm:$0xff] %v5580_v40  ;;  %v5593_v2 = vmul.f32 %v9328_v17, %v4950_v13  ;;  %9331 = vst [vmem:[#allocation182_spill] sm:$0xff] %v5598_v35  ;;  %v5605_v40 = vmul.f32 %v9333_v7, %v5075_v5  ;;  %v9338_v17 = vstv %s9312_s0  ;;  %v9341_v13 = vstv %s9313_s30 }
 0x1c0   : > { %s5583_s22 = sld [smem:[#allocation2 + $0x65]]  ;;  %9327 = vst [vmem:[#allocation180_spill] sm:$0xff] %v5588_v23  ;;  %v5610_v23 = vmul.f32 %v9335_v42, %v5075_v5  ;;  %v5620_v3 = vmul.f32 %v9341_v13, %v5075_v5  ;;  %v9348_v42 = vmov %v9333_v7  ;;  %v1046_v13 = vpop.permute.xlu0 %1045 }
 0x1c1   : > { %9329 = vst [vmem:[#allocation181_spill] sm:$0xff] %v5593_v2  ;;  %9334 = vst [vmem:[#allocation183_spill] sm:$0xff] %v5605_v40  ;;  %s9339_s10 = sld [smem:[#allocation118_spill]]  ;;  %v5615_v2 = vmul.f32 %v9338_v17, %v5075_v5  ;;  %v1000_v17 = vpop.permute.xlu1 %999 }
 0x1c2   : > { %9337 = vst [vmem:[#allocation184_spill] sm:$0xff] %v5610_v23  ;;  %9343 = vst [vmem:[#allocation186_spill] sm:$0xff] %v5620_v3  ;;  %s9344_s19 = sld [smem:[#allocation29_spill]]  ;;  %v5630_v23 = vmul.f32 %v9348_v42, %v5095_v46  ;;  %v1003_v46 = vsel %vm925_vm11, 0.0, %v998_v61  ;;  %v1051_v3 = vsel %vm974_vm12, %v1046_v13, 0.0 }
 0x1c3   : > { %9332 = sst [smem:[#allocation53_spill]] %s5600_s9  ;;  %9340 = vst [vmem:[#allocation185_spill] sm:$0xff] %v5615_v2 }
 0x1c4   : > { %s9346_s18 = sld [smem:[#allocation31_spill]]  ;;  %9350 = vst [vmem:[#allocation187_spill] sm:$0xff] %v5630_v23  ;;  %v1243_v5 = vpop.permute.xlu0 %1242 }
 0x1c5   : > { %s5625_s21 = sld [smem:[#allocation2 + $0x20]]  ;;  %v1248_v23 = vsel %vm925_vm11, 0.0, %v1243_v5 }
 0x1c6   : > { %9325 = sst [smem:[#allocation52_spill]] %s5583_s22 }
 0x1c7   : > { %s5636_s12 = sld [smem:[#allocation2 + $0x44]] }
 0x1c8   : > { %s9356_s28 = sld [smem:[#allocation33_spill]]  ;;  %v1291_v61 = vpop.permute.xlu0 %1290 }
 0x1c9   : > { %s5642_s27 = sld [smem:[#allocation2 + $0x68]] }
 0x1ca   : > { %s5648_s5 = sld [smem:[#allocation2 + $0x8c]] }
 0x1cb   : > { %9347 = sst [smem:[#allocation54_spill]] %s5625_s21 }
 0x1cc   : > { %s5654_s15 = sld [smem:[#allocation2 + $0x21]]  ;;  %v1487_v49 = vpop.permute.xlu0 %1486 }
 0x1cd   : > { %9355 = sst [smem:[#allocation59_spill]] %s5636_s12 }
 0x1ce   : > { %s5660_s9 = sld [smem:[#allocation2 + $0x45]] }
 0x1cf   : > { %9357 = sst [smem:[#allocation60_spill]] %s5642_s27 }
 0x1d0   : > { %9361 = sst [smem:[#allocation61_spill]] %s5648_s5 }
 0x1d1   : > { %s5666_s0 = sld [smem:[#allocation2 + $0x69]] }
 0x1d2   : > { %9363 = sst [smem:[#allocation58_spill]] %s5654_s15 }
 0x1d3   : > { %s5672_s24 = sld [smem:[#allocation2 + $0x8d]] }
 0x1d4   : > { %9365 = sst [smem:[#allocation117_spill]] %s5660_s9 }
 0x1d5   : > { %s9373_s13 = sld [smem:[#allocation65_spill]] }
 0x1d6   : > { %s9374_s25 = sld [smem:[#allocation66_spill]] }
 0x1d7   : > { %9369 = sst [smem:[#allocation118_spill]] %s5666_s0 }
 0x1d8   : > { %s9375_s6 = sld [smem:[#allocation67_spill]] }
 0x1d9   : > { %9372 = sst [smem:[#allocation29_spill]] %s5672_s24 }
 0x1da   : > { %s5678_s8 = sld [smem:[#allocation2 + $0x23]] }
 0x1db   : > { %s9377_s2 = sld [smem:[#allocation68_spill]]  ;;  %v9382_v35 = vstv %s9373_s13 }
 0x1dc   : > { %s9378_s3 = sld [smem:[#allocation69_spill]]  ;;  %v5692_v42 = vmul.f32 %v9382_v35, %v1003_v46  ;;  %v9383_v2 = vstv %s9374_s25  ;;  %v1048_v35 = vpop.permute.xlu1 %1047  ;;  %v9407_v26 = vstv %s9374_s25 }
 0x1dd   : > { %s9379_s11 = sld [smem:[#allocation70_spill]]  ;;  %v5696_v40 = vmul.f32 %v9383_v2, %v1003_v46 }
 0x1de   : > { %s9380_s1 = sld [smem:[#allocation71_spill]]  ;;  %v9385_v16 = vstv %s9375_s6  ;;  %v9408_v50 = vstv %s9375_s6 }
 0x1df   : > { %s9381_s29 = sld [smem:[#allocation72_spill]]  ;;  %v5700_v13 = vmul.f32 %v9385_v16, %v1003_v46  ;;  %v1004_v16 = vsel %vm925_vm11, 0.0, %v1000_v17 }
 0x1e0   : > { %9376 = sst [smem:[#allocation31_spill]] %s5678_s8  ;;  %v5763_v36 = vmul.f32 %v9408_v50, %v1004_v16 }
 0x1e1   : > { %s5688_s20 = sld [smem:[#allocation2 + $0x47]]  ;;  %v9387_v30 = vstv %s9377_s2 }
 0x1e2   : > { %s9384_s22 = sld [smem:[#allocation73_spill]]  ;;  %v5707_v7 = vmul.f32 %v9387_v30, %v1003_v46  ;;  %v9390_v2 = vstv %s9378_s3  ;;  %v9424_v6 = vstv %s9378_s3 }
 0x1e3   : > { %s9386_s16 = sld [smem:[#allocation74_spill]]  ;;  %v5717_v5 = vmul.f32 %v9390_v2, %v1051_v3  ;;  %v9391_v48 = vstv %s9379_s11 }
 0x1e4   : > { %s5703_s26 = sld [smem:[#allocation2 + $0x6b]]  ;;  %v5721_v38 = vmul.f32 %v9391_v48, %v1051_v3  ;;  %v9392_v46 = vstv %s9380_s1  ;;  %v9435_v18 = vstv %s9380_s1 }
 0x1e5   : > { %s9388_s21 = sld [smem:[#allocation75_spill]]  ;;  %v5725_v30 = vmul.f32 %v9392_v46, %v1051_v3  ;;  %v9393_v51 = vstv %s9381_s29  ;;  %v9437_v56 = vstv %s9381_s29 }
 0x1e6   : > { %s9389_s14 = sld [smem:[#allocation76_spill]]  ;;  %v5729_v58 = vmul.f32 %v9393_v51, %v1051_v3  ;;  %v1296_v3 = vsel %vm974_vm12, %v1291_v61, 0.0  ;;  %v1052_v61 = vsel %vm974_vm12, %v1048_v35, 0.0  ;;  %v1492_v35 = vsel %vm925_vm11, 0.0, %v1487_v49 }
 0x1e7   : > { %s5712_s30 = sld [smem:[#allocation2 + $0x8f]] }
 0x1e8   : > { %v9394_v22 = vstv %s9384_s22  ;;  %s9398_s5 = sld [smem:[#allocation77_spill]] }
 0x1e9   : > { %v5733_v17 = vmul.f32 %v9394_v22, %v1248_v23  ;;  %v9396_v34 = vstv %s9386_s16  ;;  %s9399_s27 = sld [smem:[#allocation78_spill]]  ;;  %v9406_v22 = vstv %s9373_s13  ;;  %v9447_v21 = vstv %s9386_s16 }
 0x1ea   : > { %v5737_v2 = vmul.f32 %v9396_v34, %v1248_v23  ;;  %s9401_s12 = sld [smem:[#allocation79_spill]]  ;;  %v5752_v37 = vmul.f32 %v9406_v22, %v1004_v16  ;;  %v1245_v22 = vpop.permute.xlu1 %1244 }
 0x1eb   : > { %9395 = vst [vmem:[#allocation188_spill] sm:$0xff] %v5733_v17  ;;  %v9400_v63 = vstv %s9388_s21  ;;  %s9404_s4 = sld [smem:[#allocation80_spill]] }
 0x1ec   : > { %9397 = vst [vmem:[#allocation189_spill] sm:$0xff] %v5737_v2  ;;  %v5742_v46 = vmul.f32 %v9400_v63, %v1248_v23  ;;  %v9403_v55 = vstv %s9389_s14  ;;  %v5759_v63 = vmul.f32 %v9407_v26, %v1004_v16  ;;  %s9410_s13 = sld [smem:[#allocation85_spill]] }
 0x1ed   : > { %v5746_v51 = vmul.f32 %v9403_v55, %v1248_v23  ;;  %v9409_v55 = vstv %s9377_s2  ;;  %s9411_s9 = sld [smem:[#allocation86_spill]] }
 0x1ee   : > { %9402 = vst [vmem:[#allocation190_spill] sm:$0xff] %v5742_v46  ;;  %v5767_v23 = vmul.f32 %v9409_v55, %v1004_v16  ;;  %v9412_v34 = vstv %s9398_s5  ;;  %s9413_s24 = sld [smem:[#allocation87_spill]]  ;;  %v920_v55 = vpop.permute.xlu0 %919 }
 0x1ef   : > { %9405 = vst [vmem:[#allocation191_spill] sm:$0xff] %v5746_v51  ;;  %v5772_v47 = vmul.f32 %v9412_v34, %v1296_v3  ;;  %v9415_v48 = vstv %s9399_s27  ;;  %s9416_s25 = sld [smem:[#allocation88_spill]]  ;;  %v926_v34 = vsel %vm925_vm11, 0.0, %v920_v55 }
 0x1f0   : > { %v5776_v26 = vmul.f32 %v9415_v48, %v1296_v3  ;;  %v9418_v11 = vstv %s9401_s12  ;;  %s9422_s2 = sld [smem:[#allocation81_spill]]  ;;  %v5792_v48 = vmul.f32 %v9424_v6, %v1052_v61 }
 0x1f1   : > { %9414 = vst [vmem:[#allocation192_spill] sm:$0xff] %v5772_v47  ;;  %v5780_v50 = vmul.f32 %v9418_v11, %v1296_v3  ;;  %v9420_v1 = vstv %s9404_s4  ;;  %s9423_s6 = sld [smem:[#allocation82_spill]] }
 0x1f2   : > { %9417 = vst [vmem:[#allocation193_spill] sm:$0xff] %v5776_v26  ;;  %v5784_v16 = vmul.f32 %v9420_v1, %v1296_v3  ;;  %s9425_s8 = sld [smem:[#allocation89_spill]]  ;;  %v9426_v26 = vstv %s9379_s11  ;;  %v1249_v1 = vsel %vm925_vm11, 0.0, %v1245_v22  ;;  %v5814_v22 = vmul.f32 %v9437_v56, %v1052_v61  ;;  %v1293_v3 = vpop.permute.xlu1 %1292 }
 0x1f3   : > { %9419 = vst [vmem:[#allocation194_spill] sm:$0xff] %v5780_v50  ;;  %s9427_s0 = sld [smem:[#allocation90_spill]]  ;;  %v5796_v11 = vmul.f32 %v9426_v26, %v1052_v61  ;;  %v9430_v50 = vstv %s9411_s9  ;;  %v5810_v26 = vmul.f32 %v9435_v18, %v1052_v61  ;;  %v1297_v46 = vsel %vm974_vm12, %v1293_v3, 0.0 }
 0x1f4   : > { %9421 = vst [vmem:[#allocation195_spill] sm:$0xff] %v5784_v16  ;;  %s9428_s15 = sld [smem:[#allocation91_spill]]  ;;  %v9429_v16 = vstv %s9410_s13  ;;  %v934_v55 = vmul.f32 %v9430_v50, %v926_v34  ;;  %v9432_v60 = vstv %s9413_s24  ;;  %v9445_v56 = vstv %s9384_s22 }
 0x1f5   : > { %v929_v49 = vmul.f32 %v9429_v16, %v926_v34  ;;  %s9431_s23 = sld [smem:[#allocation83_spill]]  ;;  %v939_v47 = vmul.f32 %v9432_v60, %v926_v34  ;;  %v9434_v6 = vstv %s9416_s25  ;;  %v969_v60 = vpop.permute.xlu0 %968  ;;  %v5833_v61 = vmul.f32 %v9445_v56, %v1249_v1 }
 0x1f6   : > { %s9433_s3 = sld [smem:[#allocation84_spill]]  ;;  %v944_v43 = vmul.f32 %v9434_v6, %v926_v34  ;;  %v9438_v39 = vstv %s9422_s2 }
 0x1f7   : > { %s9436_s11 = sld [smem:[#allocation92_spill]]  ;;  %v5818_v16 = vmul.f32 %v9438_v39, %v1492_v35  ;;  %v9440_v51 = vstv %s9423_s6  ;;  %v5837_v39 = vmul.f32 %v9447_v21, %v1249_v1 }
 0x1f8   : > { %v5822_v50 = vmul.f32 %v9440_v51, %v1492_v35  ;;  %v9442_v34 = vstv %s9425_s8  ;;  %s9446_s29 = sld [smem:[#allocation93_spill]] }
 0x1f9   : > { %9439 = vst [vmem:[#allocation196_spill] sm:$0xff] %v5818_v16  ;;  %v931_v6 = vadd.f32 %v929_v49, %v9442_v34  ;;  %v9443_v2 = vstv %s9427_s0  ;;  %s9448_s1 = sld [smem:[#allocation94_spill]]  ;;  %v9453_v49 = vstv %s9388_s21  ;;  %v9456_v34 = vstv %s9389_s14 }
 0x1fa   : > { %9441 = vst [vmem:[#allocation197_spill] sm:$0xff] %v5822_v50  ;;  %v936_v18 = vadd.f32 %v934_v55, %v9443_v2  ;;  %v9444_v17 = vstv %s9428_s15  ;;  %v5849_v2 = vmul.f32 %v9453_v49, %v1249_v1  ;;  %v5857_v56 = vmul.f32 %v9456_v34, %v1249_v1  ;;  %s9459_s22 = sld [smem:[#allocation95_spill]] }
 0x1fb   : > { %v941_v20 = vadd.f32 %v939_v47, %v9444_v17  ;;  %v9449_v16 = vstv %s9431_s23  ;;  %v951_v55 = vadd.f32 %v5033_v15, %v931_v6  ;;  %s9461_s16 = sld [smem:[#allocation96_spill]]  ;;  %v9464_v34 = vstv %s9399_s27 }
 0x1fc   : > { %v5841_v51 = vmul.f32 %v9449_v16, %v1492_v35  ;;  %v9451_v50 = vstv %s9433_s3  ;;  %9454 = vst [vmem:[#allocation200_spill] sm:$0xff] %v5849_v2  ;;  %v956_v21 = vadd.f32 %v5038_v4, %v936_v18  ;;  %9457 = vst [vmem:[#allocation201_spill] sm:$0xff] %v5857_v56  ;;  %v9458_v16 = vstv %s9398_s5  ;;  %s9469_s21 = sld [smem:[#allocation97_spill]] }
 0x1fd   : > { %v5845_v3 = vmul.f32 %v9451_v50, %v1492_v35  ;;  %v9455_v47 = vstv %s9436_s11  ;;  %v1489_v35 = vpop.permute.xlu1 %1488  ;;  %v961_v50 = vadd.f32 %v5046_v52, %v941_v20  ;;  %v9467_v52 = vstv %s9404_s4  ;;  %s9471_s14 = sld [smem:[#allocation98_spill]] }
 0x1fe   : > { %9450 = vst [vmem:[#allocation198_spill] sm:$0xff] %v5841_v51  ;;  %v946_v17 = vadd.f32 %v944_v43, %v9455_v47  ;;  %v5861_v51 = vmul.f32 %v9458_v16, %v1297_v46  ;;  %v975_v43 = vsel %vm974_vm12, %v969_v60, 0.0  ;;  %v1493_v15 = vsel %vm925_vm11, 0.0, %v1489_v35  ;;  %v1535_v47 = vpop.permute.xlu0 %1534  ;;  %s9472_s5 = sld [smem:[#allocation99_spill]] }
 0x1ff   : > { %9452 = vst [vmem:[#allocation199_spill] sm:$0xff] %v5845_v3  ;;  %v9462_v6 = vstv %s9446_s29  ;;  %v9463_v18 = vstv %s9448_s1  ;;  %v5873_v16 = vmul.f32 %v9464_v34, %v1297_v46  ;;  %v9466_v3 = vstv %s9401_s12  ;;  %s9481_s4 = sld [smem:[#allocation100_spill]] }
 0x200   : > { %9460 = vst [vmem:[#allocation202_spill] sm:$0xff] %v5861_v51  ;;  %v966_v4 = vadd.f32 %v5051_v19, %v946_v17  ;;  %v978_v1 = vmul.f32 %v9462_v6, %v975_v43  ;;  %v983_v49 = vmul.f32 %v9463_v18, %v975_v43  ;;  %v5877_v51 = vmul.f32 %v9466_v3, %v1297_v46  ;;  %s9508_s12 = sld [smem:[#allocation105_spill]] }
 0x201   : > { %9465 = vst [vmem:[#allocation203_spill] sm:$0xff] %v5873_v16  ;;  %v5881_v20 = vmul.f32 %v9467_v52, %v1297_v46  ;;  %v9468_v60 = vstv %s9422_s2  ;;  %v9473_v35 = vstv %s9459_s22  ;;  %v9474_v18 = vstv %s9461_s16  ;;  %s9515_s27 = sld [smem:[#allocation108_spill]] }
 0x202   : > { %v5885_v56 = vmul.f32 %v9468_v60, %v1493_v15  ;;  %v980_v19 = vadd.f32 %v978_v1, %v951_v55  ;;  %v985_v17 = vadd.f32 %v983_v49, %v956_v21  ;;  %v988_v6 = vmul.f32 %v9473_v35, %v975_v43  ;;  %v922_v55 = vpop.permute.xlu1 %921  ;;  %s9524_s2 = sld [smem:[#allocation55_spill]] }
 0x203   : > { %v993_v2 = vmul.f32 %v9474_v18, %v975_v43  ;;  %v9475_v34 = vstv %s9423_s6  ;;  %v9477_v3 = vstv %s9431_s23  ;;  %v9479_v52 = vstv %s9433_s3  ;;  %s9505_s23 = sld [smem:[#allocation104_spill]] }
 0x204   : > { %9470 = vst [vmem:[#allocation204_spill] sm:$0xff] %v5885_v56  ;;  %v5893_v16 = vmul.f32 %v9475_v34, %v1493_v15  ;;  %v5897_v46 = vmul.f32 %v9477_v3, %v1493_v15  ;;  %v5901_v60 = vmul.f32 %v9479_v52, %v1493_v15  ;;  %v1540_v21 = vsel %vm974_vm12, %v1535_v47, 0.0  ;;  %v1082_v56 = vpop.permute.xlu0 %1081  ;;  %s9525_s6 = sld [smem:[#allocation56_spill]] }
 0x205   : > { %v990_v1 = vadd.f32 %v988_v6, %v961_v50  ;;  %v995_v49 = vadd.f32 %v993_v2, %v966_v4  ;;  %v1008_v43 = vadd.f32 %v5692_v42, %v980_v19  ;;  %v1013_v35 = vadd.f32 %v5696_v40, %v985_v17  ;;  %s9534_s3 = sld [smem:[#allocation57_spill]] }
 0x206   : > { %9476 = vst [vmem:[#allocation205_spill] sm:$0xff] %v5893_v16  ;;  %9478 = vst [vmem:[#allocation206_spill] sm:$0xff] %v5897_v46  ;;  %v927_v18 = vsel %vm925_vm11, 0.0, %v922_v55  ;;  %v9482_v34 = vstv %s9469_s21  ;;  %v9484_v15 = vstv %s9471_s14  ;;  %v9488_v50 = vstv %s9410_s13  ;;  %s9522_s13 = sld [smem:[#allocation109_spill]] }
 0x207   : > { %9480 = vst [vmem:[#allocation207_spill] sm:$0xff] %v5901_v60  ;;  %v5909_v3 = vmul.f32 %v9482_v34, %v1540_v21  ;;  %v5913_v52 = vmul.f32 %v9484_v15, %v1540_v21  ;;  %v9486_v60 = vstv %s9472_s5  ;;  %v1018_v2 = vadd.f32 %v5700_v13, %v990_v1  ;;  %v971_v15 = vpop.permute.xlu1 %970 }
 0x208   : > { %v5917_v46 = vmul.f32 %v9486_v60, %v1540_v21  ;;  %v1023_v42 = vadd.f32 %v5707_v7, %v995_v49  ;;  %v930_v40 = vmul.f32 %v9488_v50, %v927_v18  ;;  %v9489_v4 = vstv %s9411_s9  ;;  %s9510_s9 = sld [smem:[#allocation106_spill]] }
 0x209   : > { %9483 = vst [vmem:[#allocation208_spill] sm:$0xff] %v5909_v3  ;;  %9485 = vst [vmem:[#allocation209_spill] sm:$0xff] %v5913_v52  ;;  %v935_v47 = vmul.f32 %v9489_v4, %v927_v18  ;;  %v9490_v19 = vstv %s9413_s24  ;;  %v9491_v6 = vstv %s9416_s25  ;;  %v9492_v34 = vstv %s9481_s4  ;;  %s9503_s24 = sld [smem:[#allocation102_spill]] }
 0x20a   : > { %9487 = vst [vmem:[#allocation210_spill] sm:$0xff] %v5917_v46  ;;  %v940_v17 = vmul.f32 %v9490_v19, %v927_v18  ;;  %v945_v55 = vmul.f32 %v9491_v6, %v927_v18  ;;  %v5931_v60 = vmul.f32 %v9492_v34, %v1540_v21  ;;  %v1028_v13 = vadd.f32 %v5102_v41, %v1008_v43  ;;  %s9523_s25 = sld [smem:[#allocation110_spill]] }
 0x20b   : > { %v9494_v1 = vstv %s9425_s8  ;;  %v9495_v7 = vstv %s9427_s0  ;;  %v976_v50 = vsel %vm974_vm12, %v971_v15, 0.0  ;;  %v1033_v4 = vadd.f32 %v5110_v33, %v1013_v35  ;;  %s9502_s8 = sld [smem:[#allocation101_spill]] }
 0x20c   : > { %9493 = vst [vmem:[#allocation211_spill] sm:$0xff] %v5931_v60  ;;  %v932_v16 = vadd.f32 %v930_v40, %v9494_v1  ;;  %v937_v49 = vadd.f32 %v935_v47, %v9495_v7  ;;  %v9496_v19 = vstv %s9428_s15  ;;  %v9497_v52 = vstv %s9436_s11  ;;  %s9504_s0 = sld [smem:[#allocation103_spill]] }
 0x20d   : > { %v942_v46 = vadd.f32 %v940_v17, %v9496_v19  ;;  %v947_v18 = vadd.f32 %v945_v55, %v9497_v52  ;;  %v9498_v6 = vstv %s9446_s29  ;;  %v9499_v21 = vstv %s9448_s1  ;;  %v1537_v17 = vpop.permute.xlu1 %1536  ;;  %s9514_s15 = sld [smem:[#allocation107_spill]] }
 0x20e   : > { %v979_v3 = vmul.f32 %v9498_v6, %v976_v50  ;;  %v984_v34 = vmul.f32 %v9499_v21, %v976_v50  ;;  %v952_v60 = vadd.f32 %v5056_v25, %v932_v16  ;;  %v957_v41 = vadd.f32 %v5070_v24, %v937_v49  ;;  %s9537_s11 = sld [smem:[#allocation111_spill]] }
 0x20f   : > { %v9500_v43 = vstv %s9459_s22  ;;  %v9501_v47 = vstv %s9461_s16  ;;  %v962_v15 = vadd.f32 %v5081_v62, %v942_v46  ;;  %v967_v33 = vadd.f32 %v5086_v53, %v947_v18  ;;  %s9539_s29 = sld [smem:[#allocation112_spill]] }
 0x210   : > { %v989_v40 = vmul.f32 %v9500_v43, %v976_v50  ;;  %v994_v1 = vmul.f32 %v9501_v47, %v976_v50  ;;  %v1038_v35 = vadd.f32 %v5115_v29, %v1018_v2  ;;  %v1043_v52 = vadd.f32 %v5120_v44, %v1023_v42  ;;  %s9551_s1 = sld [smem:[#allocation113_spill]] }
 0x211   : > { %v981_v55 = vadd.f32 %v979_v3, %v952_v60  ;;  %v986_v7 = vadd.f32 %v984_v34, %v957_v41  ;;  %v1056_v25 = vadd.f32 %v5717_v5, %v1028_v13  ;;  %v1061_v24 = vadd.f32 %v5721_v38, %v1033_v4  ;;  %v1130_v38 = vpop.permute.xlu0 %1129  ;;  %s9553_s22 = sld [smem:[#allocation114_spill]] }
 0x212   : > { %v991_v16 = vadd.f32 %v989_v40, %v962_v15  ;;  %v996_v62 = vadd.f32 %v994_v1, %v967_v33  ;;  %v1066_v53 = vadd.f32 %v5725_v30, %v1038_v35  ;;  %v1071_v29 = vadd.f32 %v5729_v58, %v1043_v52  ;;  %v1084_v58 = vpop.permute.xlu1 %1083  ;;  %s9555_s16 = sld [smem:[#allocation115_spill]] }
 0x213   : > { %v1009_v44 = vadd.f32 %v5752_v37, %v981_v55  ;;  %v1014_v46 = vadd.f32 %v5759_v63, %v986_v7  ;;  %v1087_v5 = vsel %vm925_vm11, 0.0, %v1082_v56  ;;  %v1541_v3 = vsel %vm974_vm12, %v1537_v17, 0.0 }
 0x214   : > { %v1019_v2 = vadd.f32 %v5763_v36, %v991_v16  ;;  %v1024_v42 = vadd.f32 %v5767_v23, %v996_v62  ;;  %v9506_v60 = vstv %s9502_s8  ;;  %v9507_v30 = vstv %s9503_s24 }
 0x215   : > { %v1090_v13 = vmul.f32 %v9506_v60, %v1087_v5  ;;  %v1095_v49 = vmul.f32 %v9507_v30, %v1087_v5  ;;  %v9509_v37 = vstv %s9504_s0  ;;  %v9511_v63 = vstv %s9505_s23 }
 0x216   : > { %v1100_v50 = vmul.f32 %v9509_v37, %v1087_v5  ;;  %v1105_v4 = vmul.f32 %v9511_v63, %v1087_v5  ;;  %v9512_v19 = vstv %s9469_s21  ;;  %v9513_v18 = vstv %s9471_s14  ;;  %v1167_v5 = vpop.permute.xlu0 %1166  ;;  %s9557_s21 = sld [smem:[#allocation116_spill]] }
 0x217   : > { %v5978_v56 = vmul.f32 %v9512_v19, %v1541_v3  ;;  %v5982_v6 = vmul.f32 %v9513_v18, %v1541_v3  ;;  %v1092_v36 = vadd.f32 %v1090_v13, %v1056_v25  ;;  %v1097_v23 = vadd.f32 %v1095_v49, %v1061_v24  ;;  %s9577_s14 = sld [smem:[#allocation119_spill]] }
 0x218   : > { %v9516_v21 = vstv %s9472_s5  ;;  %v9517_v41 = vstv %s9481_s4  ;;  %v1102_v40 = vadd.f32 %v1100_v50, %v1066_v53  ;;  %v1107_v47 = vadd.f32 %v1105_v4, %v1071_v29  ;;  %s9599_s5 = sld [smem:[#allocation32_spill]] }
 0x219   : > { %v5986_v34 = vmul.f32 %v9516_v21, %v1541_v3  ;;  %v5990_v43 = vmul.f32 %v9517_v41, %v1541_v3  ;;  %v1135_v1 = vsel %vm974_vm12, %v1130_v38, 0.0  ;;  %v1029_v15 = vadd.f32 %v5151_v54, %v1009_v44  ;;  %v1132_v54 = vpop.permute.xlu1 %1131  ;;  %s9601_s4 = sld [smem:[#allocation25_spill]] }
 0x21a   : > { %v1112_v33 = vadd.f32 %v5128_v57, %v1092_v36  ;;  %v1117_v35 = vadd.f32 %v5133_v27, %v1097_v23  ;;  %v9518_v52 = vstv %s9508_s12  ;;  %v9519_v55 = vstv %s9510_s9 }
 0x21b   : > { %v1138_v17 = vmul.f32 %v9518_v52, %v1135_v1  ;;  %v1143_v7 = vmul.f32 %v9519_v55, %v1135_v1  ;;  %v1122_v25 = vadd.f32 %v5138_v10, %v1102_v40  ;;  %v1127_v24 = vadd.f32 %v5146_v14, %v1107_v47  ;;  %v1215_v40 = vpop.permute.xlu0 %1214 }
 0x21c   : > { %v9520_v16 = vstv %s9514_s15  ;;  %v9521_v53 = vstv %s9515_s27  ;;  %v1034_v44 = vadd.f32 %v5156_v0, %v1014_v46  ;;  %v1039_v10 = vadd.f32 %v5168_v32, %v1019_v2 }
 0x21d   : > { %v1148_v62 = vmul.f32 %v9520_v16, %v1135_v1  ;;  %v1153_v29 = vmul.f32 %v9521_v53, %v1135_v1  ;;  %v1140_v57 = vadd.f32 %v1138_v17, %v1112_v33  ;;  %v1145_v27 = vadd.f32 %v1143_v7, %v1117_v35  ;;  %v1169_v47 = vpop.permute.xlu1 %1168 }
 0x21e   : > { %v1044_v38 = vadd.f32 %v5173_v59, %v1024_v42  ;;  %v1057_v60 = vadd.f32 %v5792_v48, %v1029_v15  ;;  %v1062_v13 = vadd.f32 %v5796_v11, %v1034_v44  ;;  %v1067_v30 = vadd.f32 %v5810_v26, %v1039_v10  ;;  %v9542_v44 = vld [vmem:[#allocation122_spill] sm:$0xff] }
 0x21f   : > { %v1150_v14 = vadd.f32 %v1148_v62, %v1122_v25  ;;  %v1155_v3 = vadd.f32 %v1153_v29, %v1127_v24  ;;  %v1088_v49 = vsel %vm925_vm11, 0.0, %v1084_v58  ;;  %v1172_v37 = vsel %vm925_vm11, 0.0, %v1167_v5 }
 0x220   : > { %v1072_v0 = vadd.f32 %v5814_v22, %v1044_v38  ;;  %v9526_v46 = vstv %s9502_s8  ;;  %v9527_v2 = vstv %s9503_s24  ;;  %v9528_v63 = vstv %s9504_s0  ;;  %s9611_s8 = sld [smem:[#allocation26_spill]] }
 0x221   : > { %v1091_v32 = vmul.f32 %v9526_v46, %v1088_v49  ;;  %v1096_v50 = vmul.f32 %v9527_v2, %v1088_v49  ;;  %v1101_v4 = vmul.f32 %v9528_v63, %v1088_v49  ;;  %v9529_v59 = vstv %s9505_s23  ;;  %s9612_s24 = sld [smem:[#allocation27_spill]] }
 0x222   : > { %v1106_v42 = vmul.f32 %v9529_v59, %v1088_v49  ;;  %v9530_v48 = vstv %s9522_s13  ;;  %v9531_v18 = vstv %s9523_s25  ;;  %v9532_v36 = vstv %s9524_s2  ;;  %s9613_s0 = sld [smem:[#allocation28_spill]] }
 0x223   : > { %v1175_v19 = vmul.f32 %v9530_v48, %v1172_v37  ;;  %v1180_v11 = vmul.f32 %v9531_v18, %v1172_v37  ;;  %v1185_v26 = vmul.f32 %v9532_v36, %v1172_v37  ;;  %v1093_v23 = vadd.f32 %v1091_v32, %v1057_v60  ;;  %s9633_s23 = sld [smem:[#allocation37_spill]] }
 0x224   : > { %v1098_v58 = vadd.f32 %v1096_v50, %v1062_v13  ;;  %v1103_v21 = vadd.f32 %v1101_v4, %v1067_v30  ;;  %v9533_v41 = vstv %s9525_s6  ;;  %v1108_v1 = vadd.f32 %v1106_v42, %v1072_v0  ;;  %v1326_v13 = vpop.permute.xlu0 %1325  ;;  %v1217_v30 = vpop.permute.xlu1 %1216  ;;  %s9676_s13 = sld [smem:[#allocation44_spill]] }
 0x225   : > { %v1190_v22 = vmul.f32 %v9533_v41, %v1172_v37  ;;  %v1177_v15 = vadd.f32 %v1175_v19, %v1140_v57  ;;  %v1182_v33 = vadd.f32 %v1180_v11, %v1145_v27  ;;  %v1187_v35 = vadd.f32 %v1185_v26, %v1150_v14  ;;  %s9677_s25 = sld [smem:[#allocation45_spill]] }
 0x226   : > { %v1113_v17 = vadd.f32 %v5178_v28, %v1093_v23  ;;  %v1118_v55 = vadd.f32 %v5189_v12, %v1098_v58  ;;  %v1123_v7 = vadd.f32 %v5194_v9, %v1103_v21  ;;  %v1128_v25 = vadd.f32 %v5199_v31, %v1108_v1  ;;  %v9541_v31 = vld [vmem:[#allocation121_spill] sm:$0xff]  ;;  %v9552_v1 = vld [vmem:[#allocation188_spill] sm:$0xff]  ;;  %s9690_s2 = sld [smem:[#allocation46_spill]] }
 0x227   : > { %v1192_v52 = vadd.f32 %v1190_v22, %v1155_v3  ;;  %v1136_v24 = vsel %vm974_vm12, %v1132_v54, 0.0  ;;  %v1197_v16 = vadd.f32 %v5207_v8, %v1177_v15  ;;  %v1202_v62 = vadd.f32 %v5212_v45, %v1182_v33  ;;  %v9554_v33 = vld [vmem:[#allocation189_spill] sm:$0xff]  ;;  %s9691_s6 = sld [smem:[#allocation47_spill]] }
 0x228   : > { %v9535_v53 = vstv %s9508_s12  ;;  %v9536_v5 = vstv %s9510_s9  ;;  %v9538_v28 = vstv %s9514_s15  ;;  %v9540_v27 = vstv %s9515_s27  ;;  %s9656_s12 = sld [smem:[#allocation39_spill]] }
 0x229   : > { %v1139_v29 = vmul.f32 %v9535_v53, %v1136_v24  ;;  %v1144_v57 = vmul.f32 %v9536_v5, %v1136_v24  ;;  %v1149_v12 = vmul.f32 %v9538_v28, %v1136_v24  ;;  %v1154_v9 = vmul.f32 %v9540_v27, %v1136_v24  ;;  %v9559_v24 = vld [vmem:[#allocation127_spill] sm:$0xff]  ;;  %v1328_v28 = vpop.permute.xlu1 %1327  ;;  %s9658_s9 = sld [smem:[#allocation40_spill]] }
 0x22a   : > { %v1207_v54 = vadd.f32 %v9541_v31, %v1187_v35  ;;  %v1212_v8 = vadd.f32 %v9542_v44, %v1192_v52  ;;  %v1220_v45 = vsel %vm974_vm12, %v1215_v40, 0.0  ;;  %v1173_v10 = vsel %vm925_vm11, 0.0, %v1169_v47  ;;  %v9556_v52 = vld [vmem:[#allocation190_spill] sm:$0xff]  ;;  %s9659_s15 = sld [smem:[#allocation41_spill]] }
 0x22b   : > { %v1141_v14 = vadd.f32 %v1139_v29, %v1113_v17  ;;  %v1146_v3 = vadd.f32 %v1144_v57, %v1118_v55  ;;  %v1151_v38 = vadd.f32 %v1149_v12, %v1123_v7  ;;  %v1156_v60 = vadd.f32 %v1154_v9, %v1128_v25  ;;  %v9558_v55 = vld [vmem:[#allocation191_spill] sm:$0xff]  ;;  %v9561_v29 = vld [vmem:[#allocation129_spill] sm:$0xff]  ;;  %v1374_v57 = vpop.permute.xlu0 %1373  ;;  %v9563_v9 = vld [vmem:[#allocation124_spill] sm:$0xff]  ;;  %s9675_s27 = sld [smem:[#allocation43_spill]] }
 0x22c   : > { %v9543_v49 = vstv %s9534_s3  ;;  %v9544_v0 = vstv %s9319_s17  ;;  %v9545_v32 = vstv %s9537_s11  ;;  %v9546_v50 = vstv %s9539_s29  ;;  %v9562_v12 = vld [vmem:[#allocation123_spill] sm:$0xff] }
 0x22d   : > { %v1223_v37 = vmul.f32 %v9543_v49, %v1220_v45  ;;  %v1228_v46 = vmul.f32 %v9544_v0, %v1220_v45  ;;  %v1233_v2 = vmul.f32 %v9545_v32, %v1220_v45  ;;  %v1238_v63 = vmul.f32 %v9546_v50, %v1220_v45  ;;  %v9570_v0 = vld [vmem:[#allocation192_spill] sm:$0xff]  ;;  %v9571_v32 = vld [vmem:[#allocation193_spill] sm:$0xff]  ;;  %v9572_v50 = vld [vmem:[#allocation194_spill] sm:$0xff] }
 0x22e   : > { %v9547_v4 = vmov %v9530_v48  ;;  %v9548_v42 = vmov %v9531_v18  ;;  %v9549_v19 = vmov %v9532_v36  ;;  %v9550_v11 = vmov %v9533_v41 }
 0x22f   : > { %v1176_v59 = vmul.f32 %v9547_v4, %v1173_v10  ;;  %v1181_v48 = vmul.f32 %v9548_v42, %v1173_v10  ;;  %v1186_v18 = vmul.f32 %v9549_v19, %v1173_v10  ;;  %v1191_v36 = vmul.f32 %v9550_v11, %v1173_v10  ;;  %v9573_v4 = vld [vmem:[#allocation195_spill] sm:$0xff]  ;;  %v9574_v42 = vld [vmem:[#allocation130_spill] sm:$0xff] }
 0x230   : > { %v1225_v26 = vadd.f32 %v1223_v37, %v1197_v16  ;;  %v1230_v23 = vadd.f32 %v1228_v46, %v1202_v62  ;;  %v1235_v58 = vadd.f32 %v1233_v2, %v1207_v54  ;;  %v1240_v21 = vadd.f32 %v1238_v63, %v1212_v8  ;;  %v9560_v62 = vld [vmem:[#allocation128_spill] sm:$0xff]  ;;  %v9564_v54 = vld [vmem:[#allocation125_spill] sm:$0xff]  ;;  %v9565_v8 = vld [vmem:[#allocation126_spill] sm:$0xff] }
 0x231   : > { %v1178_v41 = vadd.f32 %v1176_v59, %v1141_v14  ;;  %v1183_v22 = vadd.f32 %v1181_v48, %v1146_v3  ;;  %v1188_v40 = vadd.f32 %v1186_v18, %v1151_v38  ;;  %v1193_v47 = vadd.f32 %v1191_v36, %v1156_v60 }
 0x232   : > { %v1253_v15 = vadd.f32 %v9552_v1, %v1225_v26  ;;  %v1258_v35 = vadd.f32 %v9554_v33, %v1230_v23  ;;  %v1263_v17 = vadd.f32 %v9556_v52, %v1235_v58  ;;  %v1268_v7 = vadd.f32 %v9558_v55, %v1240_v21  ;;  %v1411_v33 = vpop.permute.xlu0 %1410  ;;  %v9580_v52 = vld [vmem:[#allocation131_spill] sm:$0xff]  ;;  %v9581_v55 = vld [vmem:[#allocation132_spill] sm:$0xff] }
 0x233   : > { %v1331_v25 = vsel %vm925_vm11, 0.0, %v1326_v13  ;;  %v1198_v16 = vadd.f32 %v9559_v24, %v1178_v41  ;;  %v1203_v53 = vadd.f32 %v9560_v62, %v1183_v22  ;;  %v1208_v5 = vadd.f32 %v9561_v29, %v1188_v40  ;;  %v9583_v62 = vld [vmem:[#allocation134_spill] sm:$0xff] }
 0x234   : > { %v1273_v27 = vadd.f32 %v9562_v12, %v1253_v15  ;;  %v1278_v31 = vadd.f32 %v9563_v9, %v1258_v35  ;;  %v1283_v44 = vadd.f32 %v9564_v54, %v1263_v17  ;;  %v1288_v45 = vadd.f32 %v9565_v8, %v1268_v7  ;;  %v1376_v35 = vpop.permute.xlu1 %1375 }
 0x235   : > { %v9566_v10 = vstv %s9551_s1  ;;  %v9567_v3 = vstv %s9553_s22  ;;  %v9568_v60 = vstv %s9555_s16  ;;  %v9569_v49 = vstv %s9557_s21 }
 0x236   : > { %v1334_v14 = vmul.f32 %v9566_v10, %v1331_v25  ;;  %v1339_v38 = vmul.f32 %v9567_v3, %v1331_v25  ;;  %v1344_v13 = vmul.f32 %v9568_v60, %v1331_v25  ;;  %v1349_v37 = vmul.f32 %v9569_v49, %v1331_v25  ;;  %v9582_v25 = vld [vmem:[#allocation133_spill] sm:$0xff]  ;;  %v9588_v60 = vld [vmem:[#allocation200_spill] sm:$0xff] }
 0x237   : > { %v1301_v46 = vadd.f32 %v9570_v0, %v1273_v27  ;;  %v1306_v2 = vadd.f32 %v9571_v32, %v1278_v31  ;;  %v1311_v63 = vadd.f32 %v9572_v50, %v1283_v44  ;;  %v1316_v59 = vadd.f32 %v9573_v4, %v1288_v45 }
 0x238   : > { %v1213_v48 = vadd.f32 %v9574_v42, %v1193_v47  ;;  %v1221_v19 = vsel %vm974_vm12, %v1217_v30, 0.0  ;;  %v1379_v18 = vsel %vm974_vm12, %v1374_v57, 0.0  ;;  %v1332_v11 = vsel %vm925_vm11, 0.0, %v1328_v28  ;;  %v1459_v42 = vpop.permute.xlu0 %1458 }
 0x239   : > { %v1336_v36 = vadd.f32 %v1334_v14, %v1301_v46  ;;  %v1341_v26 = vadd.f32 %v1339_v38, %v1306_v2  ;;  %v1346_v23 = vadd.f32 %v1344_v13, %v1311_v63  ;;  %v1351_v58 = vadd.f32 %v1349_v37, %v1316_v59  ;;  %v9590_v46 = vld [vmem:[#allocation135_spill] sm:$0xff]  ;;  %v9591_v2 = vld [vmem:[#allocation136_spill] sm:$0xff]  ;;  %v9592_v63 = vld [vmem:[#allocation137_spill] sm:$0xff] }
 0x23a   : > { %v9575_v21 = vstv %s9534_s3  ;;  %v9576_v22 = vstv %s9319_s17  ;;  %v9578_v1 = vstv %s9537_s11  ;;  %v9579_v15 = vstv %s9539_s29  ;;  %v9593_v59 = vld [vmem:[#allocation138_spill] sm:$0xff]  ;;  %s9596_s17 = sld [smem:[#allocation30_spill]] }
 0x23b   : > { %v1224_v41 = vmul.f32 %v9575_v21, %v1221_v19  ;;  %v1229_v40 = vmul.f32 %v9576_v22, %v1221_v19  ;;  %v1234_v47 = vmul.f32 %v9578_v1, %v1221_v19  ;;  %v1239_v30 = vmul.f32 %v9579_v15, %v1221_v19  ;;  %s9692_s3 = sld [smem:[#allocation48_spill]] }
 0x23c   : > { %v1356_v17 = vadd.f32 %v9580_v52, %v1336_v36  ;;  %v1361_v7 = vadd.f32 %v9581_v55, %v1341_v26  ;;  %v1366_v24 = vadd.f32 %v9582_v25, %v1346_v23  ;;  %v1371_v29 = vadd.f32 %v9583_v62, %v1351_v58  ;;  %s9693_s11 = sld [smem:[#allocation49_spill]] }
 0x23d   : > { %v1226_v57 = vadd.f32 %v1224_v41, %v1198_v16  ;;  %v1231_v28 = vadd.f32 %v1229_v40, %v1203_v53  ;;  %v1236_v12 = vadd.f32 %v1234_v47, %v1208_v5  ;;  %v1241_v27 = vadd.f32 %v1239_v30, %v1213_v48  ;;  %v9589_v53 = vld [vmem:[#allocation201_spill] sm:$0xff]  ;;  %v1413_v48 = vpop.permute.xlu1 %1412  ;;  %v9600_v41 = vld [vmem:[#allocation202_spill] sm:$0xff]  ;;  %v9602_v40 = vld [vmem:[#allocation203_spill] sm:$0xff]  ;;  %s9708_s29 = sld [smem:[#allocation50_spill]] }
 0x23e   : > { %v9584_v9 = vstv %s9336_s7  ;;  %v9585_v54 = vstv %s9339_s10  ;;  %v9586_v8 = vstv %s9577_s14  ;;  %v9587_v10 = vstv %s9344_s19 }
 0x23f   : > { %v1382_v31 = vmul.f32 %v9584_v9, %v1379_v18  ;;  %v1387_v44 = vmul.f32 %v9585_v54, %v1379_v18  ;;  %v1392_v45 = vmul.f32 %v9586_v8, %v1379_v18  ;;  %v1397_v14 = vmul.f32 %v9587_v10, %v1379_v18  ;;  %v9608_v9 = vld [vmem:[#allocation140_spill] sm:$0xff]  ;;  %v9609_v54 = vld [vmem:[#allocation141_spill] sm:$0xff]  ;;  %v9610_v8 = vld [vmem:[#allocation142_spill] sm:$0xff] }
 0x240   : > { %v1254_v3 = vadd.f32 %v5833_v61, %v1226_v57  ;;  %v1259_v38 = vadd.f32 %v5837_v39, %v1231_v28  ;;  %v1264_v16 = vadd.f32 %v9588_v60, %v1236_v12  ;;  %v1269_v5 = vadd.f32 %v9589_v53, %v1241_v27  ;;  %v9607_v12 = vld [vmem:[#allocation139_spill] sm:$0xff]  ;;  %v1731_v60 = vpop.permute.xlu0 %1730 }
 0x241   : > { %v1384_v13 = vadd.f32 %v1382_v31, %v1356_v17  ;;  %v1389_v49 = vadd.f32 %v1387_v44, %v1361_v7  ;;  %v1394_v37 = vadd.f32 %v1392_v45, %v1366_v24  ;;  %v1399_v0 = vadd.f32 %v1397_v14, %v1371_v29 }
 0x242   : > { %v1274_v32 = vadd.f32 %v9590_v46, %v1254_v3  ;;  %v1279_v50 = vadd.f32 %v9591_v2, %v1259_v38  ;;  %v1284_v4 = vadd.f32 %v9592_v63, %v1264_v16  ;;  %v1289_v61 = vadd.f32 %v9593_v59, %v1269_v5  ;;  %v1461_v16 = vpop.permute.xlu1 %1460  ;;  %v9620_v59 = vld [vmem:[#allocation145_spill] sm:$0xff] }
 0x243   : > { %v9594_v39 = vstv %s9551_s1  ;;  %v9595_v18 = vstv %s9553_s22  ;;  %v9597_v26 = vstv %s9555_s16  ;;  %v9598_v58 = vstv %s9557_s21  ;;  %s9710_s1 = sld [smem:[#allocation51_spill]] }
 0x244   : > { %v1335_v19 = vmul.f32 %v9594_v39, %v1332_v11  ;;  %v1340_v36 = vmul.f32 %v9595_v18, %v1332_v11  ;;  %v1345_v23 = vmul.f32 %v9597_v26, %v1332_v11  ;;  %v1350_v21 = vmul.f32 %v9598_v58, %v1332_v11  ;;  %s9712_s22 = sld [smem:[#allocation52_spill]] }
 0x245   : > { %v1302_v22 = vadd.f32 %v9600_v41, %v1274_v32  ;;  %v1307_v1 = vadd.f32 %v9602_v40, %v1279_v50  ;;  %v1312_v47 = vadd.f32 %v5877_v51, %v1284_v4  ;;  %v1317_v15 = vadd.f32 %v5881_v20, %v1289_v61  ;;  %s9714_s16 = sld [smem:[#allocation53_spill]] }
 0x246   : > { %v1416_v30 = vsel %vm925_vm11, 0.0, %v1411_v33  ;;  %v1380_v52 = vsel %vm974_vm12, %v1376_v35, 0.0  ;;  %v1464_v17 = vsel %vm974_vm12, %v1459_v42, 0.0  ;;  %v1417_v55 = vsel %vm925_vm11, 0.0, %v1413_v48  ;;  %v9621_v42 = vld [vmem:[#allocation146_spill] sm:$0xff]  ;;  %s9726_s21 = sld [smem:[#allocation54_spill]] }
 0x247   : > { %v1337_v7 = vadd.f32 %v1335_v19, %v1302_v22  ;;  %v1342_v25 = vadd.f32 %v1340_v36, %v1307_v1  ;;  %v1347_v11 = vadd.f32 %v1345_v23, %v1312_v47  ;;  %v1352_v24 = vadd.f32 %v1350_v21, %v1317_v15 }
 0x248   : > { %v9603_v62 = vstv %s9596_s17  ;;  %v9604_v57 = vstv %s9346_s18  ;;  %v9605_v20 = vstv %s9599_s5  ;;  %v9606_v28 = vstv %s9601_s4  ;;  %s9654_s18 = sld [smem:[#allocation38_spill]] }
 0x249   : > { %v1419_v29 = vmul.f32 %v9603_v62, %v1416_v30  ;;  %v1424_v51 = vmul.f32 %v9604_v57, %v1416_v30  ;;  %v1429_v33 = vmul.f32 %v9605_v20, %v1416_v30  ;;  %v1434_v35 = vmul.f32 %v9606_v28, %v1416_v30  ;;  %s9728_s17 = sld [smem:[#allocation60_spill]] }
 0x24a   : > { %v1357_v27 = vadd.f32 %v9607_v12, %v1337_v7  ;;  %v1362_v31 = vadd.f32 %v9608_v9, %v1342_v25  ;;  %v1367_v44 = vadd.f32 %v9609_v54, %v1347_v11  ;;  %v1372_v45 = vadd.f32 %v9610_v8, %v1352_v24  ;;  %v9637_v8 = vld [vmem:[#allocation199_spill] sm:$0xff]  ;;  %s9729_s5 = sld [smem:[#allocation61_spill]] }
 0x24b   : > { %v1421_v10 = vadd.f32 %v1419_v29, %v1384_v13  ;;  %v1426_v14 = vadd.f32 %v1424_v51, %v1389_v49  ;;  %v1431_v3 = vadd.f32 %v1429_v33, %v1394_v37  ;;  %v1436_v38 = vadd.f32 %v1434_v35, %v1399_v0  ;;  %v9618_v49 = vld [vmem:[#allocation143_spill] sm:$0xff]  ;;  %v9619_v0 = vld [vmem:[#allocation144_spill] sm:$0xff]  ;;  %v1733_v33 = vpop.permute.xlu1 %1732  ;;  %s9742_s4 = sld [smem:[#allocation58_spill]] }
 0x24c   : > { %v9614_v53 = vstv %s9336_s7  ;;  %v9615_v46 = vstv %s9339_s10  ;;  %v9616_v2 = vstv %s9577_s14  ;;  %v9617_v63 = vstv %s9344_s19  ;;  %s9630_s7 = sld [smem:[#allocation34_spill]] }
 0x24d   : > { %v1383_v5 = vmul.f32 %v9614_v53, %v1380_v52  ;;  %v1388_v32 = vmul.f32 %v9615_v46, %v1380_v52  ;;  %v1393_v50 = vmul.f32 %v9616_v2, %v1380_v52  ;;  %v1398_v13 = vmul.f32 %v9617_v63, %v1380_v52  ;;  %s9631_s10 = sld [smem:[#allocation35_spill]] }
 0x24e   : > { %v1441_v37 = vadd.f32 %v9618_v49, %v1421_v10  ;;  %v1446_v4 = vadd.f32 %v9619_v0, %v1426_v14  ;;  %v1451_v61 = vadd.f32 %v9620_v59, %v1431_v3  ;;  %v1456_v48 = vadd.f32 %v9621_v42, %v1436_v38  ;;  %s9632_s19 = sld [smem:[#allocation36_spill]]  ;;  %v9638_v14 = vld [vmem:[#allocation147_spill] sm:$0xff]  ;;  %v9639_v38 = vld [vmem:[#allocation148_spill] sm:$0xff] }
 0x24f   : > { %v1385_v39 = vadd.f32 %v1383_v5, %v1357_v27  ;;  %v1390_v19 = vadd.f32 %v1388_v32, %v1362_v31  ;;  %v1395_v18 = vadd.f32 %v1393_v50, %v1367_v44  ;;  %v1400_v36 = vadd.f32 %v1398_v13, %v1372_v45  ;;  %v9634_v27 = vld [vmem:[#allocation196_spill] sm:$0xff]  ;;  %v9635_v31 = vld [vmem:[#allocation197_spill] sm:$0xff]  ;;  %s9727_s14 = sld [smem:[#allocation59_spill]] }
 0x250   : > { %v9622_v26 = vstv %s9611_s8  ;;  %v9623_v58 = vstv %s9612_s24  ;;  %v9624_v41 = vstv %s9613_s0  ;;  %v9625_v40 = vstv %s9356_s28  ;;  %v9640_v5 = vld [vmem:[#allocation149_spill] sm:$0xff]  ;;  %s9674_s28 = sld [smem:[#allocation42_spill]] }
 0x251   : > { %v1467_v23 = vmul.f32 %v9622_v26, %v1464_v17  ;;  %v1472_v21 = vmul.f32 %v9623_v58, %v1464_v17  ;;  %v1477_v22 = vmul.f32 %v9624_v41, %v1464_v17  ;;  %v1482_v1 = vmul.f32 %v9625_v40, %v1464_v17  ;;  %s9743_s8 = sld [smem:[#allocation117_spill]] }
 0x252   : > { %v9626_v47 = vmov %v9603_v62  ;;  %v9627_v30 = vmov %v9604_v57  ;;  %v9628_v7 = vmov %v9605_v20  ;;  %v9629_v11 = vmov %v9606_v28  ;;  %v1570_v20 = vpop.permute.xlu0 %1569  ;;  %s9744_s24 = sld [smem:[#allocation118_spill]] }
 0x253   : > { %v1420_v15 = vmul.f32 %v9626_v47, %v1417_v55  ;;  %v1425_v52 = vmul.f32 %v9627_v30, %v1417_v55  ;;  %v1430_v25 = vmul.f32 %v9628_v7, %v1417_v55  ;;  %v1435_v24 = vmul.f32 %v9629_v11, %v1417_v55  ;;  %v9636_v55 = vld [vmem:[#allocation198_spill] sm:$0xff]  ;;  %v9657_v7 = vld [vmem:[#allocation209_spill] sm:$0xff]  ;;  %s9746_s0 = sld [smem:[#allocation29_spill]] }
 0x254   : > { %v1469_v62 = vadd.f32 %v1467_v23, %v1441_v37  ;;  %v1474_v29 = vadd.f32 %v1472_v21, %v1446_v4  ;;  %v1479_v57 = vadd.f32 %v1477_v22, %v1451_v61  ;;  %v1484_v51 = vadd.f32 %v1482_v1, %v1456_v48  ;;  %v9645_v4 = vld [vmem:[#allocation150_spill] sm:$0xff]  ;;  %v9646_v61 = vld [vmem:[#allocation151_spill] sm:$0xff]  ;;  %v9647_v48 = vld [vmem:[#allocation152_spill] sm:$0xff] }
 0x255   : > { %v1422_v28 = vadd.f32 %v1420_v15, %v1385_v39  ;;  %v1427_v17 = vadd.f32 %v1425_v52, %v1390_v19  ;;  %v1432_v35 = vadd.f32 %v1430_v25, %v1395_v18  ;;  %v1437_v12 = vadd.f32 %v1435_v24, %v1400_v36  ;;  %v9652_v1 = vld [vmem:[#allocation153_spill] sm:$0xff]  ;;  %v9653_v15 = vld [vmem:[#allocation154_spill] sm:$0xff] }
 0x256   : > { %v1497_v9 = vadd.f32 %v9634_v27, %v1469_v62  ;;  %v1502_v54 = vadd.f32 %v9635_v31, %v1474_v29  ;;  %v1507_v44 = vadd.f32 %v9636_v55, %v1479_v57  ;;  %v1512_v45 = vadd.f32 %v9637_v8, %v1484_v51  ;;  %v1618_v22 = vpop.permute.xlu0 %1617  ;;  %v9660_v57 = vld [vmem:[#allocation210_spill] sm:$0xff]  ;;  %v9662_v27 = vld [vmem:[#allocation204_spill] sm:$0xff]  ;;  %v9663_v31 = vld [vmem:[#allocation205_spill] sm:$0xff] }
 0x257   : > { %v1736_v10 = vsel %vm925_vm11, 0.0, %v1731_v60  ;;  %v1442_v3 = vadd.f32 %v9638_v14, %v1422_v28  ;;  %v1447_v53 = vadd.f32 %v9639_v38, %v1427_v17  ;;  %v1452_v46 = vadd.f32 %v9640_v5, %v1432_v35  ;;  %v9661_v28 = vld [vmem:[#allocation211_spill] sm:$0xff]  ;;  %v9664_v55 = vld [vmem:[#allocation206_spill] sm:$0xff] }
 0x258   : > { %v9641_v32 = vstv %s9630_s7  ;;  %v9642_v50 = vstv %s9631_s10  ;;  %v9643_v13 = vstv %s9632_s19  ;;  %v9644_v37 = vstv %s9633_s23  ;;  %v9665_v8 = vld [vmem:[#allocation207_spill] sm:$0xff] }
 0x259   : > { %v6188_v2 = vmul.f32 %v9641_v32, %v1736_v10  ;;  %v6192_v63 = vmul.f32 %v9642_v50, %v1736_v10  ;;  %v6196_v49 = vmul.f32 %v9643_v13, %v1736_v10  ;;  %v6200_v0 = vmul.f32 %v9644_v37, %v1736_v10 }
 0x25a   : > { %v1457_v60 = vadd.f32 %v9645_v4, %v1437_v12  ;;  %v1465_v59 = vsel %vm974_vm12, %v1461_v16, 0.0  ;;  %v1517_v42 = vadd.f32 %v9646_v61, %v1497_v9  ;;  %v1522_v39 = vadd.f32 %v9647_v48, %v1502_v54  ;;  %v9655_v16 = vld [vmem:[#allocation208_spill] sm:$0xff]  ;;  %v1655_v61 = vpop.permute.xlu0 %1654 }
 0x25b   : > { %v9648_v19 = vmov %v9622_v26  ;;  %v9649_v36 = vmov %v9623_v58  ;;  %v9650_v23 = vmov %v9624_v41  ;;  %v9651_v21 = vmov %v9625_v40  ;;  %v1572_v40 = vpop.permute.xlu1 %1571 }
 0x25c   : > { %v1468_v18 = vmul.f32 %v9648_v19, %v1465_v59  ;;  %v1473_v26 = vmul.f32 %v9649_v36, %v1465_v59  ;;  %v1478_v58 = vmul.f32 %v9650_v23, %v1465_v59  ;;  %v1483_v41 = vmul.f32 %v9651_v21, %v1465_v59 }
 0x25d   : > { %v1527_v47 = vadd.f32 %v9652_v1, %v1507_v44  ;;  %v1532_v30 = vadd.f32 %v9653_v15, %v1512_v45  ;;  %v1545_v52 = vadd.f32 %v9655_v16, %v1517_v42  ;;  %v1550_v25 = vadd.f32 %v9657_v7, %v1522_v39  ;;  %v9683_v7 = vld [vmem:[#allocation157_spill] sm:$0xff] }
 0x25e   : > { %v1470_v11 = vadd.f32 %v1468_v18, %v1442_v3  ;;  %v1475_v24 = vadd.f32 %v1473_v26, %v1447_v53  ;;  %v1480_v62 = vadd.f32 %v1478_v58, %v1452_v46  ;;  %v1485_v29 = vadd.f32 %v1483_v41, %v1457_v60  ;;  %v9678_v26 = vld [vmem:[#allocation159_spill] sm:$0xff]  ;;  %v9679_v58 = vld [vmem:[#allocation160_spill] sm:$0xff]  ;;  %v9680_v41 = vld [vmem:[#allocation161_spill] sm:$0xff] }
 0x25f   : > { %v1555_v51 = vadd.f32 %v9660_v57, %v1527_v47  ;;  %v1560_v17 = vadd.f32 %v9661_v28, %v1532_v30  ;;  %v1575_v35 = vsel %vm925_vm11, 0.0, %v1570_v20  ;;  %v1737_v12 = vsel %vm925_vm11, 0.0, %v1733_v33  ;;  %v1620_v42 = vpop.permute.xlu1 %1619  ;;  %v9681_v47 = vld [vmem:[#allocation155_spill] sm:$0xff]  ;;  %v9682_v30 = vld [vmem:[#allocation156_spill] sm:$0xff] }
 0x260   : > { %v1498_v9 = vadd.f32 %v9662_v27, %v1470_v11  ;;  %v1503_v54 = vadd.f32 %v9663_v31, %v1475_v24  ;;  %v1508_v44 = vadd.f32 %v9664_v55, %v1480_v62  ;;  %v1513_v45 = vadd.f32 %v9665_v8, %v1485_v29  ;;  %v9684_v24 = vld [vmem:[#allocation158_spill] sm:$0xff] }
 0x261   : > { %v9666_v10 = vstv %s9654_s18  ;;  %v9667_v3 = vstv %s9656_s12  ;;  %v9668_v53 = vstv %s9658_s9  ;;  %v9669_v46 = vstv %s9659_s15 }
 0x262   : > { %v1578_v14 = vmul.f32 %v9666_v10, %v1575_v35  ;;  %v1583_v38 = vmul.f32 %v9667_v3, %v1575_v35  ;;  %v1588_v5 = vmul.f32 %v9668_v53, %v1575_v35  ;;  %v1593_v32 = vmul.f32 %v9669_v46, %v1575_v35  ;;  %v9689_v35 = vld [vmem:[#allocation162_spill] sm:$0xff]  ;;  %v1703_v10 = vpop.permute.xlu0 %1702 }
 0x263   : > { %v9670_v50 = vstv %s9630_s7  ;;  %v9671_v33 = vstv %s9631_s10  ;;  %v9672_v37 = vstv %s9632_s19  ;;  %v9673_v60 = vstv %s9633_s23  ;;  %s9757_s7 = sld [smem:[#allocation62_spill]] }
 0x264   : > { %v6236_v20 = vmul.f32 %v9670_v50, %v1737_v12  ;;  %v6240_v13 = vmul.f32 %v9671_v33, %v1737_v12  ;;  %v6244_v4 = vmul.f32 %v9672_v37, %v1737_v12  ;;  %v6248_v59 = vmul.f32 %v9673_v60, %v1737_v12  ;;  %s9759_s10 = sld [smem:[#allocation63_spill]] }
 0x265   : > { %v1580_v48 = vadd.f32 %v1578_v14, %v1545_v52  ;;  %v1585_v39 = vadd.f32 %v1583_v38, %v1550_v25  ;;  %v1590_v19 = vadd.f32 %v1588_v5, %v1555_v51  ;;  %v1595_v18 = vadd.f32 %v1593_v32, %v1560_v17  ;;  %v1657_v14 = vpop.permute.xlu1 %1656  ;;  %s9761_s19 = sld [smem:[#allocation64_spill]] }
 0x266   : > { %v1623_v36 = vsel %vm974_vm12, %v1618_v22, 0.0  ;;  %v1518_v23 = vadd.f32 %v9678_v26, %v1498_v9  ;;  %v1523_v21 = vadd.f32 %v9679_v58, %v1503_v54  ;;  %v1528_v1 = vadd.f32 %v9680_v41, %v1508_v44  ;;  %s9767_s23 = sld [smem:[#allocation31_spill]] }
 0x267   : > { %v1600_v15 = vadd.f32 %v9681_v47, %v1580_v48  ;;  %v1605_v16 = vadd.f32 %v9682_v30, %v1585_v39  ;;  %v1610_v11 = vadd.f32 %v9683_v7, %v1590_v19  ;;  %v1615_v62 = vadd.f32 %v9684_v24, %v1595_v18 }
 0x268   : > { %v9685_v52 = vstv %s9674_s28  ;;  %v9686_v29 = vstv %s9675_s27  ;;  %v9687_v51 = vstv %s9676_s13  ;;  %v9688_v28 = vstv %s9677_s25 }
 0x269   : > { %v1626_v25 = vmul.f32 %v9685_v52, %v1623_v36  ;;  %v1631_v57 = vmul.f32 %v9686_v29, %v1623_v36  ;;  %v1636_v22 = vmul.f32 %v9687_v51, %v1623_v36  ;;  %v1641_v17 = vmul.f32 %v9688_v28, %v1623_v36  ;;  %v1705_v52 = vpop.permute.xlu1 %1704 }
 0x26a   : > { %v1533_v12 = vadd.f32 %v9689_v35, %v1513_v45  ;;  %v1546_v27 = vadd.f32 %v5978_v56, %v1518_v23  ;;  %v1551_v9 = vadd.f32 %v5982_v6, %v1523_v21  ;;  %v1556_v31 = vadd.f32 %v5986_v34, %v1528_v1  ;;  %v9702_v1 = vld [vmem:[#allocation163_spill] sm:$0xff] }
 0x26b   : > { %v1628_v54 = vadd.f32 %v1626_v25, %v1600_v15  ;;  %v1633_v55 = vadd.f32 %v1631_v57, %v1605_v16  ;;  %v1638_v44 = vadd.f32 %v1636_v22, %v1610_v11  ;;  %v1643_v8 = vadd.f32 %v1641_v17, %v1615_v62  ;;  %v9703_v15 = vld [vmem:[#allocation164_spill] sm:$0xff]  ;;  %v9704_v16 = vld [vmem:[#allocation165_spill] sm:$0xff]  ;;  %v9705_v11 = vld [vmem:[#allocation166_spill] sm:$0xff]  ;;  %v1779_v62 = vpop.permute.xlu0 %1778 }
 0x26c   : > { %v1561_v45 = vadd.f32 %v5990_v43, %v1533_v12  ;;  %v1576_v3 = vsel %vm925_vm11, 0.0, %v1572_v40  ;;  %v1660_v56 = vsel %vm925_vm11, 0.0, %v1655_v61  ;;  %v1624_v6 = vsel %vm974_vm12, %v1620_v42, 0.0  ;;  %v9713_v12 = vld [vmem:[#allocation167_spill] sm:$0xff] }
 0x26d   : > { %v9694_v38 = vstv %s9654_s18  ;;  %v9695_v34 = vstv %s9656_s12  ;;  %v9696_v46 = vstv %s9658_s9  ;;  %v9697_v50 = vstv %s9659_s15  ;;  %s6548_s18 = sld [smem:[#allocation7 + $0x1]] }
 0x26e   : > { %v1579_v53 = vmul.f32 %v9694_v38, %v1576_v3  ;;  %v1584_v5 = vmul.f32 %v9695_v34, %v1576_v3  ;;  %v1589_v32 = vmul.f32 %v9696_v46, %v1576_v3  ;;  %v1594_v33 = vmul.f32 %v9697_v50, %v1576_v3  ;;  %s6551_s12 = sld [smem:[#allocation7 + $0x25]] }
 0x26f   : > { %v9698_v37 = vstv %s9690_s2  ;;  %v9699_v48 = vstv %s9691_s6  ;;  %v9700_v19 = vstv %s9692_s3  ;;  %v9701_v18 = vstv %s9693_s11  ;;  %s6553_s9 = sld [smem:[#allocation7 + $0x49]] }
 0x270   : > { %v1663_v60 = vmul.f32 %v9698_v37, %v1660_v56  ;;  %v1668_v39 = vmul.f32 %v9699_v48, %v1660_v56  ;;  %v1673_v43 = vmul.f32 %v9700_v19, %v1660_v56  ;;  %v1678_v40 = vmul.f32 %v9701_v18, %v1660_v56  ;;  %s6556_s15 = sld [smem:[#allocation7 + $0x6d]] }
 0x271   : > { %v1581_v61 = vadd.f32 %v1579_v53, %v1546_v27  ;;  %v1586_v42 = vadd.f32 %v1584_v5, %v1551_v9  ;;  %v1591_v36 = vadd.f32 %v1589_v32, %v1556_v31  ;;  %v1596_v26 = vadd.f32 %v1594_v33, %v1561_v45  ;;  %v9715_v9 = vld [vmem:[#allocation168_spill] sm:$0xff] }
 0x272   : > { %v1665_v23 = vadd.f32 %v1663_v60, %v1628_v54  ;;  %v1670_v58 = vadd.f32 %v1668_v39, %v1633_v55  ;;  %v1675_v21 = vadd.f32 %v1673_v43, %v1638_v44  ;;  %v1680_v41 = vadd.f32 %v1678_v40, %v1643_v8  ;;  %v9716_v54 = vld [vmem:[#allocation169_spill] sm:$0xff]  ;;  %v9717_v44 = vld [vmem:[#allocation170_spill] sm:$0xff] }
 0x273   : > { %v1601_v47 = vadd.f32 %v9702_v1, %v1581_v61  ;;  %v1606_v30 = vadd.f32 %v9703_v15, %v1586_v42  ;;  %v1611_v7 = vadd.f32 %v9704_v16, %v1591_v36  ;;  %v1616_v24 = vadd.f32 %v9705_v11, %v1596_v26  ;;  %v1814_v36 = vpop.permute.xlu0 %1813  ;;  %v1781_v26 = vpop.permute.xlu1 %1780 }
 0x274   : > { %v9706_v25 = vstv %s9674_s28  ;;  %v9707_v57 = vstv %s9675_s27  ;;  %v9709_v22 = vstv %s9676_s13  ;;  %v9711_v17 = vstv %s9677_s25  ;;  %s6562_s28 = sld [smem:[#allocation7 + $0x70]] }
 0x275   : > { %v1627_v29 = vmul.f32 %v9706_v25, %v1624_v6  ;;  %v1632_v51 = vmul.f32 %v9707_v57, %v1624_v6  ;;  %v1637_v28 = vmul.f32 %v9709_v22, %v1624_v6  ;;  %v1642_v35 = vmul.f32 %v9711_v17, %v1624_v6  ;;  %v9734_v17 = vld [vmem:[#allocation171_spill] sm:$0xff]  ;;  %s6566_s27 = sld [smem:[#allocation7 + $0xd]] }
 0x276   : > { %v1685_v27 = vadd.f32 %v9713_v12, %v1665_v23  ;;  %v1690_v31 = vadd.f32 %v9715_v9, %v1670_v58  ;;  %v1695_v55 = vadd.f32 %v9716_v54, %v1675_v21  ;;  %v1700_v8 = vadd.f32 %v9717_v44, %v1680_v41  ;;  %v9735_v12 = vld [vmem:[#allocation172_spill] sm:$0xff]  ;;  %v9738_v9 = vld [vmem:[#allocation175_spill] sm:$0xff]  ;;  %v9740_v44 = vld [vmem:[#allocation177_spill] sm:$0xff]  ;;  %s6572_s13 = sld [smem:[#allocation7 + $0x7]] }
 0x277   : > { %v1629_v45 = vadd.f32 %v1627_v29, %v1601_v47  ;;  %v1634_v3 = vadd.f32 %v1632_v51, %v1606_v30  ;;  %v1639_v56 = vadd.f32 %v1637_v28, %v1611_v7  ;;  %v1644_v38 = vadd.f32 %v1642_v35, %v1616_v24  ;;  %v9739_v54 = vld [vmem:[#allocation176_spill] sm:$0xff]  ;;  %s6579_s25 = sld [smem:[#allocation7 + $0x2b]] }
 0x278   : > { %v1708_v53 = vsel %vm974_vm12, %v1703_v10, 0.0  ;;  %v1661_v6 = vsel %vm925_vm11, 0.0, %v1657_v14  ;;  %v1784_v34 = vsel %vm974_vm12, %v1779_v62, 0.0  ;;  %v1709_v5 = vsel %vm974_vm12, %v1705_v52, 0.0 }
 0x279   : > { %v9718_v46 = vstv %s9708_s29  ;;  %v9719_v50 = vstv %s9710_s1  ;;  %v9720_v37 = vstv %s9712_s22  ;;  %v9721_v48 = vstv %s9714_s16 }
 0x27a   : > { %v1711_v32 = vmul.f32 %v9718_v46, %v1708_v53  ;;  %v1716_v33 = vmul.f32 %v9719_v50, %v1708_v53  ;;  %v1721_v60 = vmul.f32 %v9720_v37, %v1708_v53  ;;  %v1726_v39 = vmul.f32 %v9721_v48, %v1708_v53 }
 0x27b   : > { %v9722_v19 = vstv %s9690_s2  ;;  %v9723_v18 = vstv %s9691_s6  ;;  %v9724_v61 = vstv %s9692_s3  ;;  %v9725_v42 = vstv %s9693_s11  ;;  %9787 = sst [smem:[#allocation33_spill]] %s6566_s27 }
 0x27c   : > { %v1664_v43 = vmul.f32 %v9722_v19, %v1661_v6  ;;  %v1669_v40 = vmul.f32 %v9723_v18, %v1661_v6  ;;  %v1674_v10 = vmul.f32 %v9724_v61, %v1661_v6  ;;  %v1679_v14 = vmul.f32 %v9725_v42, %v1661_v6  ;;  %9788 = sst [smem:[#allocation65_spill]] %s6572_s13 }
 0x27d   : > { %v1713_v23 = vadd.f32 %v1711_v32, %v1685_v27  ;;  %v1718_v58 = vadd.f32 %v1716_v33, %v1690_v31  ;;  %v1723_v21 = vadd.f32 %v1721_v60, %v1695_v55  ;;  %v1728_v41 = vadd.f32 %v1726_v39, %v1700_v8  ;;  %v9737_v27 = vld [vmem:[#allocation174_spill] sm:$0xff]  ;;  %9789 = sst [smem:[#allocation66_spill]] %s6579_s25 }
 0x27e   : > { %v1666_v1 = vadd.f32 %v1664_v43, %v1629_v45  ;;  %v1671_v47 = vadd.f32 %v1669_v40, %v1634_v3  ;;  %v1676_v15 = vadd.f32 %v1674_v10, %v1639_v56  ;;  %v1681_v30 = vadd.f32 %v1679_v14, %v1644_v38  ;;  %v9741_v45 = vld [vmem:[#allocation178_spill] sm:$0xff]  ;;  %v1862_v56 = vpop.permute.xlu0 %1861  ;;  %v1816_v38 = vpop.permute.xlu1 %1815  ;;  %s6584_s2 = sld [smem:[#allocation7 + $0x4f]] }
 0x27f   : > { %v1741_v16 = vadd.f32 %v6188_v2, %v1713_v23  ;;  %v1746_v7 = vadd.f32 %v6192_v63, %v1718_v58  ;;  %v1751_v11 = vadd.f32 %v6196_v49, %v1723_v21  ;;  %v1756_v24 = vadd.f32 %v6200_v0, %v1728_v41  ;;  %v9736_v63 = vld [vmem:[#allocation173_spill] sm:$0xff]  ;;  %s6594_s6 = sld [smem:[#allocation7 + $0x73]] }
 0x280   : > { %v9730_v62 = vstv %s9726_s21  ;;  %v9731_v25 = vstv %s9727_s14  ;;  %v9732_v57 = vstv %s9728_s17  ;;  %v9733_v22 = vstv %s9729_s5  ;;  %s6599_s3 = sld [smem:[#allocation7 + $0xa]] }
 0x281   : > { %v1787_v52 = vmul.f32 %v9730_v62, %v1784_v34  ;;  %v1792_v29 = vmul.f32 %v9731_v25, %v1784_v34  ;;  %v1797_v51 = vmul.f32 %v9732_v57, %v1784_v34  ;;  %v1802_v28 = vmul.f32 %v9733_v22, %v1784_v34  ;;  %v9754_v25 = vld [vmem:[#allocation179_spill] sm:$0xff]  ;;  %v9755_v57 = vld [vmem:[#allocation180_spill] sm:$0xff]  ;;  %v9756_v22 = vld [vmem:[#allocation181_spill] sm:$0xff]  ;;  %s6609_s11 = sld [smem:[#allocation7 + $0x2e]] }
 0x282   : > { %v1761_v35 = vadd.f32 %v9734_v17, %v1741_v16  ;;  %v1766_v2 = vadd.f32 %v9735_v12, %v1746_v7  ;;  %v1771_v49 = vadd.f32 %v9736_v63, %v1751_v11  ;;  %v1776_v0 = vadd.f32 %v9737_v27, %v1756_v24  ;;  %v9758_v17 = vld [vmem:[#allocation182_spill] sm:$0xff]  ;;  %v9765_v27 = vld [vmem:[#allocation183_spill] sm:$0xff] }
 0x283   : > { %v1686_v31 = vadd.f32 %v9738_v9, %v1666_v1  ;;  %v1691_v55 = vadd.f32 %v9739_v54, %v1671_v47  ;;  %v1696_v8 = vadd.f32 %v9740_v44, %v1676_v15  ;;  %v1701_v3 = vadd.f32 %v9741_v45, %v1681_v30  ;;  %v9766_v9 = vld [vmem:[#allocation184_spill] sm:$0xff]  ;;  %v9768_v54 = vld [vmem:[#allocation185_spill] sm:$0xff]  ;;  %v9769_v44 = vld [vmem:[#allocation186_spill] sm:$0xff] }
 0x284   : > { %v1789_v53 = vadd.f32 %v1787_v52, %v1761_v35  ;;  %v1794_v6 = vadd.f32 %v1792_v29, %v1766_v2  ;;  %v1799_v34 = vadd.f32 %v1797_v51, %v1771_v49  ;;  %v1804_v46 = vadd.f32 %v1802_v28, %v1776_v0  ;;  %9790 = sst [smem:[#allocation67_spill]] %s6584_s2 }
 0x285   : > { %v9745_v32 = vstv %s9708_s29  ;;  %v9747_v33 = vstv %s9710_s1  ;;  %v9748_v60 = vstv %s9712_s22  ;;  %v9749_v39 = vstv %s9714_s16  ;;  %9791 = sst [smem:[#allocation68_spill]] %s6594_s6 }
 0x286   : > { %v1712_v50 = vmul.f32 %v9745_v32, %v1709_v5  ;;  %v1717_v37 = vmul.f32 %v9747_v33, %v1709_v5  ;;  %v1722_v48 = vmul.f32 %v9748_v60, %v1709_v5  ;;  %v1727_v19 = vmul.f32 %v9749_v39, %v1709_v5  ;;  %s6614_s29 = sld [smem:[#allocation7 + $0x52]] }
 0x287   : > { %v1819_v43 = vsel %vm925_vm11, 0.0, %v1814_v36  ;;  %v1785_v18 = vsel %vm974_vm12, %v1781_v26, 0.0  ;;  %v1867_v40 = vsel %vm974_vm12, %v1862_v56, 0.0  ;;  %v1820_v61 = vsel %vm925_vm11, 0.0, %v1816_v38  ;;  %9793 = sst [smem:[#allocation69_spill]] %s6609_s11 }
 0x288   : > { %v1714_v10 = vadd.f32 %v1712_v50, %v1686_v31  ;;  %v1719_v42 = vadd.f32 %v1717_v37, %v1691_v55  ;;  %v1724_v14 = vadd.f32 %v1722_v48, %v1696_v8  ;;  %v1729_v23 = vadd.f32 %v1727_v19, %v1701_v3  ;;  %s6616_s1 = sld [smem:[#allocation7 + $0x76]] }
 0x289   : > { %v9750_v58 = vstv %s9742_s4  ;;  %v9751_v41 = vstv %s9743_s8  ;;  %v9752_v47 = vstv %s9744_s24  ;;  %v9753_v15 = vstv %s9746_s0  ;;  %s6622_s22 = sld [smem:[#allocation7 + $0x31]]  ;;  %s9805_s0 = smov 127  }
 0x28a   : > { %v1822_v21 = vmul.f32 %v9750_v58, %v1819_v43  ;;  %v1827_v1 = vmul.f32 %v9751_v41, %v1819_v43  ;;  %v1832_v5 = vmul.f32 %v9752_v47, %v1819_v43  ;;  %v1837_v36 = vmul.f32 %v9753_v15, %v1819_v43  ;;  %s6628_s16 = sld [smem:[#allocation7 + $0x55]] }
 0x28b   : > { %v1742_v26 = vadd.f32 %v6236_v20, %v1714_v10  ;;  %v1747_v30 = vadd.f32 %v6240_v13, %v1719_v42  ;;  %v1752_v16 = vadd.f32 %v6244_v4, %v1724_v14  ;;  %v1757_v7 = vadd.f32 %v6248_v59, %v1729_v23  ;;  %s6648_s4 = sld [smem:[#allocation7 + $0x58]] }
 0x28c   : > { %v1824_v11 = vadd.f32 %v1822_v21, %v1789_v53  ;;  %v1829_v24 = vadd.f32 %v1827_v1, %v1794_v6  ;;  %v1834_v62 = vadd.f32 %v1832_v5, %v1799_v34  ;;  %v1839_v52 = vadd.f32 %v1837_v36, %v1804_v46  ;;  %v9771_v34 = vld [vmem:[#allocation120_spill] sm:$0xff]  ;;  %9794 = sst [smem:[#allocation70_spill]] %s6614_s29 }
 0x28d   : > { %v1762_v29 = vadd.f32 %v9754_v25, %v1742_v26  ;;  %v1767_v51 = vadd.f32 %v9755_v57, %v1747_v30  ;;  %v1772_v28 = vadd.f32 %v9756_v22, %v1752_v16  ;;  %v1777_v20 = vadd.f32 %v9758_v17, %v1757_v7  ;;  %v1864_v16 = vpop.permute.xlu1 %1863  ;;  %v9782_v7 = vld [vmem:[#allocation187_spill] sm:$0xff]  ;;  %s6651_s8 = sld [smem:[#allocation7 + $0x7c]] }
 0x28e   : > { %v9760_v13 = vstv %s9726_s21  ;;  %v9762_v35 = vstv %s9727_s14  ;;  %v9763_v12 = vstv %s9728_s17  ;;  %v9764_v63 = vstv %s9729_s5  ;;  %9795 = sst [smem:[#allocation71_spill]] %s6616_s1  ;;  %s9800_s17 = smov 1  }
 0x28f   : > { %v1788_v4 = vmul.f32 %v9760_v13, %v1785_v18  ;;  %v1793_v59 = vmul.f32 %v9762_v35, %v1785_v18  ;;  %v1798_v2 = vmul.f32 %v9763_v12, %v1785_v18  ;;  %v1803_v49 = vmul.f32 %v9764_v63, %v1785_v18  ;;  %9796 = sst [smem:[#allocation72_spill]] %s6622_s22 }
 0x290   : > { %v1844_v0 = vadd.f32 %v9765_v27, %v1824_v11  ;;  %v1849_v31 = vadd.f32 %v9766_v9, %v1829_v24  ;;  %v1854_v55 = vadd.f32 %v9768_v54, %v1834_v62  ;;  %v1859_v8 = vadd.f32 %v9769_v44, %v1839_v52  ;;  %9797 = sst [smem:[#allocation73_spill]] %s6628_s16 }
 0x291   : > { %v1790_v45 = vadd.f32 %v1788_v4, %v1762_v29  ;;  %v1795_v3 = vadd.f32 %v1793_v59, %v1767_v51  ;;  %v1800_v56 = vadd.f32 %v1798_v2, %v1772_v28  ;;  %v1805_v38 = vadd.f32 %v1803_v49, %v1777_v20  ;;  %s6632_s21 = sld [smem:[#allocation7 + $0x79]] }
 0x292   : > { %v9770_v53 = vstv %s5712_s30  ;;  %v9772_v46 = vstv %s9757_s7  ;;  %v9773_v50 = vstv %s9759_s10  ;;  %v9774_v37 = vstv %s9761_s19  ;;  %s6539_s30 = sld [smem:[#allocation7 + $0x4c]] }
 0x293   : > { %v1885_v6 = vmul.f32 %v9770_v53, %v1867_v40  ;;  %v1848_v32 = vmul.f32 %v9772_v46, %v9771_v34  ;;  %v1853_v33 = vmul.f32 %v9773_v50, %v9771_v34  ;;  %v1858_v60 = vmul.f32 %v9774_v37, %v9771_v34  ;;  %s6634_s14 = sld [smem:[#allocation7 + $0x10]] }
 0x294   : > { %v9775_v48 = vmov %v9750_v58  ;;  %v9776_v19 = vmov %v9751_v41  ;;  %v9777_v18 = vmov %v9752_v47  ;;  %v9778_v42 = vmov %v9753_v15  ;;  %s6639_s5 = sld [smem:[#allocation7 + $0x34]] }
 0x295   : > { %v1823_v39 = vmul.f32 %v9775_v48, %v1820_v61  ;;  %v1828_v43 = vmul.f32 %v9776_v19, %v1820_v61  ;;  %v1833_v10 = vmul.f32 %v9777_v18, %v1820_v61  ;;  %v1838_v14 = vmul.f32 %v9778_v42, %v1820_v61  ;;  %9802 = sst [smem:[#allocation77_spill]] %s6648_s4 }
 0x296   : > { %v9779_v23 = vstv %s9767_s23  ;;  %v9780_v21 = vstv %s5688_s20  ;;  %v9781_v1 = vstv %s5703_s26  ;;  %v6411_v5 = vadd.f32 %v1885_v6, %v1859_v8  ;;  %s6531_s26 = sld [smem:[#allocation7 + $0x4]] }
 0x297   : > { %v1870_v58 = vmul.f32 %v9779_v23, %v1867_v40  ;;  %v1875_v41 = vmul.f32 %v9780_v21, %v1867_v40  ;;  %v1880_v47 = vmul.f32 %v9781_v1, %v1867_v40  ;;  %v1825_v15 = vadd.f32 %v1823_v39, %v1790_v45  ;;  %s6537_s20 = sld [smem:[#allocation7 + $0x28]] }
 0x298   : > { %v1830_v36 = vadd.f32 %v1828_v43, %v1795_v3  ;;  %v1835_v26 = vadd.f32 %v1833_v10, %v1800_v56  ;;  %v1840_v30 = vadd.f32 %v1838_v14, %v1805_v38  ;;  %v1868_v40 = vsel %vm974_vm12, %v1864_v16, 0.0  ;;  %9798 = sst [smem:[#allocation74_spill]] %s6632_s21 }
 0x299   : > { %v1845_v11 = vadd.f32 %v9782_v7, %v1825_v15  ;;  %v1872_v52 = vadd.f32 %v1870_v58, %v1844_v0  ;;  %v1877_v25 = vadd.f32 %v1875_v41, %v1849_v31  ;;  %v1882_v29 = vadd.f32 %v1880_v47, %v1854_v55  ;;  %9799 = sst [smem:[#allocation75_spill]] %s6634_s14 }
 0x29a   : > { %v1850_v61 = vadd.f32 %v1848_v32, %v1830_v36  ;;  %v1855_v24 = vadd.f32 %v1853_v33, %v1835_v26  ;;  %v1860_v62 = vadd.f32 %v1858_v60, %v1840_v30  ;;  %v9783_v57 = vmov %v9779_v23  ;;  %9801 = sst [smem:[#allocation76_spill]] %s6639_s5 }
 0x29b   : > { %v1871_v51 = vmul.f32 %v9783_v57, %v1868_v40  ;;  %v9784_v22 = vmov %v9780_v21  ;;  %v9785_v17 = vmov %v9781_v1  ;;  %v9786_v13 = vmov %v9770_v53  ;;  %9803 = sst [smem:[#allocation78_spill]] %s6651_s8 }
 0x29c   : > { %v1876_v28 = vmul.f32 %v9784_v22, %v1868_v40  ;;  %v1881_v20 = vmul.f32 %v9785_v17, %v1868_v40  ;;  %v1886_v4 = vmul.f32 %v9786_v13, %v1868_v40  ;;  %v1889_v63 = vsel %vm399_vm0, %v1872_v52, 0.0  ;;  %s6653_s24 = sld [smem:[#allocation7 + $0x13]] }
 0x29d   : > { %v1873_v35 = vadd.f32 %v1871_v51, %v1845_v11  ;;  %v1993_v49 = vsel %vm399_vm0, %v1877_v25, 0.0  ;;  %v2077_v27 = vsel %vm399_vm0, %v1882_v29, 0.0  ;;  %v2161_v0 = vsel %vm399_vm0, %v6411_v5, 0.0  ;;  %s6659_s7 = sld [smem:[#allocation7 + $0x37]] }
 0x29e   : > { %v1878_v59 = vadd.f32 %v1876_v28, %v1850_v61  ;;  %v1883_v12 = vadd.f32 %v1881_v20, %v1855_v24  ;;  %v1888_v2 = vadd.f32 %v1886_v4, %v1860_v62  ;;  %s6663_s10 = sld [smem:[#allocation7 + $0x5b]] }
 0x29f   : > { %v1890_v9 = vsel %vm399_vm0, %v1873_v35, 0.0  ;;  %s6670_s19 = sld [smem:[#allocation7 + $0x7f]] }
 0x2a0   : > { %v1994_v31 = vsel %vm399_vm0, %v1878_v59, 0.0  ;;  %v2078_v54 = vsel %vm399_vm0, %v1883_v12, 0.0  ;;  %v2162_v55 = vsel %vm399_vm0, %v1888_v2, 0.0  ;;  %v1891_v44 = vadd.f32 %v1890_v9, %v1889_v63  ;;  %s6676_s23 = sld [smem:[#allocation7 + $0x16]] }
 0x2a1   : > { %v1995_v8 = vadd.f32 %v1994_v31, %v1993_v49  ;;  %v2079_v45 = vadd.f32 %v2078_v54, %v2077_v27  ;;  %v2163_v3 = vadd.f32 %v2162_v55, %v2161_v0 }
 0x2a2   : > { %v1892_v56 = vrot.slane %v1891_v44, 4  ;;  %9804 = sst [smem:[#allocation79_spill]] %s6653_s24 }
 0x2a3   : > { %v1996_v38 = vrot.slane %v1995_v8, 4  ;;  %v2080_v53 = vrot.slane %v2079_v45, 4  ;;  %v2164_v6 = vrot.slane %v2163_v3, 4  ;;  %9806 = sst [smem:[#allocation80_spill]] %s6659_s7 }
 0x2a4   : > { %v1893_v34 = vadd.f32 %v1892_v56, %v1891_v44  ;;  %9807 = sst [smem:[#allocation85_spill]] %s6663_s10 }
 0x2a5   : > { %v1997_v46 = vadd.f32 %v1996_v38, %v1995_v8  ;;  %v2081_v32 = vadd.f32 %v2080_v53, %v2079_v45  ;;  %v2165_v50 = vadd.f32 %v2164_v6, %v2163_v3  ;;  %9808 = sst [smem:[#allocation86_spill]] %s6670_s19 }
 0x2a6   : > { %v1894_v33 = vrot.slane %v1893_v34, 2  ;;  %9809 = sst [smem:[#allocation87_spill]] %s6676_s23 }
 0x2a7   : > { %v1998_v37 = vrot.slane %v1997_v46, 2  ;;  %v2082_v60 = vrot.slane %v2081_v32, 2  ;;  %v2166_v48 = vrot.slane %v2165_v50, 2  ;;  %s6682_s10 = sld [smem:[#allocation7 + $0x3a]] }
 0x2a8   : > { %v1895_v39 = vadd.f32 %v1894_v33, %v1893_v34  ;;  %s6689_s23 = sld [smem:[#allocation7 + $0x5e]] }
 0x2a9   : > { %v1999_v19 = vadd.f32 %v1998_v37, %v1997_v46  ;;  %v2083_v43 = vadd.f32 %v2082_v60, %v2081_v32  ;;  %v2167_v18 = vadd.f32 %v2166_v48, %v2165_v50  ;;  %s6719_s19 = sld [smem:[#allocation7 + $0x61]] }
 0x2aa   : > { %v1896_v10 = vrot.slane %v1895_v39, 1  ;;  %s6777_s7 = sld [smem:[#allocation7 + $0x67]] }
 0x2ab   : > { %v2000_v42 = vrot.slane %v1999_v19, 1  ;;  %v2084_v14 = vrot.slane %v2083_v43, 1  ;;  %v2168_v23 = vrot.slane %v2167_v18, 1  ;;  %s6781_s24 = sld [smem:[#allocation7 + $0x22]] }
 0x2ac   : > { %v1897_v58 = vadd.f32 %v1896_v10, %v1895_v39 }
 0x2ad   : > { %v2001_v21 = vadd.f32 %v2000_v42, %v1999_v19  ;;  %v2085_v41 = vadd.f32 %v2084_v14, %v2083_v43  ;;  %v2169_v1 = vadd.f32 %v2168_v23, %v2167_v18  ;;  %9810 = sst [smem:[#allocation88_spill]] %s6682_s10 }
 0x2ae   : > { %v1898_v47 = vmul.f32 0.0625, %v1897_v58  ;;  %9811 = sst [smem:[#allocation81_spill]] %s6689_s23 }
 0x2af   : > { %v2002_v15 = vmul.f32 0.0625, %v2001_v21  ;;  %v2086_v36 = vmul.f32 0.0625, %v2085_v41  ;;  %v2170_v26 = vmul.f32 0.0625, %v2169_v1  ;;  %s6695_s10 = sld [smem:[#allocation7 + $0x82]] }
 0x2b0   : > { %v6432_v30 = vsub.f32 %v1873_v35, %v1898_v47  ;;  %v6440_v61 = vsub.f32 %v1872_v52, %v1898_v47  ;;  %v1920_v47 = vpop.permute.xlu0 %1919  ;;  %s6708_s23 = sld [smem:[#allocation7 + $0x19]] }
 0x2b1   : > { %v6434_v16 = vsub.f32 %v1878_v59, %v2002_v15  ;;  %v6436_v7 = vsub.f32 %v1883_v12, %v2086_v36  ;;  %v6438_v11 = vsub.f32 %v1888_v2, %v2170_v26  ;;  %v6442_v24 = vsub.f32 %v1877_v25, %v2002_v15  ;;  %9815 = sst [smem:[#allocation91_spill]] %s6719_s19 }
 0x2b2   : > { %v6444_v62 = vsub.f32 %v1882_v29, %v2086_v36  ;;  %v6447_v40 = vsub.f32 %v6411_v5, %v2170_v26  ;;  %v1902_v57 = vmul.f32 %v6432_v30, %v6432_v30  ;;  %v1901_v25 = vmul.f32 %v6440_v61, %v6440_v61  ;;  %s6737_s19 = sld [smem:[#allocation7 + $0x1c]] }
 0x2b3   : > { %v2006_v51 = vmul.f32 %v6434_v16, %v6434_v16  ;;  %v2090_v22 = vmul.f32 %v6436_v7, %v6436_v7  ;;  %v2174_v52 = vmul.f32 %v6438_v11, %v6438_v11  ;;  %v2005_v29 = vmul.f32 %v6442_v24, %v6442_v24  ;;  %9823 = sst [smem:[#allocation97_spill]] %s6777_s7 }
 0x2b4   : > { %v2089_v5 = vmul.f32 %v6444_v62, %v6444_v62  ;;  %v2173_v28 = vmul.f32 %v6447_v40, %v6447_v40  ;;  %v1904_v17 = vsel %vm399_vm0, %v1902_v57, 0.0  ;;  %v1903_v35 = vsel %vm399_vm0, %v1901_v25, 0.0  ;;  %9825 = sst [smem:[#allocation99_spill]] %s6781_s24 }
 0x2b5   : > { %v2008_v20 = vsel %vm399_vm0, %v2006_v51, 0.0  ;;  %v2092_v13 = vsel %vm399_vm0, %v2090_v22, 0.0  ;;  %v2176_v4 = vsel %vm399_vm0, %v2174_v52, 0.0  ;;  %v2007_v59 = vsel %vm399_vm0, %v2005_v29, 0.0  ;;  %9812 = sst [smem:[#allocation82_spill]] %s6695_s10 }
 0x2b6   : > { %v2091_v12 = vsel %vm399_vm0, %v2089_v5, 0.0  ;;  %v2175_v2 = vsel %vm399_vm0, %v2173_v28, 0.0  ;;  %v1905_v63 = vadd.f32 %v1904_v17, %v1903_v35  ;;  %v2009_v49 = vadd.f32 %v2008_v20, %v2007_v59  ;;  %v1925_v28 = vpop.permute.xlu1 %1924  ;;  %9813 = sst [smem:[#allocation89_spill]] %s6708_s23 }
 0x2b7   : > { %v2093_v27 = vadd.f32 %v2092_v13, %v2091_v12  ;;  %v2177_v0 = vadd.f32 %v2176_v4, %v2175_v2  ;;  %v1932_v4 = vpop.permute.xlu0 %1931  ;;  %s6713_s10 = sld [smem:[#allocation7 + $0x3d]] }
 0x2b8   : > { %v1906_v9 = vrot.slane %v1905_v63, 4  ;;  %v2010_v31 = vrot.slane %v2009_v49, 4  ;;  %s6725_s23 = sld [smem:[#allocation7 + $0x85]] }
 0x2b9   : > { %v2094_v54 = vrot.slane %v2093_v27, 4  ;;  %v2178_v55 = vrot.slane %v2177_v0, 4  ;;  %9817 = sst [smem:[#allocation84_spill]] %s6737_s19 }
 0x2ba   : > { %v1907_v44 = vadd.f32 %v1906_v9, %v1905_v63  ;;  %v2011_v8 = vadd.f32 %v2010_v31, %v2009_v49  ;;  %v6499_v63 = vpop.permute.xlu1 %1936  ;;  %s6762_s19 = sld [smem:[#allocation7 + $0x88]] }
 0x2bb   : > { %v2095_v45 = vadd.f32 %v2094_v54, %v2093_v27  ;;  %v2179_v3 = vadd.f32 %v2178_v55, %v2177_v0  ;;  %s6793_s7 = sld [smem:[#allocation7 + $0x8e]] }
 0x2bc   : > { %v1908_v56 = vrot.slane %v1907_v44, 2  ;;  %v2012_v38 = vrot.slane %v2011_v8, 2  ;;  %s6800_s24 = sld [smem:[#allocation7 + $0x27]] }
 0x2bd   : > { %v2096_v53 = vrot.slane %v2095_v45, 2  ;;  %v2180_v6 = vrot.slane %v2179_v3, 2  ;;  %9814 = sst [smem:[#allocation90_spill]] %s6713_s10 }
 0x2be   : > { %v1909_v34 = vadd.f32 %v1908_v56, %v1907_v44  ;;  %v2013_v46 = vadd.f32 %v2012_v38, %v2011_v8  ;;  %9816 = sst [smem:[#allocation83_spill]] %s6725_s23 }
 0x2bf   : > { %v2097_v32 = vadd.f32 %v2096_v53, %v2095_v45  ;;  %v2181_v50 = vadd.f32 %v2180_v6, %v2179_v3  ;;  %s6745_s23 = sld [smem:[#allocation7 + $0x40]] }
 0x2c0   : > { %v1910_v33 = vrot.slane %v1909_v34, 1  ;;  %v2014_v37 = vrot.slane %v2013_v46, 1  ;;  %s6749_s10 = sld [smem:[#allocation7 + $0x64]] }
 0x2c1   : > { %v2098_v60 = vrot.slane %v2097_v32, 1  ;;  %v2182_v48 = vrot.slane %v2181_v50, 1  ;;  %9820 = sst [smem:[#allocation94_spill]] %s6762_s19 }
 0x2c2   : > { %v1911_v39 = vadd.f32 %v1910_v33, %v1909_v34  ;;  %v2015_v19 = vadd.f32 %v2014_v37, %v2013_v46  ;;  %s6779_s19 = sld [smem:[#allocation7 + $0x8b]] }
 0x2c3   : > { %v2099_v43 = vadd.f32 %v2098_v60, %v2097_v32  ;;  %v2183_v18 = vadd.f32 %v2182_v48, %v2181_v50  ;;  %9828 = sst [smem:[#allocation102_spill]] %s6793_s7 }
 0x2c4   : > { %v1912_v10 = vmul.f32 0.0625, %v1911_v39  ;;  %v2016_v42 = vmul.f32 0.0625, %v2015_v19  ;;  %9830 = sst [smem:[#allocation104_spill]] %s6800_s24 }
 0x2c5   : > { %v2100_v14 = vmul.f32 0.0625, %v2099_v43  ;;  %v2184_v23 = vmul.f32 0.0625, %v2183_v18  ;;  %9818 = sst [smem:[#allocation92_spill]] %s6745_s23 }
 0x2c6   : > { %v1913_v58 = vadd.f32 1e-05, %v1912_v10  ;;  %v2017_v21 = vadd.f32 1e-05, %v2016_v42  ;;  %9819 = sst [smem:[#allocation93_spill]] %s6749_s10 }
 0x2c7   : > { %v2101_v41 = vadd.f32 1e-05, %v2100_v14  ;;  %v2185_v1 = vadd.f32 1e-05, %v2184_v23  ;;  %s6768_s10 = sld [smem:[#allocation7 + $0x1f]] }
 0x2c8   : > { %3989 = vrsqrt.f32 %v1913_v58  ;;  %s6773_s23 = sld [smem:[#allocation7 + $0x43]] }
 0x2c9   : > { %3991 = vrsqrt.f32 %v2017_v21  ;;  %9824 = sst [smem:[#allocation98_spill]] %s6779_s19 }
 0x2ca   : > { %3993 = vrsqrt.f32 %v2101_v41  ;;  %s6796_s19 = sld [smem:[#allocation7 + $0x3]] }
 0x2cb   : > { %3995 = vrsqrt.f32 %v2185_v1  ;;  %s6809_s7 = sld [smem:[#allocation7 + $0x5]] }
 0x2cc   : > { %s6818_s24 = sld [smem:[#allocation7 + $0x4d]] }
 0x2cd   : > { %9821 = sst [smem:[#allocation95_spill]] %s6768_s10 }
 0x2ce   : > { %9822 = sst [smem:[#allocation96_spill]] %s6773_s23 }
 0x2cf   : > { %s6786_s10 = sld [smem:[#allocation7 + $0x46]] }
 0x2d0   : > { %s6790_s23 = sld [smem:[#allocation7 + $0x6a]] }
 0x2d1   : > { %9829 = sst [smem:[#allocation103_spill]] %s6796_s19 }
 0x2d2   : > { %9833 = sst [smem:[#allocation107_spill]] %s6809_s7 }
 0x2d3   : > { %s6813_s19 = sld [smem:[#allocation7 + $0x29]] }
 0x2d4   : > { %9835 = sst [smem:[#allocation109_spill]] %s6818_s24 }
 0x2d5   : > { %v3990_v15 = vpop.eup %3989  ;;  %9826 = sst [smem:[#allocation100_spill]] %s6786_s10 }
 0x2d6   : > { %v3992_v36 = vpop.eup %3991  ;;  %v1915_v26 = vmul.f32 %v3990_v15, %v6440_v61  ;;  %v1916_v57 = vmul.f32 %v3990_v15, %v6432_v30  ;;  %9827 = sst [smem:[#allocation101_spill]] %s6790_s23 }
 0x2d7   : > { %v3994_v51 = vpop.eup %3993  ;;  %v2019_v22 = vmul.f32 %v3992_v36, %v6442_v24  ;;  %v2020_v52 = vmul.f32 %v3992_v36, %v6434_v16  ;;  %s6805_s23 = sld [smem:[#allocation7 + $0x4b]] }
 0x2d8   : > { %v3996_v25 = vpop.eup %3995  ;;  %v1927_v29 = vmul.f32 %v1920_v47, %v1915_v26  ;;  %v2103_v5 = vmul.f32 %v3994_v51, %v6444_v62  ;;  %v2104_v17 = vmul.f32 %v3994_v51, %v6436_v7  ;;  %v1928_v16 = vmul.f32 %v1925_v28, %v1916_v57  ;;  %s6807_s10 = sld [smem:[#allocation7 + $0x6f]] }
 0x2d9   : > { %v2021_v20 = vmul.f32 %v2019_v22, %v1920_v47  ;;  %v2187_v13 = vmul.f32 %v3996_v25, %v6447_v40  ;;  %v2188_v61 = vmul.f32 %v3996_v25, %v6438_v11  ;;  %v2022_v54 = vmul.f32 %v2020_v52, %v1925_v28  ;;  %9834 = sst [smem:[#allocation108_spill]] %s6813_s19 }
 0x2da   : > { %v2105_v35 = vmul.f32 %v2103_v5, %v1920_v47  ;;  %v6481_v30 = vadd.f32 %v1932_v4, %v1927_v29  ;;  %v6503_v27 = vadd.f32 %v6499_v63, %v1928_v16  ;;  %v2106_v38 = vmul.f32 %v2104_v17, %v1925_v28  ;;  %s6824_s7 = sld [smem:[#allocation7 + $0xc]] }
 0x2db   : > { %v2189_v59 = vmul.f32 %v2187_v13, %v1920_v47  ;;  %v6483_v24 = vadd.f32 %v2021_v20, %v1932_v4  ;;  %v6485_v12 = vmul.f32 %v2188_v61, %v1925_v28  ;;  %v6510_v56 = vadd.f32 %v2022_v54, %v6499_v63  ;;  %s6832_s19 = sld [smem:[#allocation7 + $0x54]] }
 0x2dc   : > { %v6488_v62 = vmul.f32 0.70710677, %v6481_v30  ;;  %v6490_v2 = vadd.f32 %v2105_v35, %v1932_v4  ;;  %v6507_v45 = vmul.f32 0.70710677, %v6503_v27  ;;  %v6517_v32 = vadd.f32 %v2106_v38, %v6499_v63  ;;  %s6834_s24 = sld [smem:[#allocation7 + $0x78]] }
 0x2dd   : > { %v6493_v7 = vmul.f32 0.70710677, %v6483_v24  ;;  %v6514_v34 = vmul.f32 0.70710677, %v6510_v56  ;;  %v6523_v39 = vadd.f32 %v2189_v59, %v1932_v4  ;;  %9831 = sst [smem:[#allocation105_spill]] %s6805_s23 }
 0x2de   : > { %v1949_v40 = vand.u32 2147483647, %v6488_v62  ;;  %v6497_v11 = vmul.f32 0.70710677, %v6490_v2  ;;  %v1950_v53 = vand.u32 2147483647, %v6507_v45 }
 0x2df   : > { %v2033_v49 = vand.u32 2147483647, %v6493_v7  ;;  %v2034_v37 = vand.u32 2147483647, %v6514_v34  ;;  %v6521_v60 = vmul.f32 0.70710677, %v6517_v32 }
 0x2e0   : > { %v1951_v0 = vmul.f32 0.3275911, %v1949_v40  ;;  %v2117_v31 = vand.u32 2147483647, %v6497_v11  ;;  %v1952_v6 = vmul.f32 0.3275911, %v1950_v53 }
 0x2e1   : > { %v2035_v9 = vmul.f32 0.3275911, %v2033_v49  ;;  %v1975_v46 = vsub.f32 0.0, %v1949_v40  ;;  %v2059_v50 = vsub.f32 0.0, %v2033_v49  ;;  %v2036_v19 = vmul.f32 0.3275911, %v2034_v37 }
 0x2e2   : > { %v1953_v55 = vadd.f32 1.0, %v1951_v0  ;;  %v2119_v8 = vmul.f32 0.3275911, %v2117_v31  ;;  %v1954_v33 = vadd.f32 1.0, %v1952_v6  ;;  %v2143_v48 = vsub.f32 0.0, %v2117_v31  ;;  %9832 = sst [smem:[#allocation106_spill]] %s6807_s10 }
 0x2e3   : > { %v2037_v44 = vadd.f32 1.0, %v2035_v9  ;;  %v1977_v43 = vmul.f32 %v1975_v46, %v1949_v40  ;;  %v2118_v18 = vand.u32 2147483647, %v6521_v60  ;;  %v2061_v10 = vmul.f32 %v2059_v50, %v2033_v49  ;;  %s6821_s23 = sld [smem:[#allocation7 + $0x71]] }
 0x2e4   : > { %3997 = vrcp.f32 %v1953_v55  ;;  %v2121_v3 = vadd.f32 1.0, %v2119_v8  ;;  %v2038_v42 = vadd.f32 1.0, %v2036_v19  ;;  %v2145_v58 = vmul.f32 %v2143_v48, %v2117_v31  ;;  %9837 = sst [smem:[#allocation55_spill]] %s6824_s7 }
 0x2e5   : > { %3999 = vrcp.f32 %v2037_v44  ;;  %v2120_v14 = vmul.f32 0.3275911, %v2118_v18  ;;  %v6529_v21 = vmul.f32 0.70710677, %v6523_v39  ;;  %v1979_v47 = vmul.f32 1.442695, %v1977_v43 }
 0x2e6   : > { %4001 = vrcp.f32 %v2121_v3  ;;  %v1976_v15 = vsub.f32 0.0, %v1950_v53  ;;  %v2063_v57 = vmul.f32 1.442695, %v2061_v10  ;;  %v2147_v25 = vmul.f32 1.442695, %v2145_v58  ;;  %s6828_s10 = sld [smem:[#allocation7 + $0x30]] }
 0x2e7   : > { %4003 = vrcp.f32 %v1954_v33  ;;  %v2122_v36 = vadd.f32 1.0, %v2120_v14  ;;  %v6544_v29 = vand.u32 2147483647, %v6529_v21  ;;  %v2060_v13 = vsub.f32 0.0, %v2034_v37  ;;  %9839 = sst [smem:[#allocation57_spill]] %s6832_s19 }
 0x2e8   : > { %4005 = vrcp.f32 %v2038_v42  ;;  %v1978_v17 = vmul.f32 %v1976_v15, %v1950_v53  ;;  %v2144_v9 = vsub.f32 0.0, %v2118_v18  ;;  %v6570_v3 = vadd.f32 %v6485_v12, %v6499_v63  ;;  %9840 = sst [smem:[#allocation111_spill]] %s6834_s24 }
 0x2e9   : > { %4007 = vrcp.f32 %v2122_v36  ;;  %v2203_v59 = vmul.f32 0.3275911, %v6544_v29  ;;  %v2062_v55 = vmul.f32 %v2060_v13, %v2034_v37  ;;  %vm1945_vm13 = vcmp.lt.f32.partialorder %v6488_v62, 0.0  ;;  %9836 = sst [smem:[#allocation110_spill]] %s6821_s23 }
 0x2ea   : > { %4009 = vpow2.f32 %v1979_v47  ;;  %v1981_v0 = vmul.f32 1.442695, %v1978_v17  ;;  %v2146_v37 = vmul.f32 %v2144_v9, %v2118_v18  ;;  %v6587_v42 = vmul.f32 0.70710677, %v6570_v3  ;;  %s6841_s7 = sld [smem:[#allocation7 + $0xe]] }
 0x2eb   : > { %4011 = vpow2.f32 %v2063_v57  ;;  %v2205_v53 = vadd.f32 1.0, %v2203_v59  ;;  %v2065_v19 = vmul.f32 1.442695, %v2062_v55  ;;  %vm2029_vm14 = vcmp.lt.f32.partialorder %v6493_v7, 0.0  ;;  %s6850_s19 = sld [smem:[#allocation7 + $0x32]] }
 0x2ec   : > { %4013 = vpow2.f32 %v2147_v25  ;;  %vm2113_vm15 = vcmp.lt.f32.partialorder %v6497_v11, 0.0  ;;  %vm1946_vm1 = vcmp.lt.f32.partialorder %v6507_v45, 0.0  ;;  %vm2030_vm2 = vcmp.lt.f32.partialorder %v6514_v34, 0.0  ;;  %9838 = sst [smem:[#allocation56_spill]] %s6828_s10 }
 0x2ed   : > { %4015 = vpow2.f32 %v1981_v0  ;;  %v2025_v45 = vmul.f32 0.5, %v6483_v24  ;;  %v1942_v34 = vmul.f32 0.5, %v6503_v27  ;;  %vm2114_vm3 = vcmp.lt.f32.partialorder %v6521_v60, 0.0  ;;  %s6854_s24 = sld [smem:[#allocation7 + $0x56]] }
 0x2ee   : > { %4017 = vpow2.f32 %v2065_v19  ;;  %s6857_s10 = sld [smem:[#allocation7 + $0x7a]]  ;;  %vm2197_vm4 = vcmp.lt.f32.partialorder %v6529_v21, 0.0  ;;  %vm2198_vm5 = vcmp.lt.f32.partialorder %v6587_v42, 0.0 }
 0x2ef   : > { %s6864_s23 = sld [smem:[#allocation7 + $0x39]] }
 0x2f0   : > { %9841 = sst [smem:[#allocation112_spill]] %s6841_s7 }
 0x2f1   : > { %v6526_v23 = vpop.eup %3997  ;;  %9842 = sst [smem:[#allocation113_spill]] %s6850_s19 }
 0x2f2   : > { %v6533_v41 = vpop.eup %3999  ;;  %v1957_v1 = vmul.f32 1.0614054, %v6526_v23  ;;  %s6860_s7 = sld [smem:[#allocation7 + $0x15]] }
 0x2f3   : > { %v2041_v26 = vmul.f32 1.0614054, %v6533_v41  ;;  %v6541_v22 = vpop.eup %4001  ;;  %9843 = sst [smem:[#allocation114_spill]] %s6854_s24 }
 0x2f4   : > { %v3686_v51 = vadd.f32 -1.4531521, %v1957_v1  ;;  %v2125_v28 = vmul.f32 1.0614054, %v6541_v22  ;;  %v6558_v16 = vpop.eup %4003  ;;  %9844 = sst [smem:[#allocation115_spill]] %s6857_s10 }
 0x2f5   : > { %v3690_v52 = vadd.f32 -1.4531521, %v2041_v26  ;;  %v1958_v54 = vmul.f32 1.0614054, %v6558_v16  ;;  %v6575_v46 = vpop.eup %4005  ;;  %v2149_v26 = vmul.f32 1.442695, %v2146_v37 }
 0x2f6   : > { %v1961_v5 = vmul.f32 %v6526_v23, %v3686_v51  ;;  %v3694_v61 = vadd.f32 -1.4531521, %v2125_v28  ;;  %v2042_v48 = vmul.f32 1.0614054, %v6575_v46  ;;  %v6589_v14 = vpop.eup %4007  ;;  %v9792_v28 = vmov 1.0   ;;  %9846 = sst [smem:[#allocation119_spill]] %s6864_s23 }
 0x2f7   : > { %v2045_v20 = vmul.f32 %v6533_v41, %v3690_v52  ;;  %v3687_v6 = vadd.f32 -1.4531521, %v1958_v54  ;;  %v2126_v36 = vmul.f32 1.0614054, %v6589_v14  ;;  %v4010_v57 = vpop.eup %4009  ;;  %4019 = vpow2.f32 %v2149_v26  ;;  %s6868_s19 = sld [smem:[#allocation7 + $0x5d]] }
 0x2f8   : > { %v1963_v4 = vadd.f32 1.4214138, %v1961_v5  ;;  %v2129_v49 = vmul.f32 %v6541_v22, %v3694_v61  ;;  %v3691_v1 = vadd.f32 -1.4531521, %v2042_v48  ;;  %v4012_v5 = vpop.eup %4011  ;;  %4021 = vrcp.f32 %v2205_v53  ;;  %9845 = sst [smem:[#allocation116_spill]] %s6860_s7 }
 0x2f9   : > { %v2047_v35 = vadd.f32 1.4214138, %v2045_v20  ;;  %v1962_v63 = vmul.f32 %v6558_v16, %v3687_v6  ;;  %v3695_v13 = vadd.f32 -1.4531521, %v2126_v36  ;;  %v4014_v59 = vpop.eup %4013  ;;  %v1941_v6 = vmul.f32 0.5, %v6481_v30  ;;  %s6870_s24 = sld [smem:[#allocation7 + $0x81]] }
 0x2fa   : > { %v1965_v40 = vmul.f32 %v6526_v23, %v1963_v4  ;;  %v2131_v8 = vadd.f32 1.4214138, %v2129_v49  ;;  %v2046_v25 = vmul.f32 %v6575_v46, %v3691_v1  ;;  %v2031_v53 = vsel %vm2029_vm14, -1.0, %v9792_v28  ;;  %s6872_s10 = sld [smem:[#allocation7]] }
 0x2fb   : > { %v2049_v31 = vmul.f32 %v6533_v41, %v2047_v35  ;;  %v1964_v18 = vadd.f32 1.4214138, %v1962_v63  ;;  %v2130_v0 = vmul.f32 %v6589_v14, %v3695_v13  ;;  %v1948_v1 = vsel %vm1946_vm1, -1.0, %v9792_v28  ;;  %s6876_s7 = sld [smem:[#allocation7 + $0x24]] }
 0x2fc   : > { %v3688_v44 = vadd.f32 -0.28449672, %v1965_v40  ;;  %v2133_v33 = vmul.f32 %v6541_v22, %v2131_v8  ;;  %v2048_v35 = vadd.f32 1.4214138, %v2046_v25  ;;  %s6880_s23 = sld [smem:[#allocation7 + $0x48]] }
 0x2fd   : > { %v3692_v38 = vadd.f32 -0.28449672, %v2049_v31  ;;  %v1966_v52 = vmul.f32 %v6558_v16, %v1964_v18  ;;  %9847 = sst [smem:[#allocation30_spill]] %s6868_s19 }
 0x2fe   : > { %v1969_v50 = vmul.f32 %v6526_v23, %v3688_v44  ;;  %v3696_v10 = vadd.f32 -0.28449672, %v2133_v33  ;;  %v2050_v9 = vmul.f32 %v6575_v46, %v2048_v35  ;;  %v2132_v44 = vadd.f32 1.4214138, %v2130_v0  ;;  %v4016_v33 = vpop.eup %4015  ;;  %s6883_s19 = sld [smem:[#allocation7 + $0x6c]] }
 0x2ff   : > { %v2053_v12 = vmul.f32 %v6533_v41, %v3692_v38  ;;  %v3689_v61 = vadd.f32 -0.28449672, %v1966_v52  ;;  %v4018_v36 = vpop.eup %4017  ;;  %v2116_v0 = vsel %vm2114_vm3, -1.0, %v9792_v28  ;;  %9848 = sst [smem:[#allocation32_spill]] %s6870_s24 }
 0x300   : > { %v1971_v43 = vadd.f32 0.2548296, %v1969_v50  ;;  %v2137_v15 = vmul.f32 %v6541_v22, %v3696_v10  ;;  %v3693_v8 = vadd.f32 -0.28449672, %v2050_v9  ;;  %v2134_v50 = vmul.f32 %v6589_v14, %v2132_v44  ;;  %9849 = sst [smem:[#allocation25_spill]] %s6872_s10 }
 0x301   : > { %v2055_v58 = vadd.f32 0.2548296, %v2053_v12  ;;  %v1970_v62 = vmul.f32 %v6558_v16, %v3689_v61  ;;  %9850 = sst [smem:[#allocation26_spill]] %s6876_s7 }
 0x302   : > { %v1973_v47 = vmul.f32 %v6526_v23, %v1971_v43  ;;  %v1947_v23 = vsel %vm1945_vm13, -1.0, %v9792_v28  ;;  %v2139_v20 = vadd.f32 0.2548296, %v2137_v15  ;;  %v2054_v12 = vmul.f32 %v6575_v46, %v3693_v8  ;;  %9851 = sst [smem:[#allocation27_spill]] %s6880_s23 }
 0x303   : > { %v2057_v51 = vmul.f32 %v6533_v41, %v2055_v58  ;;  %v6605_v41 = vand.u32 2147483647, %v6587_v42  ;;  %v3697_v19 = vadd.f32 -0.28449672, %v2134_v50  ;;  %s6886_s24 = sld [smem:[#allocation8]]  ;;  %v2439_v42 = vstv %s6551_s12 }
 0x304   : > { %v1983_v17 = vmul.f32 %v4010_v57, %v1973_v47  ;;  %v2141_v49 = vmul.f32 %v6541_v22, %v2139_v20  ;;  %v1972_v22 = vadd.f32 0.2548296, %v1970_v62  ;;  %v2056_v10 = vadd.f32 0.2548296, %v2054_v12  ;;  %9852 = sst [smem:[#allocation28_spill]] %s6883_s19 }
 0x305   : > { %v2067_v4 = vmul.f32 %v4012_v5, %v2057_v51  ;;  %v2204_v38 = vmul.f32 0.3275911, %v6605_v41  ;;  %v2138_v18 = vmul.f32 %v6589_v14, %v3697_v19  ;;  %s6890_s10 = sld [smem:[#allocation8 + $0x1]] }
 0x306   : > { %v1985_v40 = vsub.f32 1.0, %v1983_v17  ;;  %v2151_v55 = vmul.f32 %v4014_v59, %v2141_v49  ;;  %v1974_v37 = vmul.f32 %v6558_v16, %v1972_v22  ;;  %v2115_v16 = vsel %vm2113_vm15, -1.0, %v9792_v28  ;;  %s6895_s23 = sld [smem:[#allocation8 + $0x2]] }
 0x307   : > { %v2069_v54 = vsub.f32 1.0, %v2067_v4  ;;  %v2206_v58 = vadd.f32 1.0, %v2204_v38  ;;  %v2058_v15 = vmul.f32 %v6575_v46, %v2056_v10  ;;  %v2140_v51 = vadd.f32 0.2548296, %v2138_v18  ;;  %v4020_v46 = vpop.eup %4019  ;;  %s6897_s7 = sld [smem:[#allocation8 + $0x3]] }
 0x308   : > { %v1987_v31 = vmul.f32 %v1985_v40, %v1947_v23  ;;  %v2153_v48 = vsub.f32 1.0, %v2151_v55  ;;  %v1984_v43 = vmul.f32 %v4016_v33, %v1974_v37  ;;  %v2032_v23 = vsel %vm2030_vm2, -1.0, %v9792_v28  ;;  %v6665_v20 = vpop.eup %4021  ;;  %s7130_s12 = sld [smem:[#allocation7 + $0x35]] }
 0x309   : > { %v2071_v30 = vmul.f32 %v2069_v54, %v2031_v53  ;;  %v2068_v11 = vmul.f32 %v4018_v36, %v2058_v15  ;;  %4023 = vrcp.f32 %v2206_v58  ;;  %v2142_v25 = vmul.f32 %v6589_v14, %v2140_v51  ;;  %9853 = sst [smem:[#allocation34_spill]] %s6886_s24 }
 0x30a   : > { %v1989_v7 = vadd.f32 1.0, %v1987_v31  ;;  %v1986_v47 = vsub.f32 1.0, %v1984_v43  ;;  %v2155_v57 = vmul.f32 %v2153_v48, %v2115_v16  ;;  %v2109_v59 = vmul.f32 0.5, %v6490_v2  ;;  %s6904_s24 = sld [smem:[#allocation7 + $0x2]] }
 0x30b   : > { %v2073_v26 = vadd.f32 1.0, %v2071_v30  ;;  %v2070_v17 = vsub.f32 1.0, %v2068_v11  ;;  %v2152_v14 = vmul.f32 %v4020_v46, %v2142_v25  ;;  %v2026_v40 = vmul.f32 0.5, %v6510_v56  ;;  %9854 = sst [smem:[#allocation35_spill]] %s6890_s10 }
 0x30c   : > { %v6630_v63 = vmul.f32 %v1989_v7, %v1941_v6  ;;  %v1988_v52 = vmul.f32 %v1986_v47, %v1948_v1  ;;  %v2157_v24 = vadd.f32 1.0, %v2155_v57  ;;  %v2209_v56 = vmul.f32 1.0614054, %v6665_v20  ;;  %9855 = sst [smem:[#allocation36_spill]] %s6895_s23 }
 0x30d   : > { %v6667_v13 = vmul.f32 %v2073_v26, %v2025_v45  ;;  %v2072_v61 = vmul.f32 %v2070_v17, %v2032_v23  ;;  %v2154_v49 = vsub.f32 1.0, %v2152_v14  ;;  %v2110_v38 = vmul.f32 0.5, %v6517_v32  ;;  %9856 = sst [smem:[#allocation37_spill]] %s6897_s7 }
 0x30e   : > { %2482 = vrot.lane.b32.xlu0 %v6630_v63, %s9800_s17  ;;  %v1990_v5 = vadd.f32 1.0, %v1988_v52  ;;  %v2399_v27 = vrot.slane %v6630_v63, 7  ;;  %v2558_v35 = vrot.slane %v6630_v63, 1  ;;  %v6691_v2 = vmul.f32 %v2157_v24, %v2109_v59  ;;  %s6913_s7 = sld [smem:[#allocation7 + $0x26]] }
 0x30f   : > { %v2074_v60 = vadd.f32 1.0, %v2072_v61  ;;  %v2156_v31 = vmul.f32 %v2154_v49, %v2116_v0  ;;  %v2643_v54 = vrot.slane %v6667_v13, 7  ;;  %v2802_v8 = vrot.slane %v6667_v13, 1  ;;  %s6917_s23 = sld [smem:[#allocation7 + $0x4a]] }
 0x310   : > { %v6672_v4 = vmul.f32 %v1990_v5, %v1942_v34  ;;  %v3698_v50 = vadd.f32 -1.4531521, %v2209_v56  ;;  %v2887_v32 = vrot.slane %v6691_v2, 7  ;;  %v3046_v37 = vrot.slane %v6691_v2, 1  ;;  %9857 = sst [smem:[#allocation38_spill]] %s6904_s24 }
 0x311   : > { %v6697_v55 = vmul.f32 %v2074_v60, %v2026_v40  ;;  %v2158_v6 = vadd.f32 1.0, %v2156_v31  ;;  %v6766_v1 = vsel %vm911_vm7, 0.0, %v2399_v27  ;;  %v2227_v47 = vsub.f32 0.0, %v6544_v29  ;;  %s6919_s24 = sld [smem:[#allocation7 + $0x6e]] }
 0x312   : > { %2530 = vrot.lane.b32.xlu0 %v6630_v63, %s9805_s0  ;;  %2484 = vrot.lane.b32.xlu1 %v6672_v4, %s9800_s17  ;;  %v2400_v62 = vrot.slane %v6672_v4, 7  ;;  %v2559_v9 = vrot.slane %v6672_v4, 1  ;;  %v2213_v10 = vmul.f32 %v6665_v20, %v3698_v50  ;;  %v6839_v17 = vsel %vm911_vm7, 0.0, %v2643_v54  ;;  %s6922_s10 = sld [smem:[#allocation7 + $0x17]] }
 0x313   : > { %v2644_v7 = vrot.slane %v6697_v55, 7  ;;  %v2803_v53 = vrot.slane %v6697_v55, 1  ;;  %v6721_v33 = vmul.f32 %v2158_v6, %v2110_v38  ;;  %v2229_v26 = vmul.f32 %v2227_v47, %v6544_v29  ;;  %9934 = sst [smem:[#allocation213_spill]] %s7130_s12 }
 0x314   : > { %v6700_v44 = vsel %vm911_vm7, %v2399_v27, %v2400_v62  ;;  %v6705_v22 = vsel %vm1073_vm8, %v2558_v35, %v2559_v9  ;;  %v2215_v15 = vadd.f32 1.4214138, %v2213_v10  ;;  %v2228_v29 = vsub.f32 0.0, %v6605_v41  ;;  %9858 = sst [smem:[#allocation39_spill]] %s6913_s7 }
 0x315   : > { %v6730_v12 = vsel %vm911_vm7, %v2643_v54, %v2644_v7  ;;  %v6735_v30 = vsel %vm1073_vm8, %v2802_v8, %v2803_v53  ;;  %v2888_v19 = vrot.slane %v6721_v33, 7  ;;  %v3047_v43 = vrot.slane %v6721_v33, 1  ;;  %9859 = sst [smem:[#allocation40_spill]] %s6917_s23 }
 0x316   : > { %2726 = vrot.lane.b32.xlu0 %v6667_v13, %s9800_s17  ;;  %2532 = vrot.lane.b32.xlu1 %v6672_v4, %s9805_s0  ;;  %v6739_v48 = vpop.eup %4023  ;;  %v2217_v57 = vmul.f32 %v6665_v20, %v2215_v15  ;;  %v2231_v52 = vmul.f32 1.442695, %v2229_v26  ;;  %v2230_v25 = vmul.f32 %v2228_v29, %v6605_v41  ;;  %v6846_v24 = vsel %vm1073_vm8, %v2559_v9, 0.0  ;;  %s6927_s7 = sld [smem:[#allocation7 + $0x3b]] }
 0x317   : > { %v6755_v58 = vsel %vm911_vm7, %v2887_v32, %v2888_v19  ;;  %v6760_v18 = vsel %vm1073_vm8, %v3046_v37, %v3047_v43  ;;  %v2210_v16 = vmul.f32 1.0614054, %v6739_v48  ;;  %v2199_v49 = vsel %vm2197_vm4, -1.0, %v9792_v28  ;;  %9860 = sst [smem:[#allocation41_spill]] %s6919_s24 }
 0x318   : > { %v3700_v11 = vadd.f32 -0.28449672, %v2217_v57  ;;  %4025 = vpow2.f32 %v2231_v52  ;;  %v2233_v5 = vmul.f32 1.442695, %v2230_v25  ;;  %v6902_v62 = vsel %vm911_vm7, 0.0, %v2887_v32  ;;  %9861 = sst [smem:[#allocation42_spill]] %s6922_s10 }
 0x319   : > { %v3699_v36 = vadd.f32 -1.4531521, %v2210_v16  ;;  %v6909_v9 = vsel %vm1073_vm8, %v2803_v53, 0.0  ;;  %v2193_v54 = vmul.f32 0.5, %v6523_v39  ;;  %v2510_v8 = vstv %s6531_s26  ;;  %s6934_s24 = sld [smem:[#allocation7 + $0x5f]] }
 0x31a   : > { %2774 = vrot.lane.b32.xlu0 %v6667_v13, %s9805_s0  ;;  %2728 = vrot.lane.b32.xlu1 %v6697_v55, %s9800_s17  ;;  %v2221_v46 = vmul.f32 %v6665_v20, %v3700_v11  ;;  %4027 = vpow2.f32 %v2233_v5  ;;  %v2434_v38 = vstv %s6548_s18  ;;  %v2515_v6 = vstv %s6537_s20  ;;  %s6945_s10 = sld [smem:[#allocation7 + $0x6]] }
 0x31b   : > { %v2214_v51 = vmul.f32 %v6739_v48, %v3699_v36  ;;  %v2200_v7 = vsel %vm2198_vm5, -1.0, %v9792_v28  ;;  %v2444_v53 = vstv %s6553_s9  ;;  %v2520_v50 = vstv %s6539_s30  ;;  %s6963_s23 = sld [smem:[#allocation7 + $0x72]] }
 0x31c   : > { %v2223_v41 = vadd.f32 0.2548296, %v2221_v46  ;;  %9862 = sst [smem:[#allocation43_spill]] %s6927_s7  ;;  %v2449_v37 = vstv %s6556_s15  ;;  %v2593_v19 = vstv %s6572_s13  ;;  %v2598_v28 = vstv %s6579_s25 }
 0x31d   : > { %v2216_v45 = vadd.f32 1.4214138, %v2214_v51  ;;  %s6941_s7 = sld [smem:[#allocation7 + $0x83]]  ;;  %v2603_v10 = vstv %s6584_s2  ;;  %v2754_v16 = vstv %s6566_s27  ;;  %v2608_v47 = vstv %s6594_s6 }
 0x31e   : > { %2970 = vrot.lane.b32.xlu0 %v6691_v2, %s9800_s17  ;;  %2776 = vrot.lane.b32.xlu1 %v6697_v55, %s9805_s0  ;;  %v2225_v14 = vmul.f32 %v6665_v20, %v2223_v41  ;;  %v2678_v15 = vstv %s6599_s3  ;;  %v2683_v36 = vstv %s6609_s11  ;;  %s6969_s25 = sld [smem:[#allocation7 + $0x8]]  ;;  %v2194_v41 = vmul.f32 0.5, %v6570_v3 }
 0x31f   : > { %v2218_v34 = vmul.f32 %v6739_v48, %v2216_v45  ;;  %9863 = sst [smem:[#allocation44_spill]] %s6934_s24  ;;  %v2688_v26 = vstv %s6614_s29  ;;  %v2693_v57 = vstv %s6616_s1  ;;  %v2759_v51 = vstv %s6622_s22 }
 0x320   : > { %9865 = sst [smem:[#allocation46_spill]] %s6945_s10  ;;  %v2764_v52 = vstv %s6628_s16  ;;  %v2769_v11 = vstv %s6632_s21  ;;  %v2837_v45 = vstv %s6634_s14  ;;  %v8878_v25 = vstv %s6639_s5 }
 0x321   : > { %v3701_v23 = vadd.f32 -0.28449672, %v2218_v34  ;;  %s6951_s24 = sld [smem:[#allocation7 + $0x2a]]  ;;  %v2847_v46 = vstv %s6648_s4  ;;  %v2852_v34 = vstv %s6651_s8  ;;  %v7179_v3 = vmul.f32 %v2515_v6, %v6672_v4 }
 0x322   : > { %2406 = vrot.lane.b32.xlu0 %v6766_v1, %s9800_s17  ;;  %2972 = vrot.lane.b32.xlu1 %v6721_v33, %s9800_s17  ;;  %9869 = sst [smem:[#allocation49_spill]] %s6963_s23  ;;  %v7336_v5 = vmul.f32 %v2764_v52, %v6697_v55 }
 0x323   : > { %v2222_v61 = vmul.f32 %v6739_v48, %v3701_v23  ;;  %9864 = sst [smem:[#allocation45_spill]] %s6941_s7  ;;  %v7331_v23 = vmul.f32 %v2759_v51, %v6697_v55 }
 0x324   : > { %s6958_s7 = sld [smem:[#allocation7 + $0x4e]]  ;;  %9982 = vst [vmem:[#allocation126_spill] sm:$0xff] %v7336_v5 }
 0x325   : > { %v4026_v27 = vpop.eup %4025  ;;  %v2224_v20 = vadd.f32 0.2548296, %v2222_v61  ;;  %9873 = sst [smem:[#allocation50_spill]] %s6969_s25  ;;  %v7280_v61 = vmul.f32 %v2683_v36, %v6730_v12  ;;  %9981 = vst [vmem:[#allocation125_spill] sm:$0xff] %v7331_v23 }
 0x326   : > { %2454 = vrot.lane.b32.xlu0 %v6766_v1, %s9805_s0  ;;  %2408 = vrot.lane.b32.xlu1 %v6700_v44, %s9800_s17  ;;  %v2235_v35 = vmul.f32 %v4026_v27, %v2225_v14  ;;  %s6976_s23 = sld [smem:[#allocation7 + $0x2c]]  ;;  %v7237_v27 = vmul.f32 %v2603_v10, %v6846_v24  ;;  %v7326_v14 = vmul.f32 %v2754_v16, %v6697_v55 }
 0x327   : > { %v2226_v40 = vmul.f32 %v6739_v48, %v2224_v20  ;;  %v4028_v21 = vpop.eup %4027  ;;  %v2525_v48 = vstv %s6562_s28  ;;  %9866 = sst [smem:[#allocation47_spill]] %s6951_s24  ;;  %v7184_v20 = vmul.f32 %v2520_v50, %v6672_v4  ;;  %9963 = vst [vmem:[#allocation189_spill] sm:$0xff] %v7280_v61 }
 0x328   : > { %v2237_v59 = vsub.f32 1.0, %v2235_v35  ;;  %s6984_s25 = sld [smem:[#allocation7 + $0x50]]  ;;  %v7250_v35 = vmul.f32 %v2678_v15, %v6839_v17  ;;  %9980 = vst [vmem:[#allocation124_spill] sm:$0xff] %v7326_v14 }
 0x329   : > { %v2236_v0 = vmul.f32 %v4028_v21, %v2226_v40  ;;  %s6989_s1 = sld [smem:[#allocation7 + $0x74]] }
 0x32a   : > { %3018 = vrot.lane.b32.xlu0 %v6691_v2, %s9805_s0  ;;  %2456 = vrot.lane.b32.xlu1 %v6700_v44, %s9805_s0  ;;  %v2239_v60 = vmul.f32 %v2237_v59, %v2199_v49  ;;  %9867 = sst [smem:[#allocation48_spill]] %s6958_s7  ;;  %v7089_v49 = vmul.f32 %v2439_v42, %v6766_v1 }
 0x32b   : > { %v2238_v31 = vsub.f32 1.0, %v2236_v0  ;;  %s6998_s24 = sld [smem:[#allocation7 + $0x9]]  ;;  %v7080_v0 = vmul.f32 %v2434_v38, %v6766_v1 }
 0x32c   : > { %v2241_v56 = vadd.f32 1.0, %v2239_v60  ;;  %9878 = sst [smem:[#allocation51_spill]] %s6976_s23 }
 0x32d   : > { %v2240_v32 = vmul.f32 %v2238_v31, %v2200_v7  ;;  %s7011_s13 = sld [smem:[#allocation7 + $0x51]] }
 0x32e   : > { %2565 = vrot.lane.b32.xlu0 %v6705_v22, %s9800_s17  ;;  %3020 = vrot.lane.b32.xlu1 %v6721_v33, %s9805_s0  ;;  %v6937_v39 = vmul.f32 %v2241_v56, %v2193_v54  ;;  %9881 = sst [smem:[#allocation52_spill]] %s6984_s25  ;;  %v7102_v54 = vmul.f32 %v2449_v37, %v6766_v1 }
 0x32f   : > { %v2242_v29 = vadd.f32 1.0, %v2240_v32  ;;  %9885 = sst [smem:[#allocation53_spill]] %s6989_s1  ;;  %v7112_v32 = vmul.f32 %v2439_v42, %v6700_v44  ;;  %v7174_v42 = vmul.f32 %v2510_v8, %v6672_v4 }
 0x330   : > { %v3131_v40 = vrot.slane %v6937_v39, 7  ;;  %s7004_s1 = sld [smem:[#allocation7 + $0x2d]]  ;;  %v3290_v31 = vrot.slane %v6937_v39, 1 }
 0x331   : > { %v6995_v59 = vmul.f32 %v2242_v29, %v2194_v41  ;;  %9891 = sst [smem:[#allocation54_spill]] %s6998_s24  ;;  %v7035_v41 = vsel %vm1073_vm8, %v3047_v43, 0.0  ;;  %v7094_v43 = vmul.f32 %v2444_v53, %v6766_v1  ;;  %v7107_v29 = vmul.f32 %v2434_v38, %v6700_v44 }
 0x332   : > { %2613 = vrot.lane.b32.xlu0 %v6705_v22, %s9805_s0  ;;  %2567 = vrot.lane.b32.xlu1 %v6846_v24, %s9800_s17  ;;  %s7016_s29 = sld [smem:[#allocation7 + $0x75]]  ;;  %v7025_v56 = vsel %vm911_vm7, 0.0, %v3131_v40 }
 0x333   : > { %9898 = sst [smem:[#allocation60_spill]] %s7011_s13  ;;  %v3132_v60 = vrot.slane %v6995_v59, 7  ;;  %v3291_v21 = vrot.slane %v6995_v59, 1 }
 0x334   : > { %s7027_s13 = sld [smem:[#allocation7 + $0xb]] }
 0x335   : > { %s7041_s25 = sld [smem:[#allocation7 + $0x2f]]  ;;  %v7119_v7 = vsel %vm911_vm7, %v3131_v40, %v3132_v60  ;;  %v7124_v1 = vsel %vm1073_vm8, %v3290_v31, %v3291_v21  ;;  %v7127_v38 = vsel %vm1073_vm8, %v3291_v21, 0.0  ;;  %v7138_v60 = vmul.f32 %v2444_v53, %v6700_v44 }
 0x336   : > { %2650 = vrot.lane.b32.xlu0 %v6839_v17, %s9800_s17  ;;  %2615 = vrot.lane.b32.xlu1 %v6846_v24, %s9805_s0  ;;  %9894 = sst [smem:[#allocation59_spill]] %s7004_s1  ;;  %v7143_v31 = vmul.f32 %v2449_v37, %v6700_v44  ;;  %v7148_v21 = vmul.f32 %v2510_v8, %v6630_v63  ;;  %v7156_v40 = vmul.f32 %v2515_v6, %v6630_v63 }
 0x337   : > { %s7050_s4 = sld [smem:[#allocation7 + $0x53]]  ;;  %v7161_v53 = vmul.f32 %v2520_v50, %v6630_v63  ;;  %v7166_v44 = vmul.f32 %v2525_v48, %v6630_v63  ;;  %v7194_v8 = vmul.f32 %v2525_v48, %v6672_v4  ;;  %v7199_v6 = vmul.f32 %v2593_v19, %v6705_v22 }
 0x338   : > { %9902 = sst [smem:[#allocation61_spill]] %s7016_s29  ;;  %v7204_v50 = vmul.f32 %v2598_v28, %v6705_v22  ;;  %v7214_v4 = vmul.f32 %v2603_v10, %v6705_v22  ;;  %v7219_v48 = vmul.f32 %v2608_v47, %v6705_v22  ;;  %v7224_v37 = vmul.f32 %v2593_v19, %v6846_v24 }
 0x339   : > { %s7056_s16 = sld [smem:[#allocation7 + $0x77]]  ;;  %v7232_v63 = vmul.f32 %v2598_v28, %v6846_v24  ;;  %v7242_v22 = vmul.f32 %v2608_v47, %v6846_v24  ;;  %v7255_v28 = vmul.f32 %v2683_v36, %v6839_v17  ;;  %v7260_v10 = vmul.f32 %v2688_v26, %v6839_v17 }
 0x33a   : > { %2698 = vrot.lane.b32.xlu0 %v6839_v17, %s9805_s0  ;;  %2652 = vrot.lane.b32.xlu1 %v6730_v12, %s9800_s17  ;;  %9906 = sst [smem:[#allocation58_spill]] %s7027_s13  ;;  %v7270_v47 = vmul.f32 %v2693_v57, %v6839_v17  ;;  %v7275_v19 = vmul.f32 %v2678_v15, %v6730_v12  ;;  %v7290_v17 = vmul.f32 %v2688_v26, %v6730_v12 }
 0x33b   : > { %9914 = sst [smem:[#allocation117_spill]] %s7041_s25  ;;  %9956 = vst [vmem:[#allocation121_spill] sm:$0xff] %v7260_v10  ;;  %v7295_v15 = vmul.f32 %v2693_v57, %v6730_v12  ;;  %v7300_v36 = vmul.f32 %v2754_v16, %v6667_v13  ;;  %v7308_v24 = vmul.f32 %v2759_v51, %v6667_v13  ;;  %v7313_v26 = vmul.f32 %v2764_v52, %v6667_v13 }
 0x33c   : > { %s7062_s21 = sld [smem:[#allocation7 + $0xf]]  ;;  %9961 = vst [vmem:[#allocation122_spill] sm:$0xff] %v7270_v47  ;;  %9962 = vst [vmem:[#allocation188_spill] sm:$0xff] %v7275_v19  ;;  %v7344_v57 = vmul.f32 %v2769_v11, %v6697_v55  ;;  %v7349_v16 = vmul.f32 %v2837_v45, %v6735_v30  ;;  %v7354_v51 = vmul.f32 %v8878_v25, %v6735_v30 }
 0x33d   : > { %9918 = sst [smem:[#allocation118_spill]] %s7050_s4  ;;  %9966 = vst [vmem:[#allocation190_spill] sm:$0xff] %v7290_v17  ;;  %9968 = vst [vmem:[#allocation191_spill] sm:$0xff] %v7295_v15  ;;  %v7364_v55 = vmul.f32 %v2847_v46, %v6735_v30 }
 0x33e   : > { %2809 = vrot.lane.b32.xlu0 %v6735_v30, %s9800_s17  ;;  %2700 = vrot.lane.b32.xlu1 %v6730_v12, %s9805_s0  ;;  %s7070_s13 = sld [smem:[#allocation7 + $0x33]]  ;;  %9970 = vst [vmem:[#allocation127_spill] sm:$0xff] %v7300_v36  ;;  %9973 = vst [vmem:[#allocation128_spill] sm:$0xff] %v7308_v24  ;;  %v7318_v12 = vmul.f32 %v2769_v11, %v6667_v13  ;;  %v7369_v11 = vmul.f32 %v2852_v34, %v6735_v30 }
 0x33f   : > { %9922 = sst [smem:[#allocation29_spill]] %s7056_s16  ;;  %9975 = vst [vmem:[#allocation129_spill] sm:$0xff] %v7313_v26  ;;  %9984 = vst [vmem:[#allocation192_spill] sm:$0xff] %v7344_v57  ;;  %v7374_v13 = vmul.f32 %v2837_v45, %v6909_v9 }
 0x340   : > { %s7082_s2 = sld [smem:[#allocation7 + $0x57]]  ;;  %9977 = vst [vmem:[#allocation123_spill] sm:$0xff] %v7318_v12  ;;  %9986 = vst [vmem:[#allocation193_spill] sm:$0xff] %v7349_v16 }
 0x341   : > { %s7096_s25 = sld [smem:[#allocation7 + $0x7b]]  ;;  %9988 = vst [vmem:[#allocation194_spill] sm:$0xff] %v7354_v51  ;;  %9993 = vst [vmem:[#allocation195_spill] sm:$0xff] %v7364_v55  ;;  %v7387_v55 = vmul.f32 %v2847_v46, %v6909_v9 }
 0x342   : > { %2857 = vrot.lane.b32.xlu0 %v6735_v30, %s9805_s0  ;;  %2811 = vrot.lane.b32.xlu1 %v6909_v9, %s9800_s17  ;;  %9925 = sst [smem:[#allocation62_spill]] %s7062_s21  ;;  %9994 = vst [vmem:[#allocation130_spill] sm:$0xff] %v7369_v11  ;;  %9995 = vst [vmem:[#allocation131_spill] sm:$0xff] %v7374_v13  ;;  %v7392_v30 = vmul.f32 %v2852_v34, %v6909_v9 }
 0x343   : > { %s7114_s5 = sld [smem:[#allocation7 + $0x11]]  ;;  %10000 = vst [vmem:[#allocation133_spill] sm:$0xff] %v7387_v55 }
 0x344   : > { %9927 = sst [smem:[#allocation63_spill]] %s7070_s13  ;;  %10001 = vst [vmem:[#allocation134_spill] sm:$0xff] %v7392_v30 }
 0x345   : > { %s7150_s24 = sld [smem:[#allocation7 + $0x59]] }
 0x346   : > { %2894 = vrot.lane.b32.xlu0 %v6902_v62, %s9800_s17  ;;  %2859 = vrot.lane.b32.xlu1 %v6909_v9, %s9805_s0  ;;  %9929 = sst [smem:[#allocation64_spill]] %s7082_s2 }
 0x347   : > { %9931 = sst [smem:[#allocation31_spill]] %s7096_s25 }
 0x348   : > { %s7168_s22 = sld [smem:[#allocation7 + $0x7d]] }
 0x349   : > { %9932 = sst [smem:[#allocation212_spill]] %s7114_s5 }
 0x34a   : > { %2942 = vrot.lane.b32.xlu0 %v6902_v62, %s9805_s0  ;;  %2896 = vrot.lane.b32.xlu1 %v6755_v58, %s9800_s17  ;;  %s7186_s7 = sld [smem:[#allocation7 + $0x12]] }
 0x34b   : > { %9938 = sst [smem:[#allocation65_spill]] %s7150_s24 }
 0x34c   : > { %s7206_s18 = sld [smem:[#allocation7 + $0x36]] }
 0x34d   : > { %s7226_s27 = sld [smem:[#allocation7 + $0x5a]] }
 0x34e   : > { %3214 = vrot.lane.b32.xlu0 %v6937_v39, %s9800_s17  ;;  %2944 = vrot.lane.b32.xlu1 %v6755_v58, %s9805_s0  ;;  %9942 = sst [smem:[#allocation66_spill]] %s7168_s22 }
 0x34f   : > { %s7244_s6 = sld [smem:[#allocation7 + $0x7e]] }
 0x350   : > { %s7262_s19 = sld [smem:[#allocation7 + $0x14]] }
 0x351   : > { %s7282_s23 = sld [smem:[#allocation7 + $0x38]] }
 0x352   : > { %3053 = vrot.lane.b32.xlu0 %v6760_v18, %s9800_s17  ;;  %3216 = vrot.lane.b32.xlu1 %v6995_v59, %s9800_s17  ;;  %9947 = sst [smem:[#allocation67_spill]] %s7206_s18 }
 0x353   : > { %9950 = sst [smem:[#allocation68_spill]] %s7226_s27 }
 0x354   : > { %s9969_s20 = sld [smem:[#allocation76_spill]] }
 0x355   : > { %9952 = sst [smem:[#allocation69_spill]] %s7244_s6 }
 0x356   : > { %3101 = vrot.lane.b32.xlu0 %v6760_v18, %s9805_s0  ;;  %3055 = vrot.lane.b32.xlu1 %v7035_v41, %s9800_s17  ;;  %9958 = sst [smem:[#allocation70_spill]] %s7262_s19 }
 0x357   : > { %9964 = sst [smem:[#allocation71_spill]] %s7282_s23 }
 0x358   : > { %s7302_s1 = sld [smem:[#allocation7 + $0x5c]] }
 0x359   : > { %s7320_s23 = sld [smem:[#allocation7 + $0x80]] }
 0x35a   : > { %3138 = vrot.lane.b32.xlu0 %v7025_v56, %s9800_s17  ;;  %3103 = vrot.lane.b32.xlu1 %v7035_v41, %s9805_s0  ;;  %s9985_s11 = sld [smem:[#allocation79_spill]]  ;;  %v9997_v52 = vstv %s9969_s20 }
 0x35b   : > { %s9987_s15 = sld [smem:[#allocation80_spill]]  ;;  %v7382_v51 = vmul.f32 %v9997_v52, %v6909_v9 }
 0x35c   : > { %s9989_s8 = sld [smem:[#allocation85_spill]] }
 0x35d   : > { %s9992_s28 = sld [smem:[#allocation86_spill]]  ;;  %9999 = vst [vmem:[#allocation132_spill] sm:$0xff] %v7382_v51 }
 0x35e   : > { %3186 = vrot.lane.b32.xlu0 %v7025_v56, %s9805_s0  ;;  %3140 = vrot.lane.b32.xlu1 %v7119_v7, %s9800_s17  ;;  %9971 = sst [smem:[#allocation33_spill]] %s7302_s1 }
 0x35f   : > { %9978 = sst [smem:[#allocation72_spill]] %s7320_s23 }
 0x360   : > { %s7338_s1 = sld [smem:[#allocation7 + $0x1e]]  ;;  %v10004_v25 = vstv %s9985_s11 }
 0x361   : > { %s7356_s23 = sld [smem:[#allocation7 + $0x42]]  ;;  %v7400_v13 = vmul.f32 %v10004_v25, %v6902_v62  ;;  %v10007_v52 = vstv %s9987_s15 }
 0x362   : > { %3262 = vrot.lane.b32.xlu0 %v6937_v39, %s9805_s0  ;;  %3188 = vrot.lane.b32.xlu1 %v7119_v7, %s9805_s0  ;;  %s7394_s3 = sld [smem:[#allocation7 + $0x8a]]  ;;  %v7405_v51 = vmul.f32 %v10007_v52, %v6902_v62  ;;  %v10009_v46 = vstv %s9989_s8  ;;  %v7423_v52 = vmul.f32 %v10004_v25, %v6755_v58 }
 0x363   : > { %s10003_s9 = sld [smem:[#allocation87_spill]]  ;;  %10006 = vst [vmem:[#allocation200_spill] sm:$0xff] %v7400_v13  ;;  %v7410_v55 = vmul.f32 %v10009_v46, %v6902_v62  ;;  %v10015_v34 = vstv %s9992_s28  ;;  %v10024_v25 = vstv %s9992_s28 }
 0x364   : > { %10008 = vst [vmem:[#allocation201_spill] sm:$0xff] %v7405_v51  ;;  %s10010_s30 = sld [smem:[#allocation88_spill]]  ;;  %v7418_v45 = vmul.f32 %v10015_v34, %v6902_v62  ;;  %10017 = vst [vmem:[#allocation137_spill] sm:$0xff] %v7423_v52  ;;  %v10018_v51 = vstv %s9987_s15  ;;  %v10021_v62 = vstv %s9989_s8  ;;  %v7443_v52 = vmul.f32 %v10024_v25, %v6755_v58 }
 0x365   : > { %10011 = vst [vmem:[#allocation135_spill] sm:$0xff] %v7410_v55  ;;  %s10012_s29 = sld [smem:[#allocation81_spill]]  ;;  %v7428_v46 = vmul.f32 %v10018_v51, %v6755_v58  ;;  %v7438_v34 = vmul.f32 %v10021_v62, %v6755_v58 }
 0x366   : > { %3297 = vrot.lane.b32.xlu0 %v7124_v1, %s9800_s17  ;;  %3264 = vrot.lane.b32.xlu1 %v6995_v59, %s9805_s0  ;;  %s7412_s14 = sld [smem:[#allocation7 + $0x18]]  ;;  %10016 = vst [vmem:[#allocation136_spill] sm:$0xff] %v7418_v45  ;;  %10026 = vst [vmem:[#allocation203_spill] sm:$0xff] %v7443_v52 }
 0x367   : > { %9990 = sst [smem:[#allocation73_spill]] %s7356_s23  ;;  %10019 = vst [vmem:[#allocation138_spill] sm:$0xff] %v7428_v46  ;;  %10023 = vst [vmem:[#allocation202_spill] sm:$0xff] %v7438_v34 }
 0x368   : > { %s7376_s23 = sld [smem:[#allocation7 + $0x66]] }
 0x369   : > { %10002 = sst [smem:[#allocation75_spill]] %s7394_s3  ;;  %v10029_v51 = vstv %s10003_s9 }
 0x36a   : > { %3345 = vrot.lane.b32.xlu0 %v7124_v1, %s9805_s0  ;;  %3299 = vrot.lane.b32.xlu1 %v7127_v38, %s9800_s17  ;;  %s10014_s3 = sld [smem:[#allocation82_spill]]  ;;  %v7450_v46 = vmul.f32 %v10029_v51, %v6691_v2  ;;  %v10034_v62 = vstv %s10010_s30  ;;  %v7473_v9 = vmul.f32 %v10029_v51, %v6721_v33 }
 0x36b   : > { %s7430_s10 = sld [smem:[#allocation7 + $0x3c]]  ;;  %v7458_v34 = vmul.f32 %v10034_v62, %v6691_v2  ;;  %v10036_v58 = vstv %s10012_s29 }
 0x36c   : > { %10013 = sst [smem:[#allocation76_spill]] %s7412_s14  ;;  %10031 = vst [vmem:[#allocation139_spill] sm:$0xff] %v7450_v46  ;;  %v7463_v25 = vmul.f32 %v10036_v58, %v6691_v2  ;;  %10041 = vst [vmem:[#allocation143_spill] sm:$0xff] %v7473_v9  ;;  %v10042_v46 = vmov %v10034_v62  ;;  %v10044_v62 = vmov %v10036_v58 }
 0x36d   : > { %s10022_s26 = sld [smem:[#allocation89_spill]]  ;;  %10035 = vst [vmem:[#allocation140_spill] sm:$0xff] %v7458_v34  ;;  %v7478_v55 = vmul.f32 %v10042_v46, %v6721_v33  ;;  %v7483_v34 = vmul.f32 %v10044_v62, %v6721_v33 }
 0x36e   : > { %9996 = sst [smem:[#allocation74_spill]] %s7376_s23  ;;  %3347 = vrot.lane.b32.xlu1 %v7127_v38, %s9805_s0  ;;  %10037 = vst [vmem:[#allocation141_spill] sm:$0xff] %v7463_v25 }
 0x36f   : > { %s10025_s11 = sld [smem:[#allocation90_spill]]  ;;  %10043 = vst [vmem:[#allocation144_spill] sm:$0xff] %v7478_v55  ;;  %10045 = vst [vmem:[#allocation145_spill] sm:$0xff] %v7483_v34 }
 0x370   : > { %s10027_s15 = sld [smem:[#allocation91_spill]]  ;;  %v10038_v52 = vstv %s10014_s3 }
 0x371   : > { %10020 = sst [smem:[#allocation77_spill]] %s7430_s10  ;;  %v7468_v45 = vmul.f32 %v10038_v52, %v6691_v2  ;;  %v10046_v58 = vmov %v10038_v52 }
 0x372   : > { %s7445_s14 = sld [smem:[#allocation7 + $0x60]]  ;;  %v7488_v25 = vmul.f32 %v10046_v58, %v6721_v33 }
 0x373   : > { %s10030_s10 = sld [smem:[#allocation83_spill]]  ;;  %10039 = vst [vmem:[#allocation142_spill] sm:$0xff] %v7468_v45  ;;  %v10053_v2 = vstv %s10022_s26 }
 0x374   : > { %s7453_s17 = sld [smem:[#allocation7 + $0x84]]  ;;  %10048 = vst [vmem:[#allocation146_spill] sm:$0xff] %v7488_v25  ;;  %v7497_v52 = vmul.f32 %v10053_v2, %v6760_v18 }
 0x375   : > { %s10047_s28 = sld [smem:[#allocation84_spill]]  ;;  %v10055_v46 = vstv %s10025_s11 }
 0x376   : > { %s10049_s20 = sld [smem:[#allocation92_spill]]  ;;  %10054 = vst [vmem:[#allocation196_spill] sm:$0xff] %v7497_v52  ;;  %v7502_v51 = vmul.f32 %v10055_v46, %v6760_v18  ;;  %v10058_v62 = vstv %s10027_s15  ;;  %v7520_v52 = vmul.f32 %v10053_v2, %v7035_v41 }
 0x377   : > { %s10056_s30 = sld [smem:[#allocation93_spill]]  ;;  %v7507_v33 = vmul.f32 %v10058_v62, %v6760_v18 }
 0x378   : > { %10028 = sst [smem:[#allocation78_spill]] %s7445_s14  ;;  %10057 = vst [vmem:[#allocation197_spill] sm:$0xff] %v7502_v51  ;;  %10065 = vst [vmem:[#allocation147_spill] sm:$0xff] %v7520_v52  ;;  %v7525_v51 = vmul.f32 %v10055_v46, %v7035_v41 }
 0x379   : > { %s7492_s14 = sld [smem:[#allocation7 + $0x3e]]  ;;  %10060 = vst [vmem:[#allocation198_spill] sm:$0xff] %v7507_v33  ;;  %v10061_v58 = vstv %s10030_s10  ;;  %v7530_v33 = vmul.f32 %v10058_v62, %v7035_v41 }
 0x37a   : > { %10033 = sst [smem:[#allocation79_spill]] %s7453_s17  ;;  %v7512_v25 = vmul.f32 %v10061_v58, %v6760_v18  ;;  %10066 = vst [vmem:[#allocation148_spill] sm:$0xff] %v7525_v51  ;;  %v7538_v34 = vmul.f32 %v10061_v58, %v7035_v41 }
 0x37b   : > { %s7490_s17 = sld [smem:[#allocation7 + $0x1a]]  ;;  %10067 = vst [vmem:[#allocation149_spill] sm:$0xff] %v7530_v33  ;;  %v10072_v2 = vstv %s10047_s28 }
 0x37c   : > { %s10059_s3 = sld [smem:[#allocation94_spill]]  ;;  %10062 = vst [vmem:[#allocation199_spill] sm:$0xff] %v7512_v25  ;;  %10071 = vst [vmem:[#allocation150_spill] sm:$0xff] %v7538_v34  ;;  %v7543_v52 = vmul.f32 %v10072_v2, %v7025_v56  ;;  %v10075_v46 = vstv %s10049_s20 }
 0x37d   : > { %s7533_s0 = sld [smem:[#allocation7 + $0x86]]  ;;  %v7548_v51 = vmul.f32 %v10075_v46, %v7025_v56  ;;  %v10079_v18 = vstv %s10056_s30  ;;  %v10086_v62 = vmov %v10075_v46 }
 0x37e   : > { %s10070_s26 = sld [smem:[#allocation96_spill]]  ;;  %10074 = vst [vmem:[#allocation151_spill] sm:$0xff] %v7543_v52  ;;  %v7556_v33 = vmul.f32 %v10079_v18, %v7025_v56  ;;  %v7566_v52 = vmul.f32 %v10072_v2, %v7119_v7 }
 0x37f   : > { %10052 = sst [smem:[#allocation85_spill]] %s7492_s14  ;;  %10077 = vst [vmem:[#allocation152_spill] sm:$0xff] %v7548_v51  ;;  %v7574_v51 = vmul.f32 %v10086_v62, %v7119_v7 }
 0x380   : > { %s7515_s14 = sld [smem:[#allocation7 + $0x62]]  ;;  %10080 = vst [vmem:[#allocation153_spill] sm:$0xff] %v7556_v33  ;;  %10083 = vst [vmem:[#allocation208_spill] sm:$0xff] %v7566_v52  ;;  %v7579_v33 = vmul.f32 %v10079_v18, %v7119_v7 }
 0x381   : > { %10050 = sst [smem:[#allocation80_spill]] %s7490_s17  ;;  %10088 = vst [vmem:[#allocation209_spill] sm:$0xff] %v7574_v51 }
 0x382   : > { %s10068_s17 = sld [smem:[#allocation95_spill]]  ;;  %v10081_v41 = vstv %s10059_s3  ;;  %10090 = vst [vmem:[#allocation210_spill] sm:$0xff] %v7579_v33 }
 0x383   : > { %10069 = sst [smem:[#allocation87_spill]] %s7533_s0  ;;  %v7561_v58 = vmul.f32 %v10081_v41, %v7025_v56  ;;  %v10091_v56 = vmov %v10081_v41 }
 0x384   : > { %s10073_s11 = sld [smem:[#allocation97_spill]]  ;;  %v7584_v41 = vmul.f32 %v10091_v56, %v7119_v7  ;;  %v10098_v62 = vstv %s10070_s26 }
 0x385   : > { %s10076_s15 = sld [smem:[#allocation98_spill]]  ;;  %10082 = vst [vmem:[#allocation154_spill] sm:$0xff] %v7561_v58  ;;  %v7596_v51 = vmul.f32 %v10098_v62, %v6937_v39 }
 0x386   : > { %10064 = sst [smem:[#allocation86_spill]] %s7515_s14  ;;  %10093 = vst [vmem:[#allocation211_spill] sm:$0xff] %v7584_v41 }
 0x387   : > { %s7551_s8 = sld [smem:[#allocation7 + $0x1b]]  ;;  %10100 = vst [vmem:[#allocation205_spill] sm:$0xff] %v7596_v51  ;;  %v7618_v51 = vmul.f32 %v10098_v62, %v6995_v59 }
 0x388   : > { %s10084_s10 = sld [smem:[#allocation54_spill]]  ;;  %v10096_v2 = vstv %s10068_s17 }
 0x389   : > { %s7569_s9 = sld [smem:[#allocation7 + $0x3f]]  ;;  %v7591_v46 = vmul.f32 %v10096_v2, %v6937_v39  ;;  %10109 = vst [vmem:[#allocation160_spill] sm:$0xff] %v7618_v51 }
 0x38a   : > { %s10089_s0 = sld [smem:[#allocation100_spill]]  ;;  %v10101_v18 = vstv %s10073_s11 }
 0x38b   : > { %s10092_s28 = sld [smem:[#allocation101_spill]]  ;;  %10097 = vst [vmem:[#allocation204_spill] sm:$0xff] %v7591_v46  ;;  %v7601_v33 = vmul.f32 %v10101_v18, %v6937_v39  ;;  %v10103_v7 = vstv %s10076_s15  ;;  %v7613_v46 = vmul.f32 %v10096_v2, %v6995_v59 }
 0x38c   : > { %s10094_s14 = sld [smem:[#allocation59_spill]]  ;;  %v7606_v56 = vmul.f32 %v10103_v7, %v6937_v39  ;;  %v10111_v39 = vmov %v10103_v7 }
 0x38d   : > { %10078 = sst [smem:[#allocation88_spill]] %s7551_s8  ;;  %10102 = vst [vmem:[#allocation206_spill] sm:$0xff] %v7601_v33  ;;  %10108 = vst [vmem:[#allocation159_spill] sm:$0xff] %v7613_v46  ;;  %v7623_v33 = vmul.f32 %v10101_v18, %v6995_v59  ;;  %v7628_v7 = vmul.f32 %v10111_v39, %v6995_v59 }
 0x38e   : > { %s10087_s8 = sld [smem:[#allocation99_spill]]  ;;  %10104 = vst [vmem:[#allocation207_spill] sm:$0xff] %v7606_v56 }
 0x38f   : > { %10085 = sst [smem:[#allocation81_spill]] %s7569_s9  ;;  %10110 = vst [vmem:[#allocation161_spill] sm:$0xff] %v7623_v33  ;;  %10112 = vst [vmem:[#allocation155_spill] sm:$0xff] %v7628_v7 }
 0x390   : > { %s7586_s23 = sld [smem:[#allocation7 + $0x63]]  ;;  %v10117_v62 = vstv %s10089_s0 }
 0x391   : > { %s10099_s20 = sld [smem:[#allocation102_spill]]  ;;  %v7641_v51 = vmul.f32 %v10117_v62, %v7124_v1  ;;  %v10119_v18 = vstv %s10092_s28 }
 0x392   : > { %s7608_s3 = sld [smem:[#allocation7 + $0x87]]  ;;  %v7646_v33 = vmul.f32 %v10119_v18, %v7124_v1 }
 0x393   : > { %s7631_s17 = sld [smem:[#allocation7 + $0x1d]]  ;;  %10118 = vst [vmem:[#allocation157_spill] sm:$0xff] %v7641_v51  ;;  %v7664_v51 = vmul.f32 %v10117_v62, %v7127_v38 }
 0x394   : > { %v10114_v2 = vstv %s10087_s8  ;;  %10120 = vst [vmem:[#allocation158_spill] sm:$0xff] %v7646_v33  ;;  %s7649_s26 = sld [smem:[#allocation7 + $0x41]]  ;;  %v10126_v33 = vmov %v10119_v18 }
 0x395   : > { %v7636_v46 = vmul.f32 %v10114_v2, %v7124_v1  ;;  %10125 = vst [vmem:[#allocation164_spill] sm:$0xff] %v7664_v51  ;;  %s7668_s11 = sld [smem:[#allocation7 + $0x65]]  ;;  %v2485_v51 = vpop.permute.xlu1 %2484 }
 0x396   : > { %10095 = sst [smem:[#allocation82_spill]] %s7586_s23  ;;  %v2489_v7 = vsel %vm925_vm11, 0.0, %v2485_v51 }
 0x397   : > { %10116 = vst [vmem:[#allocation156_spill] sm:$0xff] %v7636_v46  ;;  %v10122_v39 = vstv %s10099_s20  ;;  %v7659_v46 = vmul.f32 %v10114_v2, %v7127_v38  ;;  %s7684_s0 = sld [smem:[#allocation7 + $0x89]] }
 0x398   : > { %10106 = sst [smem:[#allocation89_spill]] %s7608_s3  ;;  %v7654_v56 = vmul.f32 %v10122_v39, %v7124_v1  ;;  %v7673_v1 = vmul.f32 %v10126_v33, %v7127_v38  ;;  %v7678_v2 = vmul.f32 %v10122_v39, %v7127_v38 }
 0x399   : > { %10124 = vst [vmem:[#allocation163_spill] sm:$0xff] %v7659_v46  ;;  %v2483_v46 = vpop.permute.xlu0 %2482  ;;  %s10130_s8 = sld [smem:[#allocation71_spill]] }
 0x39a   : > { %10121 = sst [smem:[#allocation90_spill]] %s7649_s26  ;;  %10123 = vst [vmem:[#allocation162_spill] sm:$0xff] %v7654_v56  ;;  %10127 = vst [vmem:[#allocation165_spill] sm:$0xff] %v7673_v1  ;;  %v2488_v62 = vsel %vm925_vm11, 0.0, %v2483_v46 }
 0x39b   : > { %10128 = vst [vmem:[#allocation166_spill] sm:$0xff] %v7678_v2  ;;  %s10132_s28 = sld [smem:[#allocation72_spill]] }
 0x39c   : > { %s7690_s20 = sld [smem:[#allocation7 + $0x20]] }
 0x39d   : > { %10129 = sst [smem:[#allocation91_spill]] %s7684_s0  ;;  %v2531_v38 = vpop.permute.xlu0 %2530 }
 0x39e   : > { %s10134_s23 = sld [smem:[#allocation73_spill]]  ;;  %v2536_v46 = vsel %vm974_vm12, %v2531_v38, 0.0 }
 0x39f   : > { %s10135_s4 = sld [smem:[#allocation74_spill]] }
 0x3a0   : > { %s7696_s3 = sld [smem:[#allocation7 + $0x44]] }
 0x3a1   : > { %s7702_s29 = sld [smem:[#allocation7 + $0x68]]  ;;  %v2727_v2 = vpop.permute.xlu0 %2726 }
 0x3a2   : > { %10133 = sst [smem:[#allocation83_spill]] %s7690_s20  ;;  %v2732_v18 = vsel %vm925_vm11, 0.0, %v2727_v2 }
 0x3a3   : > { %s7708_s30 = sld [smem:[#allocation7 + $0x8c]] }
 0x3a4   : > { %s7714_s27 = sld [smem:[#allocation7 + $0x21]] }
 0x3a5   : > { %s7720_s15 = sld [smem:[#allocation7 + $0x45]] }
 0x3a6   : > { %10137 = sst [smem:[#allocation84_spill]] %s7696_s3 }
 0x3a7   : > { %10142 = sst [smem:[#allocation92_spill]] %s7702_s29 }
 0x3a8   : > { %s7726_s16 = sld [smem:[#allocation7 + $0x69]] }
 0x3a9   : > { %10147 = sst [smem:[#allocation93_spill]] %s7708_s30 }
 0x3aa   : > { %10150 = sst [smem:[#allocation94_spill]] %s7714_s27 }
 0x3ab   : > { %10152 = sst [smem:[#allocation95_spill]] %s7720_s15 }
 0x3ac   : > { %s10154_s13 = sld [smem:[#allocation103_spill]] }
 0x3ad   : > { %s10155_s2 = sld [smem:[#allocation104_spill]] }
 0x3ae   : > { %10153 = sst [smem:[#allocation96_spill]] %s7726_s16 }
 0x3af   : > { %s10156_s25 = sld [smem:[#allocation105_spill]] }
 0x3b0   : > { %s7732_s21 = sld [smem:[#allocation7 + $0x8d]] }
 0x3b1   : > { %s10157_s12 = sld [smem:[#allocation106_spill]] }
 0x3b2   : > { %s7738_s22 = sld [smem:[#allocation7 + $0x23]]  ;;  %v10164_v41 = vstv %s10154_s13  ;;  %v10181_v11 = vstv %s10154_s13 }
 0x3b3   : > { %s10159_s24 = sld [smem:[#allocation107_spill]]  ;;  %v7748_v56 = vmul.f32 %v10164_v41, %v2488_v62  ;;  %v10166_v1 = vstv %s10155_s2  ;;  %v2775_v41 = vpop.permute.xlu0 %2774 }
 0x3b4   : > { %s10160_s18 = sld [smem:[#allocation108_spill]]  ;;  %v7752_v59 = vmul.f32 %v10166_v1, %v2488_v62 }
 0x3b5   : > { %s10161_s9 = sld [smem:[#allocation109_spill]]  ;;  %v10168_v33 = vstv %s10156_s25 }
 0x3b6   : > { %s10162_s6 = sld [smem:[#allocation110_spill]]  ;;  %v7756_v38 = vmul.f32 %v10168_v33, %v2488_v62  ;;  %v2533_v33 = vpop.permute.xlu1 %2532 }
 0x3b7   : > { %s7744_s5 = sld [smem:[#allocation7 + $0x47]]  ;;  %v10169_v39 = vstv %s10157_s12  ;;  %v10188_v30 = vstv %s10157_s12 }
 0x3b8   : > { %10158 = sst [smem:[#allocation97_spill]] %s7738_s22  ;;  %v7762_v52 = vmul.f32 %v10169_v39, %v2488_v62 }
 0x3b9   : > { %s10165_s19 = sld [smem:[#allocation55_spill]]  ;;  %v10172_v34 = vstv %s10159_s24  ;;  %v10200_v24 = vstv %s10159_s24 }
 0x3ba   : > { %s10167_s26 = sld [smem:[#allocation56_spill]]  ;;  %v7770_v25 = vmul.f32 %v10172_v34, %v2536_v46  ;;  %v10174_v2 = vstv %s10160_s18  ;;  %v7813_v34 = vmul.f32 %v10188_v30, %v2489_v7  ;;  %v2729_v23 = vpop.permute.xlu1 %2728 }
 0x3bb   : > { %s10170_s3 = sld [smem:[#allocation57_spill]]  ;;  %v7774_v55 = vmul.f32 %v10174_v2, %v2536_v46  ;;  %v10175_v51 = vstv %s10161_s9  ;;  %v7796_v2 = vmul.f32 %v10181_v11, %v2489_v7  ;;  %v2537_v11 = vsel %vm974_vm12, %v2533_v33, 0.0 }
 0x3bc   : > { %s7766_s20 = sld [smem:[#allocation7 + $0x6b]]  ;;  %v7778_v9 = vmul.f32 %v10175_v51, %v2536_v46  ;;  %v10176_v62 = vstv %s10162_s6  ;;  %v10183_v51 = vstv %s10155_s2  ;;  %v2733_v30 = vsel %vm925_vm11, 0.0, %v2729_v23 }
 0x3bd   : > { %10163 = sst [smem:[#allocation98_spill]] %s7744_s5  ;;  %v7782_v39 = vmul.f32 %v10176_v62, %v2536_v46  ;;  %v7800_v16 = vmul.f32 %v10183_v51, %v2489_v7  ;;  %v7836_v36 = vmul.f32 %v10200_v24, %v2537_v11  ;;  %v10204_v12 = vstv %s10161_s9 }
 0x3be   : > { %s10173_s0 = sld [smem:[#allocation111_spill]]  ;;  %v7844_v14 = vmul.f32 %v10204_v12, %v2537_v11 }
 0x3bf   : > { %v10177_v58 = vstv %s10165_s19  ;;  %s10182_s30 = sld [smem:[#allocation112_spill]] }
 0x3c0   : > { %v7786_v1 = vmul.f32 %v10177_v58, %v2732_v18  ;;  %v10179_v45 = vstv %s10167_s26  ;;  %s10184_s29 = sld [smem:[#allocation113_spill]]  ;;  %v2780_v58 = vsel %vm974_vm12, %v2775_v41, 0.0  ;;  %v10227_v15 = vstv %s10167_s26 }
 0x3c1   : > { %v7790_v13 = vmul.f32 %v10179_v45, %v2732_v18  ;;  %v10185_v46 = vstv %s10170_s3  ;;  %v10187_v45 = vstv %s10156_s25  ;;  %s10189_s13 = sld [smem:[#allocation114_spill]] }
 0x3c2   : > { %10171 = sst [smem:[#allocation54_spill]] %s7766_s20  ;;  %10178 = vst [vmem:[#allocation167_spill] sm:$0xff] %v7786_v1  ;;  %v7804_v62 = vmul.f32 %v10185_v46, %v2732_v18  ;;  %v7809_v57 = vmul.f32 %v10187_v45, %v2489_v7  ;;  %v2971_v46 = vpop.permute.xlu0 %2970 }
 0x3c3   : > { %10180 = vst [vmem:[#allocation168_spill] sm:$0xff] %v7790_v13  ;;  %s10192_s2 = sld [smem:[#allocation115_spill]]  ;;  %v2976_v41 = vsel %vm925_vm11, 0.0, %v2971_v46  ;;  %v10202_v46 = vstv %s10160_s18 }
 0x3c4   : > { %10186 = vst [vmem:[#allocation169_spill] sm:$0xff] %v7804_v62  ;;  %v10190_v51 = vstv %s10173_s0  ;;  %s10193_s15 = sld [smem:[#allocation116_spill]]  ;;  %v7840_v45 = vmul.f32 %v10202_v46, %v2537_v11  ;;  %v10216_v62 = vstv %s10165_s19 }
 0x3c5   : > { %v7818_v5 = vmul.f32 %v10190_v51, %v2732_v18  ;;  %s10194_s25 = sld [smem:[#allocation119_spill]]  ;;  %v10195_v7 = vstv %s10182_s30 }
 0x3c6   : > { %s10196_s12 = sld [smem:[#allocation30_spill]]  ;;  %v7827_v33 = vmul.f32 %v10195_v7, %v2780_v58  ;;  %v10198_v18 = vstv %s10184_s29 }
 0x3c7   : > { %10191 = vst [vmem:[#allocation170_spill] sm:$0xff] %v7818_v5  ;;  %v7831_v51 = vmul.f32 %v10198_v18, %v2780_v58  ;;  %s10201_s27 = sld [smem:[#allocation25_spill]]  ;;  %v10206_v23 = vstv %s10189_s13  ;;  %v2407_v5 = vpop.permute.xlu0 %2406 }
 0x3c8   : > { %10197 = vst [vmem:[#allocation171_spill] sm:$0xff] %v7827_v33  ;;  %s10203_s16 = sld [smem:[#allocation26_spill]]  ;;  %v7848_v7 = vmul.f32 %v10206_v23, %v2780_v58  ;;  %v10208_v33 = vstv %s10162_s6  ;;  %v7865_v23 = vmul.f32 %v10216_v62, %v2733_v30 }
 0x3c9   : > { %10199 = vst [vmem:[#allocation172_spill] sm:$0xff] %v7831_v51  ;;  %s10205_s22 = sld [smem:[#allocation27_spill]]  ;;  %v7852_v18 = vmul.f32 %v10208_v33, %v2537_v11  ;;  %v10209_v26 = vstv %s10192_s2 }
 0x3ca   : > { %10207 = vst [vmem:[#allocation173_spill] sm:$0xff] %v7848_v7  ;;  %v7856_v24 = vmul.f32 %v10209_v26, %v2780_v58  ;;  %v10211_v51 = vstv %s10193_s15  ;;  %s10212_s24 = sld [smem:[#allocation32_spill]]  ;;  %10218 = vst [vmem:[#allocation176_spill] sm:$0xff] %v7865_v23  ;;  %v2777_v7 = vpop.permute.xlu1 %2776  ;;  %v2412_v58 = vsel %vm925_vm11, 0.0, %v2407_v5 }
 0x3cb   : > { %v7860_v46 = vmul.f32 %v10211_v51, %v2976_v41  ;;  %s10214_s18 = sld [smem:[#allocation34_spill]]  ;;  %v10220_v11 = vstv %s10194_s25  ;;  %v2781_v51 = vsel %vm974_vm12, %v2777_v7, 0.0 }
 0x3cc   : > { %10210 = vst [vmem:[#allocation174_spill] sm:$0xff] %v7856_v24  ;;  %s10215_s9 = sld [smem:[#allocation35_spill]]  ;;  %v7869_v33 = vmul.f32 %v10220_v11, %v2976_v41  ;;  %v10222_v13 = vstv %s10196_s12  ;;  %v7885_v11 = vmul.f32 %v10227_v15, %v2733_v30 }
 0x3cd   : > { %10213 = vst [vmem:[#allocation175_spill] sm:$0xff] %v7860_v46  ;;  %s10217_s5 = sld [smem:[#allocation36_spill]]  ;;  %v7873_v26 = vmul.f32 %v10222_v13, %v2976_v41  ;;  %v10224_v12 = vstv %s10201_s27  ;;  %v10232_v13 = vstv %s10173_s0 }
 0x3ce   : > { %s10219_s6 = sld [smem:[#allocation28_spill]]  ;;  %10221 = vst [vmem:[#allocation177_spill] sm:$0xff] %v7869_v33  ;;  %v2415_v46 = vmul.f32 %v10224_v12, %v2412_v58  ;;  %v10225_v24 = vstv %s10203_s16  ;;  %10229 = vst [vmem:[#allocation179_spill] sm:$0xff] %v7885_v11  ;;  %v10230_v33 = vstv %s10170_s3 }
 0x3cf   : > { %10223 = vst [vmem:[#allocation178_spill] sm:$0xff] %v7873_v26  ;;  %v2420_v62 = vmul.f32 %v10225_v24, %v2412_v58  ;;  %v10226_v23 = vstv %s10205_s22  ;;  %s10228_s19 = sld [smem:[#allocation37_spill]]  ;;  %v7889_v17 = vmul.f32 %v10230_v33, %v2733_v30  ;;  %v7893_v26 = vmul.f32 %v10232_v13, %v2733_v30  ;;  %v2455_v33 = vpop.permute.xlu0 %2454 }
 0x3d0   : > { %v2425_v1 = vmul.f32 %v10226_v23, %v2412_v58  ;;  %v10234_v5 = vstv %s10212_s24  ;;  %s10241_s3 = sld [smem:[#allocation38_spill]]  ;;  %v10243_v13 = vstv %s10184_s29 }
 0x3d1   : > { %10231 = vst [vmem:[#allocation180_spill] sm:$0xff] %v7889_v17  ;;  %10233 = vst [vmem:[#allocation181_spill] sm:$0xff] %v7893_v26  ;;  %v7897_v61 = vmul.f32 %v10234_v5, %v2976_v41  ;;  %v10236_v7 = vstv %s10214_s18  ;;  %v10240_v17 = vstv %s10182_s30  ;;  %s10244_s26 = sld [smem:[#allocation39_spill]]  ;;  %v7913_v41 = vmul.f32 %v10243_v13, %v2781_v51 }
 0x3d2   : > { %v2417_v12 = vadd.f32 %v2415_v46, %v10236_v7  ;;  %v10237_v24 = vstv %s10215_s9  ;;  %v7909_v30 = vmul.f32 %v10240_v17, %v2781_v51  ;;  %v10246_v5 = vstv %s10189_s13  ;;  %v2973_v46 = vpop.permute.xlu1 %2972  ;;  %s10248_s0 = sld [smem:[#allocation40_spill]] }
 0x3d3   : > { %10235 = vst [vmem:[#allocation182_spill] sm:$0xff] %v7897_v61  ;;  %v2422_v23 = vadd.f32 %v2420_v62, %v10237_v24  ;;  %v10238_v19 = vstv %s10217_s5  ;;  %10245 = vst [vmem:[#allocation184_spill] sm:$0xff] %v7913_v41  ;;  %v7917_v61 = vmul.f32 %v10246_v5, %v2781_v51  ;;  %v2460_v62 = vsel %vm974_vm12, %v2455_v33, 0.0  ;;  %s10250_s20 = sld [smem:[#allocation41_spill]] }
 0x3d4   : > { %v2427_v15 = vadd.f32 %v2425_v1, %v10238_v19  ;;  %v10239_v11 = vstv %s10219_s6  ;;  %10242 = vst [vmem:[#allocation183_spill] sm:$0xff] %v7909_v30  ;;  %v2977_v19 = vsel %vm925_vm11, 0.0, %v2973_v46  ;;  %v2437_v17 = vadd.f32 %v7080_v0, %v2417_v12  ;;  %s10256_s29 = sld [smem:[#allocation42_spill]] }
 0x3d5   : > { %v2430_v47 = vmul.f32 %v10239_v11, %v2412_v58  ;;  %10247 = vst [vmem:[#allocation185_spill] sm:$0xff] %v7917_v61  ;;  %v10249_v1 = vstv %s10228_s19  ;;  %v2442_v11 = vadd.f32 %v7089_v49, %v2422_v23  ;;  %v10251_v7 = vstv %s10192_s2  ;;  %s10270_s30 = sld [smem:[#allocation43_spill]] }
 0x3d6   : > { %v7927_v24 = vmul.f32 %v10251_v7, %v2781_v51  ;;  %v10253_v13 = vstv %s10193_s15  ;;  %v10255_v61 = vstv %s10194_s25  ;;  %v10258_v33 = vstv %s10196_s12  ;;  %s10287_s15 = sld [smem:[#allocation48_spill]] }
 0x3d7   : > { %v2432_v58 = vadd.f32 %v2430_v47, %v10249_v1  ;;  %v7931_v5 = vmul.f32 %v10253_v13, %v2977_v19  ;;  %v7935_v41 = vmul.f32 %v10255_v61, %v2977_v19  ;;  %v7939_v46 = vmul.f32 %v10258_v33, %v2977_v19  ;;  %v3019_v1 = vpop.permute.xlu0 %3018  ;;  %v2409_v61 = vpop.permute.xlu1 %2408  ;;  %s10297_s13 = sld [smem:[#allocation50_spill]] }
 0x3d8   : > { %10252 = vst [vmem:[#allocation186_spill] sm:$0xff] %v7927_v24  ;;  %v2447_v47 = vadd.f32 %v7094_v43, %v2427_v15  ;;  %v10260_v0 = vstv %s10241_s3  ;;  %v10261_v12 = vstv %s10244_s26  ;;  %v10262_v7 = vstv %s10212_s24  ;;  %s10299_s2 = sld [smem:[#allocation51_spill]] }
 0x3d9   : > { %10254 = vst [vmem:[#allocation120_spill] sm:$0xff] %v7931_v5  ;;  %10257 = vst [vmem:[#allocation187_spill] sm:$0xff] %v7935_v41  ;;  %v2452_v49 = vadd.f32 %v7102_v54, %v2432_v58  ;;  %v2463_v51 = vmul.f32 %v10260_v0, %v2460_v62  ;;  %v2468_v23 = vmul.f32 %v10261_v12, %v2460_v62  ;;  %v10264_v41 = vstv %s10248_s0  ;;  %s10301_s25 = sld [smem:[#allocation52_spill]] }
 0x3da   : > { %10259 = vst [vmem:[#allocation214_spill] sm:$0xff] %v7939_v46  ;;  %v7949_v13 = vmul.f32 %v10262_v7, %v2977_v19  ;;  %v2473_v5 = vmul.f32 %v10264_v41, %v2460_v62  ;;  %v10265_v33 = vstv %s10250_s20  ;;  %v3024_v43 = vsel %vm974_vm12, %v3019_v1, 0.0  ;;  %s10303_s12 = sld [smem:[#allocation53_spill]] }
 0x3db   : > { %v2478_v46 = vmul.f32 %v10265_v33, %v2460_v62  ;;  %v2413_v54 = vsel %vm925_vm11, 0.0, %v2409_v61  ;;  %v2465_v15 = vadd.f32 %v2463_v51, %v2437_v17  ;;  %v2470_v58 = vadd.f32 %v2468_v23, %v2442_v11  ;;  %v2566_v11 = vpop.permute.xlu0 %2565  ;;  %s10309_s24 = sld [smem:[#allocation60_spill]] }
 0x3dc   : > { %10263 = vst [vmem:[#allocation215_spill] sm:$0xff] %v7949_v13  ;;  %v10266_v0 = vstv %s10256_s29  ;;  %v10267_v19 = vstv %s10201_s27  ;;  %v10268_v13 = vstv %s10203_s16  ;;  %v10269_v41 = vstv %s10205_s22  ;;  %s10275_s27 = sld [smem:[#allocation44_spill]] }
 0x3dd   : > { %v7959_v12 = vmul.f32 %v10266_v0, %v3024_v43  ;;  %v2416_v7 = vmul.f32 %v10267_v19, %v2413_v54  ;;  %v2421_v24 = vmul.f32 %v10268_v13, %v2413_v54  ;;  %v2426_v30 = vmul.f32 %v10269_v41, %v2413_v54  ;;  %s10277_s22 = sld [smem:[#allocation45_spill]] }
 0x3de   : > { %v10271_v62 = vstv %s10219_s6  ;;  %v2475_v26 = vadd.f32 %v2473_v5, %v2447_v47  ;;  %v2480_v1 = vadd.f32 %v2478_v46, %v2452_v49  ;;  %v2493_v10 = vadd.f32 %v7748_v56, %v2465_v15  ;;  %v2457_v46 = vpop.permute.xlu1 %2456  ;;  %s10285_s16 = sld [smem:[#allocation46_spill]] }
 0x3df   : > { %v2431_v33 = vmul.f32 %v10271_v62, %v2413_v54  ;;  %v2498_v17 = vadd.f32 %v7752_v59, %v2470_v58  ;;  %v10272_v51 = vstv %s10214_s18  ;;  %v10273_v61 = vstv %s10215_s9  ;;  %s10310_s18 = sld [smem:[#allocation61_spill]] }
 0x3e0   : > { %v2418_v23 = vadd.f32 %v2416_v7, %v10272_v51  ;;  %v2423_v13 = vadd.f32 %v2421_v24, %v10273_v61  ;;  %v10274_v0 = vstv %s10217_s5  ;;  %v10276_v41 = vstv %s10228_s19  ;;  %s10286_s5 = sld [smem:[#allocation47_spill]] }
 0x3e1   : > { %v2428_v19 = vadd.f32 %v2426_v30, %v10274_v0  ;;  %v2433_v5 = vadd.f32 %v2431_v33, %v10276_v41  ;;  %v2503_v56 = vadd.f32 %v7756_v38, %v2475_v26  ;;  %v2508_v47 = vadd.f32 %v7762_v52, %v2480_v1  ;;  %s10319_s9 = sld [smem:[#allocation58_spill]] }
 0x3e2   : > { %v2461_v59 = vsel %vm974_vm12, %v2457_v46, 0.0  ;;  %v10278_v49 = vstv %s10270_s30  ;;  %v2438_v15 = vadd.f32 %v7107_v29, %v2418_v23  ;;  %v2443_v24 = vadd.f32 %v7112_v32, %v2423_v13  ;;  %v3021_v29 = vpop.permute.xlu1 %3020  ;;  %s10320_s6 = sld [smem:[#allocation117_spill]] }
 0x3e3   : > { %v7984_v54 = vmul.f32 %v10278_v49, %v3024_v43  ;;  %v2448_v58 = vadd.f32 %v7138_v60, %v2428_v19  ;;  %v2453_v30 = vadd.f32 %v7143_v31, %v2433_v5  ;;  %v10279_v7 = vstv %s10241_s3  ;;  %v2614_v31 = vpop.permute.xlu0 %2613  ;;  %s10321_s19 = sld [smem:[#allocation118_spill]] }
 0x3e4   : > { %v2464_v62 = vmul.f32 %v10279_v7, %v2461_v59  ;;  %v10280_v33 = vstv %s10244_s26  ;;  %v10281_v38 = vstv %s10248_s0  ;;  %v10282_v52 = vstv %s10250_s20  ;;  %s10288_s20 = sld [smem:[#allocation49_spill]] }
 0x3e5   : > { %v2469_v51 = vmul.f32 %v10280_v33, %v2461_v59  ;;  %v2474_v26 = vmul.f32 %v10281_v38, %v2461_v59  ;;  %v2479_v1 = vmul.f32 %v10282_v52, %v2461_v59  ;;  %v10283_v61 = vstv %s10275_s27  ;;  %s10323_s3 = sld [smem:[#allocation29_spill]] }
 0x3e6   : > { %v8000_v0 = vmul.f32 %v10283_v61, %v3024_v43  ;;  %v10284_v41 = vstv %s10277_s22  ;;  %v2513_v32 = vadd.f32 %v7148_v21, %v2493_v10  ;;  %v2518_v60 = vadd.f32 %v7156_v40, %v2498_v17  ;;  %s10347_s26 = sld [smem:[#allocation64_spill]] }
 0x3e7   : > { %v8004_v46 = vmul.f32 %v10284_v41, %v3024_v43  ;;  %v2466_v23 = vadd.f32 %v2464_v62, %v2438_v15  ;;  %v2471_v13 = vadd.f32 %v2469_v51, %v2443_v24  ;;  %v2476_v19 = vadd.f32 %v2474_v26, %v2448_v58  ;;  %s10349_s0 = sld [smem:[#allocation31_spill]] }
 0x3e8   : > { %v2481_v5 = vadd.f32 %v2479_v1, %v2453_v30  ;;  %v3025_v59 = vsel %vm974_vm12, %v3021_v29, 0.0  ;;  %v2523_v49 = vadd.f32 %v7161_v53, %v2503_v56  ;;  %v2528_v43 = vadd.f32 %v7166_v44, %v2508_v47  ;;  %s10380_s27 = sld [smem:[#allocation65_spill]] }
 0x3e9   : > { %v2541_v21 = vadd.f32 %v7770_v25, %v2513_v32  ;;  %v2494_v40 = vadd.f32 %v7796_v2, %v2466_v23  ;;  %v2499_v10 = vadd.f32 %v7800_v16, %v2471_v13  ;;  %v2504_v17 = vadd.f32 %v7809_v57, %v2476_v19  ;;  %v2568_v2 = vpop.permute.xlu1 %2567  ;;  %s10382_s22 = sld [smem:[#allocation66_spill]] }
 0x3ea   : > { %v2509_v15 = vadd.f32 %v7813_v34, %v2481_v5  ;;  %v10289_v24 = vstv %s10256_s29  ;;  %v10290_v53 = vstv %s10270_s30  ;;  %v10291_v44 = vmov %v10283_v61  ;;  %s10376_s29 = sld [smem:[#allocation212_spill]] }
 0x3eb   : > { %v8018_v58 = vmul.f32 %v10289_v24, %v3025_v59  ;;  %v8022_v56 = vmul.f32 %v10290_v53, %v3025_v59  ;;  %v8026_v47 = vmul.f32 %v10291_v44, %v3025_v59  ;;  %v10292_v25 = vmov %v10284_v41  ;;  %v2651_v41 = vpop.permute.xlu0 %2650  ;;  %s10378_s30 = sld [smem:[#allocation213_spill]] }
 0x3ec   : > { %v8030_v30 = vmul.f32 %v10292_v25, %v3025_v59  ;;  %v2546_v7 = vadd.f32 %v7774_v55, %v2518_v60  ;;  %v2551_v16 = vadd.f32 %v7778_v9, %v2523_v49  ;;  %v2556_v57 = vadd.f32 %v7782_v39, %v2528_v43 }
 0x3ed   : > { %v2571_v34 = vsel %vm925_vm11, 0.0, %v2566_v11  ;;  %v10293_v62 = vstv %s10285_s16  ;;  %v10294_v51 = vstv %s10286_s5  ;;  %v10295_v26 = vstv %s10287_s15  ;;  %v2616_v13 = vpop.permute.xlu1 %2615  ;;  %s10388_s16 = sld [smem:[#allocation67_spill]] }
 0x3ee   : > { %v2574_v33 = vmul.f32 %v10293_v62, %v2571_v34  ;;  %v2579_v38 = vmul.f32 %v10294_v51, %v2571_v34  ;;  %v2584_v52 = vmul.f32 %v10295_v26, %v2571_v34  ;;  %v10296_v1 = vstv %s10288_s20  ;;  %s10390_s5 = sld [smem:[#allocation68_spill]] }
 0x3ef   : > { %v2589_v61 = vmul.f32 %v10296_v1, %v2571_v34  ;;  %v2514_v29 = vadd.f32 %v7174_v42, %v2494_v40  ;;  %v2519_v32 = vadd.f32 %v7179_v3, %v2499_v10  ;;  %v2524_v55 = vadd.f32 %v7184_v20, %v2504_v17  ;;  %v2699_v24 = vpop.permute.xlu0 %2698  ;;  %s10392_s15 = sld [smem:[#allocation69_spill]] }
 0x3f0   : > { %v2529_v9 = vadd.f32 %v7194_v8, %v2509_v15  ;;  %v2576_v39 = vadd.f32 %v2574_v33, %v2541_v21  ;;  %v2581_v11 = vadd.f32 %v2579_v38, %v2546_v7  ;;  %v2586_v60 = vadd.f32 %v2584_v52, %v2551_v16  ;;  %s10404_s20 = sld [smem:[#allocation70_spill]] }
 0x3f1   : > { %v2591_v23 = vadd.f32 %v2589_v61, %v2556_v57  ;;  %v2542_v19 = vadd.f32 %v7836_v36, %v2514_v29  ;;  %v2547_v5 = vadd.f32 %v7840_v45, %v2519_v32  ;;  %v2552_v42 = vadd.f32 %v7844_v14, %v2524_v55 }
 0x3f2   : > { %v2557_v3 = vadd.f32 %v7852_v18, %v2529_v9  ;;  %v2572_v20 = vsel %vm925_vm11, 0.0, %v2568_v2  ;;  %v2596_v59 = vadd.f32 %v7199_v6, %v2576_v39  ;;  %v2601_v8 = vadd.f32 %v7204_v50, %v2581_v11 }
 0x3f3   : > { %v2606_v49 = vadd.f32 %v7214_v4, %v2586_v60  ;;  %v10298_v43 = vmov %v10293_v62  ;;  %v10300_v40 = vmov %v10294_v51  ;;  %v10302_v45 = vmov %v10295_v26  ;;  %v2653_v4 = vpop.permute.xlu1 %2652 }
 0x3f4   : > { %v2575_v21 = vmul.f32 %v10298_v43, %v2572_v20  ;;  %v2580_v36 = vmul.f32 %v10300_v40, %v2572_v20  ;;  %v2585_v14 = vmul.f32 %v10302_v45, %v2572_v20  ;;  %v10304_v10 = vmov %v10296_v1 }
 0x3f5   : > { %v2590_v18 = vmul.f32 %v10304_v10, %v2572_v20  ;;  %v2611_v17 = vadd.f32 %v7219_v48, %v2591_v23  ;;  %v2619_v6 = vsel %vm974_vm12, %v2614_v31, 0.0  ;;  %v2620_v50 = vsel %vm974_vm12, %v2616_v13, 0.0 }
 0x3f6   : > { %v2656_v15 = vsel %vm925_vm11, 0.0, %v2651_v41  ;;  %v2577_v53 = vadd.f32 %v2575_v21, %v2542_v19  ;;  %v2582_v44 = vadd.f32 %v2580_v36, %v2547_v5  ;;  %v2587_v25 = vadd.f32 %v2585_v14, %v2552_v42 }
 0x3f7   : > { %v2592_v2 = vadd.f32 %v2590_v18, %v2557_v3  ;;  %v10305_v7 = vstv %s10297_s13  ;;  %v10306_v57 = vstv %s10299_s2  ;;  %v10307_v31 = vstv %s10301_s25  ;;  %v2701_v20 = vpop.permute.xlu1 %2700  ;;  %s10405_s13 = sld [smem:[#allocation33_spill]] }
 0x3f8   : > { %v2622_v16 = vmul.f32 %v10305_v7, %v2619_v6  ;;  %v2627_v48 = vmul.f32 %v10306_v57, %v2619_v6  ;;  %v2632_v34 = vmul.f32 %v10307_v31, %v2619_v6  ;;  %v10308_v62 = vstv %s10303_s12  ;;  %s10445_s2 = sld [smem:[#allocation78_spill]] }
 0x3f9   : > { %v2637_v33 = vmul.f32 %v10308_v62, %v2619_v6  ;;  %v2597_v51 = vadd.f32 %v7224_v37, %v2577_v53  ;;  %v2602_v38 = vadd.f32 %v7232_v63, %v2582_v44  ;;  %v2607_v26 = vadd.f32 %v7237_v27, %v2587_v25  ;;  %s10449_s25 = sld [smem:[#allocation79_spill]] }
 0x3fa   : > { %v2612_v52 = vadd.f32 %v7242_v22, %v2592_v2  ;;  %v2624_v1 = vadd.f32 %v2622_v16, %v2596_v59  ;;  %v2629_v61 = vadd.f32 %v2627_v48, %v2601_v8  ;;  %v2634_v41 = vadd.f32 %v2632_v34, %v2606_v49  ;;  %v2810_v59 = vpop.permute.xlu0 %2809  ;;  %s10465_s12 = sld [smem:[#allocation87_spill]] }
 0x3fb   : > { %v2639_v29 = vadd.f32 %v2637_v33, %v2611_v17  ;;  %v10311_v32 = vmov %v10305_v7  ;;  %v10312_v9 = vmov %v10306_v57  ;;  %v10313_v11 = vmov %v10307_v31  ;;  %v10328_v31 = vld [vmem:[#allocation122_spill] sm:$0xff] }
 0x3fc   : > { %v2623_v55 = vmul.f32 %v10311_v32, %v2620_v50  ;;  %v2628_v39 = vmul.f32 %v10312_v9, %v2620_v50  ;;  %v2633_v60 = vmul.f32 %v10313_v11, %v2620_v50  ;;  %v10314_v23 = vmov %v10308_v62  ;;  %v10333_v32 = vld [vmem:[#allocation188_spill] sm:$0xff]  ;;  %v10334_v9 = vld [vmem:[#allocation189_spill] sm:$0xff]  ;;  %v10335_v11 = vld [vmem:[#allocation190_spill] sm:$0xff] }
 0x3fd   : > { %v2638_v13 = vmul.f32 %v10314_v23, %v2620_v50  ;;  %v10315_v19 = vstv %s10084_s10  ;;  %v10316_v5 = vstv %s10094_s14  ;;  %v10317_v42 = vstv %s10309_s24  ;;  %v10336_v23 = vld [vmem:[#allocation191_spill] sm:$0xff]  ;;  %s10345_s14 = sld [smem:[#allocation62_spill]] }
 0x3fe   : > { %v2659_v37 = vmul.f32 %v10315_v19, %v2656_v15  ;;  %v2664_v63 = vmul.f32 %v10316_v5, %v2656_v15  ;;  %v2669_v27 = vmul.f32 %v10317_v42, %v2656_v15  ;;  %v10318_v3 = vstv %s10310_s18  ;;  %s10346_s10 = sld [smem:[#allocation63_spill]] }
 0x3ff   : > { %v2674_v22 = vmul.f32 %v10318_v3, %v2656_v15  ;;  %v2625_v8 = vadd.f32 %v2623_v55, %v2597_v51  ;;  %v2630_v49 = vadd.f32 %v2628_v39, %v2602_v38  ;;  %v2635_v43 = vadd.f32 %v2633_v60, %v2607_v26  ;;  %s10477_s24 = sld [smem:[#allocation88_spill]] }
 0x400   : > { %v2640_v21 = vadd.f32 %v2638_v13, %v2612_v52  ;;  %v2661_v40 = vadd.f32 %v2659_v37, %v2624_v1  ;;  %v2666_v36 = vadd.f32 %v2664_v63, %v2629_v61  ;;  %v2671_v45 = vadd.f32 %v2669_v27, %v2634_v41  ;;  %s10479_s18 = sld [smem:[#allocation81_spill]] }
 0x401   : > { %v2676_v14 = vadd.f32 %v2674_v22, %v2639_v29  ;;  %v2657_v10 = vsel %vm925_vm11, 0.0, %v2653_v4  ;;  %v2704_v18 = vsel %vm974_vm12, %v2699_v24, 0.0  ;;  %v2705_v17 = vsel %vm974_vm12, %v2701_v20, 0.0  ;;  %v10327_v24 = vld [vmem:[#allocation121_spill] sm:$0xff] }
 0x402   : > { %v2815_v6 = vsel %vm925_vm11, 0.0, %v2810_v59  ;;  %v10322_v50 = vmov %v10315_v19  ;;  %v10324_v53 = vmov %v10316_v5  ;;  %v10325_v25 = vmov %v10317_v42 }
 0x403   : > { %v2660_v15 = vmul.f32 %v10322_v50, %v2657_v10  ;;  %v2665_v44 = vmul.f32 %v10324_v53, %v2657_v10  ;;  %v2670_v2 = vmul.f32 %v10325_v25, %v2657_v10  ;;  %v10326_v7 = vmov %v10318_v3  ;;  %v10344_v50 = vld [vmem:[#allocation170_spill] sm:$0xff] }
 0x404   : > { %v2675_v16 = vmul.f32 %v10326_v7, %v2657_v10  ;;  %v2681_v4 = vadd.f32 %v7250_v35, %v2661_v40  ;;  %v2686_v57 = vadd.f32 %v7255_v28, %v2666_v36  ;;  %v2691_v48 = vadd.f32 %v10327_v24, %v2671_v45  ;;  %v10341_v40 = vld [vmem:[#allocation167_spill] sm:$0xff]  ;;  %v10342_v45 = vld [vmem:[#allocation168_spill] sm:$0xff]  ;;  %v10343_v10 = vld [vmem:[#allocation169_spill] sm:$0xff] }
 0x405   : > { %v2696_v34 = vadd.f32 %v10328_v31, %v2676_v14  ;;  %v2662_v62 = vadd.f32 %v2660_v15, %v2625_v8  ;;  %v2667_v33 = vadd.f32 %v2665_v44, %v2630_v49  ;;  %v2672_v51 = vadd.f32 %v2670_v2, %v2635_v43  ;;  %v2812_v43 = vpop.permute.xlu1 %2811  ;;  %v10348_v7 = vld [vmem:[#allocation127_spill] sm:$0xff] }
 0x406   : > { %v2677_v38 = vadd.f32 %v2675_v16, %v2640_v21  ;;  %v10329_v26 = vstv %s10319_s9  ;;  %v10330_v1 = vstv %s10320_s6  ;;  %v10331_v41 = vstv %s10321_s19  ;;  %v2858_v21 = vpop.permute.xlu0 %2857  ;;  %v10350_v16 = vld [vmem:[#allocation128_spill] sm:$0xff]  ;;  %s10481_s9 = sld [smem:[#allocation82_spill]] }
 0x407   : > { %v2707_v52 = vmul.f32 %v10329_v26, %v2704_v18  ;;  %v2712_v61 = vmul.f32 %v10330_v1, %v2704_v18  ;;  %v2717_v35 = vmul.f32 %v10331_v41, %v2704_v18  ;;  %v10332_v29 = vstv %s10323_s3  ;;  %s10482_s6 = sld [smem:[#allocation89_spill]] }
 0x408   : > { %v2722_v28 = vmul.f32 %v10332_v29, %v2704_v18  ;;  %v2682_v55 = vadd.f32 %v10333_v32, %v2662_v62  ;;  %v2687_v39 = vadd.f32 %v10334_v9, %v2667_v33  ;;  %v2692_v60 = vadd.f32 %v10335_v11, %v2672_v51  ;;  %v10354_v33 = vld [vmem:[#allocation179_spill] sm:$0xff]  ;;  %s10491_s19 = sld [smem:[#allocation90_spill]] }
 0x409   : > { %v2697_v13 = vadd.f32 %v10336_v23, %v2677_v38  ;;  %v2709_v19 = vadd.f32 %v2707_v52, %v2681_v4  ;;  %v2714_v37 = vadd.f32 %v2712_v61, %v2686_v57  ;;  %v2719_v5 = vadd.f32 %v2717_v35, %v2691_v48  ;;  %v10351_v57 = vld [vmem:[#allocation129_spill] sm:$0xff]  ;;  %v10352_v48 = vld [vmem:[#allocation123_spill] sm:$0xff]  ;;  %v10355_v38 = vld [vmem:[#allocation180_spill] sm:$0xff]  ;;  %s10493_s3 = sld [smem:[#allocation91_spill]] }
 0x40a   : > { %v2724_v63 = vadd.f32 %v2722_v28, %v2696_v34  ;;  %v10337_v42 = vmov %v10329_v26  ;;  %v10338_v3 = vmov %v10330_v1  ;;  %v10339_v20 = vmov %v10331_v41  ;;  %v10353_v34 = vld [vmem:[#allocation176_spill] sm:$0xff]  ;;  %v10356_v52 = vld [vmem:[#allocation181_spill] sm:$0xff]  ;;  %v10357_v61 = vld [vmem:[#allocation171_spill] sm:$0xff] }
 0x40b   : > { %v2708_v27 = vmul.f32 %v10337_v42, %v2705_v17  ;;  %v2713_v22 = vmul.f32 %v10338_v3, %v2705_v17  ;;  %v2718_v59 = vmul.f32 %v10339_v20, %v2705_v17  ;;  %v10340_v8 = vmov %v10332_v29  ;;  %v10358_v35 = vld [vmem:[#allocation172_spill] sm:$0xff]  ;;  %v10359_v28 = vld [vmem:[#allocation173_spill] sm:$0xff]  ;;  %v2895_v42 = vpop.permute.xlu0 %2894 }
 0x40c   : > { %v2723_v49 = vmul.f32 %v10340_v8, %v2705_v17  ;;  %v2737_v36 = vadd.f32 %v10341_v40, %v2709_v19  ;;  %v2742_v14 = vadd.f32 %v10342_v45, %v2714_v37  ;;  %v2747_v18 = vadd.f32 %v10343_v10, %v2719_v5 }
 0x40d   : > { %v2752_v15 = vadd.f32 %v10344_v50, %v2724_v63  ;;  %v2710_v53 = vadd.f32 %v2708_v27, %v2682_v55  ;;  %v2715_v44 = vadd.f32 %v2713_v22, %v2687_v39  ;;  %v2720_v25 = vadd.f32 %v2718_v59, %v2692_v60  ;;  %v10360_v55 = vld [vmem:[#allocation174_spill] sm:$0xff]  ;;  %v2860_v63 = vpop.permute.xlu1 %2859  ;;  %v10365_v27 = vld [vmem:[#allocation124_spill] sm:$0xff]  ;;  %v10366_v22 = vld [vmem:[#allocation125_spill] sm:$0xff] }
 0x40e   : > { %v2725_v2 = vadd.f32 %v2723_v49, %v2697_v13  ;;  %v2757_v17 = vadd.f32 %v10348_v7, %v2737_v36  ;;  %v2762_v4 = vadd.f32 %v10350_v16, %v2742_v14  ;;  %v2767_v24 = vadd.f32 %v10351_v57, %v2747_v18  ;;  %v10367_v59 = vld [vmem:[#allocation126_spill] sm:$0xff]  ;;  %v10368_v49 = vld [vmem:[#allocation192_spill] sm:$0xff]  ;;  %v10369_v18 = vld [vmem:[#allocation183_spill] sm:$0xff] }
 0x40f   : > { %v2772_v31 = vadd.f32 %v10352_v48, %v2752_v15  ;;  %v2738_v62 = vadd.f32 %v10353_v34, %v2710_v53  ;;  %v2743_v51 = vadd.f32 %v10354_v33, %v2715_v44  ;;  %v2748_v26 = vadd.f32 %v10355_v38, %v2720_v25  ;;  %v10370_v50 = vld [vmem:[#allocation184_spill] sm:$0xff]  ;;  %v10371_v53 = vld [vmem:[#allocation185_spill] sm:$0xff]  ;;  %v10372_v25 = vld [vmem:[#allocation186_spill] sm:$0xff] }
 0x410   : > { %v2753_v1 = vadd.f32 %v10356_v52, %v2725_v2  ;;  %v2785_v41 = vadd.f32 %v10357_v61, %v2757_v17  ;;  %v2790_v29 = vadd.f32 %v10358_v35, %v2762_v4  ;;  %v2795_v32 = vadd.f32 %v10359_v28, %v2767_v24  ;;  %v10373_v17 = vld [vmem:[#allocation193_spill] sm:$0xff]  ;;  %v10374_v4 = vld [vmem:[#allocation194_spill] sm:$0xff]  ;;  %v10375_v24 = vld [vmem:[#allocation195_spill] sm:$0xff]  ;;  %v2943_v28 = vpop.permute.xlu0 %2942 }
 0x411   : > { %v2800_v9 = vadd.f32 %v10360_v55, %v2772_v31  ;;  %v10361_v39 = vstv %s10345_s14  ;;  %v10362_v60 = vstv %s10346_s10  ;;  %v10363_v13 = vstv %s10347_s26  ;;  %s10509_s14 = sld [smem:[#allocation83_spill]] }
 0x412   : > { %v2818_v11 = vmul.f32 %v10361_v39, %v2815_v6  ;;  %v2823_v23 = vmul.f32 %v10362_v60, %v2815_v6  ;;  %v2828_v19 = vmul.f32 %v10363_v13, %v2815_v6  ;;  %v10364_v37 = vstv %s10349_s0  ;;  %s10510_s10 = sld [smem:[#allocation84_spill]] }
 0x413   : > { %v2833_v5 = vmul.f32 %v10364_v37, %v2815_v6  ;;  %v2758_v3 = vadd.f32 %v10365_v27, %v2738_v62  ;;  %v2763_v20 = vadd.f32 %v10366_v22, %v2743_v51  ;;  %v2768_v8 = vadd.f32 %v10367_v59, %v2748_v26  ;;  %v10393_v27 = vld [vmem:[#allocation132_spill] sm:$0xff]  ;;  %v10394_v22 = vld [vmem:[#allocation133_spill] sm:$0xff]  ;;  %v10395_v59 = vld [vmem:[#allocation134_spill] sm:$0xff]  ;;  %s10512_s26 = sld [smem:[#allocation92_spill]] }
 0x414   : > { %v2773_v40 = vadd.f32 %v10368_v49, %v2753_v1  ;;  %v2820_v36 = vadd.f32 %v2818_v11, %v2785_v41  ;;  %v2825_v45 = vadd.f32 %v2823_v23, %v2790_v29  ;;  %v2830_v14 = vadd.f32 %v2828_v19, %v2795_v32  ;;  %v10384_v1 = vld [vmem:[#allocation130_spill] sm:$0xff]  ;;  %v2897_v29 = vpop.permute.xlu1 %2896  ;;  %s10514_s0 = sld [smem:[#allocation93_spill]] }
 0x415   : > { %v2835_v10 = vadd.f32 %v2833_v5, %v2800_v9  ;;  %v2786_v6 = vadd.f32 %v10369_v18, %v2758_v3  ;;  %v2791_v15 = vadd.f32 %v10370_v50, %v2763_v20  ;;  %v2796_v44 = vadd.f32 %v10371_v53, %v2768_v8 }
 0x416   : > { %v2801_v2 = vadd.f32 %v10372_v25, %v2773_v40  ;;  %v2816_v7 = vsel %vm925_vm11, 0.0, %v2812_v43  ;;  %v2840_v16 = vadd.f32 %v10373_v17, %v2820_v36  ;;  %v2845_v57 = vadd.f32 %v10374_v4, %v2825_v45 }
 0x417   : > { %v2850_v48 = vadd.f32 %v10375_v24, %v2830_v14  ;;  %v10377_v31 = vmov %v10361_v39  ;;  %v10379_v62 = vmov %v10362_v60  ;;  %v10381_v51 = vmov %v10363_v13 }
 0x418   : > { %v2819_v34 = vmul.f32 %v10377_v31, %v2816_v7  ;;  %v2824_v33 = vmul.f32 %v10379_v62, %v2816_v7  ;;  %v2829_v38 = vmul.f32 %v10381_v51, %v2816_v7  ;;  %v10383_v26 = vmov %v10364_v37 }
 0x419   : > { %v2834_v52 = vmul.f32 %v10383_v26, %v2816_v7  ;;  %v2855_v43 = vadd.f32 %v10384_v1, %v2835_v10  ;;  %v2863_v61 = vsel %vm974_vm12, %v2858_v21, 0.0  ;;  %v2864_v41 = vsel %vm974_vm12, %v2860_v63, 0.0  ;;  %v10391_v63 = vld [vmem:[#allocation131_spill] sm:$0xff] }
 0x41a   : > { %v2900_v35 = vsel %vm925_vm11, 0.0, %v2895_v42  ;;  %v2821_v32 = vadd.f32 %v2819_v34, %v2786_v6  ;;  %v2826_v55 = vadd.f32 %v2824_v33, %v2791_v15  ;;  %v2831_v9 = vadd.f32 %v2829_v38, %v2796_v44 }
 0x41b   : > { %v2836_v39 = vadd.f32 %v2834_v52, %v2801_v2  ;;  %v10385_v11 = vstv %s10376_s29  ;;  %v10386_v23 = vstv %s10378_s30  ;;  %v10387_v21 = vstv %s10380_s27  ;;  %s10526_s29 = sld [smem:[#allocation95_spill]] }
 0x41c   : > { %v2866_v60 = vmul.f32 %v10385_v11, %v2863_v61  ;;  %v2871_v13 = vmul.f32 %v10386_v23, %v2863_v61  ;;  %v2876_v19 = vmul.f32 %v10387_v21, %v2863_v61  ;;  %v10389_v37 = vstv %s10382_s22  ;;  %s10527_s30 = sld [smem:[#allocation96_spill]] }
 0x41d   : > { %v2881_v5 = vmul.f32 %v10389_v37, %v2863_v61  ;;  %v2841_v42 = vadd.f32 %v10391_v63, %v2821_v32  ;;  %v2846_v3 = vadd.f32 %v10393_v27, %v2826_v55  ;;  %v2851_v20 = vadd.f32 %v10394_v22, %v2831_v9  ;;  %v10413_v63 = vld [vmem:[#allocation136_spill] sm:$0xff]  ;;  %s10532_s27 = sld [smem:[#allocation16_spill]] }
 0x41e   : > { %v2856_v8 = vadd.f32 %v10395_v59, %v2836_v39  ;;  %v2868_v49 = vadd.f32 %v2866_v60, %v2840_v16  ;;  %v2873_v40 = vadd.f32 %v2871_v13, %v2845_v57  ;;  %v2878_v36 = vadd.f32 %v2876_v19, %v2850_v48  ;;  %v2945_v57 = vpop.permute.xlu1 %2944  ;;  %v3215_v48 = vpop.permute.xlu0 %3214  ;;  %v10411_v19 = vld [vmem:[#allocation201_spill] sm:$0xff] }
 0x41f   : > { %v2883_v45 = vadd.f32 %v2881_v5, %v2855_v43  ;;  %v10396_v14 = vmov %v10385_v11  ;;  %v10397_v18 = vmov %v10386_v23  ;;  %v10398_v50 = vmov %v10387_v21  ;;  %v10410_v21 = vld [vmem:[#allocation200_spill] sm:$0xff] }
 0x420   : > { %v2867_v10 = vmul.f32 %v10396_v14, %v2864_v41  ;;  %v2872_v6 = vmul.f32 %v10397_v18, %v2864_v41  ;;  %v2877_v15 = vmul.f32 %v10398_v50, %v2864_v41  ;;  %v10399_v53 = vmov %v10389_v37  ;;  %v10418_v50 = vld [vmem:[#allocation137_spill] sm:$0xff] }
 0x421   : > { %v2882_v44 = vmul.f32 %v10399_v53, %v2864_v41  ;;  %v10400_v25 = vstv %s7186_s7  ;;  %v10401_v7 = vstv %s10388_s16  ;;  %v10402_v4 = vstv %s10390_s5  ;;  %v10419_v53 = vld [vmem:[#allocation138_spill] sm:$0xff]  ;;  %s10423_s7 = sld [smem:[#allocation75_spill]] }
 0x422   : > { %v2903_v2 = vmul.f32 %v10400_v25, %v2900_v35  ;;  %v2908_v17 = vmul.f32 %v10401_v7, %v2900_v35  ;;  %v2913_v24 = vmul.f32 %v10402_v4, %v2900_v35  ;;  %v10403_v31 = vstv %s10392_s15  ;;  %v3217_v18 = vpop.permute.xlu1 %3216  ;;  %s10541_s16 = sld [smem:[#allocation97_spill]] }
 0x423   : > { %v2918_v16 = vmul.f32 %v10403_v31, %v2900_v35  ;;  %v2869_v34 = vadd.f32 %v2867_v10, %v2841_v42  ;;  %v2874_v62 = vadd.f32 %v2872_v6, %v2846_v3  ;;  %v2879_v33 = vadd.f32 %v2877_v15, %v2851_v20  ;;  %v3054_v6 = vpop.permute.xlu0 %3053  ;;  %s375_s22 = sand.u32 1, %s10532_s27   ;;  %s10542_s5 = sld [smem:[#allocation98_spill]] }
 0x424   : > { %v2884_v51 = vadd.f32 %v2882_v44, %v2856_v8  ;;  %v2905_v38 = vadd.f32 %v2903_v2, %v2868_v49  ;;  %v2910_v26 = vadd.f32 %v2908_v17, %v2873_v40  ;;  %v2915_v52 = vadd.f32 %v2913_v24, %v2878_v36  ;;  %s10544_s15 = sld [smem:[#allocation54_spill]] }
 0x425   : > { %v2920_v1 = vadd.f32 %v2918_v16, %v2883_v45  ;;  %v2901_v43 = vsel %vm925_vm11, 0.0, %v2897_v29  ;;  %v2948_v61 = vsel %vm974_vm12, %v2943_v28, 0.0  ;;  %v2949_v41 = vsel %vm974_vm12, %v2945_v57, 0.0  ;;  %v10412_v28 = vld [vmem:[#allocation135_spill] sm:$0xff] }
 0x426   : > { %v3220_v35 = vsel %vm925_vm11, 0.0, %v3215_v48  ;;  %v10406_v32 = vmov %v10400_v25  ;;  %v10407_v9 = vmov %v10401_v7  ;;  %v10408_v11 = vmov %v10402_v4  ;;  %v10420_v25 = vld [vmem:[#allocation202_spill] sm:$0xff]  ;;  %v10421_v7 = vld [vmem:[#allocation203_spill] sm:$0xff] }
 0x427   : > { %v2904_v55 = vmul.f32 %v10406_v32, %v2901_v43  ;;  %v2909_v39 = vmul.f32 %v10407_v9, %v2901_v43  ;;  %v2914_v60 = vmul.f32 %v10408_v11, %v2901_v43  ;;  %v10409_v23 = vmov %v10403_v31  ;;  %v10429_v32 = vld [vmem:[#allocation178_spill] sm:$0xff] }
 0x428   : > { %v2919_v13 = vmul.f32 %v10409_v23, %v2901_v43  ;;  %v2925_v29 = vadd.f32 %v10410_v21, %v2905_v38  ;;  %v2930_v37 = vadd.f32 %v10411_v19, %v2910_v26  ;;  %v2935_v5 = vadd.f32 %v10412_v28, %v2915_v52  ;;  %v10427_v52 = vld [vmem:[#allocation175_spill] sm:$0xff]  ;;  %v10428_v43 = vld [vmem:[#allocation177_spill] sm:$0xff]  ;;  %v10430_v9 = vld [vmem:[#allocation182_spill] sm:$0xff] }
 0x429   : > { %v2940_v42 = vadd.f32 %v10413_v63, %v2920_v1  ;;  %v2906_v27 = vadd.f32 %v2904_v55, %v2869_v34  ;;  %v2911_v3 = vadd.f32 %v2909_v39, %v2874_v62  ;;  %v2916_v22 = vadd.f32 %v2914_v60, %v2879_v33 }
 0x42a   : > { %v2921_v20 = vadd.f32 %v2919_v13, %v2884_v51  ;;  %v10414_v59 = vstv %s10404_s20  ;;  %v10415_v49 = vstv %s10130_s8  ;;  %v10416_v36 = vstv %s10405_s13  ;;  %s10441_s8 = sld [smem:[#allocation76_spill]]  ;;  %s3521_s20 = sshll.u32 %s375_s22, 6 }
 0x42b   : > { %v2951_v8 = vmul.f32 %v10414_v59, %v2948_v61  ;;  %v2956_v40 = vmul.f32 %v10415_v49, %v2948_v61  ;;  %v2961_v45 = vmul.f32 %v10416_v36, %v2948_v61  ;;  %v10417_v14 = vstv %s10132_s28  ;;  %s10443_s28 = sld [smem:[#allocation77_spill]] }
 0x42c   : > { %v2966_v10 = vmul.f32 %v10417_v14, %v2948_v61  ;;  %v2926_v15 = vadd.f32 %v10418_v50, %v2906_v27  ;;  %v2931_v44 = vadd.f32 %v10419_v53, %v2911_v3  ;;  %v2936_v2 = vadd.f32 %v10420_v25, %v2916_v22  ;;  %v3102_v27 = vpop.permute.xlu0 %3101  ;;  %v10435_v3 = vld [vmem:[#allocation120_spill] sm:$0xff]  ;;  %v10442_v53 = vld [vmem:[#allocation141_spill] sm:$0xff]  ;;  %s10557_s13 = sld [smem:[#allocation24_spill]] }
 0x42d   : > { %v2941_v17 = vadd.f32 %v10421_v7, %v2921_v20  ;;  %v2953_v4 = vadd.f32 %v2951_v8, %v2925_v29  ;;  %v2958_v24 = vadd.f32 %v2956_v40, %v2930_v37  ;;  %v2963_v31 = vadd.f32 %v2961_v45, %v2935_v5  ;;  %v10436_v20 = vld [vmem:[#allocation187_spill] sm:$0xff]  ;;  %v10437_v8 = vld [vmem:[#allocation214_spill] sm:$0xff]  ;;  %v10438_v40 = vld [vmem:[#allocation215_spill] sm:$0xff] }
 0x42e   : > { %v2968_v16 = vadd.f32 %v2966_v10, %v2940_v42  ;;  %v10422_v57 = vmov %v10414_v59  ;;  %v10424_v34 = vmov %v10415_v49  ;;  %v10425_v33 = vmov %v10416_v36  ;;  %v3056_v42 = vpop.permute.xlu1 %3055  ;;  %v10440_v50 = vld [vmem:[#allocation140_spill] sm:$0xff] }
 0x42f   : > { %v2952_v48 = vmul.f32 %v10422_v57, %v2949_v41  ;;  %v2957_v62 = vmul.f32 %v10424_v34, %v2949_v41  ;;  %v2962_v51 = vmul.f32 %v10425_v33, %v2949_v41  ;;  %v10426_v38 = vmov %v10417_v14  ;;  %v10439_v14 = vld [vmem:[#allocation139_spill] sm:$0xff] }
 0x430   : > { %v2967_v26 = vmul.f32 %v10426_v38, %v2949_v41  ;;  %v2981_v1 = vadd.f32 %v10427_v52, %v2953_v4  ;;  %v2986_v61 = vadd.f32 %v10428_v43, %v2958_v24  ;;  %v2991_v55 = vadd.f32 %v10429_v32, %v2963_v31  ;;  %v10450_v31 = vld [vmem:[#allocation142_spill] sm:$0xff]  ;;  %v10451_v33 = vld [vmem:[#allocation143_spill] sm:$0xff]  ;;  %v10452_v38 = vld [vmem:[#allocation144_spill] sm:$0xff] }
 0x431   : > { %v2996_v39 = vadd.f32 %v10430_v9, %v2968_v16  ;;  %v2954_v11 = vadd.f32 %v2952_v48, %v2926_v15  ;;  %v2959_v60 = vadd.f32 %v2957_v62, %v2931_v44  ;;  %v2964_v23 = vadd.f32 %v2962_v51, %v2936_v2  ;;  %v10453_v52 = vld [vmem:[#allocation145_spill] sm:$0xff] }
 0x432   : > { %v2969_v13 = vadd.f32 %v2967_v26, %v2941_v17  ;;  %v10431_v21 = vstv %s7338_s1  ;;  %v10432_v19 = vstv %s10134_s23  ;;  %v10433_v37 = vstv %s10135_s4  ;;  %s10459_s1 = sld [smem:[#allocation80_spill]] }
 0x433   : > { %v8250_v29 = vmul.f32 %v10431_v21, %v3220_v35  ;;  %v8254_v41 = vmul.f32 %v10432_v19, %v3220_v35  ;;  %v8258_v28 = vmul.f32 %v10433_v37, %v3220_v35  ;;  %v10434_v5 = vstv %s10423_s7  ;;  %s10461_s4 = sld [smem:[#allocation85_spill]] }
 0x434   : > { %v8262_v63 = vmul.f32 %v10434_v5, %v3220_v35  ;;  %v2982_v22 = vadd.f32 %v10435_v3, %v2954_v11  ;;  %v2987_v59 = vadd.f32 %v10436_v20, %v2959_v60  ;;  %v2992_v49 = vadd.f32 %v10437_v8, %v2964_v23  ;;  %v10458_v60 = vld [vmem:[#allocation146_spill] sm:$0xff]  ;;  %s10463_s23 = sld [smem:[#allocation86_spill]] }
 0x435   : > { %v2997_v36 = vadd.f32 %v10438_v40, %v2969_v13  ;;  %v3221_v45 = vsel %vm925_vm11, 0.0, %v3217_v18  ;;  %v3001_v10 = vadd.f32 %v10439_v14, %v2981_v1  ;;  %v3006_v15 = vadd.f32 %v10440_v50, %v2986_v61  ;;  %v10468_v50 = vld [vmem:[#allocation197_spill] sm:$0xff] }
 0x436   : > { %v3011_v35 = vadd.f32 %v10442_v53, %v2991_v55  ;;  %v10444_v44 = vmov %v10431_v21  ;;  %v10446_v2 = vmov %v10432_v19  ;;  %v10447_v17 = vmov %v10433_v37  ;;  %v10470_v53 = vld [vmem:[#allocation199_spill] sm:$0xff] }
 0x437   : > { %v8274_v25 = vmul.f32 %v10444_v44, %v3221_v45  ;;  %v8278_v7 = vmul.f32 %v10446_v2, %v3221_v45  ;;  %v8282_v4 = vmul.f32 %v10447_v17, %v3221_v45  ;;  %v10448_v24 = vmov %v10434_v5 }
 0x438   : > { %v8286_v18 = vmul.f32 %v10448_v24, %v3221_v45  ;;  %v3016_v16 = vadd.f32 %v10450_v31, %v2996_v39  ;;  %v3029_v57 = vadd.f32 %v7959_v12, %v3001_v10  ;;  %v3034_v48 = vadd.f32 %v7984_v54, %v3006_v15  ;;  %v3104_v54 = vpop.permute.xlu1 %3103  ;;  %v10469_v15 = vld [vmem:[#allocation198_spill] sm:$0xff] }
 0x439   : > { %v3039_v34 = vadd.f32 %v8000_v0, %v3011_v35  ;;  %v3059_v62 = vsel %vm925_vm11, 0.0, %v3054_v6  ;;  %v3002_v51 = vadd.f32 %v10451_v33, %v2982_v22  ;;  %v3007_v26 = vadd.f32 %v10452_v38, %v2987_v59  ;;  %v3139_v0 = vpop.permute.xlu0 %3138 }
 0x43a   : > { %v3012_v1 = vadd.f32 %v10453_v52, %v2992_v49  ;;  %v3044_v43 = vadd.f32 %v8004_v46, %v3016_v16  ;;  %v10454_v61 = vstv %s10441_s8  ;;  %v10455_v55 = vstv %s10443_s28  ;;  %s8470_s8 = scalar_lea.vmem [#allocation10], %s3521_s20 }
 0x43b   : > { %v3062_v32 = vmul.f32 %v10454_v61, %v3059_v62  ;;  %v3067_v9 = vmul.f32 %v10455_v55, %v3059_v62  ;;  %v10456_v39 = vstv %s10445_s2  ;;  %v10457_v6 = vstv %s10449_s25  ;;  %s3406_s28 = sshll.u32 %s8470_s8, 4  ;;  %s8490_s28 = int_to_ptr.vmem [resolvable:$true] %s3406_s28 }
 0x43c   : > { %v3072_v12 = vmul.f32 %v10456_v39, %v3059_v62  ;;  %v3077_v11 = vmul.f32 %v10457_v6, %v3059_v62  ;;  %v3017_v23 = vadd.f32 %v10458_v60, %v2997_v36  ;;  %v3030_v13 = vadd.f32 %v8018_v58, %v3002_v51  ;;  %v3141_v24 = vpop.permute.xlu1 %3140 }
 0x43d   : > { %v3035_v46 = vadd.f32 %v8022_v56, %v3007_v26  ;;  %v3064_v21 = vadd.f32 %v3062_v32, %v3029_v57  ;;  %v3069_v19 = vadd.f32 %v3067_v9, %v3034_v48  ;;  %v3040_v5 = vadd.f32 %v8026_v47, %v3012_v1  ;;  %v10467_v47 = vld [vmem:[#allocation196_spill] sm:$0xff]  ;;  %v3187_v31 = vpop.permute.xlu0 %3186  ;;  %v10475_v26 = vld [vmem:[#allocation147_spill] sm:$0xff] }
 0x43e   : > { %v3074_v37 = vadd.f32 %v3072_v12, %v3039_v34  ;;  %v3079_v3 = vadd.f32 %v3077_v11, %v3044_v43  ;;  %v3045_v22 = vadd.f32 %v8030_v30, %v3017_v23  ;;  %v3060_v20 = vsel %vm925_vm11, 0.0, %v3056_v42  ;;  %v10476_v1 = vld [vmem:[#allocation148_spill] sm:$0xff] }
 0x43f   : > { %v3107_v59 = vsel %vm974_vm12, %v3102_v27, 0.0  ;;  %v10460_v8 = vmov %v10454_v61  ;;  %v10462_v40 = vmov %v10455_v55  ;;  %v10464_v56 = vmov %v10456_v39  ;;  %v10478_v61 = vld [vmem:[#allocation149_spill] sm:$0xff]  ;;  %v10480_v55 = vld [vmem:[#allocation150_spill] sm:$0xff] }
 0x440   : > { %v3063_v49 = vmul.f32 %v10460_v8, %v3060_v20  ;;  %v3068_v58 = vmul.f32 %v10462_v40, %v3060_v20  ;;  %v3073_v36 = vmul.f32 %v10464_v56, %v3060_v20  ;;  %v10466_v45 = vmov %v10457_v6 }
 0x441   : > { %v3078_v14 = vmul.f32 %v10466_v45, %v3060_v20  ;;  %v3084_v10 = vadd.f32 %v10467_v47, %v3064_v21  ;;  %v3089_v30 = vadd.f32 %v10468_v50, %v3069_v19  ;;  %v3094_v42 = vadd.f32 %v10469_v15, %v3074_v37  ;;  %v3189_v45 = vpop.permute.xlu1 %3188 }
 0x442   : > { %v3099_v35 = vadd.f32 %v10470_v53, %v3079_v3  ;;  %v3065_v27 = vadd.f32 %v3063_v49, %v3030_v13  ;;  %v3070_v44 = vadd.f32 %v3068_v58, %v3035_v46  ;;  %v3075_v2 = vadd.f32 %v3073_v36, %v3040_v5 }
 0x443   : > { %v3080_v17 = vadd.f32 %v3078_v14, %v3045_v22  ;;  %v10471_v16 = vstv %s10459_s1  ;;  %v10472_v48 = vstv %s10461_s4  ;;  %v10473_v62 = vstv %s10463_s23  ;;  %v3263_v14 = vpop.permute.xlu0 %3262  ;;  %s10564_s1 = sld [smem:[#allocation225_spill]] }
 0x444   : > { %v3110_v57 = vmul.f32 %v10471_v16, %v3107_v59  ;;  %v3115_v34 = vmul.f32 %v10472_v48, %v3107_v59  ;;  %v3120_v33 = vmul.f32 %v10473_v62, %v3107_v59  ;;  %v10474_v51 = vstv %s10465_s12  ;;  %s10565_s23 = sld [smem:[#allocation22_spill]]  ;;  %s8506_s12 = scalar_lea.sflag [#allocation3], %s375_s22 }
 0x445   : > { %v3125_v38 = vmul.f32 %v10474_v51, %v3107_v59  ;;  %v3085_v52 = vadd.f32 %v10475_v26, %v3065_v27  ;;  %v3090_v43 = vadd.f32 %v10476_v1, %v3070_v44  ;;  %v3095_v32 = vadd.f32 %v10478_v61, %v3075_v2  ;;  %v10500_v26 = vld [vmem:[#allocation154_spill] sm:$0xff] }
 0x446   : > { %v3100_v9 = vadd.f32 %v10480_v55, %v3080_v17  ;;  %v3112_v39 = vadd.f32 %v3110_v57, %v3084_v10  ;;  %v3117_v12 = vadd.f32 %v3115_v34, %v3089_v30  ;;  %v3122_v6 = vadd.f32 %v3120_v33, %v3094_v42 }
 0x447   : > { %v3127_v11 = vadd.f32 %v3125_v38, %v3099_v35  ;;  %v3108_v60 = vsel %vm974_vm12, %v3104_v54, 0.0  ;;  %v3144_v23 = vsel %vm925_vm11, 0.0, %v3139_v0  ;;  %v3145_v13 = vsel %vm925_vm11, 0.0, %v3141_v24 }
 0x448   : > { %v3192_v46 = vsel %vm974_vm12, %v3187_v31, 0.0  ;;  %v10483_v21 = vmov %v10471_v16  ;;  %v10484_v37 = vmov %v10472_v48  ;;  %v10485_v3 = vmov %v10473_v62  ;;  %v10497_v48 = vld [vmem:[#allocation151_spill] sm:$0xff]  ;;  %v10498_v62 = vld [vmem:[#allocation152_spill] sm:$0xff] }
 0x449   : > { %v3111_v19 = vmul.f32 %v10483_v21, %v3108_v60  ;;  %v3116_v5 = vmul.f32 %v10484_v37, %v3108_v60  ;;  %v3121_v22 = vmul.f32 %v10485_v3, %v3108_v60  ;;  %v10486_v20 = vmov %v10474_v51  ;;  %v10499_v51 = vld [vmem:[#allocation153_spill] sm:$0xff]  ;;  %v3298_v21 = vpop.permute.xlu0 %3297 }
 0x44a   : > { %v3126_v59 = vmul.f32 %v10486_v20, %v3108_v60  ;;  %v10487_v8 = vstv %s10477_s24  ;;  %v10488_v40 = vstv %s10479_s18  ;;  %v10489_v0 = vstv %s10481_s9  ;;  %s4097_s24 = scalar_lea.vmem %s8490_s28, 1024  ;;  %p10566_p11 = scmp.ne.s32.totalorder %s10565_s23, 0 }
 0x44b   : > { %v3147_v49 = vmul.f32 %v10487_v8, %v3144_v23  ;;  %v3152_v54 = vmul.f32 %v10488_v40, %v3144_v23  ;;  %v3157_v58 = vmul.f32 %v10489_v0, %v3144_v23  ;;  %v10490_v56 = vstv %s10482_s6  ;;  %p4098_p8 = scmp.ne.s32.totalorder %s8490_s28, %s4097_s24  ;;  %s4179_s18 = smov [#allocation10]  }
 0x44c   : > { %v3162_v36 = vmul.f32 %v10490_v56, %v3144_v23  ;;  %v3113_v47 = vadd.f32 %v3111_v19, %v3085_v52  ;;  %v3118_v10 = vadd.f32 %v3116_v5, %v3090_v43  ;;  %v3123_v50 = vadd.f32 %v3121_v22, %v3095_v32  ;;  %v10505_v19 = vld [vmem:[#allocation208_spill] sm:$0xff]  ;;  %v10506_v5 = vld [vmem:[#allocation209_spill] sm:$0xff]  ;;  %v10507_v22 = vld [vmem:[#allocation210_spill] sm:$0xff]  ;;  %s4101_s9 = sshll.u32 %s4179_s18, 4  ;;  %s4102_s9 = int_to_ptr.vmem [resolvable:$false] %s4101_s9 }
 0x44d   : > { %v3128_v30 = vadd.f32 %v3126_v59, %v3100_v9  ;;  %v3149_v15 = vadd.f32 %v3147_v49, %v3112_v39  ;;  %v3154_v42 = vadd.f32 %v3152_v54, %v3117_v12  ;;  %v3159_v53 = vadd.f32 %v3157_v58, %v3122_v6  ;;  %v10508_v59 = vld [vmem:[#allocation211_spill] sm:$0xff]  ;;  %p4099_p13 = pnand %p4098_p8, %p10566_p11  ;;  %s4103_s6 = scalar_lea.vmem %s4102_s9, 2048 }
 0x44e   : > { %v3164_v35 = vadd.f32 %v3162_v36, %v3127_v11  ;;  %v10492_v27 = vmov %v10487_v8  ;;  %v10494_v2 = vmov %v10488_v40  ;;  %v10495_v24 = vmov %v10489_v0  ;;  %p4104_p2 = scmp.lt.s32.totalorder %s8490_s28, %s4102_s9  ;;  %p4105_p3 = scmp.lt.s32.totalorder %s4103_s6, %s4097_s24 }
 0x44f   : > { %v3148_v44 = vmul.f32 %v10492_v27, %v3145_v13  ;;  %v3153_v17 = vmul.f32 %v10494_v2, %v3145_v13  ;;  %v3158_v31 = vmul.f32 %v10495_v24, %v3145_v13  ;;  %v10496_v16 = vmov %v10490_v56  ;;  %v10517_v2 = vld [vmem:[#allocation204_spill] sm:$0xff]  ;;  %v10519_v24 = vld [vmem:[#allocation206_spill] sm:$0xff]  ;;  %p4100_p1 = pneg %p4099_p13 }
 0x450   : > { %v3163_v57 = vmul.f32 %v10496_v16, %v3145_v13  ;;  %v3169_v34 = vadd.f32 %v10497_v48, %v3149_v15  ;;  %v3174_v33 = vadd.f32 %v10498_v62, %v3154_v42  ;;  %v3179_v38 = vadd.f32 %v10499_v51, %v3159_v53  ;;  %v3265_v13 = vpop.permute.xlu1 %3264  ;;  %p4106_p4 = por %p4105_p3, %p4104_p2 }
 0x451   : > { %v3184_v52 = vadd.f32 %v10500_v26, %v3164_v35  ;;  %v3150_v1 = vadd.f32 %v3148_v44, %v3113_v47  ;;  %v3155_v43 = vadd.f32 %v3153_v17, %v3118_v10  ;;  %v3160_v61 = vadd.f32 %v3158_v31, %v3123_v50  ;;  %v10518_v17 = vld [vmem:[#allocation205_spill] sm:$0xff] }
 0x452   : > { %v3165_v32 = vadd.f32 %v3163_v57, %v3128_v30  ;;  %v10501_v55 = vstv %s7631_s17  ;;  %v10502_v39 = vstv %s10491_s19  ;;  %v10503_v6 = vstv %s7668_s11  ;;  %s8408_s17 = sld [smem:[#allocation7 + $0x8f]]  ;;  %p4107_p9 = pnand %p4106_p4, %p4100_p1 }
 0x453   : > { %v3195_v9 = vmul.f32 %v10501_v55, %v3192_v46  ;;  %v3200_v12 = vmul.f32 %v10502_v39, %v3192_v46  ;;  %v3205_v11 = vmul.f32 %v10503_v6, %v3192_v46  ;;  %v10504_v60 = vstv %s10493_s3  ;;  %s10525_s11 = sld [smem:[#allocation94_spill]] }
 0x454   : > { %v3210_v23 = vmul.f32 %v10504_v60, %v3192_v46  ;;  %v3170_v37 = vadd.f32 %v10505_v19, %v3150_v1  ;;  %v3175_v3 = vadd.f32 %v10506_v5, %v3155_v43  ;;  %v3180_v20 = vadd.f32 %v10507_v22, %v3160_v61  ;;  %v3300_v62 = vpop.permute.xlu1 %3299  ;;  %v10531_v5 = vld [vmem:[#allocation155_spill] sm:$0xff] }
 0x455   : > { %v3185_v8 = vadd.f32 %v10508_v59, %v3165_v32  ;;  %v3197_v49 = vadd.f32 %v3195_v9, %v3169_v34  ;;  %v3202_v40 = vadd.f32 %v3200_v12, %v3174_v33  ;;  %v3207_v54 = vadd.f32 %v3205_v11, %v3179_v38 }
 0x456   : > { %v3212_v0 = vadd.f32 %v3210_v23, %v3184_v52  ;;  %v3193_v46 = vsel %vm974_vm12, %v3189_v45, 0.0  ;;  %v3268_v58 = vsel %vm974_vm12, %v3263_v14, 0.0  ;;  %v3269_v56 = vsel %vm974_vm12, %v3265_v13, 0.0  ;;  %v10528_v23 = vld [vmem:[#allocation159_spill] sm:$0xff] }
 0x457   : > { %v3303_v36 = vsel %vm925_vm11, 0.0, %v3298_v21  ;;  %v3225_v47 = vadd.f32 %v8250_v29, %v3197_v49  ;;  %v3230_v10 = vadd.f32 %v8254_v41, %v3202_v40  ;;  %v3235_v50 = vadd.f32 %v8258_v28, %v3207_v54  ;;  %v10520_v28 = vld [vmem:[#allocation207_spill] sm:$0xff]  ;;  %v10529_v21 = vld [vmem:[#allocation160_spill] sm:$0xff] }
 0x458   : > { %v3240_v30 = vadd.f32 %v8262_v63, %v3212_v0  ;;  %v10511_v15 = vmov %v10501_v55  ;;  %v10513_v45 = vmov %v10502_v39  ;;  %v10515_v53 = vmov %v10503_v6 }
 0x459   : > { %v3196_v42 = vmul.f32 %v10511_v15, %v3193_v46  ;;  %v3201_v14 = vmul.f32 %v10513_v45, %v3193_v46  ;;  %v3206_v35 = vmul.f32 %v10515_v53, %v3193_v46  ;;  %v10516_v27 = vmov %v10504_v60  ;;  %v3348_v15 = vpop.permute.xlu1 %3347 }
 0x45a   : > { %v3211_v44 = vmul.f32 %v10516_v27, %v3193_v46  ;;  %v3245_v29 = vadd.f32 %v10517_v2, %v3225_v47  ;;  %v3250_v41 = vadd.f32 %v10518_v17, %v3230_v10  ;;  %v3255_v31 = vadd.f32 %v10519_v24, %v3235_v50 }
 0x45b   : > { %v3260_v16 = vadd.f32 %v10520_v28, %v3240_v30  ;;  %v3198_v57 = vadd.f32 %v3196_v42, %v3170_v37  ;;  %v3203_v63 = vadd.f32 %v3201_v14, %v3175_v3  ;;  %v3208_v48 = vadd.f32 %v3206_v35, %v3180_v20  ;;  %v10530_v37 = vld [vmem:[#allocation161_spill] sm:$0xff]  ;;  %v3346_v30 = vpop.permute.xlu0 %3345 }
 0x45c   : > { %v3213_v34 = vadd.f32 %v3211_v44, %v3185_v8  ;;  %v10521_v33 = vstv %s10509_s14  ;;  %v10522_v38 = vstv %s10510_s10  ;;  %v10523_v52 = vstv %s10512_s26 }
 0x45d   : > { %v3271_v51 = vmul.f32 %v10521_v33, %v3268_v58  ;;  %v3276_v26 = vmul.f32 %v10522_v38, %v3268_v58  ;;  %v3281_v1 = vmul.f32 %v10523_v52, %v3268_v58  ;;  %v10524_v43 = vstv %s10514_s0 }
 0x45e   : > { %v3286_v61 = vmul.f32 %v10524_v43, %v3268_v58  ;;  %v3226_v32 = vadd.f32 %v8274_v25, %v3198_v57  ;;  %v3231_v55 = vadd.f32 %v8278_v7, %v3203_v63  ;;  %v3236_v9 = vadd.f32 %v8282_v4, %v3208_v48 }
 0x45f   : > { %v3241_v39 = vadd.f32 %v8286_v18, %v3213_v34  ;;  %v3273_v12 = vadd.f32 %v3271_v51, %v3245_v29  ;;  %v3278_v6 = vadd.f32 %v3276_v26, %v3250_v41  ;;  %v3283_v11 = vadd.f32 %v3281_v1, %v3255_v31  ;;  %v10548_v34 = vld [vmem:[#allocation156_spill] sm:$0xff] }
 0x460   : > { %v3288_v60 = vadd.f32 %v3286_v61, %v3260_v16  ;;  %v3246_v13 = vadd.f32 %v10528_v23, %v3226_v32  ;;  %v3251_v19 = vadd.f32 %v10529_v21, %v3231_v55  ;;  %v3256_v25 = vadd.f32 %v10530_v37, %v3236_v9 }
 0x461   : > { %v3261_v7 = vadd.f32 %v10531_v5, %v3241_v39  ;;  %v10533_v3 = vmov %v10521_v33  ;;  %v10534_v4 = vmov %v10522_v38  ;;  %v10535_v59 = vmov %v10523_v52  ;;  %v10549_v33 = vld [vmem:[#allocation157_spill] sm:$0xff]  ;;  %v10550_v38 = vld [vmem:[#allocation158_spill] sm:$0xff] }
 0x462   : > { %v3272_v22 = vmul.f32 %v10533_v3, %v3269_v56  ;;  %v3277_v20 = vmul.f32 %v10534_v4, %v3269_v56  ;;  %v3282_v18 = vmul.f32 %v10535_v59, %v3269_v56  ;;  %v10536_v8 = vmov %v10524_v43  ;;  %v10551_v52 = vld [vmem:[#allocation162_spill] sm:$0xff] }
 0x463   : > { %v3287_v49 = vmul.f32 %v10536_v8, %v3269_v56  ;;  %v10537_v40 = vstv %s10525_s11  ;;  %v10538_v0 = vstv %s10526_s29  ;;  %v10539_v58 = vstv %s10527_s30 }
 0x464   : > { %v3306_v54 = vmul.f32 %v10537_v40, %v3303_v36  ;;  %v3311_v46 = vmul.f32 %v10538_v0, %v3303_v36  ;;  %v3316_v47 = vmul.f32 %v10539_v58, %v3303_v36  ;;  %v10540_v10 = vstv %s7732_s21  ;;  %s10554_s21 = sld [smem:[#allocation19_spill]] }
 0x465   : > { %v3321_v50 = vmul.f32 %v10540_v10, %v3303_v36  ;;  %v3274_v42 = vadd.f32 %v3272_v22, %v3246_v13  ;;  %v3279_v45 = vadd.f32 %v3277_v20, %v3251_v19  ;;  %v3284_v14 = vadd.f32 %v3282_v18, %v3256_v25  ;;  %v10556_v13 = vld [vmem:[#allocation163_spill] sm:$0xff]  ;;  %v10558_v19 = vld [vmem:[#allocation164_spill] sm:$0xff]  ;;  %v10559_v25 = vld [vmem:[#allocation165_spill] sm:$0xff] }
 0x466   : > { %v3289_v56 = vadd.f32 %v3287_v49, %v3261_v7  ;;  %v3308_v53 = vadd.f32 %v3306_v54, %v3273_v12  ;;  %v3313_v35 = vadd.f32 %v3311_v46, %v3278_v6  ;;  %v3318_v27 = vadd.f32 %v3316_v47, %v3283_v11  ;;  %v10560_v7 = vld [vmem:[#allocation166_spill] sm:$0xff] }
 0x467   : > { %v3323_v44 = vadd.f32 %v3321_v50, %v3288_v60  ;;  %v3304_v2 = vsel %vm925_vm11, 0.0, %v3300_v62  ;;  %v3368_v29 = vstv %s8408_s17  ;;  %v3351_v36 = vsel %vm974_vm12, %v3346_v30, 0.0  ;;  %v4031_v30 = vld [vmem:[%s10557_s13 + $0x20] sm:$0xff] }
 0x468   : > { %v3352_v17 = vsel %vm974_vm12, %v3348_v15, 0.0  ;;  %v10543_v41 = vmov %v10537_v40  ;;  %v10545_v31 = vmov %v10538_v0  ;;  %v10546_v16 = vmov %v10539_v58  ;;  %v4029_v58 = vld [vmem:[%s10557_s13] sm:$0xff] }
 0x469   : > { %v3307_v24 = vmul.f32 %v10543_v41, %v3304_v2  ;;  %v3312_v28 = vmul.f32 %v10545_v31, %v3304_v2  ;;  %v3317_v57 = vmul.f32 %v10546_v16, %v3304_v2  ;;  %v10547_v63 = vmov %v10540_v10  ;;  %v4030_v10 = vld [vmem:[%s10557_s13 + $0x10] sm:$0xff]  ;;  %v4036_v41 = vld [vmem:[%s10557_s13 + $0x38] sm:$0xff] }
 0x46a   : > { %v3322_v48 = vmul.f32 %v10547_v63, %v3304_v2  ;;  %v3328_v62 = vadd.f32 %v10548_v34, %v3308_v53  ;;  %v3333_v51 = vadd.f32 %v10549_v33, %v3313_v35  ;;  %v3338_v26 = vadd.f32 %v10550_v38, %v3318_v27  ;;  %s3860_s7 = sshll.u32 %s10554_s21, 10  ;;  %v4033_v27 = vld [vmem:[%s10557_s13 + $0x8] sm:$0xff]  ;;  %v4034_v2 = vld [vmem:[%s10557_s13 + $0x18] sm:$0xff] }
 0x46b   : > { %v3343_v1 = vadd.f32 %v10551_v52, %v3323_v44  ;;  %v3309_v43 = vadd.f32 %v3307_v24, %v3274_v42  ;;  %v3314_v61 = vadd.f32 %v3312_v28, %v3279_v45  ;;  %v3319_v32 = vadd.f32 %v3317_v57, %v3284_v14  ;;  %v4032_v42 = vld [vmem:[%s10557_s13 + $0x30] sm:$0xff]  ;;  %s8488_s4 = scalar_lea.hbm %s10564_s1, %s3860_s7 }
 0x46c   : > { %v3324_v55 = vadd.f32 %v3322_v48, %v3289_v56  ;;  %v10552_v9 = vstv %s10541_s16  ;;  %v10553_v12 = vstv %s10542_s5  ;;  %v10555_v11 = vstv %s10544_s15 }
 0x46d   : > { %v3354_v39 = vmul.f32 %v10552_v9, %v3351_v36  ;;  %v3359_v6 = vmul.f32 %v10553_v12, %v3351_v36  ;;  %v3364_v60 = vmul.f32 %v10555_v11, %v3351_v36  ;;  %v3369_v23 = vmul.f32 %v3368_v29, %v3351_v36  ;;  %v4035_v36 = vld [vmem:[%s10557_s13 + $0x28] sm:$0xff] }
 0x46e   : > { %v3329_v21 = vadd.f32 %v10556_v13, %v3309_v43  ;;  %v3334_v37 = vadd.f32 %v10558_v19, %v3314_v61  ;;  %v3339_v5 = vadd.f32 %v10559_v25, %v3319_v32  ;;  %v3344_v3 = vadd.f32 %v10560_v7, %v3324_v55 }
 0x46f   : > { %v3356_v22 = vadd.f32 %v3354_v39, %v3328_v62  ;;  %v3361_v4 = vadd.f32 %v3359_v6, %v3333_v51  ;;  %v3366_v20 = vadd.f32 %v3364_v60, %v3338_v26  ;;  %v3371_v59 = vadd.f32 %v3369_v23, %v3343_v1 }
 0x470   : > { %v10561_v18 = vmov %v10552_v9  ;;  %v10562_v49 = vmov %v10553_v12  ;;  %v10563_v54 = vmov %v10555_v11  ;;  %v3370_v46 = vmul.f32 %v3368_v29, %v3352_v17 }
 0x471   : > { %v3355_v8 = vmul.f32 %v10561_v18, %v3352_v17  ;;  %v3360_v40 = vmul.f32 %v10562_v49, %v3352_v17  ;;  %v3365_v0 = vmul.f32 %v10563_v54, %v3352_v17  ;;  %v3373_v47 = vadd.f32 %v4029_v58, %v3356_v22 }
 0x472   : > { %v3377_v50 = vadd.f32 %v4030_v10, %v3361_v4  ;;  %v3382_v15 = vadd.f32 %v4031_v30, %v3366_v20  ;;  %v3387_v45 = vadd.f32 %v4032_v42, %v3371_v59  ;;  %v3372_v35 = vadd.f32 %v3370_v46, %v3344_v3 }
 0x473   : > { %v3357_v14 = vadd.f32 %v3355_v8, %v3329_v21  ;;  %v3362_v56 = vadd.f32 %v3360_v40, %v3334_v37  ;;  %v3367_v53 = vadd.f32 %v3365_v0, %v3339_v5  ;;  %3375 = vst.msk [vmem:[%s8470_s8] sm:$0xff] %vm399_vm0, %v3373_v47 }
 0x474   : > { %3848 = vst.msk [vmem:[%s8470_s8 + $0x10] sm:$0xff] %vm399_vm0, %v3377_v50  ;;  %3850 = vst.msk [vmem:[%s8470_s8 + $0x20] sm:$0xff] %vm399_vm0, %v3382_v15  ;;  %v3388_v24 = vadd.f32 %v4036_v41, %v3372_v35 }
 0x475   : > { %3852 = vst.msk [vmem:[%s8470_s8 + $0x30] sm:$0xff] %vm399_vm0, %v3387_v45  ;;  %v3374_v44 = vadd.f32 %v4033_v27, %v3357_v14  ;;  %v3378_v29 = vadd.f32 %v4034_v2, %v3362_v56  ;;  %v3383_v17 = vadd.f32 %v4035_v36, %v3367_v53 }
 0x476   : > { %3853 = vst.msk [vmem:[%s8470_s8 + $0x38] sm:$0xff] %vm399_vm0, %v3388_v24 }
 0x477   : > { %3376 = vst.msk [vmem:[%s8470_s8 + $0x8] sm:$0xff] %vm399_vm0, %v3374_v44  ;;  %3849 = vst.msk [vmem:[%s8470_s8 + $0x18] sm:$0xff] %vm399_vm0, %v3378_v29 }
 0x478   : > { %3851 = vst.msk [vmem:[%s8470_s8 + $0x28] sm:$0xff] %vm399_vm0, %v3383_v17 }
 0x479   : > { %4110 = shalt.err (!%p4107_p9)
}
 0x47a   : > { %s4111_s19 = scalar_lea.hbm %s8488_s4, 1024  ;;  %s4115_s10 = scalar_lea.hbm %s10564_s1, 2048 }
 0x47b   : > { %p4112_p7 = scmp.ne.s32.totalorder %s8488_s4, %s4111_s19  ;;  %p4116_p6 = scmp.lt.s32.totalorder %s8488_s4, %s10564_s1 }
 0x47c   : > { %p4117_p12 = scmp.lt.s32.totalorder %s4115_s10, %s4111_s19 }
 0x47d   : > { %p4113_p0 = pnand %p4112_p7, %p10566_p11 }
 0x47e   : > { %p4118_p10 = por %p4117_p12, %p4116_p6 }
 0x47f   : > { %p4114_p5 = pneg %p4113_p0 }
 0x481   : > { %p4119_p8 = pnand %p4118_p10, %p4114_p5 }
 0x483   : > { %4122 = shalt.err (!%p4119_p8)
}
 0x484   : > { %s4180_s17 = smov 128   ;;  %s4181_s11 = smov 8  }
 0x485   : > { %3877 = dma.vmem_to_hbm [thread:$0]  (%p10566_p11), %s8490_s28, 1024, %s8488_s4, %s8506_s12, %s4180_s17, %s4180_s17, %s4181_s11  }
 0x486 PF: > { %s10567_s29 = sld [smem:[#allocation18_spill]] }
 0x487   : > { %s10568_s30 = sld [smem:[#allocation15_spill]] }
 0x488   : > { %s10569_s27 = sld [smem:[#allocation23_spill]] }
 0x48c   : > { %p3904_p13 = scmp.ge.s32.totalorder %s10567_s29, 2 }
 0x48d   : > { %s3421_s22 = sand.u32 1, %s10568_s30  }
 0x48e   : > { %p10570_p1 = scmp.ne.s32.totalorder %s10569_s27, 0  ;;  %s3422_s16 = scalar_lea.sflag [#allocation3], %s3421_s22 }
 0x490   : > { %p3893_p2 = pnand %p3904_p13, %p10570_p1 }
 0x492   : > { %p3894_p3 = pneg %p3893_p2 }
 0x494   : > { %4152 = dma.done.wait (%p3894_p3), %s3422_s16, 1024  }
 0x495   : > { %4154 = vsyncadd (%p3894_p3), %s3422_s16, 4294966272  ;;  %s10571_s12 = sld [smem:[#allocation20_spill]] }
 0x496   : > { %s10572_s30 = sld [smem:[#allocation16_spill]] }
 0x497   : > { %s10573_s10 = sld [smem:[#allocation17_spill]] }
 0x498   : > { %s10574_s11 = sld [smem:[#allocation21_spill]] }
 0x49b   : > { %p22_p4 = scmp.ge.s32.totalorder %s10571_s12, 4  }
 0x49d   :  { %24 = sbr.rel (!%p22_p4) target bundleno = 17 (0x11), region = 111 }
 0x4a2   :  { %3427 = vsyncpa [#allocation3], 1 }
 0x4a3   :  { %3429 = vsyncpa [#allocation3 + $0x1], 1 }
 0x4a4   :  { %3430 = vsyncpa [#allocation4], 1 }
 0x4a5   :  { %3432 = vsyncpa [#allocation4 + $0x1], 1 }
 0x4a6   :  { %3433 = vsyncpa [#allocation6], 1 }
 0x4a7   :  { %3434 = vsyncpa [#allocation9], 1 }

</bundles_post_ra>
